<compile_context>
chip_gen: v7x
topology: tpu7x:2x2x1
jax: 0.10.0
libtpu: 0.0.40
codegen_flags: <defaults>
</compile_context>

<pallas_src>
import math

import jax
import jax.numpy as jnp
from jax import lax
from jax.experimental import pallas as pl
from jax.experimental.pallas import tpu as pltpu

RGB = 3   # output channels of the final decode stage
UP = 4    # total nearest-upsample factor (2x per stage, two upsampling stages)


# ------------------------------- fused kernel --------------------------------

def _decoder_kernel(shift_ref, l_ref, r_ref, *refs):
    (wqkv1, wo1, wl1, bl1, wr1, br1,
     wqkv2, wo2, wl2, bl2, wr2, br2,
     wqkv3, wo3, wl3, bl3, wr3, br3,
     lo_ref, ro_ref) = refs

    Rb, W, C = l_ref.shape
    bf = jnp.bfloat16

    # ---- left_to_right + residual add (fused; shift is scalar-prefetched) ----
    # shifted[r, v, c] = l[r, v - shift, c], zero-filled outside [0, W).
    # Expressed as a tiny batched matmul with a dynamically built 0/1 selection
    # matrix so it goes through the standard dot_general path; rows with no
    # matching source column stay zero (negative shift handled correctly).
    shift = shift_ref[0]
    vi = lax.broadcasted_iota(jnp.int32, (W, W), 0)       # output column index
    wi = lax.broadcasted_iota(jnp.int32, (W, W), 1)       # source column index
    sel = (wi == (vi - shift)).astype(jnp.float32)        # (W, W) 0/1
    sel_b = jnp.broadcast_to(sel[None], (Rb, W, W))
    l = l_ref[...]
    shifted = jnp.einsum("rvw,rwc->rvc", sel_b, l,
                         preferred_element_type=jnp.float32)
    r = r_ref[...] + shifted                               # yr_quant

    x = jnp.concatenate([l, r], axis=0)                    # (2Rb, W, C) [left; right]

    def sam(x, wqkv, wo):
        """Cross-view width attention. Q/K/V merged into one matmul and the two
        views stacked: 4 MXU launches per SAM block."""
        n2 = x.shape[0]
        n = n2 // 2
        x2 = x.reshape(n2 * W, C).astype(bf)
        qkv = jnp.dot(x2, wqkv, preferred_element_type=jnp.float32).astype(bf)
        q = qkv[:, :C].reshape(n2, W, C)                   # 1/sqrt(C) folded into Wq
        k = qkv[:, C:2 * C].reshape(n2, W, C)
        v = qkv[:, 2 * C:].reshape(n2, W, C)
        # cross view: left queries attend right K/V, right queries attend left K/V
        kx = jnp.concatenate([k[n:], k[:n]], axis=0)
        vx = jnp.concatenate([v[n:], v[:n]], axis=0)
        s = jnp.einsum("bqc,bkc->bqk", q, kx, preferred_element_type=jnp.float32)
        s = s - jnp.max(s, axis=-1, keepdims=True)         # softmax in f32
        p = jnp.exp(s)
        inv = pl.reciprocal(jnp.sum(p, axis=-1, keepdims=True), approx=True)
        a = (p * inv).astype(bf)
        att = jnp.einsum("bqk,bkc->bqc", a, vx, preferred_element_type=jnp.float32)
        out = jnp.dot(att.reshape(n2 * W, C).astype(bf), wo,
                      preferred_element_type=jnp.float32).reshape(n2, W, C)
        return x + out                                     # residual, f32

    def dual_conv(x, wl, bl, wr, br):
        """Per-view 1x1 conv (channel matmul) + bias; returns flat (n*W, Cout)."""
        n = x.shape[0] // 2
        xl2 = x[:n].reshape(n * W, C).astype(bf)
        xr2 = x[n:].reshape(n * W, C).astype(bf)
        yl = jnp.dot(xl2, wl, preferred_element_type=jnp.float32) + bl
        yr = jnp.dot(xr2, wr, preferred_element_type=jnp.float32) + br
        return yl, yr

    def lrelu(y):
        return jnp.where(y > 0, y, 0.01 * y)

    def restack(yl, yr):
        return jnp.concatenate([yl.reshape(Rb, W, C), yr.reshape(Rb, W, C)], axis=0)

    # stage 1: SAM + 1x1 conv + LeakyReLU (2x nearest upsample deferred exactly)
    x = sam(x, wqkv1[...], wo1[...])
    yl, yr = dual_conv(x, wl1[...], bl1[...], wr1[...], br1[...])
    x = restack(lrelu(yl), lrelu(yr))
    # stage 2
    x = sam(x, wqkv2[...], wo2[...])
    yl, yr = dual_conv(x, wl2[...], bl2[...], wr2[...], br2[...])
    x = restack(lrelu(yl), lrelu(yr))
    # stage 3: SAM + conv to RGB + clamp. Conv weights are pre-tiled 4x along
    # the output-channel dim, so column j*3+c of the matmul already carries the
    # horizontally duplicated pixel (w-dup of the nearest upsample).
    x = sam(x, wqkv3[...], wo3[...])
    yl, yr = dual_conv(x, wl3[...], bl3[...], wr3[...], br3[...])

    def emit(y, out_ref):
        img = jnp.clip(y, 0.0, 1.0).reshape(Rb, W, UP * RGB)
        # vertical duplication: ONE broadcast store into all UP row-copies.
        out_ref[...] = jnp.broadcast_to(img[:, None, :, :], (Rb, UP, W, UP * RGB))

    emit(yl, lo_ref)
    emit(yr, ro_ref)


# ------------------------------ wrapper / glue --------------------------------

def fused_decoder(yl, yr_res, shift, packed, n_blocks=1):
    """Whole decoder in one pallas_call.  n_blocks splits the B*H rows across
    the (parallel) grid: keep 1 on single-TC v5e/v6e, try 2 on dual-TC v7x."""
    B, H, W, C = yl.shape
    R = B * H
    assert R % n_blocks == 0, "row count must split evenly across grid blocks"
    Rb = R // n_blocks
    cout = packed["s3"]["wl"].shape[1]
    assert cout == UP * RGB

    feat_spec = pl.BlockSpec((Rb, W, C), lambda i, s: (i, 0, 0))

    def full_spec(a):
        return pl.BlockSpec(a.shape, lambda i, s: (0, 0))

    weights, w_specs = [], []
    for st in ("s1", "s2", "s3"):
        p = packed[st]
        for nm in ("wqkv", "wo", "wl", "bl", "wr", "br"):
            weights.append(p[nm])
            w_specs.append(full_spec(p[nm]))

    out_spec = pl.BlockSpec((Rb, UP, W, cout), lambda i, s: (i, 0, 0, 0))
    out_shape = (jax.ShapeDtypeStruct((R, UP, W, cout), jnp.float32),) * 2

    shift_arr = jnp.asarray(shift, jnp.int32).reshape(1)

    lo, ro = pl.pallas_call(
        _decoder_kernel,
        out_shape=out_shape,
        grid_spec=pltpu.PrefetchScalarGridSpec(
            num_scalar_prefetch=1,
            grid=(n_blocks,),
            in_specs=[feat_spec, feat_spec] + w_specs,
            out_specs=[out_spec, out_spec],
        ),
        compiler_params=pltpu.CompilerParams(
            dimension_semantics=("parallel",)),
    )(shift_arr, yl.reshape(R, W, C), yr_res.reshape(R, W, C), *weights)

    # (R, UP, W, UP*RGB) has exactly the memory order of (B, UP*H, UP*W, RGB):
    # the reshape is free metadata, no transpose / extra kernel.
    xl = lo.reshape(B, UP * H, UP * W, RGB)
    xr = ro.reshape(B, UP * H, UP * W, RGB)
    return xl, xr


def decoder_forward(packed_params, yl_quant, yr_quant_res, shift):
    x_hat_left, x_hat_right = fused_decoder(yl_quant, yr_quant_res, shift,
                                            packed_params)
    return x_hat_left, x_hat_right, shift


# ----------------------------- parameter handling -----------------------------

def init_params(key, C, c_img=RGB):
    """Synthesized sub-module weights (stand-in for the external trained model)."""
    def dense(k, cin, cout, scale=0.08):
        kw, kb = jax.random.split(k)
        return {"w": scale * jax.random.normal(kw, (cin, cout), jnp.float32),
                "b": scale * jax.random.normal(kb, (cout,), jnp.float32)}

    def sam_p(k, c, scale=0.08):
        ks = jax.random.split(k, 4)
        return {n: scale * jax.random.normal(kk, (c, c), jnp.float32)
                for n, kk in zip(("wq", "wk", "wv", "wo"), ks)}

    keys = jax.random.split(key, 9)
    return {
        "sam1": sam_p(keys[0], C), "sam2": sam_p(keys[1], C), "sam3": sam_p(keys[2], C),
        "dec_l1": dense(keys[3], C, C), "dec_r1": dense(keys[4], C, C),
        "dec_l2": dense(keys[5], C, C), "dec_r2": dense(keys[6], C, C),
        "dec_l3": dense(keys[7], C, c_img), "dec_r3": dense(keys[8], C, c_img),
    }


def prepare_params(params, C):
    """One-time weight transform for the kernel:
    - fold 1/sqrt(C) into Wq, concatenate Wq|Wk|Wv into one (C, 3C) matrix,
    - pre-cast matmul weights to bf16 (biases stay f32),
    - tile the final RGB conv 4x along the output channel (horizontal dup)."""
    bf = jnp.bfloat16
    scale = 1.0 / math.sqrt(C)

    def sam_pack(p):
        wqkv = jnp.concatenate([p["wq"] * scale, p["wk"], p["wv"]], axis=1)
        return wqkv.astype(bf), p["wo"].astype(bf)

    def dec_pack(p, dup):
        w, b = p["w"], p["b"].reshape(1, -1)
        if dup > 1:
            w, b = jnp.tile(w, (1, dup)), jnp.tile(b, (1, dup))
        return w.astype(bf), b.astype(jnp.float32)

    packed = {}
    for i, st in ((1, "s1"), (2, "s2"), (3, "s3")):
        dup = UP if i == 3 else 1
        wqkv, wo = sam_pack(params[f"sam{i}"])
        wl, bl = dec_pack(params[f"dec_l{i}"], dup)
        wr, br = dec_pack(params[f"dec_r{i}"], dup)
        packed[st] = {"wqkv": wqkv, "wo": wo, "wl": wl, "bl": bl, "wr": wr, "br": br}
    return packed


# -------------------------- pure-JAX staged reference -------------------------

def _reference_decoder(params, yl, yr_res, shift):
    """Plain-JAX reference with the explicit staged structure (SAM -> conv ->
    LeakyReLU -> 2x upsample per stage).  Used to validate the fused kernel
    (including the exact upsample-commutation restructuring)."""
    def l2r(y, s):
        Wd = y.shape[2]
        rolled = jnp.roll(y, s, axis=2)
        keep = (jnp.arange(Wd) >= s)[None, None, :, None]
        return jnp.where(keep, rolled, 0.0)

    def sam(sp, l, r):
        scale = 1.0 / math.sqrt(l.shape[-1])
        def attend(q_src, kv_src):
            q, k, v = q_src @ sp["wq"], kv_src @ sp["wk"], kv_src @ sp["wv"]
            s = jnp.einsum("bhqc,bhkc->bhqk", q, k) * scale
            a = jax.nn.softmax(s, axis=-1)
            return jnp.einsum("bhqk,bhkc->bhqc", a, v) @ sp["wo"]
        return l + attend(l, r), r + attend(r, l)

    def conv(p, x):
        return x @ p["w"] + p["b"]

    def up2(x):
        B, H, Wd, C = x.shape
        x = jnp.broadcast_to(x[:, :, None, :, None, :], (B, H, 2, Wd, 2, C))
        return x.reshape(B, 2 * H, 2 * Wd, C)

    def lrelu(x):
        return jnp.where(x > 0, x, 0.01 * x)

    yr = yr_res + l2r(yl, shift)
    l, r = sam(params["sam1"], yl, yr)
    l, r = up2(lrelu(conv(params["dec_l1"], l))), up2(lrelu(conv(params["dec_r1"], r)))
    l, r = sam(params["sam2"], l, r)
    l, r = up2(lrelu(conv(params["dec_l2"], l))), up2(lrelu(conv(params["dec_r2"], r)))
    l, r = sam(params["sam3"], l, r)
    xl = jnp.clip(conv(params["dec_l3"], l), 0.0, 1.0)
    xr = jnp.clip(conv(params["dec_r3"], r), 0.0, 1.0)
    return xl, xr


# ----------------------------------- main --------------------------------------

if __name__ == "__main__":
    key = jax.random.PRNGKey(0)
    k_l, k_r, k_p = jax.random.split(key, 3)

    B, H, W, C = 2, 8, 8, 32                   # latent shapes (NHWC)
    yl_quant = jax.random.normal(k_l, (B, H, W, C), jnp.float32)
    yr_quant_res = jax.random.normal(k_r, (B, H, W, C), jnp.float32)
    shift = jnp.int32(2)

    params = init_params(k_p, C)
    packed = prepare_params(params, C)

    fwd = jax.jit(decoder_forward)
    x_hat_left, x_hat_right, shift_out = fwd(packed, yl_quant, yr_quant_res, shift)
    jax.block_until_ready((x_hat_left, x_hat_right, shift_out))

    assert x_hat_left.shape == (B, UP * H, UP * W, RGB)
    assert x_hat_right.shape == (B, UP * H, UP * W, RGB)
    assert float(x_hat_left.min()) >= 0.0 and float(x_hat_left.max()) <= 1.0
    assert float(x_hat_right.min()) >= 0.0 and float(x_hat_right.max()) <= 1.0

    # validate against the plain-JAX staged reference (bf16 matmuls + approx
    # reciprocal in the kernel -> loose tolerance)
    ref_l, ref_r = jax.jit(_reference_decoder)(params, yl_quant, yr_quant_res, shift)
    err = max(float(jnp.max(jnp.abs(x_hat_left - ref_l))),
              float(jnp.max(jnp.abs(x_hat_right - ref_r))))
    assert err < 1e-1, f"kernel deviates from reference by {err}"

    print("KERNEL_OK")
</pallas_src>

<mosaic_0001>
module attributes {stable_mosaic.version = 11 : i64} {
  func.func @_decoder_kernel(%arg0: i32, %arg1: memref<1xi32, #tpu.memory_space<smem>>, %arg2: memref<16x8x32xf32, #tpu.memory_space<vmem>>, %arg3: memref<16x8x32xf32, #tpu.memory_space<vmem>>, %arg4: memref<32x96xbf16, #tpu.memory_space<vmem>>, %arg5: memref<32x32xbf16, #tpu.memory_space<vmem>>, %arg6: memref<32x32xbf16, #tpu.memory_space<vmem>>, %arg7: memref<1x32xf32, #tpu.memory_space<vmem>>, %arg8: memref<32x32xbf16, #tpu.memory_space<vmem>>, %arg9: memref<1x32xf32, #tpu.memory_space<vmem>>, %arg10: memref<32x96xbf16, #tpu.memory_space<vmem>>, %arg11: memref<32x32xbf16, #tpu.memory_space<vmem>>, %arg12: memref<32x32xbf16, #tpu.memory_space<vmem>>, %arg13: memref<1x32xf32, #tpu.memory_space<vmem>>, %arg14: memref<32x32xbf16, #tpu.memory_space<vmem>>, %arg15: memref<1x32xf32, #tpu.memory_space<vmem>>, %arg16: memref<32x96xbf16, #tpu.memory_space<vmem>>, %arg17: memref<32x32xbf16, #tpu.memory_space<vmem>>, %arg18: memref<32x12xbf16, #tpu.memory_space<vmem>>, %arg19: memref<1x12xf32, #tpu.memory_space<vmem>>, %arg20: memref<32x12xbf16, #tpu.memory_space<vmem>>, %arg21: memref<1x12xf32, #tpu.memory_space<vmem>>, %arg22: memref<16x4x8x12xf32, #tpu.memory_space<vmem>>, %arg23: memref<16x4x8x12xf32, #tpu.memory_space<vmem>>) attributes {dimension_semantics = [#tpu.dimension_semantics<parallel>], iteration_bounds = array<i64: 1>, scalar_prefetch = 1 : i64, scratch_operands = 0 : i64, tpu.core_type = #tpu.core_type<tc>, window_params = [{transform_indices = @transform_0, window_bounds = array<i64: 16, 8, 32>}, {transform_indices = @transform_1, window_bounds = array<i64: 16, 8, 32>}, {pipeline_mode = #tpu.pipeline_mode<synchronous>, transform_indices = @transform_2, window_bounds = array<i64: 32, 96>}, {pipeline_mode = #tpu.pipeline_mode<synchronous>, transform_indices = @transform_3, window_bounds = array<i64: 32, 32>}, {pipeline_mode = #tpu.pipeline_mode<synchronous>, transform_indices = @transform_4, window_bounds = array<i64: 32, 32>}, {pipeline_mode = #tpu.pipeline_mode<synchronous>, transform_indices = @transform_5, window_bounds = array<i64: 1, 32>}, {pipeline_mode = #tpu.pipeline_mode<synchronous>, transform_indices = @transform_6, window_bounds = array<i64: 32, 32>}, {pipeline_mode = #tpu.pipeline_mode<synchronous>, transform_indices = @transform_7, window_bounds = array<i64: 1, 32>}, {pipeline_mode = #tpu.pipeline_mode<synchronous>, transform_indices = @transform_8, window_bounds = array<i64: 32, 96>}, {pipeline_mode = #tpu.pipeline_mode<synchronous>, transform_indices = @transform_9, window_bounds = array<i64: 32, 32>}, {pipeline_mode = #tpu.pipeline_mode<synchronous>, transform_indices = @transform_10, window_bounds = array<i64: 32, 32>}, {pipeline_mode = #tpu.pipeline_mode<synchronous>, transform_indices = @transform_11, window_bounds = array<i64: 1, 32>}, {pipeline_mode = #tpu.pipeline_mode<synchronous>, transform_indices = @transform_12, window_bounds = array<i64: 32, 32>}, {pipeline_mode = #tpu.pipeline_mode<synchronous>, transform_indices = @transform_13, window_bounds = array<i64: 1, 32>}, {pipeline_mode = #tpu.pipeline_mode<synchronous>, transform_indices = @transform_14, window_bounds = array<i64: 32, 96>}, {pipeline_mode = #tpu.pipeline_mode<synchronous>, transform_indices = @transform_15, window_bounds = array<i64: 32, 32>}, {pipeline_mode = #tpu.pipeline_mode<synchronous>, transform_indices = @transform_16, window_bounds = array<i64: 32, 12>}, {pipeline_mode = #tpu.pipeline_mode<synchronous>, transform_indices = @transform_17, window_bounds = array<i64: 1, 12>}, {pipeline_mode = #tpu.pipeline_mode<synchronous>, transform_indices = @transform_18, window_bounds = array<i64: 32, 12>}, {pipeline_mode = #tpu.pipeline_mode<synchronous>, transform_indices = @transform_19, window_bounds = array<i64: 1, 12>}, {transform_indices = @transform_20, window_bounds = array<i64: 16, 4, 8, 12>}, {transform_indices = @transform_21, window_bounds = array<i64: 16, 4, 8, 12>}]} {
    %c0 = arith.constant 0 : index
    %0 = memref.load %arg1[%c0] : memref<1xi32, #tpu.memory_space<smem>>
    %1 = tpu.iota {dimensions = array<i32: 0>} : vector<8x8xi32>
    %2 = tpu.iota {dimensions = array<i32: 1>} : vector<8x8xi32>
    %3 = vector.broadcast %0 : i32 to vector<8x8xi32>
    %4 = arith.subi %1, %3 : vector<8x8xi32>
    %5 = arith.cmpi eq, %2, %4 : vector<8x8xi32>
    %6 = arith.extui %5 : vector<8x8xi1> to vector<8x8xi32>
    %7 = arith.sitofp %6 : vector<8x8xi32> to vector<8x8xf32>
    %8 = vector.shape_cast %7 : vector<8x8xf32> to vector<1x8x8xf32>
    %9 = vector.shape_cast %8 : vector<1x8x8xf32> to vector<1x8x8xf32>
    %10 = vector.broadcast %9 : vector<1x8x8xf32> to vector<16x8x8xf32>
    %c0_0 = arith.constant 0 : index
    %c0_1 = arith.constant 0 : index
    %c0_2 = arith.constant 0 : index
    %11 = vector.load %arg2[%c0_0, %c0_1, %c0_2] : memref<16x8x32xf32, #tpu.memory_space<vmem>>, vector<16x8x32xf32>
    "tpu.trace_start"() <{level = 10 : i32, message = "rvw,rwc->rvc"}> : () -> ()
    %cst = arith.constant dense<0.000000e+00> : vector<16x8x32xf32>
    %12 = tpu.matmul %10, %11, %cst {dimension_numbers = #tpu.dot_dimension_numbers<[2], [1], [1], [2], [0, 0, 0, 1, 1, 2], [0], [0]>} : vector<16x8x8xf32>, vector<16x8x32xf32>, vector<16x8x32xf32> -> vector<16x8x32xf32>
    "tpu.trace_stop"() : () -> ()
    %c0_3 = arith.constant 0 : index
    %c0_4 = arith.constant 0 : index
    %c0_5 = arith.constant 0 : index
    %13 = vector.load %arg3[%c0_3, %c0_4, %c0_5] : memref<16x8x32xf32, #tpu.memory_space<vmem>>, vector<16x8x32xf32>
    %14 = arith.addf %13, %12 : vector<16x8x32xf32>
    %15 = tpu.concatenate %11, %14 in 0 : vector<16x8x32xf32>, vector<16x8x32xf32> -> vector<32x8x32xf32>
    %c0_6 = arith.constant 0 : index
    %c0_7 = arith.constant 0 : index
    %16 = vector.load %arg4[%c0_6, %c0_7] : memref<32x96xbf16, #tpu.memory_space<vmem>>, vector<32x96xbf16>
    %c0_8 = arith.constant 0 : index
    %c0_9 = arith.constant 0 : index
    %17 = vector.load %arg5[%c0_8, %c0_9] : memref<32x32xbf16, #tpu.memory_space<vmem>>, vector<32x32xbf16>
    %18 = vector.shape_cast %15 : vector<32x8x32xf32> to vector<256x32xf32>
    %19 = arith.truncf %18 : vector<256x32xf32> to vector<256x32xbf16>
    %cst_10 = arith.constant dense<0.000000e+00> : vector<256x96xf32>
    %20 = tpu.matmul %19, %16, %cst_10 {dimension_numbers = #tpu.dot_dimension_numbers<[1], [0], [0], [1], [0, 0, 1, 1], [], []>} : vector<256x32xbf16>, vector<32x96xbf16>, vector<256x96xf32> -> vector<256x96xf32>
    %21 = arith.truncf %20 : vector<256x96xf32> to vector<256x96xbf16>
    %22 = vector.extract_strided_slice %21 {offsets = [0, 0], sizes = [256, 32], strides = [1, 1]} : vector<256x96xbf16> to vector<256x32xbf16>
    %23 = vector.shape_cast %22 : vector<256x32xbf16> to vector<32x8x32xbf16>
    %24 = vector.extract_strided_slice %21 {offsets = [0, 32], sizes = [256, 32], strides = [1, 1]} : vector<256x96xbf16> to vector<256x32xbf16>
    %25 = vector.shape_cast %24 : vector<256x32xbf16> to vector<32x8x32xbf16>
    %26 = vector.extract_strided_slice %21 {offsets = [0, 64], sizes = [256, 32], strides = [1, 1]} : vector<256x96xbf16> to vector<256x32xbf16>
    %27 = vector.shape_cast %26 : vector<256x32xbf16> to vector<32x8x32xbf16>
    %28 = vector.extract_strided_slice %25 {offsets = [16, 0, 0], sizes = [16, 8, 32], strides = [1, 1, 1]} : vector<32x8x32xbf16> to vector<16x8x32xbf16>
    %29 = vector.extract_strided_slice %25 {offsets = [0, 0, 0], sizes = [16, 8, 32], strides = [1, 1, 1]} : vector<32x8x32xbf16> to vector<16x8x32xbf16>
    %30 = tpu.concatenate %28, %29 in 0 : vector<16x8x32xbf16>, vector<16x8x32xbf16> -> vector<32x8x32xbf16>
    %31 = vector.extract_strided_slice %27 {offsets = [16, 0, 0], sizes = [16, 8, 32], strides = [1, 1, 1]} : vector<32x8x32xbf16> to vector<16x8x32xbf16>
    %32 = vector.extract_strided_slice %27 {offsets = [0, 0, 0], sizes = [16, 8, 32], strides = [1, 1, 1]} : vector<32x8x32xbf16> to vector<16x8x32xbf16>
    %33 = tpu.concatenate %31, %32 in 0 : vector<16x8x32xbf16>, vector<16x8x32xbf16> -> vector<32x8x32xbf16>
    "tpu.trace_start"() <{level = 10 : i32, message = "bqc,bkc->bqk"}> : () -> ()
    %cst_11 = arith.constant dense<0.000000e+00> : vector<32x8x8xf32>
    %34 = tpu.matmul %23, %30, %cst_11 {dimension_numbers = #tpu.dot_dimension_numbers<[2], [2], [1], [1], [0, 0, 0, 1, 1, 1], [0], [0]>} : vector<32x8x32xbf16>, vector<32x8x32xbf16>, vector<32x8x8xf32> -> vector<32x8x8xf32>
    "tpu.trace_stop"() : () -> ()
    %cst_12 = arith.constant dense<0xFF800000> : vector<32x8xf32>
    %35 = vector.multi_reduction <maximumf>, %34, %cst_12 [2] : vector<32x8x8xf32> to vector<32x8xf32>
    %36 = vector.shape_cast %35 : vector<32x8xf32> to vector<32x8x1xf32>
    %37 = vector.broadcast %36 : vector<32x8x1xf32> to vector<32x8x8xf32>
    %38 = arith.subf %34, %37 : vector<32x8x8xf32>
    %39 = math.exp %38 : vector<32x8x8xf32>
    %cst_13 = arith.constant dense<0.000000e+00> : vector<32x8xf32>
    %40 = vector.multi_reduction <add>, %39, %cst_13 [2] : vector<32x8x8xf32> to vector<32x8xf32>
    %41 = vector.shape_cast %40 : vector<32x8xf32> to vector<32x8x1xf32>
    %42 = tpu.reciprocal %41 {approx = true} : vector<32x8x1xf32> -> vector<32x8x1xf32>
    %43 = vector.broadcast %42 : vector<32x8x1xf32> to vector<32x8x8xf32>
    %44 = arith.mulf %39, %43 : vector<32x8x8xf32>
    %45 = arith.truncf %44 : vector<32x8x8xf32> to vector<32x8x8xbf16>
    "tpu.trace_start"() <{level = 10 : i32, message = "bqk,bkc->bqc"}> : () -> ()
    %cst_14 = arith.constant dense<0.000000e+00> : vector<32x8x32xf32>
    %46 = tpu.matmul %45, %33, %cst_14 {dimension_numbers = #tpu.dot_dimension_numbers<[2], [1], [1], [2], [0, 0, 0, 1, 1, 2], [0], [0]>} : vector<32x8x8xbf16>, vector<32x8x32xbf16>, vector<32x8x32xf32> -> vector<32x8x32xf32>
    "tpu.trace_stop"() : () -> ()
    %47 = vector.shape_cast %46 : vector<32x8x32xf32> to vector<256x32xf32>
    %48 = arith.truncf %47 : vector<256x32xf32> to vector<256x32xbf16>
    %cst_15 = arith.constant dense<0.000000e+00> : vector<256x32xf32>
    %49 = tpu.matmul %48, %17, %cst_15 {dimension_numbers = #tpu.dot_dimension_numbers<[1], [0], [0], [1], [0, 0, 1, 1], [], []>} : vector<256x32xbf16>, vector<32x32xbf16>, vector<256x32xf32> -> vector<256x32xf32>
    %50 = vector.shape_cast %49 : vector<256x32xf32> to vector<32x8x32xf32>
    %51 = arith.addf %15, %50 : vector<32x8x32xf32>
    %c0_16 = arith.constant 0 : index
    %c0_17 = arith.constant 0 : index
    %52 = vector.load %arg6[%c0_16, %c0_17] : memref<32x32xbf16, #tpu.memory_space<vmem>>, vector<32x32xbf16>
    %c0_18 = arith.constant 0 : index
    %c0_19 = arith.constant 0 : index
    %53 = vector.load %arg7[%c0_18, %c0_19] : memref<1x32xf32, #tpu.memory_space<vmem>>, vector<1x32xf32>
    %c0_20 = arith.constant 0 : index
    %c0_21 = arith.constant 0 : index
    %54 = vector.load %arg8[%c0_20, %c0_21] : memref<32x32xbf16, #tpu.memory_space<vmem>>, vector<32x32xbf16>
    %c0_22 = arith.constant 0 : index
    %c0_23 = arith.constant 0 : index
    %55 = vector.load %arg9[%c0_22, %c0_23] : memref<1x32xf32, #tpu.memory_space<vmem>>, vector<1x32xf32>
    %56 = vector.extract_strided_slice %51 {offsets = [0, 0, 0], sizes = [16, 8, 32], strides = [1, 1, 1]} : vector<32x8x32xf32> to vector<16x8x32xf32>
    %57 = vector.shape_cast %56 : vector<16x8x32xf32> to vector<128x32xf32>
    %58 = arith.truncf %57 : vector<128x32xf32> to vector<128x32xbf16>
    %59 = vector.extract_strided_slice %51 {offsets = [16, 0, 0], sizes = [16, 8, 32], strides = [1, 1, 1]} : vector<32x8x32xf32> to vector<16x8x32xf32>
    %60 = vector.shape_cast %59 : vector<16x8x32xf32> to vector<128x32xf32>
    %61 = arith.truncf %60 : vector<128x32xf32> to vector<128x32xbf16>
    %cst_24 = arith.constant dense<0.000000e+00> : vector<128x32xf32>
    %62 = tpu.matmul %58, %52, %cst_24 {dimension_numbers = #tpu.dot_dimension_numbers<[1], [0], [0], [1], [0, 0, 1, 1], [], []>} : vector<128x32xbf16>, vector<32x32xbf16>, vector<128x32xf32> -> vector<128x32xf32>
    %63 = vector.broadcast %53 : vector<1x32xf32> to vector<128x32xf32>
    %64 = arith.addf %62, %63 : vector<128x32xf32>
    %cst_25 = arith.constant dense<0.000000e+00> : vector<128x32xf32>
    %65 = tpu.matmul %61, %54, %cst_25 {dimension_numbers = #tpu.dot_dimension_numbers<[1], [0], [0], [1], [0, 0, 1, 1], [], []>} : vector<128x32xbf16>, vector<32x32xbf16>, vector<128x32xf32> -> vector<128x32xf32>
    %66 = vector.broadcast %55 : vector<1x32xf32> to vector<128x32xf32>
    %67 = arith.addf %65, %66 : vector<128x32xf32>
    %cst_26 = arith.constant 0.000000e+00 : f32
    %68 = vector.broadcast %cst_26 : f32 to vector<128x32xf32>
    %69 = arith.cmpf ogt, %64, %68 : vector<128x32xf32>
    %cst_27 = arith.constant 0.00999999977 : f32
    %70 = vector.broadcast %cst_27 : f32 to vector<128x32xf32>
    %71 = arith.mulf %70, %64 : vector<128x32xf32>
    %72 = arith.select %69, %64, %71 : vector<128x32xi1>, vector<128x32xf32>
    %cst_28 = arith.constant 0.000000e+00 : f32
    %73 = vector.broadcast %cst_28 : f32 to vector<128x32xf32>
    %74 = arith.cmpf ogt, %67, %73 : vector<128x32xf32>
    %cst_29 = arith.constant 0.00999999977 : f32
    %75 = vector.broadcast %cst_29 : f32 to vector<128x32xf32>
    %76 = arith.mulf %75, %67 : vector<128x32xf32>
    %77 = arith.select %74, %67, %76 : vector<128x32xi1>, vector<128x32xf32>
    %78 = vector.shape_cast %72 : vector<128x32xf32> to vector<16x8x32xf32>
    %79 = vector.shape_cast %77 : vector<128x32xf32> to vector<16x8x32xf32>
    %80 = tpu.concatenate %78, %79 in 0 : vector<16x8x32xf32>, vector<16x8x32xf32> -> vector<32x8x32xf32>
    %c0_30 = arith.constant 0 : index
    %c0_31 = arith.constant 0 : index
    %81 = vector.load %arg10[%c0_30, %c0_31] : memref<32x96xbf16, #tpu.memory_space<vmem>>, vector<32x96xbf16>
    %c0_32 = arith.constant 0 : index
    %c0_33 = arith.constant 0 : index
    %82 = vector.load %arg11[%c0_32, %c0_33] : memref<32x32xbf16, #tpu.memory_space<vmem>>, vector<32x32xbf16>
    %83 = vector.shape_cast %80 : vector<32x8x32xf32> to vector<256x32xf32>
    %84 = arith.truncf %83 : vector<256x32xf32> to vector<256x32xbf16>
    %cst_34 = arith.constant dense<0.000000e+00> : vector<256x96xf32>
    %85 = tpu.matmul %84, %81, %cst_34 {dimension_numbers = #tpu.dot_dimension_numbers<[1], [0], [0], [1], [0, 0, 1, 1], [], []>} : vector<256x32xbf16>, vector<32x96xbf16>, vector<256x96xf32> -> vector<256x96xf32>
    %86 = arith.truncf %85 : vector<256x96xf32> to vector<256x96xbf16>
    %87 = vector.extract_strided_slice %86 {offsets = [0, 0], sizes = [256, 32], strides = [1, 1]} : vector<256x96xbf16> to vector<256x32xbf16>
    %88 = vector.shape_cast %87 : vector<256x32xbf16> to vector<32x8x32xbf16>
    %89 = vector.extract_strided_slice %86 {offsets = [0, 32], sizes = [256, 32], strides = [1, 1]} : vector<256x96xbf16> to vector<256x32xbf16>
    %90 = vector.shape_cast %89 : vector<256x32xbf16> to vector<32x8x32xbf16>
    %91 = vector.extract_strided_slice %86 {offsets = [0, 64], sizes = [256, 32], strides = [1, 1]} : vector<256x96xbf16> to vector<256x32xbf16>
    %92 = vector.shape_cast %91 : vector<256x32xbf16> to vector<32x8x32xbf16>
    %93 = vector.extract_strided_slice %90 {offsets = [16, 0, 0], sizes = [16, 8, 32], strides = [1, 1, 1]} : vector<32x8x32xbf16> to vector<16x8x32xbf16>
    %94 = vector.extract_strided_slice %90 {offsets = [0, 0, 0], sizes = [16, 8, 32], strides = [1, 1, 1]} : vector<32x8x32xbf16> to vector<16x8x32xbf16>
    %95 = tpu.concatenate %93, %94 in 0 : vector<16x8x32xbf16>, vector<16x8x32xbf16> -> vector<32x8x32xbf16>
    %96 = vector.extract_strided_slice %92 {offsets = [16, 0, 0], sizes = [16, 8, 32], strides = [1, 1, 1]} : vector<32x8x32xbf16> to vector<16x8x32xbf16>
    %97 = vector.extract_strided_slice %92 {offsets = [0, 0, 0], sizes = [16, 8, 32], strides = [1, 1, 1]} : vector<32x8x32xbf16> to vector<16x8x32xbf16>
    %98 = tpu.concatenate %96, %97 in 0 : vector<16x8x32xbf16>, vector<16x8x32xbf16> -> vector<32x8x32xbf16>
    "tpu.trace_start"() <{level = 10 : i32, message = "bqc,bkc->bqk"}> : () -> ()
    %cst_35 = arith.constant dense<0.000000e+00> : vector<32x8x8xf32>
    %99 = tpu.matmul %88, %95, %cst_35 {dimension_numbers = #tpu.dot_dimension_numbers<[2], [2], [1], [1], [0, 0, 0, 1, 1, 1], [0], [0]>} : vector<32x8x32xbf16>, vector<32x8x32xbf16>, vector<32x8x8xf32> -> vector<32x8x8xf32>
    "tpu.trace_stop"() : () -> ()
    %cst_36 = arith.constant dense<0xFF800000> : vector<32x8xf32>
    %100 = vector.multi_reduction <maximumf>, %99, %cst_36 [2] : vector<32x8x8xf32> to vector<32x8xf32>
    %101 = vector.shape_cast %100 : vector<32x8xf32> to vector<32x8x1xf32>
    %102 = vector.broadcast %101 : vector<32x8x1xf32> to vector<32x8x8xf32>
    %103 = arith.subf %99, %102 : vector<32x8x8xf32>
    %104 = math.exp %103 : vector<32x8x8xf32>
    %cst_37 = arith.constant dense<0.000000e+00> : vector<32x8xf32>
    %105 = vector.multi_reduction <add>, %104, %cst_37 [2] : vector<32x8x8xf32> to vector<32x8xf32>
    %106 = vector.shape_cast %105 : vector<32x8xf32> to vector<32x8x1xf32>
    %107 = tpu.reciprocal %106 {approx = true} : vector<32x8x1xf32> -> vector<32x8x1xf32>
    %108 = vector.broadcast %107 : vector<32x8x1xf32> to vector<32x8x8xf32>
    %109 = arith.mulf %104, %108 : vector<32x8x8xf32>
    %110 = arith.truncf %109 : vector<32x8x8xf32> to vector<32x8x8xbf16>
    "tpu.trace_start"() <{level = 10 : i32, message = "bqk,bkc->bqc"}> : () -> ()
    %cst_38 = arith.constant dense<0.000000e+00> : vector<32x8x32xf32>
    %111 = tpu.matmul %110, %98, %cst_38 {dimension_numbers = #tpu.dot_dimension_numbers<[2], [1], [1], [2], [0, 0, 0, 1, 1, 2], [0], [0]>} : vector<32x8x8xbf16>, vector<32x8x32xbf16>, vector<32x8x32xf32> -> vector<32x8x32xf32>
    "tpu.trace_stop"() : () -> ()
    %112 = vector.shape_cast %111 : vector<32x8x32xf32> to vector<256x32xf32>
    %113 = arith.truncf %112 : vector<256x32xf32> to vector<256x32xbf16>
    %cst_39 = arith.constant dense<0.000000e+00> : vector<256x32xf32>
    %114 = tpu.matmul %113, %82, %cst_39 {dimension_numbers = #tpu.dot_dimension_numbers<[1], [0], [0], [1], [0, 0, 1, 1], [], []>} : vector<256x32xbf16>, vector<32x32xbf16>, vector<256x32xf32> -> vector<256x32xf32>
    %115 = vector.shape_cast %114 : vector<256x32xf32> to vector<32x8x32xf32>
    %116 = arith.addf %80, %115 : vector<32x8x32xf32>
    %c0_40 = arith.constant 0 : index
    %c0_41 = arith.constant 0 : index
    %117 = vector.load %arg12[%c0_40, %c0_41] : memref<32x32xbf16, #tpu.memory_space<vmem>>, vector<32x32xbf16>
    %c0_42 = arith.constant 0 : index
    %c0_43 = arith.constant 0 : index
    %118 = vector.load %arg13[%c0_42, %c0_43] : memref<1x32xf32, #tpu.memory_space<vmem>>, vector<1x32xf32>
    %c0_44 = arith.constant 0 : index
    %c0_45 = arith.constant 0 : index
    %119 = vector.load %arg14[%c0_44, %c0_45] : memref<32x32xbf16, #tpu.memory_space<vmem>>, vector<32x32xbf16>
    %c0_46 = arith.constant 0 : index
    %c0_47 = arith.constant 0 : index
    %120 = vector.load %arg15[%c0_46, %c0_47] : memref<1x32xf32, #tpu.memory_space<vmem>>, vector<1x32xf32>
    %121 = vector.extract_strided_slice %116 {offsets = [0, 0, 0], sizes = [16, 8, 32], strides = [1, 1, 1]} : vector<32x8x32xf32> to vector<16x8x32xf32>
    %122 = vector.shape_cast %121 : vector<16x8x32xf32> to vector<128x32xf32>
    %123 = arith.truncf %122 : vector<128x32xf32> to vector<128x32xbf16>
    %124 = vector.extract_strided_slice %116 {offsets = [16, 0, 0], sizes = [16, 8, 32], strides = [1, 1, 1]} : vector<32x8x32xf32> to vector<16x8x32xf32>
    %125 = vector.shape_cast %124 : vector<16x8x32xf32> to vector<128x32xf32>
    %126 = arith.truncf %125 : vector<128x32xf32> to vector<128x32xbf16>
    %cst_48 = arith.constant dense<0.000000e+00> : vector<128x32xf32>
    %127 = tpu.matmul %123, %117, %cst_48 {dimension_numbers = #tpu.dot_dimension_numbers<[1], [0], [0], [1], [0, 0, 1, 1], [], []>} : vector<128x32xbf16>, vector<32x32xbf16>, vector<128x32xf32> -> vector<128x32xf32>
    %128 = vector.broadcast %118 : vector<1x32xf32> to vector<128x32xf32>
    %129 = arith.addf %127, %128 : vector<128x32xf32>
    %cst_49 = arith.constant dense<0.000000e+00> : vector<128x32xf32>
    %130 = tpu.matmul %126, %119, %cst_49 {dimension_numbers = #tpu.dot_dimension_numbers<[1], [0], [0], [1], [0, 0, 1, 1], [], []>} : vector<128x32xbf16>, vector<32x32xbf16>, vector<128x32xf32> -> vector<128x32xf32>
    %131 = vector.broadcast %120 : vector<1x32xf32> to vector<128x32xf32>
    %132 = arith.addf %130, %131 : vector<128x32xf32>
    %cst_50 = arith.constant 0.000000e+00 : f32
    %133 = vector.broadcast %cst_50 : f32 to vector<128x32xf32>
    %134 = arith.cmpf ogt, %129, %133 : vector<128x32xf32>
    %cst_51 = arith.constant 0.00999999977 : f32
    %135 = vector.broadcast %cst_51 : f32 to vector<128x32xf32>
    %136 = arith.mulf %135, %129 : vector<128x32xf32>
    %137 = arith.select %134, %129, %136 : vector<128x32xi1>, vector<128x32xf32>
    %cst_52 = arith.constant 0.000000e+00 : f32
    %138 = vector.broadcast %cst_52 : f32 to vector<128x32xf32>
    %139 = arith.cmpf ogt, %132, %138 : vector<128x32xf32>
    %cst_53 = arith.constant 0.00999999977 : f32
    %140 = vector.broadcast %cst_53 : f32 to vector<128x32xf32>
    %141 = arith.mulf %140, %132 : vector<128x32xf32>
    %142 = arith.select %139, %132, %141 : vector<128x32xi1>, vector<128x32xf32>
    %143 = vector.shape_cast %137 : vector<128x32xf32> to vector<16x8x32xf32>
    %144 = vector.shape_cast %142 : vector<128x32xf32> to vector<16x8x32xf32>
    %145 = tpu.concatenate %143, %144 in 0 : vector<16x8x32xf32>, vector<16x8x32xf32> -> vector<32x8x32xf32>
    %c0_54 = arith.constant 0 : index
    %c0_55 = arith.constant 0 : index
    %146 = vector.load %arg16[%c0_54, %c0_55] : memref<32x96xbf16, #tpu.memory_space<vmem>>, vector<32x96xbf16>
    %c0_56 = arith.constant 0 : index
    %c0_57 = arith.constant 0 : index
    %147 = vector.load %arg17[%c0_56, %c0_57] : memref<32x32xbf16, #tpu.memory_space<vmem>>, vector<32x32xbf16>
    %148 = vector.shape_cast %145 : vector<32x8x32xf32> to vector<256x32xf32>
    %149 = arith.truncf %148 : vector<256x32xf32> to vector<256x32xbf16>
    %cst_58 = arith.constant dense<0.000000e+00> : vector<256x96xf32>
    %150 = tpu.matmul %149, %146, %cst_58 {dimension_numbers = #tpu.dot_dimension_numbers<[1], [0], [0], [1], [0, 0, 1, 1], [], []>} : vector<256x32xbf16>, vector<32x96xbf16>, vector<256x96xf32> -> vector<256x96xf32>
    %151 = arith.truncf %150 : vector<256x96xf32> to vector<256x96xbf16>
    %152 = vector.extract_strided_slice %151 {offsets = [0, 0], sizes = [256, 32], strides = [1, 1]} : vector<256x96xbf16> to vector<256x32xbf16>
    %153 = vector.shape_cast %152 : vector<256x32xbf16> to vector<32x8x32xbf16>
    %154 = vector.extract_strided_slice %151 {offsets = [0, 32], sizes = [256, 32], strides = [1, 1]} : vector<256x96xbf16> to vector<256x32xbf16>
    %155 = vector.shape_cast %154 : vector<256x32xbf16> to vector<32x8x32xbf16>
    %156 = vector.extract_strided_slice %151 {offsets = [0, 64], sizes = [256, 32], strides = [1, 1]} : vector<256x96xbf16> to vector<256x32xbf16>
    %157 = vector.shape_cast %156 : vector<256x32xbf16> to vector<32x8x32xbf16>
    %158 = vector.extract_strided_slice %155 {offsets = [16, 0, 0], sizes = [16, 8, 32], strides = [1, 1, 1]} : vector<32x8x32xbf16> to vector<16x8x32xbf16>
    %159 = vector.extract_strided_slice %155 {offsets = [0, 0, 0], sizes = [16, 8, 32], strides = [1, 1, 1]} : vector<32x8x32xbf16> to vector<16x8x32xbf16>
    %160 = tpu.concatenate %158, %159 in 0 : vector<16x8x32xbf16>, vector<16x8x32xbf16> -> vector<32x8x32xbf16>
    %161 = vector.extract_strided_slice %157 {offsets = [16, 0, 0], sizes = [16, 8, 32], strides = [1, 1, 1]} : vector<32x8x32xbf16> to vector<16x8x32xbf16>
    %162 = vector.extract_strided_slice %157 {offsets = [0, 0, 0], sizes = [16, 8, 32], strides = [1, 1, 1]} : vector<32x8x32xbf16> to vector<16x8x32xbf16>
    %163 = tpu.concatenate %161, %162 in 0 : vector<16x8x32xbf16>, vector<16x8x32xbf16> -> vector<32x8x32xbf16>
    "tpu.trace_start"() <{level = 10 : i32, message = "bqc,bkc->bqk"}> : () -> ()
    %cst_59 = arith.constant dense<0.000000e+00> : vector<32x8x8xf32>
    %164 = tpu.matmul %153, %160, %cst_59 {dimension_numbers = #tpu.dot_dimension_numbers<[2], [2], [1], [1], [0, 0, 0, 1, 1, 1], [0], [0]>} : vector<32x8x32xbf16>, vector<32x8x32xbf16>, vector<32x8x8xf32> -> vector<32x8x8xf32>
    "tpu.trace_stop"() : () -> ()
    %cst_60 = arith.constant dense<0xFF800000> : vector<32x8xf32>
    %165 = vector.multi_reduction <maximumf>, %164, %cst_60 [2] : vector<32x8x8xf32> to vector<32x8xf32>
    %166 = vector.shape_cast %165 : vector<32x8xf32> to vector<32x8x1xf32>
    %167 = vector.broadcast %166 : vector<32x8x1xf32> to vector<32x8x8xf32>
    %168 = arith.subf %164, %167 : vector<32x8x8xf32>
    %169 = math.exp %168 : vector<32x8x8xf32>
    %cst_61 = arith.constant dense<0.000000e+00> : vector<32x8xf32>
    %170 = vector.multi_reduction <add>, %169, %cst_61 [2] : vector<32x8x8xf32> to vector<32x8xf32>
    %171 = vector.shape_cast %170 : vector<32x8xf32> to vector<32x8x1xf32>
    %172 = tpu.reciprocal %171 {approx = true} : vector<32x8x1xf32> -> vector<32x8x1xf32>
    %173 = vector.broadcast %172 : vector<32x8x1xf32> to vector<32x8x8xf32>
    %174 = arith.mulf %169, %173 : vector<32x8x8xf32>
    %175 = arith.truncf %174 : vector<32x8x8xf32> to vector<32x8x8xbf16>
    "tpu.trace_start"() <{level = 10 : i32, message = "bqk,bkc->bqc"}> : () -> ()
    %cst_62 = arith.constant dense<0.000000e+00> : vector<32x8x32xf32>
    %176 = tpu.matmul %175, %163, %cst_62 {dimension_numbers = #tpu.dot_dimension_numbers<[2], [1], [1], [2], [0, 0, 0, 1, 1, 2], [0], [0]>} : vector<32x8x8xbf16>, vector<32x8x32xbf16>, vector<32x8x32xf32> -> vector<32x8x32xf32>
    "tpu.trace_stop"() : () -> ()
    %177 = vector.shape_cast %176 : vector<32x8x32xf32> to vector<256x32xf32>
    %178 = arith.truncf %177 : vector<256x32xf32> to vector<256x32xbf16>
    %cst_63 = arith.constant dense<0.000000e+00> : vector<256x32xf32>
    %179 = tpu.matmul %178, %147, %cst_63 {dimension_numbers = #tpu.dot_dimension_numbers<[1], [0], [0], [1], [0, 0, 1, 1], [], []>} : vector<256x32xbf16>, vector<32x32xbf16>, vector<256x32xf32> -> vector<256x32xf32>
    %180 = vector.shape_cast %179 : vector<256x32xf32> to vector<32x8x32xf32>
    %181 = arith.addf %145, %180 : vector<32x8x32xf32>
    %c0_64 = arith.constant 0 : index
    %c0_65 = arith.constant 0 : index
    %182 = vector.load %arg18[%c0_64, %c0_65] : memref<32x12xbf16, #tpu.memory_space<vmem>>, vector<32x12xbf16>
    %c0_66 = arith.constant 0 : index
    %c0_67 = arith.constant 0 : index
    %183 = vector.load %arg19[%c0_66, %c0_67] : memref<1x12xf32, #tpu.memory_space<vmem>>, vector<1x12xf32>
    %c0_68 = arith.constant 0 : index
    %c0_69 = arith.constant 0 : index
    %184 = vector.load %arg20[%c0_68, %c0_69] : memref<32x12xbf16, #tpu.memory_space<vmem>>, vector<32x12xbf16>
    %c0_70 = arith.constant 0 : index
    %c0_71 = arith.constant 0 : index
    %185 = vector.load %arg21[%c0_70, %c0_71] : memref<1x12xf32, #tpu.memory_space<vmem>>, vector<1x12xf32>
    %186 = vector.extract_strided_slice %181 {offsets = [0, 0, 0], sizes = [16, 8, 32], strides = [1, 1, 1]} : vector<32x8x32xf32> to vector<16x8x32xf32>
    %187 = vector.shape_cast %186 : vector<16x8x32xf32> to vector<128x32xf32>
    %188 = arith.truncf %187 : vector<128x32xf32> to vector<128x32xbf16>
    %189 = vector.extract_strided_slice %181 {offsets = [16, 0, 0], sizes = [16, 8, 32], strides = [1, 1, 1]} : vector<32x8x32xf32> to vector<16x8x32xf32>
    %190 = vector.shape_cast %189 : vector<16x8x32xf32> to vector<128x32xf32>
    %191 = arith.truncf %190 : vector<128x32xf32> to vector<128x32xbf16>
    %cst_72 = arith.constant dense<0.000000e+00> : vector<128x12xf32>
    %192 = tpu.matmul %188, %182, %cst_72 {dimension_numbers = #tpu.dot_dimension_numbers<[1], [0], [0], [1], [0, 0, 1, 1], [], []>} : vector<128x32xbf16>, vector<32x12xbf16>, vector<128x12xf32> -> vector<128x12xf32>
    %193 = vector.broadcast %183 : vector<1x12xf32> to vector<128x12xf32>
    %194 = arith.addf %192, %193 : vector<128x12xf32>
    %cst_73 = arith.constant dense<0.000000e+00> : vector<128x12xf32>
    %195 = tpu.matmul %191, %184, %cst_73 {dimension_numbers = #tpu.dot_dimension_numbers<[1], [0], [0], [1], [0, 0, 1, 1], [], []>} : vector<128x32xbf16>, vector<32x12xbf16>, vector<128x12xf32> -> vector<128x12xf32>
    %196 = vector.broadcast %185 : vector<1x12xf32> to vector<128x12xf32>
    %197 = arith.addf %195, %196 : vector<128x12xf32>
    %cst_74 = arith.constant 0.000000e+00 : f32
    %cst_75 = arith.constant 1.000000e+00 : f32
    %198 = vector.broadcast %cst_74 : f32 to vector<128x12xf32>
    %199 = arith.maximumf %198, %194 : vector<128x12xf32>
    %200 = vector.broadcast %cst_75 : f32 to vector<128x12xf32>
    %201 = arith.minimumf %200, %199 : vector<128x12xf32>
    %202 = vector.shape_cast %201 : vector<128x12xf32> to vector<16x8x12xf32>
    %203 = vector.shape_cast %202 : vector<16x8x12xf32> to vector<16x1x8x12xf32>
    %204 = vector.shape_cast %203 : vector<16x1x8x12xf32> to vector<16x1x8x12xf32>
    %205 = vector.broadcast %204 : vector<16x1x8x12xf32> to vector<16x4x8x12xf32>
    %c0_76 = arith.constant 0 : index
    %c0_77 = arith.constant 0 : index
    %c0_78 = arith.constant 0 : index
    %c0_79 = arith.constant 0 : index
    %206 = vector.load %arg22[%c0_76, %c0_77, %c0_78, %c0_79] : memref<16x4x8x12xf32, #tpu.memory_space<vmem>>, vector<16x4x8x12xf32>
    tpu.vector_store %arg22[%c0_76, %c0_77, %c0_78, %c0_79], %205 {strides = array<i32>} : memref<16x4x8x12xf32, #tpu.memory_space<vmem>>, vector<16x4x8x12xf32>,
    %cst_80 = arith.constant 0.000000e+00 : f32
    %cst_81 = arith.constant 1.000000e+00 : f32
    %207 = vector.broadcast %cst_80 : f32 to vector<128x12xf32>
    %208 = arith.maximumf %207, %197 : vector<128x12xf32>
    %209 = vector.broadcast %cst_81 : f32 to vector<128x12xf32>
    %210 = arith.minimumf %209, %208 : vector<128x12xf32>
    %211 = vector.shape_cast %210 : vector<128x12xf32> to vector<16x8x12xf32>
    %212 = vector.shape_cast %211 : vector<16x8x12xf32> to vector<16x1x8x12xf32>
    %213 = vector.shape_cast %212 : vector<16x1x8x12xf32> to vector<16x1x8x12xf32>
    %214 = vector.broadcast %213 : vector<16x1x8x12xf32> to vector<16x4x8x12xf32>
    %c0_82 = arith.constant 0 : index
    %c0_83 = arith.constant 0 : index
    %c0_84 = arith.constant 0 : index
    %c0_85 = arith.constant 0 : index
    %215 = vector.load %arg23[%c0_82, %c0_83, %c0_84, %c0_85] : memref<16x4x8x12xf32, #tpu.memory_space<vmem>>, vector<16x4x8x12xf32>
    tpu.vector_store %arg23[%c0_82, %c0_83, %c0_84, %c0_85], %214 {strides = array<i32>} : memref<16x4x8x12xf32, #tpu.memory_space<vmem>>, vector<16x4x8x12xf32>,
    return
  }
  func.func @transform_0(%arg0: i32, %arg1: memref<1xi32, #tpu.memory_space<smem>>) -> (i32, i32, i32) {
    %c0_i32 = arith.constant 0 : i32
    %c0_i32_0 = arith.constant 0 : i32
    %c0_i32_1 = arith.constant 0 : i32
    return %arg0, %c0_i32, %c0_i32_0 : i32, i32, i32
  }
  func.func @transform_1(%arg0: i32, %arg1: memref<1xi32, #tpu.memory_space<smem>>) -> (i32, i32, i32) {
    %c0_i32 = arith.constant 0 : i32
    %c0_i32_0 = arith.constant 0 : i32
    %c0_i32_1 = arith.constant 0 : i32
    return %arg0, %c0_i32, %c0_i32_0 : i32, i32, i32
  }
  func.func @transform_2(%arg0: i32, %arg1: memref<1xi32, #tpu.memory_space<smem>>) -> (i32, i32) {
    %c0_i32 = arith.constant 0 : i32
    %c0_i32_0 = arith.constant 0 : i32
    %c0_i32_1 = arith.constant 0 : i32
    return %c0_i32, %c0_i32_0 : i32, i32
  }
  func.func @transform_3(%arg0: i32, %arg1: memref<1xi32, #tpu.memory_space<smem>>) -> (i32, i32) {
    %c0_i32 = arith.constant 0 : i32
    %c0_i32_0 = arith.constant 0 : i32
    %c0_i32_1 = arith.constant 0 : i32
    return %c0_i32, %c0_i32_0 : i32, i32
  }
  func.func @transform_4(%arg0: i32, %arg1: memref<1xi32, #tpu.memory_space<smem>>) -> (i32, i32) {
    %c0_i32 = arith.constant 0 : i32
    %c0_i32_0 = arith.constant 0 : i32
    %c0_i32_1 = arith.constant 0 : i32
    return %c0_i32, %c0_i32_0 : i32, i32
  }
  func.func @transform_5(%arg0: i32, %arg1: memref<1xi32, #tpu.memory_space<smem>>) -> (i32, i32) {
    %c0_i32 = arith.constant 0 : i32
    %c0_i32_0 = arith.constant 0 : i32
    %c0_i32_1 = arith.constant 0 : i32
    return %c0_i32, %c0_i32_0 : i32, i32
  }
  func.func @transform_6(%arg0: i32, %arg1: memref<1xi32, #tpu.memory_space<smem>>) -> (i32, i32) {
    %c0_i32 = arith.constant 0 : i32
    %c0_i32_0 = arith.constant 0 : i32
    %c0_i32_1 = arith.constant 0 : i32
    return %c0_i32, %c0_i32_0 : i32, i32
  }
  func.func @transform_7(%arg0: i32, %arg1: memref<1xi32, #tpu.memory_space<smem>>) -> (i32, i32) {
    %c0_i32 = arith.constant 0 : i32
    %c0_i32_0 = arith.constant 0 : i32
    %c0_i32_1 = arith.constant 0 : i32
    return %c0_i32, %c0_i32_0 : i32, i32
  }
  func.func @transform_8(%arg0: i32, %arg1: memref<1xi32, #tpu.memory_space<smem>>) -> (i32, i32) {
    %c0_i32 = arith.constant 0 : i32
    %c0_i32_0 = arith.constant 0 : i32
    %c0_i32_1 = arith.constant 0 : i32
    return %c0_i32, %c0_i32_0 : i32, i32
  }
  func.func @transform_9(%arg0: i32, %arg1: memref<1xi32, #tpu.memory_space<smem>>) -> (i32, i32) {
    %c0_i32 = arith.constant 0 : i32
    %c0_i32_0 = arith.constant 0 : i32
    %c0_i32_1 = arith.constant 0 : i32
    return %c0_i32, %c0_i32_0 : i32, i32
  }
  func.func @transform_10(%arg0: i32, %arg1: memref<1xi32, #tpu.memory_space<smem>>) -> (i32, i32) {
    %c0_i32 = arith.constant 0 : i32
    %c0_i32_0 = arith.constant 0 : i32
    %c0_i32_1 = arith.constant 0 : i32
    return %c0_i32, %c0_i32_0 : i32, i32
  }
  func.func @transform_11(%arg0: i32, %arg1: memref<1xi32, #tpu.memory_space<smem>>) -> (i32, i32) {
    %c0_i32 = arith.constant 0 : i32
    %c0_i32_0 = arith.constant 0 : i32
    %c0_i32_1 = arith.constant 0 : i32
    return %c0_i32, %c0_i32_0 : i32, i32
  }
  func.func @transform_12(%arg0: i32, %arg1: memref<1xi32, #tpu.memory_space<smem>>) -> (i32, i32) {
    %c0_i32 = arith.constant 0 : i32
    %c0_i32_0 = arith.constant 0 : i32
    %c0_i32_1 = arith.constant 0 : i32
    return %c0_i32, %c0_i32_0 : i32, i32
  }
  func.func @transform_13(%arg0: i32, %arg1: memref<1xi32, #tpu.memory_space<smem>>) -> (i32, i32) {
    %c0_i32 = arith.constant 0 : i32
    %c0_i32_0 = arith.constant 0 : i32
    %c0_i32_1 = arith.constant 0 : i32
    return %c0_i32, %c0_i32_0 : i32, i32
  }
  func.func @transform_14(%arg0: i32, %arg1: memref<1xi32, #tpu.memory_space<smem>>) -> (i32, i32) {
    %c0_i32 = arith.constant 0 : i32
    %c0_i32_0 = arith.constant 0 : i32
    %c0_i32_1 = arith.constant 0 : i32
    return %c0_i32, %c0_i32_0 : i32, i32
  }
  func.func @transform_15(%arg0: i32, %arg1: memref<1xi32, #tpu.memory_space<smem>>) -> (i32, i32) {
    %c0_i32 = arith.constant 0 : i32
    %c0_i32_0 = arith.constant 0 : i32
    %c0_i32_1 = arith.constant 0 : i32
    return %c0_i32, %c0_i32_0 : i32, i32
  }
  func.func @transform_16(%arg0: i32, %arg1: memref<1xi32, #tpu.memory_space<smem>>) -> (i32, i32) {
    %c0_i32 = arith.constant 0 : i32
    %c0_i32_0 = arith.constant 0 : i32
    %c0_i32_1 = arith.constant 0 : i32
    return %c0_i32, %c0_i32_0 : i32, i32
  }
  func.func @transform_17(%arg0: i32, %arg1: memref<1xi32, #tpu.memory_space<smem>>) -> (i32, i32) {
    %c0_i32 = arith.constant 0 : i32
    %c0_i32_0 = arith.constant 0 : i32
    %c0_i32_1 = arith.constant 0 : i32
    return %c0_i32, %c0_i32_0 : i32, i32
  }
  func.func @transform_18(%arg0: i32, %arg1: memref<1xi32, #tpu.memory_space<smem>>) -> (i32, i32) {
    %c0_i32 = arith.constant 0 : i32
    %c0_i32_0 = arith.constant 0 : i32
    %c0_i32_1 = arith.constant 0 : i32
    return %c0_i32, %c0_i32_0 : i32, i32
  }
  func.func @transform_19(%arg0: i32, %arg1: memref<1xi32, #tpu.memory_space<smem>>) -> (i32, i32) {
    %c0_i32 = arith.constant 0 : i32
    %c0_i32_0 = arith.constant 0 : i32
    %c0_i32_1 = arith.constant 0 : i32
    return %c0_i32, %c0_i32_0 : i32, i32
  }
  func.func @transform_20(%arg0: i32, %arg1: memref<1xi32, #tpu.memory_space<smem>>) -> (i32, i32, i32, i32) {
    %c0_i32 = arith.constant 0 : i32
    %c0_i32_0 = arith.constant 0 : i32
    %c0_i32_1 = arith.constant 0 : i32
    %c0_i32_2 = arith.constant 0 : i32
    return %arg0, %c0_i32, %c0_i32_0, %c0_i32_1 : i32, i32, i32, i32
  }
  func.func @transform_21(%arg0: i32, %arg1: memref<1xi32, #tpu.memory_space<smem>>) -> (i32, i32, i32, i32) {
    %c0_i32 = arith.constant 0 : i32
    %c0_i32_0 = arith.constant 0 : i32
    %c0_i32_1 = arith.constant 0 : i32
    %c0_i32_2 = arith.constant 0 : i32
    return %arg0, %c0_i32, %c0_i32_0, %c0_i32_1 : i32, i32, i32, i32
  }
}

</mosaic_0001>

<bundles_post_ra>
// kernel: decoder_forward.1
= control target key start
LH: loop header
LB: loop body
LE: loop exit
PB: predicated region body
PF: predicated region fallthrough
CT: control target
= control target key end

     0   :  { %s22996_s0 = inlined_call_operand.<no memory space> [shape: s32[1], index: 0, kind: input, shape index: {}]   ;;  %s22997_s1 = inlined_call_operand.vmem [shape: f32[16,8,32], index: 1, kind: input, shape index: {}]   ;;  %s22998_s2 = inlined_call_operand.hbm [shape: f32[16,8,32], index: 2, kind: input, shape index: {}]   ;;  %s22999_s3 = inlined_call_operand.hbm [shape: bf16[32,96], index: 3, kind: input, shape index: {}]   ;;  %s23000_s4 = inlined_call_operand.hbm [shape: bf16[32,32], index: 4, kind: input, shape index: {}]   ;;  %s23001_s5 = inlined_call_operand.hbm [shape: bf16[32,32], index: 5, kind: input, shape index: {}]   ;;  %s23002_s6 = inlined_call_operand.vmem [shape: f32[1,32], index: 6, kind: input, shape index: {}]   ;;  %s23003_s7 = inlined_call_operand.hbm [shape: bf16[32,32], index: 7, kind: input, shape index: {}]   ;;  %s23004_s8 = inlined_call_operand.vmem [shape: f32[1,32], index: 8, kind: input, shape index: {}]   ;;  %s23005_s9 = inlined_call_operand.hbm [shape: bf16[32,96], index: 9, kind: input, shape index: {}]   ;;  %s23006_s10 = inlined_call_operand.hbm [shape: bf16[32,32], index: 10, kind: input, shape index: {}]   ;;  %s23007_s11 = inlined_call_operand.hbm [shape: bf16[32,32], index: 11, kind: input, shape index: {}]   ;;  %s23008_s12 = inlined_call_operand.vmem [shape: f32[1,32], index: 12, kind: input, shape index: {}]   ;;  %s23009_s13 = inlined_call_operand.hbm [shape: bf16[32,32], index: 13, kind: input, shape index: {}]   ;;  %s23010_s14 = inlined_call_operand.vmem [shape: f32[1,32], index: 14, kind: input, shape index: {}]   ;;  %s23011_s15 = inlined_call_operand.hbm [shape: bf16[32,96], index: 15, kind: input, shape index: {}]   ;;  %s23012_s16 = inlined_call_operand.hbm [shape: bf16[32,32], index: 16, kind: input, shape index: {}]   ;;  %s23013_s17 = inlined_call_operand.vmem [shape: bf16[32,12], index: 17, kind: input, shape index: {}]   ;;  %s23014_s18 = inlined_call_operand.vmem [shape: f32[1,12], index: 18, kind: input, shape index: {}]   ;;  %s23015_s19 = inlined_call_operand.vmem [shape: bf16[32,12], index: 19, kind: input, shape index: {}]   ;;  %s23016_s20 = inlined_call_operand.vmem [shape: f32[1,12], index: 20, kind: input, shape index: {}]   ;;  %s23017_s21 = inlined_call_operand.vmem [shape: f32[16,4,8,12], index: 21, kind: output, shape index: {0}]   ;;  %s23018_s22 = inlined_call_operand.vmem [shape: f32[16,4,8,12], index: 22, kind: output, shape index: {1}]  }
   0x1   :  { %23121 = sst [smem:[#allocation76_spill]] %s22996_s0 }
   0x2   :  { %23122 = sst [smem:[#allocation77_spill]] %s22997_s1 }
   0x3   :  { %23123 = sst [smem:[#allocation78_spill]] %s22998_s2 }
   0x4   :  { %23124 = sst [smem:[#allocation79_spill]] %s22999_s3 }
   0x5   :  { %23125 = sst [smem:[#allocation80_spill]] %s23000_s4 }
   0x6   :  { %23126 = sst [smem:[#allocation81_spill]] %s23001_s5 }
   0x7   :  { %23127 = sst [smem:[#allocation82_spill]] %s23002_s6 }
   0x8   :  { %23128 = sst [smem:[#allocation83_spill]] %s23016_s20 }
   0x9   :  { %23129 = sst [smem:[#allocation84_spill]] %s23017_s21 }
   0xa   :  { %23130 = sst [smem:[#allocation85_spill]] %s23018_s22 }
   0xb   :  { %29 = vsyncpa [#allocation5], 0 }
   0xc   :  { %30 = vsyncpa [#allocation7], 0 }
   0xd   :  { %31 = vsyncpa [#allocation10], 0 }
   0xe   :  { %32 = vsyncpa [#allocation13], 0 }
   0xf   :  { %33 = vsyncpa [#allocation16], 0 }
  0x10   :  { %34 = vsyncpa [#allocation19], 0  ;;  %s18335_s3 = smov [#allocation6]   ;;  %s23131_s4 = sld [smem:[#allocation79_spill]] }
  0x11   :  { %s54_s28 = sshll.u32 %s18335_s3, 4  ;;  %s55_s28 = int_to_ptr.vmem [resolvable:$true] %s54_s28 }
  0x16   :  { %s18081_s0 = scalar_lea.hbm %s23131_s4, 256 }
  0x17   :  { %p18082_p0 = scmp.ne.s32.totalorder %s23131_s4, %s18081_s0  ;;  %p18085_p1 = scmp.lt.u32.totalorder %s18081_s0, %s23131_s4 }
  0x19   :  { %p18087_p2 = pnand %p18085_p1, %p18082_p0 }
  0x1b   :  { %18090 = shalt.err (!%p18087_p2)
}
  0x1c   :  { %s18091_s6 = scalar_lea.vmem %s55_s28, 256  ;;  %p18096_p4 = scmp.lt.s32.totalorder %s55_s28, %s55_s28 }
  0x1d   :  { %p18092_p3 = scmp.ne.s32.totalorder %s55_s28, %s18091_s6  ;;  %p18097_p5 = scmp.lt.s32.totalorder %s18091_s6, %s18091_s6 }
  0x1f   :  { %p18098_p6 = por %p18097_p5, %p18096_p4 }
  0x21   :  { %p18099_p7 = pnand %p18098_p6, %p18092_p3 }
  0x23   :  { %18102 = shalt.err (!%p18099_p7)
}
  0x24   :  { %s18336_s25 = smov 64   ;;  %s18337_s26 = smov 4  }
  0x25   :  { %60 = dma.hbm_to_vmem [thread:$0]  %s23131_s4, 256, %s55_s28, [#allocation7], %s18336_s25, %s18336_s25, %s18337_s26  }
  0x26   :  { %s18338_s3 = smov [#allocation9]   ;;  %s18339_s30 = smov [#allocation12]  }
  0x27   :  { %s78_s29 = sshll.u32 %s18338_s3, 4  ;;  %s106_s0 = sshll.u32 %s18339_s30, 4  ;;  %s79_s29 = int_to_ptr.vmem [resolvable:$true] %s78_s29  ;;  %s107_s0 = int_to_ptr.vmem [resolvable:$true] %s106_s0 }
  0x28   :  { %s23132_s5 = sld [smem:[#allocation81_spill]] }
  0x2e   :  { %s18103_s24 = scalar_lea.hbm %s23132_s5, 256 }
  0x2f   :  { %p18104_p8 = scmp.ne.s32.totalorder %s23132_s5, %s18103_s24  ;;  %p18107_p9 = scmp.lt.u32.totalorder %s18103_s24, %s23132_s5 }
  0x31   :  { %p18109_p10 = pnand %p18107_p9, %p18104_p8 }
  0x33   :  { %18112 = shalt.err (!%p18109_p10)
}
  0x34   :  { %s18113_s28 = scalar_lea.vmem %s79_s29, 256  ;;  %p18118_p12 = scmp.lt.s32.totalorder %s79_s29, %s79_s29 }
  0x35   :  { %p18114_p11 = scmp.ne.s32.totalorder %s79_s29, %s18113_s28  ;;  %p18119_p13 = scmp.lt.s32.totalorder %s18113_s28, %s18113_s28 }
  0x37   :  { %p18120_p0 = por %p18119_p13, %p18118_p12 }
  0x39   :  { %p18121_p1 = pnand %p18120_p0, %p18114_p11 }
  0x3b   :  { %18124 = shalt.err (!%p18121_p1)
}
  0x3c   :  { %84 = dma.hbm_to_vmem [thread:$0]  %s23132_s5, 256, %s79_s29, [#allocation10], %s18336_s25, %s18336_s25, %s18337_s26  }
  0x3d   :  { %s18125_s21 = scalar_lea.hbm %s23005_s9, 256 }
  0x3e   :  { %p18126_p2 = scmp.ne.s32.totalorder %s23005_s9, %s18125_s21  ;;  %p18129_p3 = scmp.lt.u32.totalorder %s18125_s21, %s23005_s9 }
  0x40   :  { %p18131_p4 = pnand %p18129_p3, %p18126_p2 }
  0x42   :  { %18134 = shalt.err (!%p18131_p4)
}
  0x43   :  { %s18135_s1 = scalar_lea.vmem %s107_s0, 256  ;;  %p18140_p6 = scmp.lt.s32.totalorder %s107_s0, %s107_s0 }
  0x44   :  { %p18136_p5 = scmp.ne.s32.totalorder %s107_s0, %s18135_s1  ;;  %p18141_p7 = scmp.lt.s32.totalorder %s18135_s1, %s18135_s1 }
  0x46   :  { %p18142_p8 = por %p18141_p7, %p18140_p6 }
  0x48   :  { %p18143_p9 = pnand %p18142_p8, %p18136_p5 }
  0x4a   :  { %18146 = shalt.err (!%p18143_p9)
}
  0x4b   :  { %112 = dma.hbm_to_vmem [thread:$0]  %s23005_s9, 256, %s107_s0, [#allocation13], %s18336_s25, %s18336_s25, %s18337_s26  }
  0x4c   :  { %s18340_s24 = smov [#allocation15]   ;;  %s18341_s28 = smov [#allocation18]  }
  0x4d   :  { %s130_s6 = sshll.u32 %s18340_s24, 4  ;;  %s158_s4 = sshll.u32 %s18341_s28, 4  ;;  %s131_s6 = int_to_ptr.vmem [resolvable:$true] %s130_s6  ;;  %s159_s4 = int_to_ptr.vmem [resolvable:$true] %s158_s4 }
  0x4e   :  { %s18147_s20 = scalar_lea.hbm %s23007_s11, 256 }
  0x4f   :  { %p18148_p10 = scmp.ne.s32.totalorder %s23007_s11, %s18147_s20  ;;  %p18151_p11 = scmp.lt.u32.totalorder %s18147_s20, %s23007_s11 }
  0x51   :  { %p18153_p12 = pnand %p18151_p11, %p18148_p10 }
  0x53   :  { %18156 = shalt.err (!%p18153_p12)
}
  0x54   :  { %s18157_s9 = scalar_lea.vmem %s131_s6, 256  ;;  %p18162_p0 = scmp.lt.s32.totalorder %s131_s6, %s131_s6 }
  0x55   :  { %p18158_p13 = scmp.ne.s32.totalorder %s131_s6, %s18157_s9  ;;  %p18163_p1 = scmp.lt.s32.totalorder %s18157_s9, %s18157_s9 }
  0x57   :  { %p18164_p2 = por %p18163_p1, %p18162_p0 }
  0x59   :  { %p18165_p3 = pnand %p18164_p2, %p18158_p13 }
  0x5b   :  { %18168 = shalt.err (!%p18165_p3)
}
  0x5c   :  { %136 = dma.hbm_to_vmem [thread:$0]  %s23007_s11, 256, %s131_s6, [#allocation16], %s18336_s25, %s18336_s25, %s18337_s26  }
  0x5d   :  { %s18169_s5 = scalar_lea.hbm %s23011_s15, 256 }
  0x5e   :  { %p18170_p4 = scmp.ne.s32.totalorder %s23011_s15, %s18169_s5  ;;  %p18173_p5 = scmp.lt.u32.totalorder %s18169_s5, %s23011_s15 }
  0x60   :  { %p18175_p6 = pnand %p18173_p5, %p18170_p4 }
  0x62   :  { %18178 = shalt.err (!%p18175_p6)
}
  0x63   :  { %s18179_s20 = scalar_lea.vmem %s159_s4, 256  ;;  %p18184_p8 = scmp.lt.s32.totalorder %s159_s4, %s159_s4 }
  0x64   :  { %p18180_p7 = scmp.ne.s32.totalorder %s159_s4, %s18179_s20  ;;  %p18185_p9 = scmp.lt.s32.totalorder %s18179_s20, %s18179_s20 }
  0x66   :  { %p18186_p10 = por %p18185_p9, %p18184_p8 }
  0x68   :  { %p18187_p11 = pnand %p18186_p10, %p18180_p7 }
  0x6a   :  { %18190 = shalt.err (!%p18187_p11)
}
  0x6b   :  { %164 = dma.hbm_to_vmem [thread:$0]  %s23011_s15, 256, %s159_s4, [#allocation19], %s18336_s25, %s18336_s25, %s18337_s26  }
  0x6c   :  { %s18342_s21 = smov [#allocation4]   ;;  %s23133_s9 = sld [smem:[#allocation78_spill]] }
  0x6d   :  { %s42_s27 = sshll.u32 %s18342_s21, 4  ;;  %s43_s27 = int_to_ptr.vmem [resolvable:$true] %s42_s27 }
  0x72   :  { %s18191_s0 = scalar_lea.hbm %s23133_s9, 2048 }
  0x73   :  { %p18192_p12 = scmp.ne.s32.totalorder %s23133_s9, %s18191_s0  ;;  %p18195_p13 = scmp.lt.u32.totalorder %s18191_s0, %s23133_s9 }
  0x75   :  { %p18197_p0 = pnand %p18195_p13, %p18192_p12 }
  0x77   :  { %18200 = shalt.err (!%p18197_p0)
}
  0x78   :  { %s18201_s24 = scalar_lea.vmem %s43_s27, 2048  ;;  %p18206_p2 = scmp.lt.s32.totalorder %s43_s27, %s43_s27 }
  0x79   :  { %p18202_p1 = scmp.ne.s32.totalorder %s43_s27, %s18201_s24  ;;  %p18207_p3 = scmp.lt.s32.totalorder %s18201_s24, %s18201_s24 }
  0x7b   :  { %p18208_p4 = por %p18207_p3, %p18206_p2 }
  0x7d   :  { %p18209_p5 = pnand %p18208_p4, %p18202_p1 }
  0x7f   :  { %18212 = shalt.err (!%p18209_p5)
}
  0x80   :  { %s18343_s15 = smov 128   ;;  %s18344_s4 = smov 8  }
  0x81   :  { %48 = dma.hbm_to_vmem [thread:$0]  %s23133_s9, 2048, %s43_s27, [#allocation5], %s18343_s15, %s18343_s15, %s18344_s4  }
  0x82   :  { %s18345_s22 = smov [#allocation8]   ;;  %s18346_s11 = smov [#allocation11]  }
  0x83   :  { %s66_s20 = sshll.u32 %s18345_s22, 4  ;;  %s92_s6 = sshll.u32 %s18346_s11, 4  ;;  %s67_s20 = int_to_ptr.vmem [resolvable:$true] %s66_s20  ;;  %s18555_s6 = int_to_ptr.vmem [resolvable:$true] %s92_s6 }
  0x84   :  { %s23134_s30 = sld [smem:[#allocation80_spill]] }
  0x8a   :  { %s18213_s0 = scalar_lea.hbm %s23134_s30, 256 }
  0x8b   :  { %p18214_p6 = scmp.ne.s32.totalorder %s23134_s30, %s18213_s0  ;;  %p18217_p7 = scmp.lt.u32.totalorder %s18213_s0, %s23134_s30 }
  0x8d   :  { %p18219_p8 = pnand %p18217_p7, %p18214_p6 }
  0x8f   :  { %18222 = shalt.err (!%p18219_p8)
}
  0x90   :  { %s18223_s27 = scalar_lea.vmem %s67_s20, 256  ;;  %p18228_p10 = scmp.lt.s32.totalorder %s67_s20, %s67_s20 }
  0x91   :  { %p18224_p9 = scmp.ne.s32.totalorder %s67_s20, %s18223_s27  ;;  %p18229_p11 = scmp.lt.s32.totalorder %s18223_s27, %s18223_s27 }
  0x93   :  { %p18230_p12 = por %p18229_p11, %p18228_p10 }
  0x95   :  { %p18231_p13 = pnand %p18230_p12, %p18224_p9 }
  0x97   :  { %18234 = shalt.err (!%p18231_p13)
}
  0x98   :  { %72 = dma.hbm_to_vmem [thread:$0]  %s23134_s30, 256, %s67_s20, [#allocation7], %s18336_s25, %s18336_s25, %s18337_s26  }
  0x99   :  { %s18235_s28 = scalar_lea.hbm %s23003_s7, 256 }
  0x9a   :  { %p18236_p0 = scmp.ne.s32.totalorder %s23003_s7, %s18235_s28  ;;  %p18239_p1 = scmp.lt.u32.totalorder %s18235_s28, %s23003_s7 }
  0x9c   :  { %p18241_p2 = pnand %p18239_p1, %p18236_p0 }
  0x9e   :  { %18244 = shalt.err (!%p18241_p2)
}
  0x9f   :  { %s18245_s3 = scalar_lea.vmem %s18555_s6, 256  ;;  %p18250_p4 = scmp.lt.s32.totalorder %s18555_s6, %s18555_s6 }
  0xa0   :  { %p18246_p3 = scmp.ne.s32.totalorder %s18555_s6, %s18245_s3  ;;  %p18251_p5 = scmp.lt.s32.totalorder %s18245_s3, %s18245_s3 }
  0xa2   :  { %p18252_p6 = por %p18251_p5, %p18250_p4 }
  0xa4   :  { %p18253_p7 = pnand %p18252_p6, %p18246_p3 }
  0xa6   :  { %18256 = shalt.err (!%p18253_p7)
}
  0xa7   :  { %98 = dma.hbm_to_vmem [thread:$0]  %s23003_s7, 256, %s18555_s6, [#allocation10], %s18336_s25, %s18336_s25, %s18337_s26  }
  0xa8   :  { %s18347_s0 = smov [#allocation14]   ;;  %s18348_s1 = smov [#allocation17]  }
  0xa9   :  { %s118_s23 = sshll.u32 %s18347_s0, 4  ;;  %s144_s29 = sshll.u32 %s18348_s1, 4  ;;  %s119_s23 = int_to_ptr.vmem [resolvable:$true] %s118_s23  ;;  %s18592_s29 = int_to_ptr.vmem [resolvable:$true] %s144_s29 }
  0xaa   :  { %s18257_s9 = scalar_lea.hbm %s23006_s10, 256 }
  0xab   :  { %p18258_p8 = scmp.ne.s32.totalorder %s23006_s10, %s18257_s9  ;;  %p18261_p9 = scmp.lt.u32.totalorder %s18257_s9, %s23006_s10 }
  0xad   :  { %p18263_p10 = pnand %p18261_p9, %p18258_p8 }
  0xaf   :  { %18266 = shalt.err (!%p18263_p10)
}
  0xb0   :  { %s18267_s7 = scalar_lea.vmem %s119_s23, 256  ;;  %p18272_p12 = scmp.lt.s32.totalorder %s119_s23, %s119_s23 }
  0xb1   :  { %p18268_p11 = scmp.ne.s32.totalorder %s119_s23, %s18267_s7  ;;  %p18273_p13 = scmp.lt.s32.totalorder %s18267_s7, %s18267_s7 }
  0xb3   :  { %p18274_p0 = por %p18273_p13, %p18272_p12 }
  0xb5   :  { %p18275_p1 = pnand %p18274_p0, %p18268_p11 }
  0xb7   :  { %18278 = shalt.err (!%p18275_p1)
}
  0xb8   :  { %124 = dma.hbm_to_vmem [thread:$0]  %s23006_s10, 256, %s119_s23, [#allocation13], %s18336_s25, %s18336_s25, %s18337_s26  }
  0xb9   :  { %s18279_s21 = scalar_lea.hbm %s23009_s13, 256 }
  0xba   :  { %p18280_p2 = scmp.ne.s32.totalorder %s23009_s13, %s18279_s21  ;;  %p18283_p3 = scmp.lt.u32.totalorder %s18279_s21, %s23009_s13 }
  0xbc   :  { %p18285_p4 = pnand %p18283_p3, %p18280_p2 }
  0xbe   :  { %18288 = shalt.err (!%p18285_p4)
}
  0xbf   :  { %s18289_s1 = scalar_lea.vmem %s18592_s29, 256  ;;  %p18294_p6 = scmp.lt.s32.totalorder %s18592_s29, %s18592_s29 }
  0xc0   :  { %p18290_p5 = scmp.ne.s32.totalorder %s18592_s29, %s18289_s1  ;;  %p18295_p7 = scmp.lt.s32.totalorder %s18289_s1, %s18289_s1 }
  0xc2   :  { %p18296_p8 = por %p18295_p7, %p18294_p6 }
  0xc4   :  { %p18297_p9 = pnand %p18296_p8, %p18290_p5 }
  0xc6   :  { %18300 = shalt.err (!%p18297_p9)
}
  0xc7   :  { %150 = dma.hbm_to_vmem [thread:$0]  %s23009_s13, 256, %s18592_s29, [#allocation16], %s18336_s25, %s18336_s25, %s18337_s26  }
  0xc8   :  { %s18349_s5 = smov [#allocation20]   ;;  %s18301_s15 = scalar_lea.hbm %s23012_s16, 256 }
  0xc9   :  { %s170_s27 = sshll.u32 %s18349_s5, 4  ;;  %p18302_p10 = scmp.ne.s32.totalorder %s23012_s16, %s18301_s15  ;;  %s171_s27 = int_to_ptr.vmem [resolvable:$true] %s170_s27 }
  0xca   :  { %p18305_p11 = scmp.lt.u32.totalorder %s18301_s15, %s23012_s16 }
  0xcc   :  { %p18307_p12 = pnand %p18305_p11, %p18302_p10 }
  0xce   :  { %18310 = shalt.err (!%p18307_p12)
}
  0xcf   :  { %s18311_s2 = scalar_lea.vmem %s171_s27, 256  ;;  %p18316_p0 = scmp.lt.s32.totalorder %s171_s27, %s171_s27 }
  0xd0   :  { %p18312_p13 = scmp.ne.s32.totalorder %s171_s27, %s18311_s2  ;;  %p18317_p1 = scmp.lt.s32.totalorder %s18311_s2, %s18311_s2 }
  0xd2   :  { %p18318_p2 = por %p18317_p1, %p18316_p0 }
  0xd4   :  { %p18319_p3 = pnand %p18318_p2, %p18312_p13 }
  0xd6   :  { %18322 = shalt.err (!%p18319_p3)
}
  0xd7   :  { %176 = dma.hbm_to_vmem [thread:$0]  %s23012_s16, 256, %s171_s27, [#allocation19], %s18336_s25, %s18336_s25, %s18337_s26  }
  0xd8   :  { %18323 = dma.done.wait [#allocation5], 2048  }
  0xd9   :  { %18324 = vsyncadd [#allocation5], 4294965248 }
  0xda   :  { %18325 = dma.done.wait [#allocation7], 512  }
  0xdb   :  { %18326 = vsyncadd [#allocation7], 4294966784 }
  0xdc   :  { %18327 = dma.done.wait [#allocation10], 512  }
  0xdd   :  { %18328 = vsyncadd [#allocation10], 4294966784 }
  0xde   :  { %18329 = dma.done.wait [#allocation13], 512  }
  0xdf   :  { %18330 = vsyncadd [#allocation13], 4294966784 }
  0xe0   :  { %18331 = dma.done.wait [#allocation16], 512  }
  0xe1   :  { %18332 = vsyncadd [#allocation16], 4294966784 }
  0xe2   :  { %18333 = dma.done.wait [#allocation19], 512  }
  0xe3   :  { %18334 = vsyncadd [#allocation19], 4294966784  ;;  %v220_v0 = vlaneseq  ;;  %v23026_v1 = vmov 0.0   ;;  %s23135_s26 = sld [smem:[#allocation76_spill]]  ;;  %vm18351_vm0 = vmmov 0   ;;  %vm245_vm2 = vcmask 64512  }
  0xe4   :  { %16071 = vmatprep.subr.mxu0 %v23026_v1  ;;  %16076 = vmatprep.subr.mxu1 %v23026_v1  ;;  %s23136_s3 = sld [smem:[#allocation77_spill]]  ;;  %v17657_v24 = vld [vmem:[#allocation6] sm:$0xff]   ;;  %vm1437_vm3 = vcmask 261120   ;;  %v17658_v25 = vld [vmem:[#allocation6 + $0x8] sm:$0xff]   ;;  %v1371_v41 = vld [vmem:[#allocation4 + $0x10] sm:$0xff]  ;;  %s18352_s27 = smov 96  }
  0xe5   :  { %16073 = vmatprep.mubr.msk.f32.mxu0 %vm18351_vm0, %v23026_v1  ;;  %16078 = vmatprep.mubr.msk.f32.mxu1 %vm18351_vm0, %v23026_v1  ;;  %v221_v3 = vshrl.u32 %v220_v0, 7  ;;  %v223_v4 = vand.u32 127, %v220_v0  ;;  %v1369_v33 = vld [vmem:[#allocation4] sm:$0xff]  ;;  %v1370_v34 = vld [vmem:[#allocation4 + $0x8] sm:$0xff]  ;;  %v1372_v42 = vld [vmem:[#allocation4 + $0x18] sm:$0xff]  ;;  %vm3668_vm4 = vcmask 1043456  }
  0xe6   :  { %v1373_v50 = vld [vmem:[#allocation4 + $0x20] sm:$0xff]  ;;  %v1374_v51 = vld [vmem:[#allocation4 + $0x28] sm:$0xff]  ;;  %v1375_v59 = vld [vmem:[#allocation4 + $0x30] sm:$0xff]  ;;  %s23190_s16 = sld [smem:[#allocation82_spill]]  ;;  %s23385_s9 = sld [smem:[#allocation84_spill]] }
  0xe7   :  { %v1376_v60 = vld [vmem:[#allocation4 + $0x38] sm:$0xff]  ;;  %s23386_s29 = sld [smem:[#allocation83_spill]]  ;;  %s23387_s22 = sld [smem:[#allocation85_spill]] }
  0xe9   :  { %v224_v2 = vstv %s23135_s26 }
  0xea   :  { %v225_v5 = vsub.s32 %v221_v3, %v224_v2  ;;  %v18656_v6 = vld [vmem:[%s23136_s3] sm:$0xff]  ;;  %v18661_v7 = vld [vmem:[%s23136_s3 + $0x8] sm:$0xff]  ;;  %v18671_v9 = vld [vmem:[%s23136_s3 + $0x10] sm:$0xff] }
  0xeb   :  { %16072 = vmatpush3.msra.mxu0 %v18656_v6  ;;  %16077 = vmatpush3.msra.mxu1 %v18661_v7  ;;  %v18680_v10 = vld [vmem:[%s23136_s3 + $0x18] sm:$0xff]  ;;  %v18693_v11 = vld [vmem:[%s23136_s3 + $0x20] sm:$0xff]  ;;  %v18702_v12 = vld [vmem:[%s23136_s3 + $0x28] sm:$0xff]  ;;  %v1409_v23 = vpack.c.bf16 %v18661_v7, %v18656_v6 }
  0xec   :  { %vm226_vm1 = vcmp.eq.s32.totalorder %v223_v4, %v225_v5  ;;  %16081 = vmatprep.subr.mxu0 %v23026_v1  ;;  %16086 = vmatprep.subr.mxu1 %v23026_v1  ;;  %v18709_v13 = vld [vmem:[%s23136_s3 + $0x30] sm:$0xff]  ;;  %v18717_v14 = vld [vmem:[%s23136_s3 + $0x38] sm:$0xff]  ;;  %v18731_v15 = vld [vmem:[%s23136_s3 + $0x40] sm:$0xff]  ;;  %v1410_v26 = vpack.c.bf16 %v18680_v10, %v18671_v9  ;;  %v1411_v27 = vpack.c.bf16 %v18702_v12, %v18693_v11 }
  0xed   :  { %v18664_v8 = vsel %vm226_vm1, 1.0, %v23026_v1  ;;  %v18739_v16 = vld [vmem:[%s23136_s3 + $0x48] sm:$0xff]  ;;  %v239_v17 = vld [vmem:[%s23136_s3 + $0x50] sm:$0xff]  ;;  %v240_v18 = vld [vmem:[%s23136_s3 + $0x58] sm:$0xff]  ;;  %v1412_v28 = vpack.c.bf16 %v18717_v14, %v18709_v13 }
  0xee   :  { %16074 = vmatmul.mubr.msk.f32.vlgmr.msra.gmra.mrb[0].mxu0 %vm245_vm2, %v18664_v8  ;;  %16079 = vmatmul.mubr.msk.f32.vlgmr.msra.gmra.mrb[0].mxu1 %vm245_vm2, %v18664_v8  ;;  %v241_v19 = vld [vmem:[%s23136_s3 + $0x60] sm:$0xff]  ;;  %v242_v20 = vld [vmem:[%s23136_s3 + $0x68] sm:$0xff]  ;;  %v243_v21 = vld [vmem:[%s23136_s3 + $0x70] sm:$0xff]  ;;  %v1413_v29 = vpack.c.bf16 %v18739_v16, %v18731_v15  ;;  %v1414_v30 = vpack.c.bf16 %v240_v18, %v239_v17 }
  0xef   :  { %16082 = vmatpush3.msra.mxu0 %v18671_v9  ;;  %16083 = vmatprep.mubr.msk.f32.mxu0 %vm18351_vm0, %v23026_v1  ;;  %v244_v22 = vld [vmem:[%s23136_s3 + $0x78] sm:$0xff]  ;;  %v1415_v31 = vpack.c.bf16 %v242_v20, %v241_v19  ;;  %v1377_v5 = vld [vmem:[#allocation4 + $0x40] sm:$0xff]  ;;  %v1378_v6 = vld [vmem:[#allocation4 + $0x48] sm:$0xff] }
  0xf0   :  { %16087 = vmatpush3.msra.mxu1 %v18680_v10  ;;  %16088 = vmatprep.mubr.msk.f32.mxu1 %vm18351_vm0, %v23026_v1  ;;  %v1416_v32 = vpack.c.bf16 %v244_v22, %v243_v21 }
  0xf1   :  { %16091 = vmatprep.subr.mxu0 %v23026_v1  ;;  %16096 = vmatprep.subr.mxu1 %v23026_v1 }
  0xf2   :  { %16084 = vmatmul.mubr.msk.f32.vlgmr.msra.gmra.mrb[2].mxu0 %vm245_vm2, %v18664_v8  ;;  %16089 = vmatmul.mubr.msk.f32.vlgmr.msra.gmra.mrb[2].mxu1 %vm245_vm2, %v18664_v8 }
  0xf3   :  { %16092 = vmatpush3.msra.mxu0 %v18693_v11  ;;  %16093 = vmatprep.mubr.msk.f32.mxu0 %vm18351_vm0, %v23026_v1 }
  0xf4   :  { %16097 = vmatpush3.msra.mxu1 %v18702_v12  ;;  %16098 = vmatprep.mubr.msk.f32.mxu1 %vm18351_vm0, %v23026_v1 }
  0xf5   :  { %16101 = vmatprep.subr.mxu0 %v23026_v1  ;;  %16106 = vmatprep.subr.mxu1 %v23026_v1 }
  0xf6   :  { %16094 = vmatmul.mubr.msk.f32.vlgmr.msra.gmra.mrb[4].mxu0 %vm245_vm2, %v18664_v8  ;;  %16099 = vmatmul.mubr.msk.f32.vlgmr.msra.gmra.mrb[4].mxu1 %vm245_vm2, %v18664_v8 }
  0xf7   :  { %16102 = vmatpush3.msra.mxu0 %v18709_v13  ;;  %16103 = vmatprep.mubr.msk.f32.mxu0 %vm18351_vm0, %v23026_v1 }
  0xf8   :  { %16107 = vmatpush3.msra.mxu1 %v18717_v14  ;;  %16108 = vmatprep.mubr.msk.f32.mxu1 %vm18351_vm0, %v23026_v1  ;;  %v1379_v14 = vld [vmem:[#allocation4 + $0x50] sm:$0xff] }
  0xf9   :  { %16111 = vmatprep.subr.mxu0 %v23026_v1  ;;  %16116 = vmatprep.subr.mxu1 %v23026_v1 }
  0xfa   :  { %16104 = vmatmul.mubr.msk.f32.vlgmr.msra.gmra.mrb[6].mxu0 %vm245_vm2, %v18664_v8  ;;  %16109 = vmatmul.mubr.msk.f32.vlgmr.msra.gmra.mrb[6].mxu1 %vm245_vm2, %v18664_v8 }
  0xfb   :  { %16112 = vmatpush3.msra.mxu0 %v18731_v15  ;;  %16113 = vmatprep.mubr.msk.f32.mxu0 %vm18351_vm0, %v23026_v1  ;;  %v1380_v15 = vld [vmem:[#allocation4 + $0x58] sm:$0xff] }
  0xfc   :  { %16117 = vmatpush3.msra.mxu1 %v18739_v16  ;;  %16118 = vmatprep.mubr.msk.f32.mxu1 %vm18351_vm0, %v23026_v1 }
  0xfd   :  { %16121 = vmatprep.subr.mxu0 %v23026_v1  ;;  %16126 = vmatprep.subr.mxu1 %v23026_v1 }
  0xfe   :  { %16114 = vmatmul.mubr.msk.f32.vlgmr.msra.gmra.mrb[8].mxu0 %vm245_vm2, %v18664_v8  ;;  %16119 = vmatmul.mubr.msk.f32.vlgmr.msra.gmra.mrb[8].mxu1 %vm245_vm2, %v18664_v8 }
  0xff   :  { %16122 = vmatpush3.msra.mxu0 %v239_v17  ;;  %16123 = vmatprep.mubr.msk.f32.mxu0 %vm18351_vm0, %v23026_v1 }
 0x100   :  { %16127 = vmatpush3.msra.mxu1 %v240_v18  ;;  %16128 = vmatprep.mubr.msk.f32.mxu1 %vm18351_vm0, %v23026_v1 }
 0x101   :  { %16131 = vmatprep.subr.mxu0 %v23026_v1  ;;  %16136 = vmatprep.subr.mxu1 %v23026_v1 }
 0x102   :  { %16124 = vmatmul.mubr.msk.f32.vlgmr.msra.gmra.mrb[10].mxu0 %vm245_vm2, %v18664_v8  ;;  %16129 = vmatmul.mubr.msk.f32.vlgmr.msra.gmra.mrb[10].mxu1 %vm245_vm2, %v18664_v8 }
 0x103   :  { %16132 = vmatpush3.msra.mxu0 %v241_v19  ;;  %16133 = vmatprep.mubr.msk.f32.mxu0 %vm18351_vm0, %v23026_v1 }
 0x104   :  { %16137 = vmatpush3.msra.mxu1 %v242_v20  ;;  %16138 = vmatprep.mubr.msk.f32.mxu1 %vm18351_vm0, %v23026_v1 }
 0x105   :  { %16141 = vmatprep.subr.mxu0 %v23026_v1  ;;  %16146 = vmatprep.subr.mxu1 %v23026_v1 }
 0x106   :  { %16134 = vmatmul.mubr.msk.f32.vlgmr.msra.gmra.mrb[12].mxu0 %vm245_vm2, %v18664_v8  ;;  %16139 = vmatmul.mubr.msk.f32.vlgmr.msra.gmra.mrb[12].mxu1 %vm245_vm2, %v18664_v8 }
 0x107   :  { %16142 = vmatpush3.msra.mxu0 %v243_v21  ;;  %16143 = vmatprep.mubr.msk.f32.mxu0 %vm18351_vm0, %v23026_v1 }
 0x108   :  { %16147 = vmatpush3.msra.mxu1 %v244_v22  ;;  %16148 = vmatprep.mubr.msk.f32.mxu1 %vm18351_vm0, %v23026_v1 }
 0x109   :  { %16151 = vmatprep.subr.bf16.mxu0 %v17657_v24  ;;  %16187 = vmatprep.subr.bf16.mxu1 %v23026_v1 }
 0x10a   :  { %16144 = vmatmul.mubr.msk.f32.vlgmr.msra.gmra.mrb[14].mxu0 %vm245_vm2, %v18664_v8  ;;  %16149 = vmatmul.mubr.msk.f32.vlgmr.msra.gmra.mrb[14].mxu1 %vm245_vm2, %v18664_v8 }
 0x10b   :  { %16155 = vmatprep.mubr.msk.bf16.mxu0 %vm1437_vm3, %v1409_v23  ;;  %16152 = vmatpush3.bf16.msra.mxu0 %v17657_v24  ;;  %v1381_v23 = vld [vmem:[#allocation4 + $0x60] sm:$0xff]  ;;  %v1382_v24 = vld [vmem:[#allocation4 + $0x68] sm:$0xff] }
 0x10c   :  { %16153 = vmatprep.subr.bf16.mxu0 %v17658_v25  ;;  %16189 = vmatprep.mubr.msk.bf16.mxu1 %vm18351_vm0, %v23026_v1 }
 0x10f   :  { %16154 = vmatpush3.bf16.msra.mxu0 %v17658_v25 }
 0x110   :  { %16235 = vmatprep.subr.bf16.mxu0 %v23026_v1 }
 0x112   :  { %16156 = vmatmul.mubr.msk.bf16.vlgmr.msra.gmra.mrb[16].mxu0 %vm1437_vm3, %v1410_v26 }
 0x113   :  { %16159 = vmatprep.mubr.msk.bf16.mxu0 %vm1437_vm3, %v1411_v27 }
 0x11a   :  { %16160 = vmatmul.mubr.msk.bf16.gmra.mrb[20].mxu0 %vm1437_vm3, %v1412_v28 }
 0x11b   :  { %16163 = vmatprep.mubr.msk.bf16.mxu0 %vm1437_vm3, %v1413_v29 }
 0x122   :  { %16164 = vmatmul.mubr.msk.bf16.gmra.mrb[24].mxu0 %vm1437_vm3, %v1414_v30 }
 0x123   :  { %16167 = vmatprep.mubr.msk.bf16.mxu0 %vm1437_vm3, %v1415_v31 }
 0x12a   :  { %16168 = vmatmul.mubr.msk.bf16.gmra.mrb[28].mxu0 %vm1437_vm3, %v1416_v32  ;;  %v1383_v32 = vld [vmem:[#allocation4 + $0x70] sm:$0xff] }
 0x1c1   :  { %v315_v35 = vpop.f32.mrb[0].mxu0  ;;  %v385_v36 = vpop.f32.mrb[0].mxu1 }
 0x1c2   :  { %v18830_v37 = vadd.f32 %v1369_v33, %v315_v35  ;;  %v18832_v38 = vadd.f32 %v1370_v34, %v385_v36  ;;  %v16075_v39 = vpop.f32.mrb[1].mxu0  ;;  %v16080_v40 = vpop.f32.mrb[1].mxu1  ;;  %v1384_v33 = vld [vmem:[#allocation4 + $0x78] sm:$0xff] }
 0x1c4   :  { %23137 = vst [vmem:[#allocation27_spill] sm:$0xff] %v18830_v37  ;;  %23138 = vst [vmem:[#allocation28_spill] sm:$0xff] %v18832_v38  ;;  %v1417_v43 = vpack.c.bf16 %v18832_v38, %v18830_v37 }
 0x1c5   :  { %v455_v44 = vpop.f32.mrb[2].mxu0  ;;  %v525_v45 = vpop.f32.mrb[2].mxu1 }
 0x1c6   :  { %v18836_v46 = vadd.f32 %v1371_v41, %v455_v44  ;;  %v18838_v47 = vadd.f32 %v1372_v42, %v525_v45  ;;  %v16085_v48 = vpop.f32.mrb[3].mxu0  ;;  %v16090_v49 = vpop.f32.mrb[3].mxu1  ;;  %16171 = vmatprep.mubr.msk.bf16.mxu0 %vm1437_vm3, %v1417_v43 }
 0x1c8   :  { %23139 = vst [vmem:[#allocation29_spill] sm:$0xff] %v18836_v46  ;;  %23140 = vst [vmem:[#allocation30_spill] sm:$0xff] %v18838_v47  ;;  %v1418_v52 = vpack.c.bf16 %v18838_v47, %v18836_v46 }
 0x1c9   :  { %v595_v53 = vpop.f32.mrb[4].mxu0  ;;  %v665_v54 = vpop.f32.mrb[4].mxu1 }
 0x1ca   :  { %v18843_v55 = vadd.f32 %v1373_v50, %v595_v53  ;;  %v18845_v56 = vadd.f32 %v1374_v51, %v665_v54  ;;  %v16095_v57 = vpop.f32.mrb[5].mxu0  ;;  %v16100_v58 = vpop.f32.mrb[5].mxu1  ;;  %16172 = vmatmul.mubr.msk.bf16.gmra.mrb[32].mxu0 %vm1437_vm3, %v1418_v52 }
 0x1cc   :  { %23141 = vst [vmem:[#allocation31_spill] sm:$0xff] %v18843_v55  ;;  %23142 = vst [vmem:[#allocation32_spill] sm:$0xff] %v18845_v56  ;;  %v1419_v61 = vpack.c.bf16 %v18845_v56, %v18843_v55 }
 0x1cd   :  { %v735_v62 = vpop.f32.mrb[6].mxu0  ;;  %v805_v63 = vpop.f32.mrb[6].mxu1 }
 0x1ce   :  { %v18850_v0 = vadd.f32 %v1375_v59, %v735_v62  ;;  %v18852_v2 = vadd.f32 %v1376_v60, %v805_v63  ;;  %v16105_v3 = vpop.f32.mrb[7].mxu0  ;;  %v16110_v4 = vpop.f32.mrb[7].mxu1  ;;  %16175 = vmatprep.mubr.msk.bf16.mxu0 %vm1437_vm3, %v1419_v61 }
 0x1d0   :  { %23143 = vst [vmem:[#allocation33_spill] sm:$0xff] %v18850_v0  ;;  %23144 = vst [vmem:[#allocation34_spill] sm:$0xff] %v18852_v2  ;;  %v1420_v7 = vpack.c.bf16 %v18852_v2, %v18850_v0 }
 0x1d1   :  { %v875_v8 = vpop.f32.mrb[8].mxu0  ;;  %v945_v9 = vpop.f32.mrb[8].mxu1 }
 0x1d2   :  { %v18857_v10 = vadd.f32 %v1377_v5, %v875_v8  ;;  %v18859_v11 = vadd.f32 %v1378_v6, %v945_v9  ;;  %v16115_v12 = vpop.f32.mrb[9].mxu0  ;;  %v16120_v13 = vpop.f32.mrb[9].mxu1  ;;  %16176 = vmatmul.mubr.msk.bf16.gmra.mrb[36].mxu0 %vm1437_vm3, %v1420_v7 }
 0x1d4   :  { %23145 = vst [vmem:[#allocation35_spill] sm:$0xff] %v18857_v10  ;;  %23146 = vst [vmem:[#allocation36_spill] sm:$0xff] %v18859_v11  ;;  %v1421_v16 = vpack.c.bf16 %v18859_v11, %v18857_v10 }
 0x1d5   :  { %v1015_v17 = vpop.f32.mrb[10].mxu0  ;;  %v1085_v18 = vpop.f32.mrb[10].mxu1 }
 0x1d6   :  { %v18864_v19 = vadd.f32 %v1379_v14, %v1015_v17  ;;  %v18866_v20 = vadd.f32 %v1380_v15, %v1085_v18  ;;  %v16125_v21 = vpop.f32.mrb[11].mxu0  ;;  %v16130_v22 = vpop.f32.mrb[11].mxu1  ;;  %16179 = vmatprep.mubr.msk.bf16.mxu0 %vm1437_vm3, %v1421_v16 }
 0x1d8   :  { %23147 = vst [vmem:[#allocation37_spill] sm:$0xff] %v18864_v19  ;;  %23148 = vst [vmem:[#allocation38_spill] sm:$0xff] %v18866_v20  ;;  %v1422_v25 = vpack.c.bf16 %v18866_v20, %v18864_v19 }
 0x1d9   :  { %v1155_v26 = vpop.f32.mrb[12].mxu0  ;;  %v1225_v27 = vpop.f32.mrb[12].mxu1 }
 0x1da   :  { %16180 = vmatmul.mubr.msk.bf16.gmra.mrb[40].mxu0 %vm1437_vm3, %v1422_v25  ;;  %v18872_v28 = vadd.f32 %v1381_v23, %v1155_v26  ;;  %v18874_v29 = vadd.f32 %v1382_v24, %v1225_v27  ;;  %v16135_v30 = vpop.f32.mrb[13].mxu0  ;;  %v16140_v31 = vpop.f32.mrb[13].mxu1 }
 0x1dc   :  { %23149 = vst [vmem:[#allocation39_spill] sm:$0xff] %v18872_v28  ;;  %23150 = vst [vmem:[#allocation40_spill] sm:$0xff] %v18874_v29  ;;  %v1423_v34 = vpack.c.bf16 %v18874_v29, %v18872_v28 }
 0x1dd   :  { %v1295_v35 = vpop.f32.mrb[14].mxu0  ;;  %v1365_v36 = vpop.f32.mrb[14].mxu1 }
 0x1de   :  { %v18878_v39 = vadd.f32 %v1383_v32, %v1295_v35  ;;  %v18880_v40 = vadd.f32 %v1384_v33, %v1365_v36  ;;  %16183 = vmatprep.mubr.msk.bf16.mxu0 %vm1437_vm3, %v1423_v34  ;;  %v16145_v41 = vpop.f32.mrb[15].mxu0  ;;  %v16150_v42 = vpop.f32.mrb[15].mxu1 }
 0x1e0   :  { %23151 = vst [vmem:[#allocation41_spill] sm:$0xff] %v18878_v39  ;;  %23152 = vst [vmem:[#allocation42_spill] sm:$0xff] %v18880_v40  ;;  %v1424_v43 = vpack.c.bf16 %v18880_v40, %v18878_v39 }
 0x1e2   :  { %16184 = vmatmul.mubr.msk.bf16.gmra.mrb[44].mxu0 %vm1437_vm3, %v1424_v43 }
 0x1e3   :  { %16237 = vmatprep.mubr.msk.bf16.mxu0 %vm18351_vm0, %v23026_v1 }
 0x1e5   :  { %v18888_v44 = vpop.f32.mrb[16].mxu0 }
 0x1e6   :  { %v1520_v45 = vpop.f32.mrb[17].mxu0 }
 0x1e7   :  { %v18890_v48 = vpop.f32.mrb[18].mxu0 }
 0x1e8   :  { %v1523_v49 = vpop.f32.mrb[19].mxu0 }
 0x1ed   :  { %v18892_v50 = vpop.f32.mrb[20].mxu0 }
 0x1ee   :  { %v18894_v51 = vpop.f32.mrb[21].mxu0 }
 0x1ef   :  { %v18896_v52 = vpop.f32.mrb[22].mxu0 }
 0x1f0   :  { %v18898_v53 = vpop.f32.mrb[23].mxu0 }
 0x1f5   :  { %v18900_v54 = vpop.f32.mrb[24].mxu0 }
 0x1f6   :  { %v18902_v57 = vpop.f32.mrb[25].mxu0 }
 0x1f7   :  { %v18904_v58 = vpop.f32.mrb[26].mxu0 }
 0x1f8   :  { %v18906_v59 = vpop.f32.mrb[27].mxu0 }
 0x1fd   :  { %v18908_v60 = vpop.f32.mrb[28].mxu0 }
 0x1fe   :  { %v18910_v61 = vpop.f32.mrb[29].mxu0 }
 0x1ff   :  { %v18912_v62 = vpop.f32.mrb[30].mxu0 }
 0x200   :  { %v18914_v63 = vpop.f32.mrb[31].mxu0 }
 0x29d   :  { %v16173_v3 = vpop.f32.mrb[32].mxu0 }
 0x29e   :  { %v18916_v4 = vpack.c.bf16 %v16173_v3, %v16173_v3  ;;  %v1584_v5 = vpop.f32.mrb[33].mxu0 }
 0x29f   :  { %v18918_v6 = vpack.c.bf16 %v1584_v5, %v1584_v5  ;;  %v16174_v7 = vpop.f32.mrb[34].mxu0  ;;  %v15391_v5 = vpack.c.bf16 %v1520_v45, %v1520_v45  ;;  %v18997_v45 = vpack.c.bf16 %v18894_v51, %v18894_v51  ;;  %v19021_v51 = vpack.c.bf16 %v18902_v57, %v18902_v57 }
 0x2a0   :  { %1839 = vrot.lane.b32.xlu1 %v18916_v4, %s18352_s27  ;;  %v1587_v8 = vpop.f32.mrb[35].mxu0  ;;  %v18924_v9 = vpack.c.bf16 %v16174_v7, %v16174_v7  ;;  %v18980_v7 = vpack.c.bf16 %v1523_v49, %v1523_v49  ;;  %v19015_v49 = vpack.c.bf16 %v18896_v52, %v18896_v52  ;;  %v19033_v52 = vpack.c.bf16 %v18900_v54, %v18900_v54 }
 0x2a1   :  { %1743 = vrot.lane.b32.xlu0 %v18918_v6, %s18352_s27  ;;  %v18926_v12 = vpack.c.bf16 %v1587_v8, %v1587_v8  ;;  %v18985_v8 = vpack.c.bf16 %v18888_v44, %v18888_v44  ;;  %v19003_v44 = vpack.c.bf16 %v18898_v53, %v18898_v53  ;;  %v19039_v53 = vpack.c.bf16 %v18904_v58, %v18904_v58 }
 0x2a2   :  { %v19045_v57 = vpack.c.bf16 %v18910_v61, %v18910_v61  ;;  %v19051_v54 = vpack.c.bf16 %v18914_v63, %v18914_v63  ;;  %v19057_v58 = vpack.c.bf16 %v18908_v60, %v18908_v60 }
 0x2a4   :  { %1887 = vrot.lane.b32.xlu1 %v18924_v9, %s18352_s27  ;;  %23153 = vst [vmem:[#allocation43_spill] sm:$0xff] %v19057_v58 }
 0x2a5   :  { %1791 = vrot.lane.b32.xlu0 %v18926_v12, %s18352_s27  ;;  %v16177_v13 = vpop.f32.mrb[36].mxu0 }
 0x2a6   :  { %v1600_v14 = vpop.f32.mrb[37].mxu0  ;;  %v18934_v18 = vpack.c.bf16 %v16177_v13, %v16177_v13  ;;  %v18991_v13 = vpack.c.bf16 %v18890_v48, %v18890_v48  ;;  %v19009_v48 = vpack.c.bf16 %v18892_v50, %v18892_v50  ;;  %v19027_v50 = vpack.c.bf16 %v18906_v59, %v18906_v59 }
 0x2a7   :  { %v18932_v15 = vpack.c.bf16 %v1600_v14, %v1600_v14  ;;  %v16178_v16 = vpop.f32.mrb[38].mxu0  ;;  %v19063_v59 = vpack.c.bf16 %v18912_v62, %v18912_v62 }
 0x2a8   :  { %v1603_v17 = vpop.f32.mrb[39].mxu0  ;;  %v18940_v22 = vpack.c.bf16 %v16178_v16, %v16178_v16 }
 0x2a9   :  { %v18936_v21 = vpack.c.bf16 %v1603_v17, %v1603_v17  ;;  %1935 = vrot.lane.b32.xlu0 %v18932_v15, %s18352_s27 }
 0x2ab   :  { %1983 = vrot.lane.b32.xlu1 %v18936_v21, %s18352_s27 }
 0x2ad   :  { %2031 = vrot.lane.b32.xlu0 %v18934_v18, %s18352_s27  ;;  %v16181_v23 = vpop.f32.mrb[40].mxu0 }
 0x2ae   :  { %v1616_v24 = vpop.f32.mrb[41].mxu0  ;;  %v18950_v30 = vpack.c.bf16 %v16181_v23, %v16181_v23 }
 0x2af   :  { %v18946_v25 = vpack.c.bf16 %v1616_v24, %v1616_v24  ;;  %2079 = vrot.lane.b32.xlu1 %v18940_v22, %s18352_s27  ;;  %v16182_v26 = vpop.f32.mrb[42].mxu0 }
 0x2b0   :  { %v1619_v27 = vpop.f32.mrb[43].mxu0  ;;  %v18956_v32 = vpack.c.bf16 %v16182_v26, %v16182_v26 }
 0x2b1   :  { %v18952_v31 = vpack.c.bf16 %v1619_v27, %v1619_v27  ;;  %2127 = vrot.lane.b32.xlu0 %v18946_v25, %s18352_s27 }
 0x2b3   :  { %2175 = vrot.lane.b32.xlu1 %v18952_v31, %s18352_s27 }
 0x2b5   :  { %2223 = vrot.lane.b32.xlu0 %v18950_v30, %s18352_s27  ;;  %v16185_v33 = vpop.f32.mrb[44].mxu0 }
 0x2b6   :  { %v1632_v34 = vpop.f32.mrb[45].mxu0  ;;  %v18966_v42 = vpack.c.bf16 %v16185_v33, %v16185_v33 }
 0x2b7   :  { %v18962_v35 = vpack.c.bf16 %v1632_v34, %v1632_v34  ;;  %2271 = vrot.lane.b32.xlu1 %v18956_v32, %s18352_s27  ;;  %v16186_v36 = vpop.f32.mrb[46].mxu0 }
 0x2b8   :  { %v1635_v41 = vpop.f32.mrb[47].mxu0  ;;  %v18972_v3 = vpack.c.bf16 %v16186_v36, %v16186_v36 }
 0x2b9   :  { %v18968_v43 = vpack.c.bf16 %v1635_v41, %v1635_v41  ;;  %2319 = vrot.lane.b32.xlu0 %v18962_v35, %s18352_s27 }
 0x2bb   :  { %2367 = vrot.lane.b32.xlu1 %v18968_v43, %s18352_s27 }
 0x2bd   :  { %2415 = vrot.lane.b32.xlu0 %v18966_v42, %s18352_s27 }
 0x2bf   :  { %2463 = vrot.lane.b32.xlu1 %v18972_v3, %s18352_s27 }
 0x2c1   :  { %2511 = vrot.lane.b32.xlu0 %v15391_v5, %s18352_s27 }
 0x2c3   :  { %2559 = vrot.lane.b32.xlu1 %v18980_v7, %s18352_s27 }
 0x2c5   :  { %2607 = vrot.lane.b32.xlu0 %v18985_v8, %s18352_s27 }
 0x2c7   :  { %2655 = vrot.lane.b32.xlu1 %v18991_v13, %s18352_s27 }
 0x2c9   :  { %2703 = vrot.lane.b32.xlu0 %v18997_v45, %s18352_s27 }
 0x2cb   :  { %2751 = vrot.lane.b32.xlu1 %v19003_v44, %s18352_s27 }
 0x2cd   :  { %2799 = vrot.lane.b32.xlu0 %v19009_v48, %s18352_s27 }
 0x2cf   :  { %2847 = vrot.lane.b32.xlu1 %v19015_v49, %s18352_s27 }
 0x2d1   :  { %2895 = vrot.lane.b32.xlu0 %v19021_v51, %s18352_s27 }
 0x2d3   :  { %2943 = vrot.lane.b32.xlu1 %v19027_v50, %s18352_s27 }
 0x2d5   :  { %2991 = vrot.lane.b32.xlu0 %v19033_v52, %s18352_s27 }
 0x2d7   :  { %3039 = vrot.lane.b32.xlu1 %v19039_v53, %s18352_s27 }
 0x2d9   :  { %3087 = vrot.lane.b32.xlu0 %v19045_v57, %s18352_s27 }
 0x2db   :  { %3135 = vrot.lane.b32.xlu1 %v19051_v54, %s18352_s27 }
 0x2dd   :  { %3183 = vrot.lane.b32.xlu0 %v19057_v58, %s18352_s27 }
 0x2df   :  { %3231 = vrot.lane.b32.xlu1 %v19063_v59, %s18352_s27 }
 0x2e1   :  { %3712 = vrot.lane.b32.xlu0 %v18926_v12, %s18336_s25 }
 0x2e3   :  { %3663 = vrot.lane.b32.xlu1 %v18918_v6, %s18336_s25 }
 0x2e5   :  { %3808 = vrot.lane.b32.xlu0 %v18924_v9, %s18336_s25 }
 0x2e7   :  { %3760 = vrot.lane.b32.xlu1 %v18916_v4, %s18336_s25 }
 0x2e9   :  { %3904 = vrot.lane.b32.xlu0 %v18936_v21, %s18336_s25 }
 0x2eb   :  { %3856 = vrot.lane.b32.xlu1 %v18932_v15, %s18336_s25 }
 0x2ed   :  { %4000 = vrot.lane.b32.xlu0 %v18940_v22, %s18336_s25 }
 0x2ef   :  { %3952 = vrot.lane.b32.xlu1 %v18934_v18, %s18336_s25 }
 0x2f1   :  { %4096 = vrot.lane.b32.xlu0 %v18952_v31, %s18336_s25 }
 0x2f3   :  { %4048 = vrot.lane.b32.xlu1 %v18946_v25, %s18336_s25 }
 0x2f5   :  { %4192 = vrot.lane.b32.xlu0 %v18956_v32, %s18336_s25 }
 0x2f7   :  { %4144 = vrot.lane.b32.xlu1 %v18950_v30, %s18336_s25 }
 0x2f9   :  { %4432 = vrot.lane.b32.xlu0 %v15391_v5, %s18336_s25 }
 0x2fb   :  { %4240 = vrot.lane.b32.xlu1 %v18962_v35, %s18336_s25 }
 0x2fd   :  { %4528 = vrot.lane.b32.xlu0 %v18985_v8, %s18336_s25 }
 0x2ff   :  { %4336 = vrot.lane.b32.xlu1 %v18966_v42, %s18336_s25 }
 0x301   :  { %4624 = vrot.lane.b32.xlu0 %v18997_v45, %s18336_s25 }
 0x303   :  { %4384 = vrot.lane.b32.xlu1 %v18972_v3, %s18336_s25 }
 0x305   :  { %4288 = vrot.lane.b32.xlu0 %v18968_v43, %s18336_s25 }
 0x307   :  { %4480 = vrot.lane.b32.xlu1 %v18980_v7, %s18336_s25 }
 0x30b   :  { %4576 = vrot.lane.b32.xlu1 %v18991_v13, %s18336_s25 }
 0x30f   :  { %4672 = vrot.lane.b32.xlu1 %v19003_v44, %s18336_s25 }
 0x312   :  { %v1840_v17 = vpop.permute.xlu1 %1839 }
 0x313   :  { %v1744_v60 = vpop.permute.xlu0 %1743  ;;  %v1845_v24 = vsel %vm1437_vm3, %v1840_v17, 0 }
 0x314   :  { %v1749_v61 = vsel %vm1437_vm3, %v1744_v60, 0 }
 0x315   :  { %16188 = vmatpush3.bf16.xpose.msra.mxu1 %v1749_v61 }
 0x316   :  { %16193 = vmatprep.subr.bf16.mxu1 %v23026_v1  ;;  %v1888_v27 = vpop.permute.xlu1 %1887 }
 0x317   :  { %v1792_v62 = vpop.permute.xlu0 %1791  ;;  %v1893_v36 = vsel %vm1437_vm3, %v1888_v27, 0 }
 0x318   :  { %v1797_v14 = vsel %vm1437_vm3, %v1792_v62, 0 }
 0x31b   :  { %v1936_v63 = vpop.permute.xlu0 %1935 }
 0x31c   :  { %16190 = vmatmul.mubr.msk.bf16.vlgmr.msra.gmra.mrb[16].mxu1 %vm1437_vm3, %v15391_v5  ;;  %v1941_v60 = vsel %vm1437_vm3, %v1936_v63, 0 }
 0x31d   :  { %16194 = vmatpush3.bf16.xpose.msra.mxu1 %v1797_v14  ;;  %16195 = vmatprep.mubr.msk.bf16.mxu1 %vm18351_vm0, %v23026_v1  ;;  %v1984_v41 = vpop.permute.xlu1 %1983 }
 0x31e   :  { %16199 = vmatprep.subr.bf16.mxu1 %v23026_v1 }
 0x31f   :  { %v2032_v16 = vpop.permute.xlu0 %2031 }
 0x323   :  { %v2128_v23 = vpop.permute.xlu0 %2127 }
 0x324   :  { %v2133_v26 = vsel %vm1437_vm3, %v2128_v23, 0  ;;  %16196 = vmatmul.mubr.msk.bf16.vlgmr.msra.gmra.mrb[20].mxu1 %vm1437_vm3, %v18980_v7  ;;  %v2037_v23 = vsel %vm1437_vm3, %v2032_v16, 0 }
 0x325   :  { %16200 = vmatpush3.bf16.xpose.msra.mxu1 %v1845_v24  ;;  %16236 = vmatpush3.bf16.xpose.msra.mxu0 %v2133_v26 }
 0x326   :  { %16201 = vmatprep.mubr.msk.bf16.mxu1 %vm18351_vm0, %v23026_v1  ;;  %16205 = vmatprep.subr.bf16.mxu1 %v23026_v1 }
 0x327   :  { %16247 = vmatprep.subr.bf16.mxu0 %v23026_v1  ;;  %v2224_v33 = vpop.permute.xlu0 %2223 }
 0x328   :  { %v2229_v34 = vsel %vm1437_vm3, %v2224_v33, 0 }
 0x32b   :  { %v2320_v5 = vpop.permute.xlu0 %2319 }
 0x32c   :  { %16202 = vmatmul.mubr.msk.bf16.vlgmr.msra.gmra.mrb[24].mxu1 %vm1437_vm3, %v18985_v8  ;;  %16238 = vmatmul.mubr.msk.bf16.vlgmr.msra.gmra.mrb[48].mxu0 %vm1437_vm3, %v19021_v51  ;;  %v2325_v7 = vsel %vm1437_vm3, %v2320_v5, 0  ;;  %v2080_v8 = vpop.permute.xlu1 %2079 }
 0x32d   :  { %16206 = vmatpush3.bf16.xpose.msra.mxu1 %v1893_v36  ;;  %16248 = vmatpush3.bf16.xpose.msra.mxu0 %v2229_v34 }
 0x32e   :  { %16207 = vmatprep.mubr.msk.bf16.mxu1 %vm18351_vm0, %v23026_v1  ;;  %16249 = vmatprep.mubr.msk.bf16.mxu0 %vm18351_vm0, %v23026_v1 }
 0x32f   :  { %16211 = vmatprep.subr.bf16.mxu1 %v23026_v1  ;;  %16259 = vmatprep.subr.bf16.mxu0 %v23026_v1  ;;  %v2416_v62 = vpop.permute.xlu0 %2415 }
 0x330   :  { %v2176_v61 = vpop.permute.xlu1 %2175  ;;  %v2421_v63 = vsel %vm1437_vm3, %v2416_v62, 0 }
 0x331   :  { %v2181_v36 = vsel %vm1437_vm3, %v2176_v61, 0 }
 0x333   :  { %v2512_v17 = vpop.permute.xlu0 %2511 }
 0x334   :  { %16208 = vmatmul.mubr.msk.bf16.vlgmr.msra.gmra.mrb[28].mxu1 %vm1437_vm3, %v18991_v13  ;;  %16250 = vmatmul.mubr.msk.bf16.vlgmr.msra.gmra.mrb[52].mxu0 %vm1437_vm3, %v19033_v52  ;;  %v1989_v13 = vsel %vm1437_vm3, %v1984_v41, 0  ;;  %v2272_v14 = vpop.permute.xlu1 %2271 }
 0x335   :  { %16212 = vmatpush3.bf16.xpose.msra.mxu1 %v1941_v60  ;;  %16260 = vmatpush3.bf16.xpose.msra.mxu0 %v2325_v7  ;;  %v2277_v7 = vsel %vm1437_vm3, %v2272_v14, 0 }
 0x336   :  { %16213 = vmatprep.mubr.msk.bf16.mxu1 %vm18351_vm0, %v23026_v1  ;;  %16261 = vmatprep.mubr.msk.bf16.mxu0 %vm18351_vm0, %v23026_v1 }
 0x337   :  { %16217 = vmatprep.subr.bf16.mxu1 %v23026_v1  ;;  %16271 = vmatprep.subr.bf16.mxu0 %v23026_v1  ;;  %v2608_v16 = vpop.permute.xlu0 %2607 }
 0x338   :  { %v2368_v24 = vpop.permute.xlu1 %2367  ;;  %v2613_v27 = vsel %vm1437_vm3, %v2608_v16, 0 }
 0x339   :  { %v2373_v62 = vsel %vm1437_vm3, %v2368_v24, 0 }
 0x33b   :  { %v2704_v34 = vpop.permute.xlu0 %2703 }
 0x33c   :  { %16214 = vmatmul.mubr.msk.bf16.vlgmr.msra.gmra.mrb[32].mxu1 %vm1437_vm3, %v18997_v45  ;;  %16262 = vmatmul.mubr.msk.bf16.vlgmr.msra.gmra.mrb[56].mxu0 %vm1437_vm3, %v19045_v57  ;;  %v2517_v45 = vsel %vm1437_vm3, %v2512_v17, 0  ;;  %v2464_v26 = vpop.permute.xlu1 %2463  ;;  %v2709_v41 = vsel %vm1437_vm3, %v2704_v34, 0 }
 0x33d   :  { %16218 = vmatpush3.bf16.xpose.msra.mxu1 %v1989_v13  ;;  %16272 = vmatpush3.bf16.xpose.msra.mxu0 %v2421_v63  ;;  %v2469_v14 = vsel %vm1437_vm3, %v2464_v26, 0 }
 0x33e   :  { %16219 = vmatprep.mubr.msk.bf16.mxu1 %vm18351_vm0, %v23026_v1  ;;  %16273 = vmatprep.mubr.msk.bf16.mxu0 %vm18351_vm0, %v23026_v1 }
 0x33f   :  { %16223 = vmatprep.subr.bf16.mxu1 %v23026_v1  ;;  %16283 = vmatprep.subr.bf16.mxu0 %v23026_v1  ;;  %v2800_v5 = vpop.permute.xlu0 %2799 }
 0x340   :  { %v2560_v33 = vpop.permute.xlu1 %2559 }
 0x343   :  { %v2896_v60 = vpop.permute.xlu0 %2895 }
 0x344   :  { %16220 = vmatmul.mubr.msk.bf16.vlgmr.msra.gmra.mrb[36].mxu1 %vm1437_vm3, %v19003_v44  ;;  %16274 = vmatmul.mubr.msk.bf16.vlgmr.msra.gmra.mrb[60].mxu0 %vm1437_vm3, %v19057_v58  ;;  %v2085_v44 = vsel %vm1437_vm3, %v2080_v8, 0  ;;  %v2805_v8 = vsel %vm1437_vm3, %v2800_v5, 0  ;;  %v2901_v63 = vsel %vm1437_vm3, %v2896_v60, 0 }
 0x345   :  { %16224 = vmatpush3.bf16.xpose.msra.mxu1 %v2037_v23  ;;  %16284 = vmatpush3.bf16.xpose.msra.mxu0 %v2517_v45  ;;  %v2565_v45 = vsel %vm1437_vm3, %v2560_v33, 0 }
 0x346   :  { %16225 = vmatprep.mubr.msk.bf16.mxu1 %vm18351_vm0, %v23026_v1  ;;  %16285 = vmatprep.mubr.msk.bf16.mxu0 %vm18351_vm0, %v23026_v1 }
 0x347   :  { %16229 = vmatprep.subr.bf16.mxu1 %v23026_v1  ;;  %16295 = vmatprep.subr.bf16.mxu0 %v23026_v1  ;;  %v2992_v13 = vpop.permute.xlu0 %2991 }
 0x348   :  { %v2997_v17 = vsel %vm1437_vm3, %v2992_v13, 0 }
 0x34b   :  { %v3088_v23 = vpop.permute.xlu0 %3087 }
 0x34c   :  { %16226 = vmatmul.mubr.msk.bf16.vlgmr.msra.gmra.mrb[40].mxu1 %vm1437_vm3, %v19009_v48  ;;  %16286 = vmatmul.mubr.msk.bf16.vlgmr.msra.gmra.mrb[64].mxu0 %vm1437_vm3, %v18918_v6  ;;  %v2656_v6 = vpop.permute.xlu1 %2655  ;;  %v3093_v24 = vsel %vm1437_vm3, %v3088_v23, 0 }
 0x34d   :  { %16230 = vmatpush3.bf16.xpose.msra.mxu1 %v2085_v44  ;;  %16296 = vmatpush3.bf16.xpose.msra.mxu0 %v2613_v27  ;;  %v2661_v44 = vsel %vm1437_vm3, %v2656_v6, 0 }
 0x34e   :  { %16231 = vmatprep.mubr.msk.bf16.mxu1 %vm18351_vm0, %v23026_v1  ;;  %16297 = vmatprep.mubr.msk.bf16.mxu0 %vm18351_vm0, %v23026_v1 }
 0x34f   :  { %16241 = vmatprep.subr.bf16.mxu1 %v23026_v1  ;;  %16307 = vmatprep.subr.bf16.mxu0 %v23026_v1  ;;  %v3184_v16 = vpop.permute.xlu0 %3183 }
 0x350   :  { %v3189_v27 = vsel %vm1437_vm3, %v3184_v16, 0 }
 0x354   :  { %16232 = vmatmul.mubr.msk.bf16.vlgmr.msra.gmra.mrb[44].mxu1 %vm1437_vm3, %v19015_v49  ;;  %16298 = vmatmul.mubr.msk.bf16.vlgmr.msra.gmra.mrb[68].mxu0 %vm1437_vm3, %v18916_v4  ;;  %v2752_v4 = vpop.permute.xlu1 %2751 }
 0x355   :  { %16242 = vmatpush3.bf16.xpose.msra.mxu1 %v2181_v36  ;;  %16308 = vmatpush3.bf16.xpose.msra.mxu0 %v2709_v41  ;;  %v2757_v33 = vsel %vm1437_vm3, %v2752_v4, 0 }
 0x356   :  { %16243 = vmatprep.mubr.msk.bf16.mxu1 %vm18351_vm0, %v23026_v1  ;;  %16309 = vmatprep.mubr.msk.bf16.mxu0 %vm18351_vm0, %v23026_v1 }
 0x357   :  { %16253 = vmatprep.subr.bf16.mxu1 %v23026_v1  ;;  %16319 = vmatprep.subr.bf16.mxu0 %v23026_v1 }
 0x358   :  { %v2848_v61 = vpop.permute.xlu1 %2847 }
 0x35c   :  { %16244 = vmatmul.mubr.msk.bf16.vlgmr.msra.gmra.mrb[48].mxu1 %vm1437_vm3, %v19027_v50  ;;  %16310 = vmatmul.mubr.msk.bf16.vlgmr.msra.gmra.mrb[72].mxu0 %vm1437_vm3, %v18932_v15  ;;  %v2944_v15 = vpop.permute.xlu1 %2943 }
 0x35d   :  { %16254 = vmatpush3.bf16.xpose.msra.mxu1 %v2277_v7  ;;  %16320 = vmatpush3.bf16.xpose.msra.mxu0 %v2805_v8 }
 0x35e   :  { %16255 = vmatprep.mubr.msk.bf16.mxu1 %vm18351_vm0, %v23026_v1  ;;  %16321 = vmatprep.mubr.msk.bf16.mxu0 %vm18351_vm0, %v23026_v1 }
 0x35f   :  { %16265 = vmatprep.subr.bf16.mxu1 %v23026_v1  ;;  %16331 = vmatprep.subr.bf16.mxu0 %v23026_v1 }
 0x364   :  { %16256 = vmatmul.mubr.msk.bf16.vlgmr.msra.gmra.mrb[52].mxu1 %vm1437_vm3, %v19039_v53  ;;  %16322 = vmatmul.mubr.msk.bf16.vlgmr.msra.gmra.mrb[76].mxu0 %vm1437_vm3, %v18934_v18  ;;  %v3040_v18 = vpop.permute.xlu1 %3039 }
 0x365   :  { %16266 = vmatpush3.bf16.xpose.msra.mxu1 %v2373_v62  ;;  %16332 = vmatpush3.bf16.xpose.msra.mxu0 %v2901_v63 }
 0x366   :  { %16267 = vmatprep.mubr.msk.bf16.mxu1 %vm18351_vm0, %v23026_v1  ;;  %16333 = vmatprep.mubr.msk.bf16.mxu0 %vm18351_vm0, %v23026_v1 }
 0x367   :  { %16277 = vmatprep.subr.bf16.mxu1 %v23026_v1  ;;  %16343 = vmatprep.subr.bf16.mxu0 %v23026_v1 }
 0x36c   :  { %16268 = vmatmul.mubr.msk.bf16.vlgmr.msra.gmra.mrb[56].mxu1 %vm1437_vm3, %v19051_v54  ;;  %16334 = vmatmul.mubr.msk.bf16.vlgmr.msra.gmra.mrb[80].mxu0 %vm1437_vm3, %v18946_v25  ;;  %v3136_v25 = vpop.permute.xlu1 %3135 }
 0x36d   :  { %16278 = vmatpush3.bf16.xpose.msra.mxu1 %v2469_v14  ;;  %16344 = vmatpush3.bf16.xpose.msra.mxu0 %v2997_v17 }
 0x36e   :  { %16345 = vmatprep.mubr.msk.bf16.mxu0 %vm18351_vm0, %v23026_v1  ;;  %16279 = vmatprep.mubr.msk.bf16.mxu1 %vm18351_vm0, %v23026_v1 }
 0x36f   :  { %16289 = vmatprep.subr.bf16.mxu1 %v23026_v1  ;;  %16355 = vmatprep.subr.bf16.mxu0 %v23026_v1 }
 0x370   :  { %v3232_v26 = vpop.permute.xlu1 %3231 }
 0x374   :  { %16280 = vmatmul.mubr.msk.bf16.vlgmr.msra.gmra.mrb[60].mxu1 %vm1437_vm3, %v19063_v59  ;;  %16346 = vmatmul.mubr.msk.bf16.vlgmr.msra.gmra.mrb[84].mxu0 %vm1437_vm3, %v18950_v30  ;;  %v3664_v30 = vpop.permute.xlu1 %3663 }
 0x375   :  { %16290 = vmatpush3.bf16.xpose.msra.mxu1 %v2565_v45  ;;  %16356 = vmatpush3.bf16.xpose.msra.mxu0 %v3093_v24 }
 0x376   :  { %16291 = vmatprep.mubr.msk.bf16.mxu1 %vm18351_vm0, %v23026_v1  ;;  %16357 = vmatprep.mubr.msk.bf16.mxu0 %vm18351_vm0, %v23026_v1 }
 0x377   :  { %16301 = vmatprep.subr.bf16.mxu1 %v23026_v1  ;;  %16367 = vmatprep.subr.bf16.mxu0 %v23026_v1 }
 0x37c   :  { %16292 = vmatmul.mubr.msk.bf16.vlgmr.msra.gmra.mrb[64].mxu1 %vm1437_vm3, %v18926_v12  ;;  %16358 = vmatmul.mubr.msk.bf16.vlgmr.msra.gmra.mrb[88].mxu0 %vm1437_vm3, %v18962_v35  ;;  %v3670_v12 = vsel %vm3668_vm4, %v3664_v30, 0  ;;  %v2853_v35 = vsel %vm1437_vm3, %v2848_v61, 0 }
 0x37d   :  { %16302 = vmatpush3.bf16.xpose.msra.mxu1 %v2661_v44  ;;  %16368 = vmatpush3.bf16.xpose.msra.mxu0 %v3189_v27 }
 0x37e   :  { %16303 = vmatprep.mubr.msk.bf16.mxu1 %vm18351_vm0, %v23026_v1  ;;  %16369 = vmatprep.mubr.msk.bf16.mxu0 %vm18351_vm0, %v23026_v1 }
 0x37f   :  { %16313 = vmatprep.subr.bf16.mxu1 %v23026_v1  ;;  %16379 = vmatprep.subr.bf16.mxu0 %v23026_v1 }
 0x384   :  { %16304 = vmatmul.mubr.msk.bf16.vlgmr.msra.gmra.mrb[68].mxu1 %vm1437_vm3, %v18924_v9  ;;  %16370 = vmatmul.mubr.msk.bf16.vlgmr.msra.gmra.mrb[92].mxu0 %vm1437_vm3, %v18966_v42  ;;  %v2949_v9 = vsel %vm1437_vm3, %v2944_v15, 0  ;;  %v3045_v42 = vsel %vm1437_vm3, %v3040_v18, 0 }
 0x385   :  { %16314 = vmatpush3.bf16.xpose.msra.mxu1 %v2757_v33  ;;  %16380 = vmatpush3.bf16.msra.mxu0 %v3670_v12 }
 0x386   :  { %16315 = vmatprep.mubr.msk.bf16.mxu1 %vm18351_vm0, %v23026_v1  ;;  %16325 = vmatprep.subr.bf16.mxu1 %v23026_v1 }
 0x387   :  { %16381 = vmatprep.mubr.msk.bf16.mxu0 %vm18351_vm0, %v23026_v1  ;;  %16391 = vmatprep.subr.bf16.mxu0 %v23026_v1 }
 0x38c   :  { %16316 = vmatmul.mubr.msk.bf16.vlgmr.msra.gmra.mrb[72].mxu1 %vm1437_vm3, %v18936_v21  ;;  %v3141_v21 = vsel %vm1437_vm3, %v3136_v25, 0 }
 0x38d   :  { %16326 = vmatpush3.bf16.xpose.msra.mxu1 %v2853_v35  ;;  %16327 = vmatprep.mubr.msk.bf16.mxu1 %vm18351_vm0, %v23026_v1 }
 0x38e   :  { %16337 = vmatprep.subr.bf16.mxu1 %v23026_v1 }
 0x394   :  { %16328 = vmatmul.mubr.msk.bf16.vlgmr.msra.gmra.mrb[76].mxu1 %vm1437_vm3, %v18940_v22  ;;  %v3237_v22 = vsel %vm1437_vm3, %v3232_v26, 0 }
 0x395   :  { %16338 = vmatpush3.bf16.xpose.msra.mxu1 %v2949_v9  ;;  %16339 = vmatprep.mubr.msk.bf16.mxu1 %vm18351_vm0, %v23026_v1 }
 0x396   :  { %16349 = vmatprep.subr.bf16.mxu1 %v23026_v1 }
 0x39c   :  { %16340 = vmatmul.mubr.msk.bf16.vlgmr.msra.gmra.mrb[80].mxu1 %vm1437_vm3, %v18952_v31  ;;  %v3713_v31 = vpop.permute.xlu0 %3712 }
 0x39d   :  { %16350 = vmatpush3.bf16.xpose.msra.mxu1 %v3045_v42  ;;  %16351 = vmatprep.mubr.msk.bf16.mxu1 %vm18351_vm0, %v23026_v1 }
 0x39e   :  { %16361 = vmatprep.subr.bf16.mxu1 %v23026_v1 }
 0x3a4   :  { %16352 = vmatmul.mubr.msk.bf16.vlgmr.msra.gmra.mrb[84].mxu1 %vm1437_vm3, %v18956_v32  ;;  %v3718_v32 = vsel %vm3668_vm4, %v3713_v31, 0 }
 0x3a5   :  { %16362 = vmatpush3.bf16.xpose.msra.mxu1 %v3141_v21  ;;  %16363 = vmatprep.mubr.msk.bf16.mxu1 %vm18351_vm0, %v23026_v1 }
 0x3a6   :  { %16373 = vmatprep.subr.bf16.mxu1 %v23026_v1 }
 0x3ac   :  { %16364 = vmatmul.mubr.msk.bf16.vlgmr.msra.gmra.mrb[88].mxu1 %vm1437_vm3, %v18968_v43 }
 0x3ad   :  { %16374 = vmatpush3.bf16.xpose.msra.mxu1 %v3237_v22  ;;  %16375 = vmatprep.mubr.msk.bf16.mxu1 %vm18351_vm0, %v23026_v1 }
 0x3ae   :  { %16385 = vmatprep.subr.bf16.mxu1 %v23026_v1 }
 0x3b4   :  { %16376 = vmatmul.mubr.msk.bf16.vlgmr.msra.gmra.mrb[92].mxu1 %vm1437_vm3, %v18972_v3 }
 0x3b5   :  { %16386 = vmatpush3.bf16.msra.mxu1 %v3718_v32  ;;  %16387 = vmatprep.mubr.msk.bf16.mxu1 %vm18351_vm0, %v23026_v1 }
 0x3b6   :  { %16397 = vmatprep.subr.bf16.mxu1 %v23026_v1 }
 0x3ef   :  { %v19307_v34 = vpop.f32.mrb[16].mxu1 }
 0x3f0   :  { %v16191_v43 = vpop.f32.mrb[17].mxu1  ;;  %v3279_v36 = vsel %vm245_vm2, %v19307_v34, -inf }
 0x3f1   :  { %v1788_v41 = vpop.f32.mrb[18].mxu1  ;;  %3280 = vmax.xlane.f32.xlu0 %v3279_v36 }
 0x3f2   :  { %v16192_v6 = vpop.f32.mrb[19].mxu1 }
 0x3f7   :  { %v19311_v5 = vpop.f32.mrb[20].mxu1 }
 0x3f8   :  { %v16197_v7 = vpop.f32.mrb[21].mxu1  ;;  %v3282_v3 = vsel %vm245_vm2, %v19311_v5, -inf }
 0x3f9   :  { %v1836_v8 = vpop.f32.mrb[22].mxu1  ;;  %3283 = vmax.xlane.f32.xlu1 %v3282_v3 }
 0x3fa   :  { %v16198_v4 = vpop.f32.mrb[23].mxu1 }
 0x3ff   :  { %v19315_v60 = vpop.f32.mrb[24].mxu1  ;;  %v19317_v61 = vpop.f32.mrb[48].mxu0 }
 0x400   :  { %v16203_v62 = vpop.f32.mrb[25].mxu1  ;;  %v16239_v63 = vpop.f32.mrb[49].mxu0  ;;  %v3285_v15 = vsel %vm245_vm2, %v19315_v60, -inf  ;;  %v3303_v13 = vsel %vm245_vm2, %v19317_v61, -inf }
 0x401   :  { %v1884_v14 = vpop.f32.mrb[26].mxu1  ;;  %v2172_v17 = vpop.f32.mrb[50].mxu0  ;;  %3286 = vmax.xlane.f32.xlu0 %v3285_v15  ;;  %3304 = vmax.xlane.f32.xlu1 %v3303_v13 }
 0x402   :  { %v16204_v18 = vpop.f32.mrb[27].mxu1  ;;  %v16240_v23 = vpop.f32.mrb[51].mxu0 }
 0x407   :  { %v19323_v45 = vpop.f32.mrb[28].mxu1  ;;  %v19325_v24 = vpop.f32.mrb[52].mxu0 }
 0x408   :  { %v16209_v25 = vpop.f32.mrb[29].mxu1  ;;  %v16251_v16 = vpop.f32.mrb[53].mxu0  ;;  %v3288_v26 = vsel %vm245_vm2, %v19323_v45, -inf  ;;  %v3309_v44 = vsel %vm245_vm2, %v19325_v24, -inf }
 0x409   :  { %v1932_v27 = vpop.f32.mrb[30].mxu1  ;;  %v2268_v30 = vpop.f32.mrb[54].mxu0  ;;  %3289 = vmax.xlane.f32.xlu0 %v3288_v26  ;;  %3310 = vmax.xlane.f32.xlu1 %v3309_v44 }
 0x40a   :  { %v16210_v33 = vpop.f32.mrb[31].mxu1  ;;  %v16252_v12 = vpop.f32.mrb[55].mxu0 }
 0x40f   :  { %v19331_v35 = vpop.f32.mrb[32].mxu1  ;;  %v19333_v9 = vpop.f32.mrb[56].mxu0 }
 0x410   :  { %v16215_v42 = vpop.f32.mrb[33].mxu1  ;;  %v16263_v21 = vpop.f32.mrb[57].mxu0  ;;  %v3291_v22 = vsel %vm245_vm2, %v19331_v35, -inf  ;;  %v3315_v41 = vsel %vm245_vm2, %v19333_v9, -inf }
 0x411   :  { %v1980_v31 = vpop.f32.mrb[34].mxu1  ;;  %v2364_v32 = vpop.f32.mrb[58].mxu0  ;;  %3292 = vmax.xlane.f32.xlu1 %v3291_v22 }
 0x412   :  { %v16216_v43 = vpop.f32.mrb[35].mxu1  ;;  %v16264_v36 = vpop.f32.mrb[59].mxu0 }
 0x415   :  { %3316 = vmax.xlane.f32.xlu1 %v3315_v41 }
 0x417   :  { %v19339_v6 = vpop.f32.mrb[36].mxu1  ;;  %v19341_v7 = vpop.f32.mrb[60].mxu0 }
 0x418   :  { %v16221_v3 = vpop.f32.mrb[37].mxu1  ;;  %v16275_v8 = vpop.f32.mrb[61].mxu0  ;;  %v3294_v4 = vsel %vm245_vm2, %v19339_v6, -inf  ;;  %v3321_v62 = vsel %vm245_vm2, %v19341_v7, -inf }
 0x419   :  { %v2028_v63 = vpop.f32.mrb[38].mxu1  ;;  %v2460_v15 = vpop.f32.mrb[62].mxu0  ;;  %3295 = vmax.xlane.f32.xlu0 %v3294_v4  ;;  %3322 = vmax.xlane.f32.xlu1 %v3321_v62 }
 0x41a   :  { %v16222_v13 = vpop.f32.mrb[39].mxu1  ;;  %v16276_v14 = vpop.f32.mrb[63].mxu0 }
 0x41f   :  { %v19347_v17 = vpop.f32.mrb[40].mxu1  ;;  %v19349_v18 = vpop.f32.mrb[64].mxu0 }
 0x420   :  { %v16227_v23 = vpop.f32.mrb[41].mxu1  ;;  %v16287_v25 = vpop.f32.mrb[65].mxu0  ;;  %v3297_v16 = vsel %vm245_vm2, %v19347_v17, -inf  ;;  %v3327_v33 = vsel %vm245_vm2, %v19349_v18, -inf }
 0x421   :  { %v2076_v26 = vpop.f32.mrb[42].mxu1  ;;  %v2556_v44 = vpop.f32.mrb[66].mxu0  ;;  %3298 = vmax.xlane.f32.xlu1 %v3297_v16 }
 0x422   :  { %v16228_v27 = vpop.f32.mrb[43].mxu1  ;;  %v16288_v30 = vpop.f32.mrb[67].mxu0 }
 0x425   :  { %3328 = vmax.xlane.f32.xlu1 %v3327_v33 }
 0x427   :  { %v19355_v12 = vpop.f32.mrb[44].mxu1  ;;  %v19357_v42 = vpop.f32.mrb[68].mxu0 }
 0x428   :  { %v16233_v21 = vpop.f32.mrb[45].mxu1  ;;  %v16299_v22 = vpop.f32.mrb[69].mxu0  ;;  %v3300_v31 = vsel %vm245_vm2, %v19355_v12, -inf  ;;  %v3333_v32 = vsel %vm245_vm2, %v19357_v42, -inf }
 0x429   :  { %v2124_v43 = vpop.f32.mrb[46].mxu1  ;;  %v2652_v36 = vpop.f32.mrb[70].mxu0  ;;  %3301 = vmax.xlane.f32.xlu0 %v3300_v31  ;;  %3334 = vmax.xlane.f32.xlu1 %v3333_v32 }
 0x42a   :  { %v16234_v41 = vpop.f32.mrb[47].mxu1  ;;  %v16300_v3 = vpop.f32.mrb[71].mxu0 }
 0x42b   :  { %v19379_v36 = vpop.permute.xlu1 %3760 }
 0x42f   :  { %v19363_v8 = vpop.f32.mrb[48].mxu1  ;;  %v19365_v4 = vpop.f32.mrb[72].mxu0 }
 0x430   :  { %v16245_v62 = vpop.f32.mrb[49].mxu1  ;;  %v16311_v63 = vpop.f32.mrb[73].mxu0  ;;  %v3306_v15 = vsel %vm245_vm2, %v19363_v8, -inf  ;;  %v3339_v13 = vsel %vm245_vm2, %v19365_v4, -inf }
 0x431   :  { %v2220_v14 = vpop.f32.mrb[50].mxu1  ;;  %v2748_v23 = vpop.f32.mrb[74].mxu0  ;;  %3307 = vmax.xlane.f32.xlu0 %v3306_v15  ;;  %3340 = vmax.xlane.f32.xlu1 %v3339_v13 }
 0x432   :  { %v16246_v25 = vpop.f32.mrb[51].mxu1  ;;  %v16312_v16 = vpop.f32.mrb[75].mxu0 }
 0x437   :  { %v19371_v26 = vpop.f32.mrb[52].mxu1  ;;  %v19373_v44 = vpop.f32.mrb[76].mxu0 }
 0x438   :  { %v16257_v27 = vpop.f32.mrb[53].mxu1  ;;  %v16323_v30 = vpop.f32.mrb[77].mxu0  ;;  %v3312_v33 = vsel %vm245_vm2, %v19371_v26, -inf  ;;  %v3345_v21 = vsel %vm245_vm2, %v19373_v44, -inf }
 0x439   :  { %v2316_v22 = vpop.f32.mrb[54].mxu1  ;;  %v2844_v31 = vpop.f32.mrb[78].mxu0  ;;  %3313 = vmax.xlane.f32.xlu0 %v3312_v33  ;;  %3346 = vmax.xlane.f32.xlu1 %v3345_v21 }
 0x43a   :  { %v16258_v32 = vpop.f32.mrb[55].mxu1  ;;  %v16324_v43 = vpop.f32.mrb[79].mxu0 }
 0x43b   :  { %v19389_v27 = vpop.permute.xlu0 %3808  ;;  %v19391_v30 = vpop.permute.xlu1 %3856 }
 0x43f   :  { %v19381_v41 = vpop.f32.mrb[56].mxu1  ;;  %v19383_v3 = vpop.f32.mrb[80].mxu0 }
 0x440   :  { %v16269_v62 = vpop.f32.mrb[57].mxu1  ;;  %v16335_v63 = vpop.f32.mrb[81].mxu0  ;;  %v3351_v15 = vsel %vm245_vm2, %v19383_v3, -inf  ;;  %v3318_v13 = vsel %vm245_vm2, %v19381_v41, -inf }
 0x441   :  { %v2940_v14 = vpop.f32.mrb[82].mxu0  ;;  %3352 = vmax.xlane.f32.xlu1 %v3351_v15  ;;  %3319 = vmax.xlane.f32.xlu0 %v3318_v13  ;;  %v2412_v23 = vpop.f32.mrb[58].mxu1 }
 0x442   :  { %v16270_v25 = vpop.f32.mrb[59].mxu1  ;;  %v16336_v16 = vpop.f32.mrb[83].mxu0 }
 0x443   :  { %v19401_v14 = vpop.permute.xlu0 %3904  ;;  %v19403_v23 = vpop.permute.xlu1 %3952 }
 0x447   :  { %v19393_v33 = vpop.f32.mrb[60].mxu1  ;;  %v19395_v21 = vpop.f32.mrb[84].mxu0 }
 0x448   :  { %v16281_v22 = vpop.f32.mrb[61].mxu1  ;;  %v16347_v31 = vpop.f32.mrb[85].mxu0  ;;  %v3357_v32 = vsel %vm245_vm2, %v19395_v21, -inf  ;;  %v3324_v43 = vsel %vm245_vm2, %v19393_v33, -inf }
 0x449   :  { %v3036_v62 = vpop.f32.mrb[86].mxu0  ;;  %3358 = vmax.xlane.f32.xlu1 %v3357_v32  ;;  %3325 = vmax.xlane.f32.xlu0 %v3324_v43  ;;  %v2508_v63 = vpop.f32.mrb[62].mxu1 }
 0x44a   :  { %v16282_v15 = vpop.f32.mrb[63].mxu1  ;;  %v16348_v13 = vpop.f32.mrb[87].mxu0 }
 0x44b   :  { %v19413_v13 = vpop.permute.xlu0 %4000  ;;  %v19415_v29 = vpop.permute.xlu1 %4048 }
 0x44f   :  { %v19405_v25 = vpop.f32.mrb[64].mxu1  ;;  %v19407_v16 = vpop.f32.mrb[88].mxu0 }
 0x450   :  { %v16293_v22 = vpop.f32.mrb[65].mxu1  ;;  %v16359_v31 = vpop.f32.mrb[89].mxu0  ;;  %v3363_v1 = vsel %vm245_vm2, %v19407_v16, -inf  ;;  %v3330_v32 = vsel %vm245_vm2, %v19405_v25, -inf }
 0x451   :  { %v3132_v43 = vpop.f32.mrb[90].mxu0  ;;  %3364 = vmax.xlane.f32.xlu1 %v3363_v1  ;;  %3331 = vmax.xlane.f32.xlu0 %v3330_v32  ;;  %v2604_v62 = vpop.f32.mrb[66].mxu1 }
 0x452   :  { %v16294_v63 = vpop.f32.mrb[67].mxu1  ;;  %v16360_v15 = vpop.f32.mrb[91].mxu0 }
 0x453   :  { %v19425_v15 = vpop.permute.xlu0 %4096  ;;  %v19427_v11 = vpop.permute.xlu1 %4144 }
 0x457   :  { %v19417_v28 = vpop.f32.mrb[68].mxu1  ;;  %v19419_v22 = vpop.f32.mrb[92].mxu0 }
 0x458   :  { %v16305_v31 = vpop.f32.mrb[69].mxu1  ;;  %v16371_v40 = vpop.f32.mrb[93].mxu0  ;;  %v3369_v39 = vsel %vm245_vm2, %v19419_v22, -inf  ;;  %v3336_v1 = vsel %vm245_vm2, %v19417_v28, -inf }
 0x459   :  { %v3228_v32 = vpop.f32.mrb[94].mxu0  ;;  %3370 = vmax.xlane.f32.xlu1 %v3369_v39  ;;  %3337 = vmax.xlane.f32.xlu0 %v3336_v1  ;;  %v2700_v43 = vpop.f32.mrb[70].mxu1 }
 0x45a   :  { %v16306_v62 = vpop.f32.mrb[71].mxu1  ;;  %v16372_v63 = vpop.f32.mrb[95].mxu0 }
 0x45b   :  { %v19433_v19 = vpop.permute.xlu0 %4192  ;;  %v19435_v39 = vpop.permute.xlu1 %4240 }
 0x45f   :  { %v19429_v10 = vpop.f32.mrb[72].mxu1  ;;  %v19439_v43 = vpop.permute.xlu0 %4432 }
 0x460   :  { %v16317_v31 = vpop.f32.mrb[73].mxu1  ;;  %v3342_v40 = vsel %vm245_vm2, %v19429_v10, -inf  ;;  %23154 = vst [vmem:[#allocation44_spill] sm:$0xff] %v19439_v43  ;;  %v19443_v56 = vpop.permute.xlu1 %4336 }
 0x461   :  { %3343 = vmax.xlane.f32.xlu0 %v3342_v40  ;;  %v2796_v20 = vpop.f32.mrb[74].mxu1  ;;  %23155 = vst [vmem:[#allocation45_spill] sm:$0xff] %v19443_v56 }
 0x462   :  { %v16318_v32 = vpop.f32.mrb[75].mxu1 }
 0x463   :  { %v19445_v40 = vpop.permute.xlu0 %4528 }
 0x464   :  { %23156 = vst [vmem:[#allocation46_spill] sm:$0xff] %v19445_v40  ;;  %v19449_v32 = vpop.permute.xlu1 %4384 }
 0x465   :  { %23157 = vst [vmem:[#allocation47_spill] sm:$0xff] %v19449_v32 }
 0x467   :  { %v19437_v1 = vpop.f32.mrb[76].mxu1  ;;  %v19453_v37 = vpop.permute.xlu0 %4624 }
 0x468   :  { %v16329_v62 = vpop.f32.mrb[77].mxu1  ;;  %v3348_v63 = vsel %vm245_vm2, %v19437_v1, -inf  ;;  %23158 = vst [vmem:[#allocation48_spill] sm:$0xff] %v19453_v37 }
 0x469   :  { %3349 = vmax.xlane.f32.xlu0 %v3348_v63  ;;  %v2892_v31 = vpop.f32.mrb[78].mxu1  ;;  %v19455_v63 = vpop.permute.xlu1 %4480 }
 0x46a   :  { %v16330_v55 = vpop.f32.mrb[79].mxu1  ;;  %23159 = vst [vmem:[#allocation49_spill] sm:$0xff] %v19455_v63 }
 0x46b   :  { %v19461_v40 = vpop.permute.xlu0 %4288 }
 0x46c   :  { %23160 = vst [vmem:[#allocation50_spill] sm:$0xff] %v19461_v40 }
 0x46d   :  { %v19463_v58 = vpop.permute.xlu1 %4576 }
 0x46e   :  { %23161 = vst [vmem:[#allocation51_spill] sm:$0xff] %v19463_v58 }
 0x46f   :  { %v19447_v20 = vpop.f32.mrb[80].mxu1 }
 0x470   :  { %v16341_v2 = vpop.f32.mrb[81].mxu1  ;;  %v3354_v0 = vsel %vm245_vm2, %v19447_v20, -inf }
 0x471   :  { %3355 = vmax.xlane.f32.xlu0 %v3354_v0  ;;  %v2988_v62 = vpop.f32.mrb[82].mxu1  ;;  %v19470_v43 = vpop.permute.xlu1 %4672 }
 0x472   :  { %v16342_v38 = vpop.f32.mrb[83].mxu1  ;;  %23162 = vst [vmem:[#allocation52_spill] sm:$0xff] %v19470_v43 }
 0x477   :  { %v19457_v31 = vpop.f32.mrb[84].mxu1 }
 0x478   :  { %v16353_v55 = vpop.f32.mrb[85].mxu1  ;;  %v3360_v47 = vsel %vm245_vm2, %v19457_v31, -inf }
 0x479   :  { %3361 = vmax.xlane.f32.xlu0 %v3360_v47  ;;  %v3084_v46 = vpop.f32.mrb[86].mxu1 }
 0x47a   :  { %v16354_v2 = vpop.f32.mrb[87].mxu1 }
 0x47e   :  { %v3281_v0 = vpop.xlane.xlu0 %3280 }
 0x47f   :  { %v3375_v38 = vsub.f32 %v19307_v34, %v3281_v0  ;;  %v19466_v62 = vpop.f32.mrb[88].mxu1 }
 0x480   :  { %v16365_v37 = vpop.f32.mrb[89].mxu1  ;;  %v3366_v63 = vsel %vm245_vm2, %v19466_v62, -inf }
 0x481   :  { %v3407_v55 = vmul.f32 1.442695, %v3375_v38  ;;  %3367 = vmax.xlane.f32.xlu0 %v3366_v63  ;;  %v3180_v32 = vpop.f32.mrb[90].mxu1 }
 0x482   :  { %v16366_v46 = vpop.f32.mrb[91].mxu1 }
 0x483   :  { %17681 = vpow2.f32 %v3407_v55 }
 0x486   :  { %v3284_v47 = vpop.xlane.xlu1 %3283 }
 0x487   :  { %v3376_v2 = vsub.f32 %v19311_v5, %v3284_v47  ;;  %v19473_v58 = vpop.f32.mrb[92].mxu1 }
 0x488   :  { %v16377_v40 = vpop.f32.mrb[93].mxu1  ;;  %v3372_v34 = vsel %vm245_vm2, %v19473_v58, -inf }
 0x489   :  { %v3409_v37 = vmul.f32 1.442695, %v3376_v2  ;;  %3373 = vmax.xlane.f32.xlu0 %v3372_v34  ;;  %v3276_v0 = vpop.f32.mrb[94].mxu1 }
 0x48a   :  { %v16378_v56 = vpop.f32.mrb[95].mxu1 }
 0x48b   :  { %17683 = vpow2.f32 %v3409_v37 }
 0x48d   :  { %v19477_v63 = vpop.eup %17681 }
 0x48e   :  { %v3287_v32 = vpop.xlane.xlu0 %3286  ;;  %v3305_v38 = vpop.xlane.xlu1 %3304  ;;  %v3471_v55 = vsel %vm245_vm2, %v19477_v63, 0.0 }
 0x48f   :  { %v3377_v5 = vsub.f32 %v19315_v60, %v3287_v32  ;;  %v3383_v46 = vsub.f32 %v19317_v61, %v3305_v38  ;;  %3472 = vadd.xlane.f32.xlu1 %v3471_v55 }
 0x491   :  { %v3411_v40 = vmul.f32 1.442695, %v3377_v5  ;;  %v3423_v47 = vmul.f32 1.442695, %v3383_v46 }
 0x493   :  { %17685 = vpow2.f32 %v3411_v40 }
 0x494   :  { %17687 = vpow2.f32 %v3423_v47 }
 0x495   :  { %v19483_v2 = vpop.eup %17683 }
 0x496   :  { %v3290_v56 = vpop.xlane.xlu0 %3289  ;;  %v3311_v34 = vpop.xlane.xlu1 %3310  ;;  %v3474_v37 = vsel %vm245_vm2, %v19483_v2, 0.0 }
 0x497   :  { %v3378_v0 = vsub.f32 %v19323_v45, %v3290_v56  ;;  %v3385_v43 = vsub.f32 %v19325_v24, %v3311_v34  ;;  %3475 = vadd.xlane.f32.xlu0 %v3474_v37 }
 0x499   :  { %v3413_v60 = vmul.f32 1.442695, %v3378_v0  ;;  %v3427_v32 = vmul.f32 1.442695, %v3385_v43 }
 0x49b   :  { %17689 = vpow2.f32 %v3413_v60 }
 0x49c   :  { %17691 = vpow2.f32 %v3427_v32 }
 0x49d   :  { %v19489_v61 = vpop.eup %17685 }
 0x49e   :  { %v3293_v38 = vpop.xlane.xlu1 %3292  ;;  %v3477_v55 = vsel %vm245_vm2, %v19489_v61, 0.0  ;;  %v19493_v5 = vpop.eup %17687 }
 0x49f   :  { %v3379_v46 = vsub.f32 %v19331_v35, %v3293_v38  ;;  %3478 = vadd.xlane.f32.xlu1 %v3477_v55  ;;  %v3495_v24 = vsel %vm245_vm2, %v19493_v5, 0.0 }
 0x4a1   :  { %v3415_v40 = vmul.f32 1.442695, %v3379_v46 }
 0x4a2   :  { %v3317_v45 = vpop.xlane.xlu1 %3316 }
 0x4a3   :  { %17693 = vpow2.f32 %v3415_v40  ;;  %v3387_v43 = vsub.f32 %v19333_v9, %v3317_v45  ;;  %3496 = vadd.xlane.f32.xlu1 %v3495_v24 }
 0x4a5   :  { %v19499_v47 = vpop.eup %17689  ;;  %v3431_v56 = vmul.f32 1.442695, %v3387_v43 }
 0x4a6   :  { %v19501_v34 = vpop.eup %17691  ;;  %v3296_v37 = vpop.xlane.xlu0 %3295  ;;  %v3480_v35 = vsel %vm245_vm2, %v19499_v47, 0.0 }
 0x4a7   :  { %v3323_v0 = vpop.xlane.xlu1 %3322  ;;  %17695 = vpow2.f32 %v3431_v56  ;;  %v3380_v60 = vsub.f32 %v19339_v6, %v3296_v37  ;;  %3481 = vadd.xlane.f32.xlu0 %v3480_v35  ;;  %v3501_v9 = vsel %vm245_vm2, %v19501_v34, 0.0 }
 0x4a8   :  { %v3389_v32 = vsub.f32 %v19341_v7, %v3323_v0  ;;  %3502 = vadd.xlane.f32.xlu1 %v3501_v9 }
 0x4a9   :  { %v3417_v38 = vmul.f32 1.442695, %v3380_v60 }
 0x4aa   :  { %v3435_v55 = vmul.f32 1.442695, %v3389_v32 }
 0x4ab   :  { %17697 = vpow2.f32 %v3417_v38 }
 0x4ac   :  { %17699 = vpow2.f32 %v3435_v55 }
 0x4ad   :  { %v19509_v46 = vpop.eup %17693 }
 0x4ae   :  { %v3299_v40 = vpop.xlane.xlu1 %3298  ;;  %v3483_v45 = vsel %vm245_vm2, %v19509_v46, 0.0 }
 0x4af   :  { %v3381_v24 = vsub.f32 %v19347_v17, %v3299_v40  ;;  %3484 = vadd.xlane.f32.xlu1 %v3483_v45 }
 0x4b1   :  { %v19514_v6 = vpop.eup %17695  ;;  %v3419_v7 = vmul.f32 1.442695, %v3381_v24 }
 0x4b2   :  { %v3329_v43 = vpop.xlane.xlu1 %3328  ;;  %v3507_v56 = vsel %vm245_vm2, %v19514_v6, 0.0 }
 0x4b3   :  { %17701 = vpow2.f32 %v3419_v7  ;;  %v3391_v37 = vsub.f32 %v19349_v18, %v3329_v43  ;;  %3508 = vadd.xlane.f32.xlu1 %v3507_v56 }
 0x4b5   :  { %v19519_v0 = vpop.eup %17697  ;;  %v3439_v35 = vmul.f32 1.442695, %v3391_v37 }
 0x4b6   :  { %v19521_v60 = vpop.eup %17699  ;;  %v3302_v32 = vpop.xlane.xlu0 %3301  ;;  %v3486_v17 = vsel %vm245_vm2, %v19519_v0, 0.0 }
 0x4b7   :  { %v3335_v9 = vpop.xlane.xlu1 %3334  ;;  %17703 = vpow2.f32 %v3439_v35  ;;  %v3382_v38 = vsub.f32 %v19355_v12, %v3302_v32  ;;  %3487 = vadd.xlane.f32.xlu0 %v3486_v17  ;;  %v3513_v18 = vsel %vm245_vm2, %v19521_v60, 0.0 }
 0x4b8   :  { %v3393_v55 = vsub.f32 %v19357_v42, %v3335_v9  ;;  %3514 = vadd.xlane.f32.xlu1 %v3513_v18 }
 0x4b9   :  { %v3421_v40 = vmul.f32 1.442695, %v3382_v38 }
 0x4ba   :  { %v3443_v45 = vmul.f32 1.442695, %v3393_v55 }
 0x4bb   :  { %17705 = vpow2.f32 %v3421_v40 }
 0x4bc   :  { %17707 = vpow2.f32 %v3443_v45 }
 0x4bd   :  { %v19529_v24 = vpop.eup %17701 }
 0x4be   :  { %v3308_v7 = vpop.xlane.xlu0 %3307  ;;  %v3341_v43 = vpop.xlane.xlu1 %3340  ;;  %v3489_v56 = vsel %vm245_vm2, %v19529_v24, 0.0 }
 0x4bf   :  { %v3384_v12 = vsub.f32 %v19363_v8, %v3308_v7  ;;  %v3395_v42 = vsub.f32 %v19365_v4, %v3341_v43  ;;  %3490 = vadd.xlane.f32.xlu1 %v3489_v56 }
 0x4c1   :  { %v19535_v37 = vpop.eup %17703  ;;  %v3425_v35 = vmul.f32 1.442695, %v3384_v12  ;;  %v3447_v32 = vmul.f32 1.442695, %v3395_v42 }
 0x4c2   :  { %v3519_v9 = vsel %vm245_vm2, %v19535_v37, 0.0 }
 0x4c3   :  { %17709 = vpow2.f32 %v3425_v35  ;;  %3520 = vadd.xlane.f32.xlu1 %v3519_v9 }
 0x4c4   :  { %17711 = vpow2.f32 %v3447_v32 }
 0x4c5   :  { %v19539_v17 = vpop.eup %17705 }
 0x4c6   :  { %v19541_v38 = vpop.eup %17707  ;;  %v3314_v55 = vpop.xlane.xlu0 %3313  ;;  %v3492_v8 = vsel %vm245_vm2, %v19539_v17, 0.0 }
 0x4c7   :  { %v3347_v18 = vpop.xlane.xlu1 %3346  ;;  %v3386_v4 = vsub.f32 %v19371_v26, %v3314_v55  ;;  %3493 = vadd.xlane.f32.xlu0 %v3492_v8  ;;  %v3525_v45 = vsel %vm245_vm2, %v19541_v38, 0.0 }
 0x4c8   :  { %v3397_v40 = vsub.f32 %v19373_v44, %v3347_v18  ;;  %3526 = vadd.xlane.f32.xlu1 %v3525_v45 }
 0x4c9   :  { %v3429_v7 = vmul.f32 1.442695, %v3386_v4 }
 0x4ca   :  { %v3451_v43 = vmul.f32 1.442695, %v3397_v40 }
 0x4cb   :  { %17713 = vpow2.f32 %v3429_v7 }
 0x4cc   :  { %17715 = vpow2.f32 %v3451_v43 }
 0x4cd   :  { %v19549_v56 = vpop.eup %17709 }
 0x4ce   :  { %v3320_v12 = vpop.xlane.xlu0 %3319  ;;  %v3353_v42 = vpop.xlane.xlu1 %3352  ;;  %v3498_v35 = vsel %vm245_vm2, %v19549_v56, 0.0 }
 0x4cf   :  { %v19553_v32 = vpop.eup %17711  ;;  %v3388_v26 = vsub.f32 %v19381_v41, %v3320_v12  ;;  %v3399_v44 = vsub.f32 %v19383_v3, %v3353_v42  ;;  %3499 = vadd.xlane.f32.xlu0 %v3498_v35 }
 0x4d0   :  { %v3531_v18 = vsel %vm245_vm2, %v19553_v32, 0.0 }
 0x4d1   :  { %v3433_v9 = vmul.f32 1.442695, %v3388_v26  ;;  %v3455_v55 = vmul.f32 1.442695, %v3399_v44 }
 0x4d3   :  { %17717 = vpow2.f32 %v3433_v9  ;;  %3532 = vadd.xlane.f32.xlu0 %v3531_v18 }
 0x4d4   :  { %17719 = vpow2.f32 %v3455_v55 }
 0x4d5   :  { %v19559_v8 = vpop.eup %17713 }
 0x4d6   :  { %v3326_v4 = vpop.xlane.xlu0 %3325  ;;  %v3504_v40 = vsel %vm245_vm2, %v19559_v8, 0.0  ;;  %v19563_v45 = vpop.eup %17715 }
 0x4d7   :  { %v3390_v41 = vsub.f32 %v19393_v33, %v3326_v4  ;;  %3505 = vadd.xlane.f32.xlu0 %v3504_v40  ;;  %v3537_v7 = vsel %vm245_vm2, %v19563_v45, 0.0  ;;  %v3359_v44 = vpop.xlane.xlu1 %3358 }
 0x4d9   :  { %v3437_v3 = vmul.f32 1.442695, %v3390_v41  ;;  %4768 = vrot.lane.b32.xlu1 %v19015_v49, %s18336_s25 }
 0x4db   :  { %17721 = vpow2.f32 %v3437_v3  ;;  %3538 = vadd.xlane.f32.xlu0 %v3537_v7 }
 0x4dd   :  { %v19570_v43 = vpop.eup %17717  ;;  %4816 = vrot.lane.b32.xlu1 %v19021_v51, %s18336_s25 }
 0x4de   :  { %v3332_v12 = vpop.xlane.xlu0 %3331  ;;  %v3510_v42 = vsel %vm245_vm2, %v19570_v43, 0.0  ;;  %v19576_v33 = vpop.eup %17719 }
 0x4df   :  { %v3392_v35 = vsub.f32 %v19405_v25, %v3332_v12  ;;  %3511 = vadd.xlane.f32.xlu0 %v3510_v42  ;;  %v3543_v26 = vsel %vm245_vm2, %v19576_v33, 0.0  ;;  %v3365_v25 = vpop.xlane.xlu1 %3364 }
 0x4e1   :  { %v3441_v49 = vmul.f32 1.442695, %v3392_v35  ;;  %4912 = vrot.lane.b32.xlu1 %v19033_v52, %s18336_s25 }
 0x4e3   :  { %17723 = vpow2.f32 %v3441_v49  ;;  %3544 = vadd.xlane.f32.xlu0 %v3543_v26 }
 0x4e5   :  { %v19583_v51 = vpop.eup %17721 }
 0x4e6   :  { %v3338_v9 = vpop.xlane.xlu0 %3337  ;;  %v3516_v55 = vsel %vm245_vm2, %v19583_v51, 0.0  ;;  %v3371_v40 = vpop.xlane.xlu1 %3370 }
 0x4e7   :  { %v3394_v18 = vsub.f32 %v19417_v28, %v3338_v9  ;;  %3517 = vadd.xlane.f32.xlu0 %v3516_v55  ;;  %v3405_v3 = vsub.f32 %v19419_v22, %v3371_v40 }
 0x4e9   :  { %v3445_v4 = vmul.f32 1.442695, %v3394_v18  ;;  %v3467_v12 = vmul.f32 1.442695, %v3405_v3 }
 0x4eb   :  { %17725 = vpow2.f32 %v3445_v4 }
 0x4ec   :  { %17727 = vpow2.f32 %v3467_v12 }
 0x4ed   :  { %v19588_v52 = vpop.eup %17723 }
 0x4ee   :  { %v3522_v41 = vsel %vm245_vm2, %v19588_v52, 0.0  ;;  %v3344_v7 = vpop.xlane.xlu0 %3343 }
 0x4ef   :  { %3523 = vadd.xlane.f32.xlu0 %v3522_v41  ;;  %v3396_v42 = vsub.f32 %v19429_v10, %v3344_v7 }
 0x4f1   :  { %v3449_v26 = vmul.f32 1.442695, %v3396_v42  ;;  %v3401_v42 = vsub.f32 %v19395_v21, %v3359_v44 }
 0x4f3   :  { %17729 = vpow2.f32 %v3449_v26  ;;  %v3403_v26 = vsub.f32 %v19407_v16, %v3365_v25 }
 0x4f5   :  { %v19594_v35 = vpop.eup %17725 }
 0x4f6   :  { %v3350_v28 = vpop.xlane.xlu0 %3349  ;;  %v3528_v49 = vsel %vm245_vm2, %v19594_v35, 0.0  ;;  %v19600_v4 = vpop.eup %17727 }
 0x4f7   :  { %v3398_v9 = vsub.f32 %v19437_v1, %v3350_v28  ;;  %3529 = vadd.xlane.f32.xlu0 %v3528_v49  ;;  %v3561_v40 = vsel %vm245_vm2, %v19600_v4, 0.0  ;;  %v3459_v49 = vmul.f32 1.442695, %v3401_v42 }
 0x4f9   :  { %v3453_v55 = vmul.f32 1.442695, %v3398_v9 }
 0x4fb   :  { %17731 = vpow2.f32 %v3453_v55 }
 0x4fd   :  { %v19604_v41 = vpop.eup %17729 }
 0x4fe   :  { %v3356_v18 = vpop.xlane.xlu0 %3355  ;;  %v3534_v1 = vsel %vm245_vm2, %v19604_v41, 0.0 }
 0x4ff   :  { %v3400_v22 = vsub.f32 %v19447_v20, %v3356_v18  ;;  %v3463_v18 = vmul.f32 1.442695, %v3403_v26 }
 0x501   :  { %v3457_v10 = vmul.f32 1.442695, %v3400_v22 }
 0x503   :  { %17733 = vpow2.f32 %v3457_v10 }
 0x505   :  { %3562 = vadd.xlane.f32.xlu1 %v3561_v40  ;;  %v19608_v3 = vpop.eup %17731 }
 0x506   :  { %v3540_v7 = vsel %vm245_vm2, %v19608_v3, 0.0  ;;  %v3362_v28 = vpop.xlane.xlu0 %3361 }
 0x507   :  { %v3402_v42 = vsub.f32 %v19457_v31, %v3362_v28 }
 0x509   :  { %3535 = vadd.xlane.f32.xlu1 %v3534_v1  ;;  %v3766_v1 = vsel %vm3668_vm4, %v19379_v36, 0 }
 0x50d   :  { %v19612_v20 = vpop.eup %17733  ;;  %3541 = vadd.xlane.f32.xlu1 %v3540_v7  ;;  %4720 = vrot.lane.b32.xlu0 %v19009_v48, %s18336_s25  ;;  %v23163_v7 = vmov 0.0  }
 0x50e   :  { %v3546_v12 = vsel %vm245_vm2, %v19612_v20, 0.0  ;;  %v19620_v9 = vpop.xlane.xlu0 %3367 }
 0x511   :  { %3547 = vadd.xlane.f32.xlu1 %v3546_v12 }
 0x516   :  { %v19622_v22 = vpop.xlane.xlu0 %3373 }
 0x51c   :  { %v3473_v55 = vpop.xlane.xlu1 %3472 }
 0x51d   :  { %17735 = vrcp.f32 %v3473_v55  ;;  %v3814_v55 = vsel %vm3668_vm4, %v19389_v27, 0  ;;  %v3862_v27 = vsel %vm3668_vm4, %v19391_v30, 0  ;;  %v3910_v30 = vsel %vm3668_vm4, %v19401_v14, 0 }
 0x51e   :  { %17737 = vpow2.f32 %v3459_v49 }
 0x51f   :  { %17739 = vpow2.f32 %v3463_v18  ;;  %v3461_v18 = vmul.f32 1.442695, %v3402_v42 }
 0x522   :  { %4960 = vrot.lane.b32.xlu1 %v19039_v53, %s18336_s25 }
 0x524   :  { %v3476_v48 = vpop.xlane.xlu0 %3475 }
 0x525   :  { %17741 = vrcp.f32 %v3476_v48 }
 0x527   :  { %v17736_v10 = vpop.eup %17735 }
 0x528   :  { %v19626_v21 = vpop.eup %17737  ;;  %v3599_v44 = vmul.f32 %v17736_v10, %v19477_v63 }
 0x529   :  { %v3549_v25 = vsel %vm245_vm2, %v19626_v21, 0.0  ;;  %v19631_v40 = vpop.eup %17739 }
 0x52a   :  { %v3631_v16 = vpack.c.bf16 %v3599_v44, %v3599_v44  ;;  %v3555_v12 = vsel %vm245_vm2, %v19631_v40, 0.0 }
 0x52c   :  { %3550 = vadd.xlane.f32.xlu0 %v3549_v25  ;;  %16382 = vmatmul.mubr.msk.bf16.vlgmr.msra.gmra.mrb[96].mxu0 %vm245_vm2, %v3631_v16  ;;  %v3479_v53 = vpop.xlane.xlu1 %3478 }
 0x52d   :  { %16392 = vmatpush3.bf16.msra.mxu0 %v3766_v1  ;;  %17743 = vrcp.f32 %v3479_v53  ;;  %16393 = vmatprep.mubr.msk.bf16.mxu0 %vm18351_vm0, %v23163_v7 }
 0x52e   :  { %16403 = vmatprep.subr.bf16.mxu0 %v23163_v7 }
 0x52f   :  { %v17742_v63 = vpop.eup %17741 }
 0x530   :  { %3556 = vadd.xlane.f32.xlu0 %v3555_v12  ;;  %v3600_v36 = vmul.f32 %v17742_v63, %v19483_v2  ;;  %v3497_v49 = vpop.xlane.xlu1 %3496 }
 0x532   :  { %v3632_v26 = vpack.c.bf16 %v3600_v36, %v3600_v36 }
 0x534   :  { %16388 = vmatmul.mubr.msk.bf16.vlgmr.msra.gmra.mrb[96].mxu1 %vm245_vm2, %v3632_v26  ;;  %v3482_v48 = vpop.xlane.xlu0 %3481  ;;  %v3958_v26 = vsel %vm3668_vm4, %v19403_v23, 0  ;;  %v4006_v23 = vsel %vm3668_vm4, %v19413_v13, 0 }
 0x535   :  { %16398 = vmatpush3.bf16.msra.mxu1 %v3814_v55  ;;  %17745 = vrcp.f32 %v3482_v48  ;;  %16399 = vmatprep.mubr.msk.bf16.mxu1 %vm18351_vm0, %v23163_v7  ;;  %v3503_v28 = vpop.xlane.xlu1 %3502 }
 0x536   :  { %16409 = vmatprep.subr.bf16.mxu1 %v23163_v7  ;;  %17747 = vpow2.f32 %v3461_v18 }
 0x537   :  { %v17744_v31 = vpop.eup %17743 }
 0x538   :  { %v3601_v2 = vmul.f32 %v17744_v31, %v19489_v61 }
 0x53a   :  { %v3633_v10 = vpack.c.bf16 %v3601_v2, %v3601_v2  ;;  %v4054_v2 = vsel %vm3668_vm4, %v19415_v29, 0 }
 0x53c   :  { %16394 = vmatmul.mubr.msk.bf16.vlgmr.msra.gmra.mrb[100].mxu0 %vm245_vm2, %v3633_v10  ;;  %v3485_v44 = vpop.xlane.xlu1 %3484 }
 0x53d   :  { %16404 = vmatpush3.bf16.msra.mxu0 %v3862_v27  ;;  %17749 = vrcp.f32 %v3485_v44  ;;  %16405 = vmatprep.mubr.msk.bf16.mxu0 %vm18351_vm0, %v23163_v7  ;;  %v4102_v44 = vsel %vm3668_vm4, %v19425_v15, 0 }
 0x53e   :  { %16415 = vmatprep.subr.bf16.mxu0 %v23163_v7 }
 0x53f   :  { %v17746_v16 = vpop.eup %17745 }
 0x540   :  { %v3602_v25 = vmul.f32 %v17746_v16, %v19499_v47  ;;  %v19657_v1 = vpop.eup %17747  ;;  %v3509_v61 = vpop.xlane.xlu1 %3508  ;;  %v4150_v16 = vsel %vm3668_vm4, %v19427_v11, 0 }
 0x541   :  { %v3552_v12 = vsel %vm245_vm2, %v19657_v1, 0.0 }
 0x542   :  { %v3634_v53 = vpack.c.bf16 %v3602_v25, %v3602_v25 }
 0x544   :  { %16400 = vmatmul.mubr.msk.bf16.vlgmr.msra.gmra.mrb[100].mxu1 %vm245_vm2, %v3634_v53  ;;  %v3488_v63 = vpop.xlane.xlu0 %3487 }
 0x545   :  { %16410 = vmatpush3.bf16.msra.mxu1 %v3910_v30  ;;  %17751 = vrcp.f32 %v3488_v63  ;;  %16411 = vmatprep.mubr.msk.bf16.mxu1 %vm18351_vm0, %v23163_v7  ;;  %v19669_v42 = vpop.xlane.xlu1 %3514 }
 0x546   :  { %3553 = vadd.xlane.f32.xlu1 %v3552_v12  ;;  %4864 = vrot.lane.b32.xlu0 %v19027_v50, %s18336_s25 }
 0x547   :  { %v17750_v47 = vpop.eup %17749  ;;  %16421 = vmatprep.subr.bf16.mxu1 %v23163_v7 }
 0x548   :  { %v3603_v14 = vmul.f32 %v17750_v47, %v19509_v46  ;;  %v4198_v47 = vsel %vm3668_vm4, %v19433_v19, 0 }
 0x54a   :  { %5008 = vrot.lane.b32.xlu0 %v19045_v57, %s18336_s25  ;;  %v3635_v36 = vpack.c.bf16 %v3603_v14, %v3603_v14  ;;  %v3404_v57 = vsub.f32 %v19466_v62, %v19620_v9  ;;  %v3406_v62 = vsub.f32 %v19473_v58, %v19622_v22  ;;  %v4246_v14 = vsel %vm3668_vm4, %v19435_v39, 0 }
 0x54c   :  { %16406 = vmatmul.mubr.msk.bf16.vlgmr.msra.gmra.mrb[104].mxu0 %vm245_vm2, %v3635_v36  ;;  %v3491_v55 = vpop.xlane.xlu1 %3490  ;;  %v3469_v10 = vmul.f32 1.442695, %v3406_v62 }
 0x54d   :  { %16416 = vmatpush3.bf16.msra.mxu0 %v3958_v26  ;;  %17753 = vrcp.f32 %v3491_v55  ;;  %16417 = vmatprep.mubr.msk.bf16.mxu0 %vm18351_vm0, %v23163_v7 }
 0x54e   :  { %16427 = vmatprep.subr.bf16.mxu0 %v23163_v7  ;;  %17755 = vrcp.f32 %v3497_v49 }
 0x54f   :  { %v17752_v50 = vpop.eup %17751 }
 0x550   :  { %v3604_v46 = vmul.f32 %v17752_v50, %v19519_v0  ;;  %v3465_v0 = vmul.f32 1.442695, %v3404_v57  ;;  %v3521_v26 = vpop.xlane.xlu1 %3520  ;;  %v23164_v57 = vld [vmem:[#allocation45_spill] sm:$0xff] }
 0x552   :  { %v3636_v18 = vpack.c.bf16 %v3604_v46, %v3604_v46 }
 0x554   :  { %16412 = vmatmul.mubr.msk.bf16.vlgmr.msra.gmra.mrb[104].mxu1 %vm245_vm2, %v3636_v18  ;;  %v3494_v48 = vpop.xlane.xlu0 %3493 }
 0x555   :  { %16422 = vmatpush3.bf16.msra.mxu1 %v4006_v23  ;;  %17757 = vrcp.f32 %v3494_v48  ;;  %16423 = vmatprep.mubr.msk.bf16.mxu1 %vm18351_vm0, %v23163_v7  ;;  %v23165_v23 = vld [vmem:[#allocation50_spill] sm:$0xff]  ;;  %v3527_v62 = vpop.xlane.xlu1 %3526 }
 0x556   :  { %16433 = vmatprep.subr.bf16.mxu1 %v23163_v7  ;;  %17759 = vrcp.f32 %v3503_v28  ;;  %v4294_v48 = vsel %vm3668_vm4, %v23165_v23, 0 }
 0x557   :  { %v17754_v31 = vpop.eup %17753  ;;  %5056 = vrot.lane.b32.xlu1 %v19051_v54, %s18336_s25  ;;  %17761 = vpow2.f32 %v3465_v0 }
 0x558   :  { %v3605_v13 = vmul.f32 %v17754_v31, %v19529_v24  ;;  %v17756_v49 = vpop.eup %17755 }
 0x559   :  { %v3607_v54 = vmul.f32 %v17756_v49, %v19493_v5 }
 0x55a   :  { %v3637_v9 = vpack.c.bf16 %v3605_v13, %v3605_v13 }
 0x55b   :  { %5152 = vrot.lane.b32.xlu1 %v19063_v59, %s18336_s25  ;;  %v3639_v22 = vpack.c.bf16 %v3607_v54, %v3607_v54  ;;  %v23167_v54 = vld [vmem:[#allocation47_spill] sm:$0xff] }
 0x55c   :  { %v3500_v27 = vpop.xlane.xlu0 %3499  ;;  %16418 = vmatmul.mubr.msk.bf16.vlgmr.msra.gmra.mrb[108].mxu0 %vm245_vm2, %v3637_v9 }
 0x55d   :  { %17763 = vrcp.f32 %v3500_v27  ;;  %16428 = vmatpush3.bf16.msra.mxu0 %v4054_v2  ;;  %16429 = vmatprep.mubr.msk.bf16.mxu0 %vm18351_vm0, %v23163_v7 }
 0x55e   :  { %16439 = vmatprep.subr.bf16.mxu0 %v23163_v7  ;;  %17765 = vpow2.f32 %v3469_v10  ;;  %v23166_v10 = vld [vmem:[#allocation44_spill] sm:$0xff] }
 0x55f   :  { %v17758_v58 = vpop.eup %17757  ;;  %17767 = vrcp.f32 %v3509_v61  ;;  %v4438_v27 = vsel %vm3668_vm4, %v23166_v10, 0 }
 0x560   :  { %v19703_v24 = vpop.xlane.xlu0 %3532  ;;  %v3606_v59 = vmul.f32 %v17758_v58, %v19539_v17  ;;  %v17760_v28 = vpop.eup %17759  ;;  %v4390_v58 = vsel %vm3668_vm4, %v23167_v54, 0 }
 0x561   :  { %v19712_v5 = vpop.eup %17761  ;;  %v3609_v15 = vmul.f32 %v17760_v28, %v19501_v34 }
 0x562   :  { %v3638_v29 = vpack.c.bf16 %v3606_v59, %v3606_v59  ;;  %v3558_v61 = vsel %vm245_vm2, %v19712_v5, 0.0 }
 0x563   :  { %v3641_v12 = vpack.c.bf16 %v3609_v15, %v3609_v15 }
 0x564   :  { %16424 = vmatmul.mubr.msk.bf16.vlgmr.msra.gmra.mrb[108].mxu1 %vm245_vm2, %v3638_v29  ;;  %v3506_v25 = vpop.xlane.xlu0 %3505  ;;  %16430 = vmatmul.mubr.msk.bf16.vlgmr.msra.gmra.mrb[112].mxu0 %vm245_vm2, %v3639_v22  ;;  %v19775_v22 = vpop.permute.xlu1 %4768 }
 0x565   :  { %16434 = vmatpush3.bf16.msra.mxu1 %v4102_v44  ;;  %17769 = vrcp.f32 %v3506_v25  ;;  %16440 = vmatpush3.bf16.msra.mxu0 %v4150_v16  ;;  %v23168_v25 = vld [vmem:[#allocation49_spill] sm:$0xff] }
 0x566   :  { %16435 = vmatprep.mubr.msk.bf16.mxu1 %vm18351_vm0, %v23163_v7  ;;  %16441 = vmatprep.mubr.msk.bf16.mxu0 %vm18351_vm0, %v23163_v7  ;;  %17771 = vrcp.f32 %v19669_v42  ;;  %v4486_v15 = vsel %vm3668_vm4, %v23168_v25, 0 }
 0x567   :  { %v17764_v17 = vpop.eup %17763  ;;  %16445 = vmatprep.subr.bf16.mxu1 %v23163_v7  ;;  %16451 = vmatprep.subr.bf16.mxu0 %v23163_v7 }
 0x568   :  { %v19721_v11 = vpop.xlane.xlu0 %3538  ;;  %v3608_v53 = vmul.f32 %v17764_v17, %v19549_v56  ;;  %v19727_v30 = vpop.eup %17765  ;;  %v23169_v17 = vld [vmem:[#allocation43_spill] sm:$0xff] }
 0x569   :  { %3559 = vadd.xlane.f32.xlu0 %v3558_v61  ;;  %v17768_v34 = vpop.eup %17767  ;;  %v3564_v56 = vsel %vm245_vm2, %v19727_v30, 0.0 }
 0x56a   :  { %v3640_v63 = vpack.c.bf16 %v3608_v53, %v3608_v53  ;;  %v3611_v19 = vmul.f32 %v17768_v34, %v19514_v6  ;;  %v4342_v6 = vsel %vm3668_vm4, %v23164_v57, 0  ;;  %v23170_v53 = vld [vmem:[#allocation46_spill] sm:$0xff] }
 0x56c   :  { %16436 = vmatmul.mubr.msk.bf16.vlgmr.msra.gmra.mrb[112].mxu1 %vm245_vm2, %v3640_v63  ;;  %v3512_v36 = vpop.xlane.xlu0 %3511  ;;  %16442 = vmatmul.mubr.msk.bf16.vlgmr.msra.gmra.mrb[116].mxu0 %vm245_vm2, %v3641_v12  ;;  %v3643_v46 = vpack.c.bf16 %v3611_v19, %v3611_v19  ;;  %v4817_v63 = vpop.permute.xlu1 %4816  ;;  %v23172_v19 = vld [vmem:[#allocation48_spill] sm:$0xff] }
 0x56d   :  { %16446 = vmatpush3.bf16.msra.mxu1 %v4198_v47  ;;  %17773 = vrcp.f32 %v3512_v36  ;;  %16452 = vmatpush3.bf16.msra.mxu0 %v4246_v14  ;;  %v23171_v36 = vld [vmem:[#allocation51_spill] sm:$0xff] }
 0x56e   :  { %3565 = vadd.xlane.f32.xlu0 %v3564_v56  ;;  %16447 = vmatprep.mubr.msk.bf16.mxu1 %vm18351_vm0, %v23163_v7  ;;  %17775 = vrcp.f32 %v3521_v26  ;;  %v4582_v56 = vsel %vm3668_vm4, %v23171_v36, 0  ;;  %v17659_v36 = vld [vmem:[#allocation8] sm:$0xff]  }
 0x56f   :  { %v17770_v42 = vpop.eup %17769  ;;  %16453 = vmatprep.mubr.msk.bf16.mxu0 %vm18351_vm0, %v23163_v7  ;;  %16457 = vmatprep.subr.bf16.mxu1 %v23163_v7 }
 0x570   :  { %v19743_v39 = vpop.xlane.xlu0 %3544  ;;  %16463 = vmatprep.subr.bf16.mxu0 %v23163_v7  ;;  %v3610_v55 = vmul.f32 %v17770_v42, %v19559_v8  ;;  %v17772_v18 = vpop.eup %17771  ;;  %v4630_v42 = vsel %vm3668_vm4, %v23172_v19, 0 }
 0x571   :  { %v3613_v8 = vmul.f32 %v17772_v18, %v19521_v60 }
 0x572   :  { %v3642_v50 = vpack.c.bf16 %v3610_v55, %v3610_v55 }
 0x573   :  { %v3645_v49 = vpack.c.bf16 %v3613_v8, %v3613_v8 }
 0x574   :  { %16448 = vmatmul.mubr.msk.bf16.vlgmr.msra.gmra.mrb[116].mxu1 %vm245_vm2, %v3642_v50  ;;  %v3518_v31 = vpop.xlane.xlu0 %3517  ;;  %16454 = vmatmul.mubr.msk.bf16.vlgmr.msra.gmra.mrb[120].mxu0 %vm245_vm2, %v3643_v46 }
 0x575   :  { %16458 = vmatpush3.bf16.msra.mxu1 %v4294_v48  ;;  %17777 = vrcp.f32 %v3518_v31  ;;  %16464 = vmatpush3.bf16.msra.mxu0 %v4342_v6  ;;  %v23173_v6 = vld [vmem:[#allocation52_spill] sm:$0xff] }
 0x576   :  { %16459 = vmatprep.mubr.msk.bf16.mxu1 %vm18351_vm0, %v23163_v7  ;;  %16465 = vmatprep.mubr.msk.bf16.mxu0 %vm18351_vm0, %v23163_v7  ;;  %17779 = vrcp.f32 %v3527_v62  ;;  %v4678_v23 = vsel %vm3668_vm4, %v23173_v6, 0 }
 0x577   :  { %v17774_v0 = vpop.eup %17773  ;;  %16469 = vmatprep.subr.bf16.mxu1 %v23163_v7  ;;  %16475 = vmatprep.subr.bf16.mxu0 %v23163_v7 }
 0x578   :  { %v3612_v13 = vmul.f32 %v17774_v0, %v19570_v43  ;;  %v17776_v2 = vpop.eup %17775  ;;  %v4822_v0 = vsel %vm3668_vm4, %v4817_v63, 0 }
 0x579   :  { %v3615_v59 = vmul.f32 %v17776_v2, %v19535_v37  ;;  %v4534_v37 = vsel %vm3668_vm4, %v23170_v53, 0 }
 0x57a   :  { %v3644_v9 = vpack.c.bf16 %v3612_v13, %v3612_v13 }
 0x57b   :  { %v3647_v44 = vpack.c.bf16 %v3615_v59, %v3615_v59 }
 0x57c   :  { %16460 = vmatmul.mubr.msk.bf16.vlgmr.msra.gmra.mrb[120].mxu1 %vm245_vm2, %v3644_v9  ;;  %v3524_v60 = vpop.xlane.xlu0 %3523  ;;  %16466 = vmatmul.mubr.msk.bf16.vlgmr.msra.gmra.mrb[124].mxu0 %vm245_vm2, %v3645_v49 }
 0x57d   :  { %16470 = vmatpush3.bf16.msra.mxu1 %v4390_v58  ;;  %17781 = vrcp.f32 %v3524_v60  ;;  %16476 = vmatpush3.bf16.msra.mxu0 %v4438_v27  ;;  %v4774_v27 = vsel %vm3668_vm4, %v19775_v22, 0 }
 0x57e   :  { %16471 = vmatprep.mubr.msk.bf16.mxu1 %vm18351_vm0, %v23163_v7  ;;  %16481 = vmatprep.subr.bf16.mxu1 %v23163_v7  ;;  %17783 = vrcp.f32 %v19703_v24 }
 0x57f   :  { %v17778_v43 = vpop.eup %17777  ;;  %16477 = vmatprep.mubr.msk.bf16.mxu0 %vm18351_vm0, %v23163_v7  ;;  %16487 = vmatprep.subr.bf16.mxu0 %v23163_v7 }
 0x580   :  { %v3614_v29 = vmul.f32 %v17778_v43, %v19583_v51  ;;  %v17780_v16 = vpop.eup %17779 }
 0x581   :  { %v3617_v24 = vmul.f32 %v17780_v16, %v19541_v38  ;;  %v4913_v38 = vpop.permute.xlu1 %4912 }
 0x582   :  { %v3646_v28 = vpack.c.bf16 %v3614_v29, %v3614_v29  ;;  %v4918_v10 = vsel %vm3668_vm4, %v4913_v38, 0 }
 0x583   :  { %v3649_v47 = vpack.c.bf16 %v3617_v24, %v3617_v24 }
 0x584   :  { %5104 = vrot.lane.b32.xlu0 %v23169_v17, %s18336_s25  ;;  %16472 = vmatmul.mubr.msk.bf16.vlgmr.msra.gmra.mrb[124].mxu1 %vm245_vm2, %v3646_v28  ;;  %v3530_v61 = vpop.xlane.xlu0 %3529 }
 0x585   :  { %16482 = vmatpush3.bf16.msra.mxu1 %v4486_v15  ;;  %17785 = vrcp.f32 %v3530_v61  ;;  %16478 = vmatmul.mubr.msk.bf16.vlgmr.msra.gmra.mrb[128].mxu0 %vm245_vm2, %v3647_v44 }
 0x586   :  { %16488 = vmatpush3.bf16.msra.mxu0 %v4534_v37  ;;  %16483 = vmatprep.mubr.msk.bf16.mxu1 %vm18351_vm0, %v23163_v7  ;;  %17787 = vrcp.f32 %v19721_v11 }
 0x587   :  { %v17782_v51 = vpop.eup %17781  ;;  %16489 = vmatprep.mubr.msk.bf16.mxu0 %vm18351_vm0, %v23163_v7  ;;  %16493 = vmatprep.subr.bf16.mxu1 %v23163_v7  ;;  %17789 = vrcp.f32 %v19743_v39 }
 0x588   :  { %16499 = vmatprep.subr.bf16.mxu0 %v23163_v7  ;;  %v3616_v12 = vmul.f32 %v17782_v51, %v19588_v52  ;;  %v17784_v14 = vpop.eup %17783  ;;  %v4721_v55 = vpop.permute.xlu0 %4720 }
 0x589   :  { %v3619_v11 = vmul.f32 %v17784_v14, %v19553_v32  ;;  %v4726_v48 = vsel %vm3668_vm4, %v4721_v55, 0 }
 0x58a   :  { %v3648_v34 = vpack.c.bf16 %v3616_v12, %v3616_v12 }
 0x58b   :  { %v3651_v18 = vpack.c.bf16 %v3619_v11, %v3619_v11 }
 0x58c   :  { %16484 = vmatmul.mubr.msk.bf16.vlgmr.msra.gmra.mrb[128].mxu1 %vm245_vm2, %v3648_v34 }
 0x58d   :  { %16490 = vmatmul.mubr.msk.bf16.vlgmr.msra.gmra.mrb[132].mxu0 %vm245_vm2, %v3649_v47  ;;  %16494 = vmatpush3.bf16.msra.mxu1 %v4582_v56 }
 0x58e   :  { %16500 = vmatpush3.bf16.msra.mxu0 %v4630_v42  ;;  %16495 = vmatprep.mubr.msk.bf16.mxu1 %vm18351_vm0, %v23163_v7 }
 0x58f   :  { %v17786_v52 = vpop.eup %17785  ;;  %16501 = vmatprep.mubr.msk.bf16.mxu0 %vm18351_vm0, %v23163_v7  ;;  %16505 = vmatprep.subr.bf16.mxu1 %v23163_v7 }
 0x590   :  { %16511 = vmatprep.subr.bf16.mxu0 %v23163_v7  ;;  %v3618_v26 = vmul.f32 %v17786_v52, %v19594_v35  ;;  %v17788_v57 = vpop.eup %17787 }
 0x591   :  { %v3621_v35 = vmul.f32 %v17788_v57, %v19563_v45  ;;  %v17790_v8 = vpop.eup %17789 }
 0x592   :  { %v19810_v50 = vpop.xlane.xlu1 %3562  ;;  %v3650_v46 = vpack.c.bf16 %v3618_v26, %v3618_v26  ;;  %v3623_v45 = vmul.f32 %v17790_v8, %v19576_v33 }
 0x593   :  { %v3653_v31 = vpack.c.bf16 %v3621_v35, %v3621_v35 }
 0x594   :  { %16496 = vmatmul.mubr.msk.bf16.vlgmr.msra.gmra.mrb[132].mxu1 %vm245_vm2, %v3650_v46  ;;  %v3655_v9 = vpack.c.bf16 %v3623_v45, %v3623_v45  ;;  %v17660_v46 = vld [vmem:[#allocation8 + $0x8] sm:$0xff]  }
 0x595   :  { %16502 = vmatmul.mubr.msk.bf16.vlgmr.msra.gmra.mrb[136].mxu0 %vm245_vm2, %v3651_v18  ;;  %16506 = vmatpush3.bf16.msra.mxu1 %v4678_v23 }
 0x596   :  { %16512 = vmatpush3.bf16.msra.mxu0 %v4726_v48  ;;  %v3536_v32 = vpop.xlane.xlu1 %3535  ;;  %16513 = vmatprep.mubr.msk.bf16.mxu0 %vm18351_vm0, %v23163_v7 }
 0x597   :  { %17791 = vrcp.f32 %v3536_v32  ;;  %16523 = vmatprep.subr.bf16.mxu0 %v23163_v7  ;;  %16507 = vmatprep.mubr.msk.bf16.mxu1 %vm18351_vm0, %v23163_v7 }
 0x598   :  { %16517 = vmatprep.subr.bf16.mxu1 %v23163_v7 }
 0x59a   :  { %v3542_v39 = vpop.xlane.xlu1 %3541 }
 0x59b   :  { %17793 = vrcp.f32 %v3542_v39 }
 0x59d   :  { %16514 = vmatmul.mubr.msk.bf16.vlgmr.msra.gmra.mrb[140].mxu0 %vm245_vm2, %v3653_v31 }
 0x59e   :  { %16524 = vmatpush3.bf16.msra.mxu0 %v4822_v0  ;;  %16525 = vmatprep.mubr.msk.bf16.mxu0 %vm18351_vm0, %v23163_v7  ;;  %v3548_v54 = vpop.xlane.xlu1 %3547 }
 0x59f   :  { %16535 = vmatprep.subr.bf16.mxu0 %v23163_v7  ;;  %17795 = vrcp.f32 %v3548_v54 }
 0x5a1   :  { %v17792_v62 = vpop.eup %17791 }
 0x5a2   :  { %v3620_v13 = vmul.f32 %v17792_v62, %v19604_v41  ;;  %v4961_v22 = vpop.permute.xlu1 %4960 }
 0x5a3   :  { %v4966_v25 = vsel %vm3668_vm4, %v4961_v22, 0 }
 0x5a4   :  { %v3652_v49 = vpack.c.bf16 %v3620_v13, %v3620_v13 }
 0x5a5   :  { %v17794_v2 = vpop.eup %17793  ;;  %16526 = vmatmul.mubr.msk.bf16.vlgmr.msra.gmra.mrb[144].mxu0 %vm245_vm2, %v3655_v9 }
 0x5a6   :  { %16536 = vmatpush3.bf16.msra.mxu0 %v4918_v10  ;;  %16508 = vmatmul.mubr.msk.bf16.vlgmr.msra.gmra.mrb[136].mxu1 %vm245_vm2, %v3652_v49  ;;  %v3622_v33 = vmul.f32 %v17794_v2, %v19608_v3 }
 0x5a7   :  { %16518 = vmatpush3.bf16.msra.mxu1 %v4774_v27  ;;  %16519 = vmatprep.mubr.msk.bf16.mxu1 %vm18351_vm0, %v23163_v7 }
 0x5a8   :  { %16529 = vmatprep.subr.bf16.mxu1 %v23163_v7  ;;  %16537 = vmatprep.mubr.msk.bf16.mxu0 %vm18351_vm0, %v23163_v7  ;;  %v3654_v41 = vpack.c.bf16 %v3622_v33, %v3622_v33 }
 0x5a9   :  { %16547 = vmatprep.subr.bf16.mxu0 %v23163_v7  ;;  %v17796_v60 = vpop.eup %17795 }
 0x5aa   :  { %v3624_v3 = vmul.f32 %v17796_v60, %v19612_v20 }
 0x5ac   :  { %v3656_v44 = vpack.c.bf16 %v3624_v3, %v3624_v3 }
 0x5ae   :  { %16520 = vmatmul.mubr.msk.bf16.vlgmr.msra.gmra.mrb[140].mxu1 %vm245_vm2, %v3654_v41 }
 0x5af   :  { %16531 = vmatprep.mubr.msk.bf16.mxu1 %vm18351_vm0, %v23163_v7 }
 0x5b9   :  { %v3551_v58 = vpop.xlane.xlu0 %3550 }
 0x5ba   :  { %17797 = vrcp.f32 %v3551_v58 }
 0x5bd   :  { %v3557_v43 = vpop.xlane.xlu0 %3556 }
 0x5be   :  { %17799 = vrcp.f32 %v3557_v43 }
 0x5c1   :  { %v4865_v59 = vpop.permute.xlu0 %4864 }
 0x5c2   :  { %v4870_v29 = vsel %vm3668_vm4, %v4865_v59, 0 }
 0x5c3   :  { %16530 = vmatpush3.bf16.msra.mxu1 %v4870_v29 }
 0x5c4   :  { %v17798_v28 = vpop.eup %17797  ;;  %16541 = vmatprep.subr.bf16.mxu1 %v23163_v7 }
 0x5c5   :  { %v3625_v16 = vmul.f32 %v17798_v28, %v19626_v21  ;;  %v5009_v15 = vpop.permute.xlu0 %5008 }
 0x5c6   :  { %16532 = vmatmul.mubr.msk.bf16.vlgmr.msra.gmra.mrb[144].mxu1 %vm245_vm2, %v3656_v44  ;;  %v5014_v61 = vsel %vm3668_vm4, %v5009_v15, 0 }
 0x5c7   :  { %16542 = vmatpush3.bf16.msra.mxu1 %v4966_v25  ;;  %v3657_v17 = vpack.c.bf16 %v3625_v16, %v3625_v16  ;;  %16543 = vmatprep.mubr.msk.bf16.mxu1 %vm18351_vm0, %v23163_v7 }
 0x5c8   :  { %v17800_v20 = vpop.eup %17799  ;;  %16553 = vmatprep.subr.bf16.mxu1 %v23163_v7 }
 0x5c9   :  { %16538 = vmatmul.mubr.msk.bf16.vlgmr.msra.gmra.mrb[148].mxu0 %vm245_vm2, %v3657_v17  ;;  %v3627_v21 = vmul.f32 %v17800_v20, %v19631_v40 }
 0x5ca   :  { %16548 = vmatpush3.bf16.msra.mxu0 %v5014_v61  ;;  %16549 = vmatprep.mubr.msk.bf16.mxu0 %vm18351_vm0, %v23163_v7 }
 0x5cb   :  { %16559 = vmatprep.subr.bf16.mxu0 %v23163_v7  ;;  %v3659_v53 = vpack.c.bf16 %v3627_v21, %v3627_v21 }
 0x5d1   :  { %16550 = vmatmul.mubr.msk.bf16.vlgmr.msra.gmra.mrb[152].mxu0 %vm245_vm2, %v3659_v53 }
 0x5d2   :  { %16561 = vmatprep.mubr.msk.bf16.mxu0 %vm18351_vm0, %v23163_v7 }
 0x5d3   :  { %v3554_v37 = vpop.xlane.xlu1 %3553 }
 0x5d4   :  { %17801 = vrcp.f32 %v3554_v37 }
 0x5d5   :  { %17803 = vrcp.f32 %v19810_v50 }
 0x5d7   :  { %v5057_v63 = vpop.permute.xlu1 %5056 }
 0x5d8   :  { %v5062_v34 = vsel %vm3668_vm4, %v5057_v63, 0 }
 0x5db   :  { %v5153_v18 = vpop.permute.xlu1 %5152 }
 0x5dc   :  { %v5158_v6 = vsel %vm3668_vm4, %v5153_v18, 0 }
 0x5de   :  { %v17802_v51 = vpop.eup %17801 }
 0x5df   :  { %v3626_v24 = vmul.f32 %v17802_v51, %v19657_v1  ;;  %v17804_v47 = vpop.eup %17803 }
 0x5e0   :  { %v3629_v1 = vmul.f32 %v17804_v47, %v19600_v4 }
 0x5e1   :  { %v3658_v12 = vpack.c.bf16 %v3626_v24, %v3626_v24 }
 0x5e2   :  { %v3661_v55 = vpack.c.bf16 %v3629_v1, %v3629_v1 }
 0x5e3   :  { %16544 = vmatmul.mubr.msk.bf16.vlgmr.msra.gmra.mrb[148].mxu1 %vm245_vm2, %v3658_v12 }
 0x5e4   :  { %16554 = vmatpush3.bf16.msra.mxu1 %v5062_v34  ;;  %16555 = vmatprep.mubr.msk.bf16.mxu1 %vm18351_vm0, %v23163_v7 }
 0x5e5   :  { %16565 = vmatprep.subr.bf16.mxu1 %v23163_v7 }
 0x5f6   :  { %v3560_v40 = vpop.xlane.xlu0 %3559 }
 0x5f7   :  { %17805 = vrcp.f32 %v3560_v40 }
 0x5fb   :  { %v3566_v14 = vpop.xlane.xlu0 %3565 }
 0x5fc   :  { %17807 = vrcp.f32 %v3566_v14 }
 0x5ff   :  { %v5105_v56 = vpop.permute.xlu0 %5104  ;;  %v3706_v19 = vpop.f32.mrb[96].mxu0 }
 0x600   :  { %v5110_v42 = vsel %vm3668_vm4, %v5105_v56, 0  ;;  %v16383_v38 = vpop.f32.mrb[97].mxu0 }
 0x601   :  { %v17806_v52 = vpop.eup %17805  ;;  %16560 = vmatpush3.bf16.msra.mxu0 %v5110_v42  ;;  %v3709_v11 = vpop.f32.mrb[98].mxu0 }
 0x602   :  { %v16384_v26 = vpop.f32.mrb[99].mxu0  ;;  %v3628_v50 = vmul.f32 %v17806_v52, %v19712_v5  ;;  %16571 = vmatprep.subr.bf16.mxu0 %v17659_v36 }
 0x604   :  { %16562 = vmatmul.mubr.msk.bf16.vlgmr.msra.gmra.mrb[156].mxu0 %vm245_vm2, %v3661_v55  ;;  %v3660_v57 = vpack.c.bf16 %v3628_v50, %v3628_v50 }
 0x605   :  { %16572 = vmatpush3.bf16.msra.mxu0 %v17659_v36 }
 0x606   :  { %v17808_v4 = vpop.eup %17807  ;;  %16556 = vmatmul.mubr.msk.bf16.vlgmr.msra.gmra.mrb[152].mxu1 %vm245_vm2, %v3660_v57  ;;  %16573 = vmatprep.subr.bf16.mxu0 %v17660_v46 }
 0x607   :  { %16566 = vmatpush3.bf16.msra.mxu1 %v5158_v6  ;;  %v3754_v23 = vpop.f32.mrb[96].mxu1  ;;  %16567 = vmatprep.mubr.msk.bf16.mxu1 %vm18351_vm0, %v23163_v7  ;;  %v3630_v32 = vmul.f32 %v17808_v4, %v19727_v30 }
 0x608   :  { %v5200_v48 = vpack.c.bf16 %v3754_v23, %v3706_v19  ;;  %v16389_v5 = vpop.f32.mrb[97].mxu1 }
 0x609   :  { %v3757_v35 = vpop.f32.mrb[98].mxu1  ;;  %16574 = vmatpush3.bf16.msra.mxu0 %v17660_v46  ;;  %v3662_v31 = vpack.c.bf16 %v3630_v32, %v3630_v32 }
 0x60a   :  { %v16390_v39 = vpop.f32.mrb[99].mxu1  ;;  %16575 = vmatprep.mubr.msk.bf16.mxu0 %vm1437_vm3, %v5200_v48 }
 0x60e   :  { %16568 = vmatmul.mubr.msk.bf16.vlgmr.msra.gmra.mrb[156].mxu1 %vm245_vm2, %v3662_v31 }
 0x60f   :  { %v3802_v8 = vpop.f32.mrb[100].mxu0 }
 0x610   :  { %v16395_v0 = vpop.f32.mrb[101].mxu0 }
 0x611   :  { %v3805_v45 = vpop.f32.mrb[102].mxu0 }
 0x612   :  { %v16396_v62 = vpop.f32.mrb[103].mxu0 }
 0x617   :  { %v3850_v13 = vpop.f32.mrb[100].mxu1 }
 0x618   :  { %v5201_v9 = vpack.c.bf16 %v3850_v13, %v3802_v8  ;;  %v16401_v49 = vpop.f32.mrb[101].mxu1 }
 0x619   :  { %v3853_v2 = vpop.f32.mrb[102].mxu1 }
 0x61a   :  { %v16402_v10 = vpop.f32.mrb[103].mxu1  ;;  %16576 = vmatmul.mubr.msk.bf16.vlgmr.msra.gmra.mrb[160].mxu0 %vm1437_vm3, %v5201_v9 }
 0x61f   :  { %v3898_v30 = vpop.f32.mrb[104].mxu0 }
 0x620   :  { %v16407_v27 = vpop.f32.mrb[105].mxu0 }
 0x621   :  { %v3901_v33 = vpop.f32.mrb[106].mxu0 }
 0x622   :  { %v16408_v41 = vpop.f32.mrb[107].mxu0 }
 0x627   :  { %v3946_v54 = vpop.f32.mrb[104].mxu1 }
 0x628   :  { %v5202_v58 = vpack.c.bf16 %v3946_v54, %v3898_v30  ;;  %v16413_v60 = vpop.f32.mrb[105].mxu1 }
 0x629   :  { %v3949_v43 = vpop.f32.mrb[106].mxu1 }
 0x62a   :  { %v16414_v3 = vpop.f32.mrb[107].mxu1  ;;  %16579 = vmatprep.mubr.msk.bf16.mxu0 %vm1437_vm3, %v5202_v58 }
 0x62f   :  { %v3994_v59 = vpop.f32.mrb[108].mxu0 }
 0x630   :  { %v16419_v29 = vpop.f32.mrb[109].mxu0 }
 0x631   :  { %v3997_v22 = vpop.f32.mrb[110].mxu0 }
 0x632   :  { %v16420_v28 = vpop.f32.mrb[111].mxu0 }
 0x637   :  { %v4042_v44 = vpop.f32.mrb[108].mxu1  ;;  %v4090_v16 = vpop.f32.mrb[112].mxu0 }
 0x638   :  { %v5203_v25 = vpack.c.bf16 %v4042_v44, %v3994_v59  ;;  %v16425_v15 = vpop.f32.mrb[109].mxu1  ;;  %v16431_v17 = vpop.f32.mrb[113].mxu0  ;;  %v17661_v44 = vld [vmem:[#allocation9] sm:$0xff]  }
 0x639   :  { %v4045_v20 = vpop.f32.mrb[110].mxu1  ;;  %v4093_v61 = vpop.f32.mrb[114].mxu0  ;;  %16607 = vmatprep.subr.bf16.mxu1 %v17661_v44  ;;  %v17662_v17 = vld [vmem:[#allocation9 + $0x8] sm:$0xff]  }
 0x63a   :  { %v16426_v21 = vpop.f32.mrb[111].mxu1  ;;  %v16432_v53 = vpop.f32.mrb[115].mxu0  ;;  %16580 = vmatmul.mubr.msk.bf16.gmra.mrb[164].mxu0 %vm1437_vm3, %v5203_v25  ;;  %16608 = vmatpush3.bf16.msra.mxu1 %v17661_v44  ;;  %v18068_v44 = vld [vmem:[%s23136_s3 + $0x8] sm:$0xff] }
 0x63b   :  { %16609 = vmatprep.subr.bf16.mxu1 %v17662_v17 }
 0x63e   :  { %16610 = vmatpush3.bf16.msra.mxu1 %v17662_v17  ;;  %v17664_v17 = vld [vmem:[#allocation11 + $0x8] sm:$0xff]  }
 0x63f   :  { %v4138_v37 = vpop.f32.mrb[112].mxu1  ;;  %v4186_v51 = vpop.f32.mrb[116].mxu0 }
 0x640   :  { %v5204_v24 = vpack.c.bf16 %v4138_v37, %v4090_v16  ;;  %v16437_v63 = vpop.f32.mrb[113].mxu1  ;;  %v16443_v12 = vpop.f32.mrb[117].mxu0 }
 0x641   :  { %v4141_v34 = vpop.f32.mrb[114].mxu1  ;;  %v4189_v40 = vpop.f32.mrb[118].mxu0 }
 0x642   :  { %v16438_v47 = vpop.f32.mrb[115].mxu1  ;;  %v16444_v14 = vpop.f32.mrb[119].mxu0  ;;  %16583 = vmatprep.mubr.msk.bf16.mxu0 %vm1437_vm3, %v5204_v24 }
 0x647   :  { %v4234_v1 = vpop.f32.mrb[116].mxu1  ;;  %v4282_v36 = vpop.f32.mrb[120].mxu0 }
 0x648   :  { %v5205_v56 = vpack.c.bf16 %v4234_v1, %v4186_v51  ;;  %v16449_v19 = vpop.f32.mrb[117].mxu1  ;;  %v16455_v42 = vpop.f32.mrb[121].mxu0 }
 0x649   :  { %v4237_v38 = vpop.f32.mrb[118].mxu1  ;;  %v4285_v52 = vpop.f32.mrb[122].mxu0 }
 0x64a   :  { %v16450_v11 = vpop.f32.mrb[119].mxu1  ;;  %v16456_v26 = vpop.f32.mrb[123].mxu0  ;;  %16584 = vmatmul.mubr.msk.bf16.gmra.mrb[168].mxu0 %vm1437_vm3, %v5205_v56 }
 0x64f   :  { %v4330_v55 = vpop.f32.mrb[120].mxu1  ;;  %v4378_v50 = vpop.f32.mrb[124].mxu0 }
 0x650   :  { %v5206_v46 = vpack.c.bf16 %v4330_v55, %v4282_v36  ;;  %v16461_v18 = vpop.f32.mrb[121].mxu1  ;;  %v16467_v57 = vpop.f32.mrb[125].mxu0 }
 0x651   :  { %v4333_v4 = vpop.f32.mrb[122].mxu1  ;;  %v4381_v6 = vpop.f32.mrb[126].mxu0 }
 0x652   :  { %v16462_v23 = vpop.f32.mrb[123].mxu1  ;;  %v16468_v48 = vpop.f32.mrb[127].mxu0  ;;  %16587 = vmatprep.mubr.msk.bf16.mxu0 %vm1437_vm3, %v5206_v46 }
 0x657   :  { %v4426_v5 = vpop.f32.mrb[124].mxu1 }
 0x658   :  { %v5207_v32 = vpack.c.bf16 %v4426_v5, %v4378_v50  ;;  %v4474_v35 = vpop.f32.mrb[128].mxu0  ;;  %v16473_v39 = vpop.f32.mrb[125].mxu1 }
 0x659   :  { %v16479_v31 = vpop.f32.mrb[129].mxu0  ;;  %v4429_v8 = vpop.f32.mrb[126].mxu1 }
 0x65a   :  { %v4477_v0 = vpop.f32.mrb[130].mxu0  ;;  %v16474_v45 = vpop.f32.mrb[127].mxu1  ;;  %16588 = vmatmul.mubr.msk.bf16.gmra.mrb[172].mxu0 %vm1437_vm3, %v5207_v32 }
 0x65b   :  { %v16480_v62 = vpop.f32.mrb[131].mxu0 }
 0x65f   :  { %v4522_v13 = vpop.f32.mrb[128].mxu1 }
 0x660   :  { %v5208_v9 = vpack.c.bf16 %v4522_v13, %v4474_v35  ;;  %v4570_v49 = vpop.f32.mrb[132].mxu0  ;;  %v16485_v2 = vpop.f32.mrb[129].mxu1  ;;  %v17663_v35 = vld [vmem:[#allocation11] sm:$0xff]  }
 0x661   :  { %v16491_v10 = vpop.f32.mrb[133].mxu0  ;;  %v4525_v30 = vpop.f32.mrb[130].mxu1  ;;  %16627 = vmatprep.subr.bf16.mxu1 %v17663_v35 }
 0x662   :  { %v4573_v27 = vpop.f32.mrb[134].mxu0  ;;  %v16486_v33 = vpop.f32.mrb[131].mxu1  ;;  %16591 = vmatprep.mubr.msk.bf16.mxu0 %vm1437_vm3, %v5208_v9 }
 0x663   :  { %v16492_v41 = vpop.f32.mrb[135].mxu0 }
 0x667   :  { %v4618_v54 = vpop.f32.mrb[132].mxu1 }
 0x668   :  { %v5209_v58 = vpack.c.bf16 %v4618_v54, %v4570_v49  ;;  %v4666_v60 = vpop.f32.mrb[136].mxu0  ;;  %v16497_v43 = vpop.f32.mrb[133].mxu1 }
 0x669   :  { %v16503_v3 = vpop.f32.mrb[137].mxu0  ;;  %v4621_v59 = vpop.f32.mrb[134].mxu1 }
 0x66a   :  { %v4669_v29 = vpop.f32.mrb[138].mxu0  ;;  %v16498_v22 = vpop.f32.mrb[135].mxu1  ;;  %16592 = vmatmul.mubr.msk.bf16.gmra.mrb[176].mxu0 %vm1437_vm3, %v5209_v58  ;;  %v18066_v3 = vld [vmem:[%s23136_s3 + $0x18] sm:$0xff] }
 0x66b   :  { %v16504_v28 = vpop.f32.mrb[139].mxu0  ;;  %v18067_v22 = vld [vmem:[%s23136_s3] sm:$0xff] }
 0x670   :  { %v4762_v16 = vpop.f32.mrb[140].mxu0 }
 0x671   :  { %v16515_v25 = vpop.f32.mrb[141].mxu0 }
 0x672   :  { %v4765_v15 = vpop.f32.mrb[142].mxu0 }
 0x673   :  { %v16516_v20 = vpop.f32.mrb[143].mxu0 }
 0x678   :  { %v4858_v61 = vpop.f32.mrb[144].mxu0 }
 0x679   :  { %v4714_v21 = vpop.f32.mrb[136].mxu1  ;;  %v16527_v53 = vpop.f32.mrb[145].mxu0 }
 0x67a   :  { %v5210_v37 = vpack.c.bf16 %v4714_v21, %v4666_v60  ;;  %v16509_v51 = vpop.f32.mrb[137].mxu1  ;;  %v4861_v24 = vpop.f32.mrb[146].mxu0  ;;  %v18065_v60 = vld [vmem:[%s23136_s3 + $0x10] sm:$0xff] }
 0x67b   :  { %v4717_v63 = vpop.f32.mrb[138].mxu1  ;;  %v16528_v12 = vpop.f32.mrb[147].mxu0  ;;  %v18069_v53 = vld [vmem:[%s23136_s3 + $0x30] sm:$0xff]  ;;  %v18070_v51 = vld [vmem:[%s23136_s3 + $0x38] sm:$0xff] }
 0x67c   :  { %v16510_v34 = vpop.f32.mrb[139].mxu1  ;;  %16595 = vmatprep.mubr.msk.bf16.mxu0 %vm1437_vm3, %v5210_v37  ;;  %v18071_v12 = vld [vmem:[%s23136_s3 + $0x20] sm:$0xff] }
 0x681   :  { %v4810_v40 = vpop.f32.mrb[140].mxu1 }
 0x682   :  { %v5211_v47 = vpack.c.bf16 %v4810_v40, %v4762_v16  ;;  %v16521_v14 = vpop.f32.mrb[141].mxu1  ;;  %v18072_v40 = vld [vmem:[%s23136_s3 + $0x28] sm:$0xff] }
 0x683   :  { %v4813_v1 = vpop.f32.mrb[142].mxu1 }
 0x684   :  { %v16522_v36 = vpop.f32.mrb[143].mxu1  ;;  %16596 = vmatmul.mubr.msk.bf16.gmra.mrb[180].mxu0 %vm1437_vm3, %v5211_v47 }
 0x699   :  { %v4906_v56 = vpop.f32.mrb[144].mxu1 }
 0x69a   :  { %v5212_v19 = vpack.c.bf16 %v4906_v56, %v4858_v61  ;;  %v16533_v42 = vpop.f32.mrb[145].mxu1 }
 0x69b   :  { %v4909_v38 = vpop.f32.mrb[146].mxu1  ;;  %v18073_v42 = vld [vmem:[%s23136_s3 + $0x50] sm:$0xff] }
 0x69c   :  { %v16534_v52 = vpop.f32.mrb[147].mxu1  ;;  %v4954_v11 = vpop.f32.mrb[148].mxu0  ;;  %16599 = vmatprep.mubr.msk.bf16.mxu0 %vm1437_vm3, %v5212_v19 }
 0x69d   :  { %v16539_v26 = vpop.f32.mrb[149].mxu0  ;;  %v18074_v52 = vld [vmem:[%s23136_s3 + $0x58] sm:$0xff] }
 0x69e   :  { %v4957_v55 = vpop.f32.mrb[150].mxu0 }
 0x69f   :  { %v16540_v50 = vpop.f32.mrb[151].mxu0  ;;  %v18075_v55 = vld [vmem:[%s23136_s3 + $0x40] sm:$0xff] }
 0x6a4   :  { %v5050_v46 = vpop.f32.mrb[152].mxu0 }
 0x6a5   :  { %v16551_v18 = vpop.f32.mrb[153].mxu0 }
 0x6a6   :  { %v5053_v57 = vpop.f32.mrb[154].mxu0 }
 0x6a7   :  { %v16552_v4 = vpop.f32.mrb[155].mxu0 }
 0x6b6   :  { %v5002_v6 = vpop.f32.mrb[148].mxu1 }
 0x6b7   :  { %v5213_v23 = vpack.c.bf16 %v5002_v6, %v4954_v11  ;;  %v16545_v48 = vpop.f32.mrb[149].mxu1 }
 0x6b8   :  { %v5005_v5 = vpop.f32.mrb[150].mxu1 }
 0x6b9   :  { %v16546_v32 = vpop.f32.mrb[151].mxu1  ;;  %16600 = vmatmul.mubr.msk.bf16.gmra.mrb[184].mxu0 %vm1437_vm3, %v5213_v23  ;;  %v18077_v5 = vld [vmem:[%s23136_s3 + $0x70] sm:$0xff] }
 0x6d7   :  { %v5146_v39 = vpop.f32.mrb[156].mxu0 }
 0x6d8   :  { %v16563_v31 = vpop.f32.mrb[157].mxu0 }
 0x6d9   :  { %v5149_v8 = vpop.f32.mrb[158].mxu0  ;;  %v5098_v0 = vpop.f32.mrb[152].mxu1 }
 0x6da   :  { %v5214_v45 = vpack.c.bf16 %v5098_v0, %v5050_v46  ;;  %v16564_v62 = vpop.f32.mrb[159].mxu0  ;;  %v16557_v13 = vpop.f32.mrb[153].mxu1  ;;  %v18076_v46 = vld [vmem:[%s23136_s3 + $0x48] sm:$0xff]  ;;  %v18079_v8 = vld [vmem:[%s23136_s3 + $0x60] sm:$0xff] }
 0x6db   :  { %v5101_v9 = vpop.f32.mrb[154].mxu1 }
 0x6dc   :  { %v16558_v49 = vpop.f32.mrb[155].mxu1  ;;  %16603 = vmatprep.mubr.msk.bf16.mxu0 %vm1437_vm3, %v5214_v45  ;;  %v18080_v45 = vld [vmem:[%s23136_s3 + $0x68] sm:$0xff] }
 0x6e1   :  { %v5194_v2 = vpop.f32.mrb[156].mxu1 }
 0x6e2   :  { %v5215_v10 = vpack.c.bf16 %v5194_v2, %v5146_v39  ;;  %v16569_v30 = vpop.f32.mrb[157].mxu1 }
 0x6e3   :  { %v5197_v27 = vpop.f32.mrb[158].mxu1  ;;  %v23174_v30 = vld [vmem:[#allocation29_spill] sm:$0xff] }
 0x6e4   :  { %v16570_v33 = vpop.f32.mrb[159].mxu1  ;;  %16604 = vmatmul.mubr.msk.bf16.gmra.mrb[188].mxu0 %vm1437_vm3, %v5215_v10 }
 0x6e5   :  { %v23175_v33 = vld [vmem:[#allocation30_spill] sm:$0xff] }
 0x6ed   :  { %v16577_v41 = vpop.f32.mrb[160].mxu0 }
 0x6ee   :  { %v5310_v54 = vpop.f32.mrb[161].mxu0  ;;  %v5439_v43 = vadd.f32 %v18065_v60, %v16577_v41 }
 0x6ef   :  { %v16578_v58 = vpop.f32.mrb[162].mxu0  ;;  %v5437_v28 = vadd.f32 %v18067_v22, %v5310_v54  ;;  %v17665_v22 = vld [vmem:[#allocation12] sm:$0xff]  }
 0x6f0   :  { %v5440_v59 = vadd.f32 %v18066_v3, %v16578_v58  ;;  %v5313_v29 = vpop.f32.mrb[163].mxu0  ;;  %v23176_v58 = vld [vmem:[#allocation27_spill] sm:$0xff]  ;;  %16647 = vmatprep.subr.bf16.mxu0 %v17665_v22 }
 0x6f1   :  { %v5438_v16 = vadd.f32 %v18068_v44, %v5313_v29  ;;  %16648 = vmatpush3.bf16.msra.mxu0 %v17665_v22 }
 0x6f2   :  { %v5480_v25 = vpack.c.bf16 %v5440_v59, %v5439_v43  ;;  %v23177_v43 = vld [vmem:[#allocation28_spill] sm:$0xff] }
 0x6f3   :  { %v5479_v15 = vpack.c.bf16 %v5438_v16, %v5437_v28  ;;  %v17666_v28 = vld [vmem:[#allocation12 + $0x8] sm:$0xff]  }
 0x6f4   :  { %16649 = vmatprep.subr.bf16.mxu0 %v17666_v28 }
 0x6f5   :  { %16611 = vmatprep.mubr.msk.bf16.mxu1 %vm1437_vm3, %v5479_v15  ;;  %16650 = vmatpush3.bf16.msra.mxu0 %v17666_v28  ;;  %v23178_v15 = vld [vmem:[#allocation33_spill] sm:$0xff] }
 0x6f6   :  { %16612 = vmatmul.mubr.msk.bf16.vlgmr.msra.gmra.mrb[160].mxu1 %vm1437_vm3, %v5480_v25  ;;  %16731 = vmatprep.subr.bf16.mxu0 %v23163_v7 }
 0x6f7   :  { %16628 = vmatpush3.bf16.msra.mxu1 %v17663_v35  ;;  %v18078_v35 = vld [vmem:[%s23136_s3 + $0x78] sm:$0xff] }
 0x6f8   :  { %16629 = vmatprep.subr.bf16.mxu1 %v17664_v17 }
 0x6fb   :  { %16630 = vmatpush3.bf16.msra.mxu1 %v17664_v17 }
 0x6fc   :  { %16683 = vmatprep.subr.bf16.mxu1 %v23163_v7 }
 0x70d   :  { %v16581_v20 = vpop.f32.mrb[164].mxu0 }
 0x70e   :  { %v5326_v61 = vpop.f32.mrb[165].mxu0  ;;  %v5443_v37 = vadd.f32 %v18069_v53, %v16581_v20  ;;  %v23179_v20 = vld [vmem:[#allocation34_spill] sm:$0xff]  ;;  %v23180_v53 = vld [vmem:[#allocation31_spill] sm:$0xff] }
 0x70f   :  { %v16582_v21 = vpop.f32.mrb[166].mxu0  ;;  %v5441_v34 = vadd.f32 %v18071_v12, %v5326_v61 }
 0x710   :  { %v5444_v24 = vadd.f32 %v18070_v51, %v16582_v21  ;;  %v5329_v63 = vpop.f32.mrb[167].mxu0  ;;  %v23181_v51 = vld [vmem:[#allocation32_spill] sm:$0xff] }
 0x711   :  { %v5442_v47 = vadd.f32 %v18072_v40, %v5329_v63 }
 0x712   :  { %v5482_v14 = vpack.c.bf16 %v5444_v24, %v5443_v37 }
 0x713   :  { %v5481_v1 = vpack.c.bf16 %v5442_v47, %v5441_v34 }
 0x715   :  { %16615 = vmatprep.mubr.msk.bf16.mxu1 %vm1437_vm3, %v5481_v1 }
 0x716   :  { %16616 = vmatmul.mubr.msk.bf16.gmra.mrb[164].mxu1 %vm1437_vm3, %v5482_v14  ;;  %v23182_v14 = vld [vmem:[#allocation37_spill] sm:$0xff] }
 0x71d   :  { %v16585_v36 = vpop.f32.mrb[168].mxu0 }
 0x71e   :  { %v5342_v56 = vpop.f32.mrb[169].mxu0  ;;  %v5447_v38 = vadd.f32 %v18073_v42, %v16585_v36  ;;  %v23183_v36 = vld [vmem:[#allocation38_spill] sm:$0xff]  ;;  %v23184_v42 = vld [vmem:[#allocation35_spill] sm:$0xff] }
 0x71f   :  { %v16586_v19 = vpop.f32.mrb[170].mxu0  ;;  %v5445_v50 = vadd.f32 %v18075_v55, %v5342_v56 }
 0x720   :  { %v5448_v11 = vadd.f32 %v18074_v52, %v16586_v19  ;;  %v5345_v26 = vpop.f32.mrb[171].mxu0  ;;  %v23185_v52 = vld [vmem:[#allocation36_spill] sm:$0xff] }
 0x721   :  { %v5446_v18 = vadd.f32 %v18076_v46, %v5345_v26 }
 0x722   :  { %v5484_v57 = vpack.c.bf16 %v5448_v11, %v5447_v38 }
 0x723   :  { %v5483_v4 = vpack.c.bf16 %v5446_v18, %v5445_v50 }
 0x725   :  { %16619 = vmatprep.mubr.msk.bf16.mxu1 %vm1437_vm3, %v5483_v4 }
 0x726   :  { %16620 = vmatmul.mubr.msk.bf16.gmra.mrb[168].mxu1 %vm1437_vm3, %v5484_v57  ;;  %v23186_v57 = vld [vmem:[#allocation41_spill] sm:$0xff] }
 0x72d   :  { %v16589_v6 = vpop.f32.mrb[172].mxu0 }
 0x72e   :  { %v5358_v23 = vpop.f32.mrb[173].mxu0  ;;  %v5451_v32 = vadd.f32 %v18077_v5, %v16589_v6  ;;  %v23187_v6 = vld [vmem:[#allocation42_spill] sm:$0xff]  ;;  %v23188_v5 = vld [vmem:[#allocation39_spill] sm:$0xff] }
 0x72f   :  { %v16590_v48 = vpop.f32.mrb[174].mxu0  ;;  %v5449_v0 = vadd.f32 %v18079_v8, %v5358_v23 }
 0x730   :  { %v5452_v39 = vadd.f32 %v18078_v35, %v16590_v48  ;;  %v5361_v31 = vpop.f32.mrb[175].mxu0  ;;  %v23189_v35 = vld [vmem:[#allocation40_spill] sm:$0xff] }
 0x731   :  { %v5450_v62 = vadd.f32 %v18080_v45, %v5361_v31 }
 0x732   :  { %v5486_v13 = vpack.c.bf16 %v5452_v39, %v5451_v32 }
 0x733   :  { %v5485_v9 = vpack.c.bf16 %v5450_v62, %v5449_v0  ;;  %v19984_v0 = vld [vmem:[%s23190_s16] ss:$0 sm:$0xff] }
 0x735   :  { %16623 = vmatprep.mubr.msk.bf16.mxu1 %vm1437_vm3, %v5485_v9 }
 0x736   :  { %16624 = vmatmul.mubr.msk.bf16.gmra.mrb[172].mxu1 %vm1437_vm3, %v5486_v13 }
 0x73d   :  { %v16593_v49 = vpop.f32.mrb[176].mxu0 }
 0x73e   :  { %v5374_v2 = vpop.f32.mrb[177].mxu0  ;;  %v5455_v27 = vadd.f32 %v16593_v49, %v23174_v30 }
 0x73f   :  { %v16594_v10 = vpop.f32.mrb[178].mxu0  ;;  %v5453_v60 = vadd.f32 %v5374_v2, %v23176_v58 }
 0x740   :  { %v5456_v41 = vadd.f32 %v16594_v10, %v23175_v33  ;;  %v5377_v54 = vpop.f32.mrb[179].mxu0 }
 0x741   :  { %v5454_v3 = vadd.f32 %v5377_v54, %v23177_v43 }
 0x742   :  { %v5488_v59 = vpack.c.bf16 %v5456_v41, %v5455_v27 }
 0x743   :  { %v5487_v29 = vpack.c.bf16 %v5454_v3, %v5453_v60 }
 0x745   :  { %16631 = vmatprep.mubr.msk.bf16.mxu1 %vm1437_vm3, %v5487_v29 }
 0x746   :  { %16632 = vmatmul.mubr.msk.bf16.vlgmr.msra.gmra.mrb[176].mxu1 %vm1437_vm3, %v5488_v59 }
 0x757   :  { %v16597_v44 = vpop.f32.mrb[180].mxu0 }
 0x758   :  { %v5390_v16 = vpop.f32.mrb[181].mxu0  ;;  %v5459_v17 = vadd.f32 %v16597_v44, %v23178_v15 }
 0x759   :  { %v16598_v25 = vpop.f32.mrb[182].mxu0  ;;  %v5457_v37 = vadd.f32 %v5390_v16, %v23180_v53 }
 0x75a   :  { %v5460_v61 = vadd.f32 %v16598_v25, %v23179_v20  ;;  %v5393_v21 = vpop.f32.mrb[183].mxu0 }
 0x75b   :  { %v5458_v24 = vadd.f32 %v5393_v21, %v23181_v51 }
 0x75c   :  { %v5490_v63 = vpack.c.bf16 %v5460_v61, %v5459_v17 }
 0x75d   :  { %v5489_v12 = vpack.c.bf16 %v5458_v24, %v5457_v37 }
 0x75f   :  { %16635 = vmatprep.mubr.msk.bf16.mxu1 %vm1437_vm3, %v5489_v12 }
 0x760   :  { %16636 = vmatmul.mubr.msk.bf16.gmra.mrb[180].mxu1 %vm1437_vm3, %v5490_v63 }
 0x78c   :  { %v16601_v34 = vpop.f32.mrb[184].mxu0 }
 0x78d   :  { %v5406_v40 = vpop.f32.mrb[185].mxu0  ;;  %v5463_v1 = vadd.f32 %v16601_v34, %v23182_v14 }
 0x78e   :  { %v16602_v47 = vpop.f32.mrb[186].mxu0  ;;  %v5461_v38 = vadd.f32 %v5406_v40, %v23184_v42 }
 0x78f   :  { %v5464_v56 = vadd.f32 %v16602_v47, %v23183_v36  ;;  %v5409_v19 = vpop.f32.mrb[187].mxu0 }
 0x790   :  { %v5462_v11 = vadd.f32 %v5409_v19, %v23185_v52 }
 0x791   :  { %v5492_v26 = vpack.c.bf16 %v5464_v56, %v5463_v1 }
 0x792   :  { %v5491_v55 = vpack.c.bf16 %v5462_v11, %v5461_v38 }
 0x794   :  { %16639 = vmatprep.mubr.msk.bf16.mxu1 %vm1437_vm3, %v5491_v55 }
 0x795   :  { %16640 = vmatmul.mubr.msk.bf16.gmra.mrb[184].mxu1 %vm1437_vm3, %v5492_v26 }
 0x7b7   :  { %v16605_v50 = vpop.f32.mrb[188].mxu0 }
 0x7b8   :  { %v5422_v46 = vpop.f32.mrb[189].mxu0  ;;  %v5467_v4 = vadd.f32 %v16605_v50, %v23186_v57 }
 0x7b9   :  { %v16606_v18 = vpop.f32.mrb[190].mxu0  ;;  %v5465_v32 = vadd.f32 %v5422_v46, %v23188_v5 }
 0x7ba   :  { %v5468_v23 = vadd.f32 %v16606_v18, %v23187_v6  ;;  %v5425_v48 = vpop.f32.mrb[191].mxu0 }
 0x7bb   :  { %v5466_v39 = vadd.f32 %v5425_v48, %v23189_v35 }
 0x7bc   :  { %v5494_v31 = vpack.c.bf16 %v5468_v23, %v5467_v4 }
 0x7bd   :  { %v5493_v8 = vpack.c.bf16 %v5466_v39, %v5465_v32 }
 0x7bf   :  { %16643 = vmatprep.mubr.msk.bf16.mxu1 %vm1437_vm3, %v5493_v8 }
 0x7c0   :  { %16644 = vmatmul.mubr.msk.bf16.gmra.mrb[188].mxu1 %vm1437_vm3, %v5494_v31 }
 0x7c1   :  { %16685 = vmatprep.mubr.msk.bf16.mxu1 %vm18351_vm0, %v23163_v7 }
 0x7c9   :  { %v16613_v45 = vpop.f32.mrb[160].mxu1 }
 0x7ca   :  { %v5580_v62 = vadd.f32 %v16613_v45, %v19984_v0  ;;  %v5571_v13 = vpop.f32.mrb[161].mxu1 }
 0x7cb   :  { %v5572_v9 = vadd.f32 %v19984_v0, %v5571_v13  ;;  %v16614_v49 = vpop.f32.mrb[162].mxu1 }
 0x7cc   :  { %v5583_v2 = vadd.f32 %v16614_v49, %v19984_v0  ;;  %v5574_v10 = vpop.f32.mrb[163].mxu1  ;;  %v5791_v33 = vmul.f32 0.01, %v5580_v62  ;;  %vm5775_vm7 = vcmp.gt.f32.partialorder %v5580_v62, 0.0 }
 0x7cd   :  { %v5789_v30 = vmul.f32 0.01, %v5572_v9  ;;  %v5575_v27 = vadd.f32 %v19984_v0, %v5574_v10  ;;  %vm5773_vm5 = vcmp.gt.f32.partialorder %v5572_v9, 0.0 }
 0x7ce   :  { %vm5776_vm6 = vcmp.gt.f32.partialorder %v5583_v2, 0.0  ;;  %v5792_v41 = vmul.f32 0.01, %v5583_v2  ;;  %v19996_v3 = vsel %vm5775_vm7, %v5580_v62, %v5791_v33  ;;  %v20061_v33 = vld [vmem:[%s23004_s8] ss:$0 sm:$0xff] }
 0x7cf   :  { %vm5774_vm8 = vcmp.gt.f32.partialorder %v5575_v27, 0.0  ;;  %v5790_v54 = vmul.f32 0.01, %v5575_v27  ;;  %v19992_v60 = vsel %vm5773_vm5, %v5572_v9, %v5789_v30  ;;  %23194 = vst [vmem:[#allocation47_spill] sm:$0xff] %v19996_v3 }
 0x7d0   :  { %v19990_v58 = vsel %vm5776_vm6, %v5583_v2, %v5792_v41  ;;  %23192 = vst [vmem:[#allocation50_spill] sm:$0xff] %v19992_v60 }
 0x7d1   :  { %23191 = vst [vmem:[#allocation45_spill] sm:$0xff] %v19990_v58  ;;  %v19994_v43 = vsel %vm5774_vm8, %v5575_v27, %v5790_v54  ;;  %v5878_v29 = vpack.c.bf16 %v19990_v58, %v19996_v3 }
 0x7d2   :  { %23193 = vst [vmem:[#allocation44_spill] sm:$0xff] %v19994_v43  ;;  %v5877_v59 = vpack.c.bf16 %v19994_v43, %v19992_v60 }
 0x7d4   :  { %16651 = vmatprep.mubr.msk.bf16.mxu0 %vm1437_vm3, %v5877_v59 }
 0x7d5   :  { %16652 = vmatmul.mubr.msk.bf16.vlgmr.msra.gmra.mrb[192].mxu0 %vm1437_vm3, %v5878_v29 }
 0x7e9   :  { %v16617_v22 = vpop.f32.mrb[164].mxu1 }
 0x7ea   :  { %v5596_v28 = vadd.f32 %v16617_v22, %v19984_v0  ;;  %v5587_v44 = vpop.f32.mrb[165].mxu1 }
 0x7eb   :  { %v5588_v16 = vadd.f32 %v19984_v0, %v5587_v44  ;;  %v16618_v25 = vpop.f32.mrb[166].mxu1 }
 0x7ec   :  { %v5599_v15 = vadd.f32 %v16618_v25, %v19984_v0  ;;  %v5590_v17 = vpop.f32.mrb[167].mxu1  ;;  %v5795_v21 = vmul.f32 0.01, %v5596_v28  ;;  %vm5779_vm11 = vcmp.gt.f32.partialorder %v5596_v28, 0.0 }
 0x7ed   :  { %v5793_v20 = vmul.f32 0.01, %v5588_v16  ;;  %v5591_v61 = vadd.f32 %v19984_v0, %v5590_v17  ;;  %vm5777_vm9 = vcmp.gt.f32.partialorder %v5588_v16, 0.0 }
 0x7ee   :  { %vm5780_vm10 = vcmp.gt.f32.partialorder %v5599_v15, 0.0  ;;  %v5796_v53 = vmul.f32 0.01, %v5599_v15  ;;  %v20014_v12 = vsel %vm5779_vm11, %v5596_v28, %v5795_v21 }
 0x7ef   :  { %vm5778_vm12 = vcmp.gt.f32.partialorder %v5591_v61, 0.0  ;;  %v5794_v37 = vmul.f32 0.01, %v5591_v61  ;;  %v20010_v24 = vsel %vm5777_vm9, %v5588_v16, %v5793_v20  ;;  %23198 = vst [vmem:[#allocation51_spill] sm:$0xff] %v20014_v12 }
 0x7f0   :  { %v20008_v51 = vsel %vm5780_vm10, %v5599_v15, %v5796_v53  ;;  %23196 = vst [vmem:[#allocation43_spill] sm:$0xff] %v20010_v24 }
 0x7f1   :  { %23195 = vst [vmem:[#allocation49_spill] sm:$0xff] %v20008_v51  ;;  %v20012_v63 = vsel %vm5778_vm12, %v5591_v61, %v5794_v37  ;;  %v5880_v40 = vpack.c.bf16 %v20008_v51, %v20014_v12 }
 0x7f2   :  { %23197 = vst [vmem:[#allocation46_spill] sm:$0xff] %v20012_v63  ;;  %v5879_v34 = vpack.c.bf16 %v20012_v63, %v20010_v24 }
 0x7f4   :  { %16655 = vmatprep.mubr.msk.bf16.mxu0 %vm1437_vm3, %v5879_v34 }
 0x7f5   :  { %16656 = vmatmul.mubr.msk.bf16.gmra.mrb[196].mxu0 %vm1437_vm3, %v5880_v40 }
 0x7f9   :  { %v16621_v47 = vpop.f32.mrb[168].mxu1 }
 0x7fa   :  { %v5612_v14 = vadd.f32 %v16621_v47, %v19984_v0  ;;  %v5603_v1 = vpop.f32.mrb[169].mxu1 }
 0x7fb   :  { %v5604_v36 = vadd.f32 %v19984_v0, %v5603_v1  ;;  %v16622_v56 = vpop.f32.mrb[170].mxu1 }
 0x7fc   :  { %v5615_v19 = vadd.f32 %v16622_v56, %v19984_v0  ;;  %v5606_v42 = vpop.f32.mrb[171].mxu1  ;;  %v5799_v11 = vmul.f32 0.01, %v5612_v14  ;;  %vm5783_vm15 = vcmp.gt.f32.partialorder %v5612_v14, 0.0 }
 0x7fd   :  { %v5797_v38 = vmul.f32 0.01, %v5604_v36  ;;  %v5607_v52 = vadd.f32 %v19984_v0, %v5606_v42  ;;  %vm5781_vm13 = vcmp.gt.f32.partialorder %v5604_v36, 0.0 }
 0x7fe   :  { %vm5784_vm14 = vcmp.gt.f32.partialorder %v5615_v19, 0.0  ;;  %v5800_v26 = vmul.f32 0.01, %v5615_v19  ;;  %v20032_v57 = vsel %vm5783_vm15, %v5612_v14, %v5799_v11 }
 0x7ff   :  { %vm5782_vm1 = vcmp.gt.f32.partialorder %v5607_v52, 0.0  ;;  %v5798_v55 = vmul.f32 0.01, %v5607_v52  ;;  %v20028_v46 = vsel %vm5781_vm13, %v5604_v36, %v5797_v38  ;;  %23202 = vst [vmem:[#allocation30_spill] sm:$0xff] %v20032_v57 }
 0x800   :  { %v20026_v50 = vsel %vm5784_vm14, %v5615_v19, %v5800_v26  ;;  %23200 = vst [vmem:[#allocation52_spill] sm:$0xff] %v20028_v46 }
 0x801   :  { %23199 = vst [vmem:[#allocation48_spill] sm:$0xff] %v20026_v50  ;;  %v20030_v18 = vsel %vm5782_vm1, %v5607_v52, %v5798_v55  ;;  %v5882_v6 = vpack.c.bf16 %v20026_v50, %v20032_v57 }
 0x802   :  { %23201 = vst [vmem:[#allocation29_spill] sm:$0xff] %v20030_v18  ;;  %v5881_v4 = vpack.c.bf16 %v20030_v18, %v20028_v46 }
 0x804   :  { %16659 = vmatprep.mubr.msk.bf16.mxu0 %vm1437_vm3, %v5881_v4 }
 0x805   :  { %16660 = vmatmul.mubr.msk.bf16.gmra.mrb[200].mxu0 %vm1437_vm3, %v5882_v6 }
 0x809   :  { %v16625_v23 = vpop.f32.mrb[172].mxu1 }
 0x80a   :  { %v5628_v48 = vadd.f32 %v16625_v23, %v19984_v0  ;;  %v5619_v5 = vpop.f32.mrb[173].mxu1 }
 0x80b   :  { %v5620_v32 = vadd.f32 %v19984_v0, %v5619_v5  ;;  %v16626_v35 = vpop.f32.mrb[174].mxu1 }
 0x80c   :  { %v5631_v39 = vadd.f32 %v16626_v35, %v19984_v0  ;;  %v5622_v31 = vpop.f32.mrb[175].mxu1  ;;  %v5803_v62 = vmul.f32 0.01, %v5628_v48  ;;  %vm5787_vm7 = vcmp.gt.f32.partialorder %v5628_v48, 0.0 }
 0x80d   :  { %v5801_v8 = vmul.f32 0.01, %v5620_v32  ;;  %v5623_v45 = vadd.f32 %v19984_v0, %v5622_v31  ;;  %vm5785_vm5 = vcmp.gt.f32.partialorder %v5620_v32, 0.0 }
 0x80e   :  { %vm5788_vm6 = vcmp.gt.f32.partialorder %v5631_v39, 0.0  ;;  %v5804_v13 = vmul.f32 0.01, %v5631_v39  ;;  %v20050_v30 = vsel %vm5787_vm7, %v5628_v48, %v5803_v62 }
 0x80f   :  { %vm5786_vm8 = vcmp.gt.f32.partialorder %v5623_v45, 0.0  ;;  %v5802_v9 = vmul.f32 0.01, %v5623_v45  ;;  %v20046_v2 = vsel %vm5785_vm5, %v5620_v32, %v5801_v8  ;;  %23206 = vst [vmem:[#allocation34_spill] sm:$0xff] %v20050_v30 }
 0x810   :  { %v20044_v49 = vsel %vm5788_vm6, %v5631_v39, %v5804_v13  ;;  %23204 = vst [vmem:[#allocation28_spill] sm:$0xff] %v20046_v2 }
 0x811   :  { %23203 = vst [vmem:[#allocation27_spill] sm:$0xff] %v20044_v49  ;;  %v20048_v10 = vsel %vm5786_vm8, %v5623_v45, %v5802_v9  ;;  %v5884_v0 = vpack.c.bf16 %v20044_v49, %v20050_v30 }
 0x812   :  { %23205 = vst [vmem:[#allocation33_spill] sm:$0xff] %v20048_v10  ;;  %v5883_v27 = vpack.c.bf16 %v20048_v10, %v20046_v2 }
 0x814   :  { %16663 = vmatprep.mubr.msk.bf16.mxu0 %vm1437_vm3, %v5883_v27 }
 0x815   :  { %16664 = vmatmul.mubr.msk.bf16.gmra.mrb[204].mxu0 %vm1437_vm3, %v5884_v0 }
 0x819   :  { %v16633_v41 = vpop.f32.mrb[176].mxu1 }
 0x81a   :  { %v5719_v54 = vadd.f32 %v16633_v41, %v20061_v33  ;;  %v5710_v59 = vpop.f32.mrb[177].mxu1 }
 0x81b   :  { %v5711_v29 = vadd.f32 %v20061_v33, %v5710_v59  ;;  %v16634_v22 = vpop.f32.mrb[178].mxu1 }
 0x81c   :  { %v5722_v28 = vadd.f32 %v16634_v22, %v20061_v33  ;;  %v5713_v44 = vpop.f32.mrb[179].mxu1  ;;  %v5839_v15 = vmul.f32 0.01, %v5719_v54  ;;  %vm5823_vm11 = vcmp.gt.f32.partialorder %v5719_v54, 0.0 }
 0x81d   :  { %v5837_v16 = vmul.f32 0.01, %v5711_v29  ;;  %v5714_v25 = vadd.f32 %v20061_v33, %v5713_v44  ;;  %vm5821_vm9 = vcmp.gt.f32.partialorder %v5711_v29, 0.0 }
 0x81e   :  { %vm5824_vm10 = vcmp.gt.f32.partialorder %v5722_v28, 0.0  ;;  %v5840_v17 = vmul.f32 0.01, %v5722_v28  ;;  %v20073_v37 = vsel %vm5823_vm11, %v5719_v54, %v5839_v15 }
 0x81f   :  { %vm5822_vm12 = vcmp.gt.f32.partialorder %v5714_v25, 0.0  ;;  %v5838_v20 = vmul.f32 0.01, %v5714_v25  ;;  %v20069_v21 = vsel %vm5821_vm9, %v5711_v29, %v5837_v16  ;;  %23210 = vst [vmem:[#allocation38_spill] sm:$0xff] %v20073_v37 }
 0x820   :  { %v20067_v61 = vsel %vm5824_vm10, %v5722_v28, %v5840_v17  ;;  %23208 = vst [vmem:[#allocation32_spill] sm:$0xff] %v20069_v21 }
 0x821   :  { %23207 = vst [vmem:[#allocation31_spill] sm:$0xff] %v20067_v61  ;;  %v20071_v53 = vsel %vm5822_vm12, %v5714_v25, %v5838_v20  ;;  %v5886_v40 = vpack.c.bf16 %v20067_v61, %v20073_v37 }
 0x822   :  { %23209 = vst [vmem:[#allocation37_spill] sm:$0xff] %v20071_v53  ;;  %v5885_v34 = vpack.c.bf16 %v20071_v53, %v20069_v21 }
 0x824   :  { %16667 = vmatprep.mubr.msk.bf16.mxu0 %vm1437_vm3, %v5885_v34 }
 0x825   :  { %16668 = vmatmul.mubr.msk.bf16.gmra.mrb[208].mxu0 %vm1437_vm3, %v5886_v40 }
 0x833   :  { %v16637_v47 = vpop.f32.mrb[180].mxu1 }
 0x834   :  { %v5735_v14 = vadd.f32 %v16637_v47, %v20061_v33  ;;  %v5726_v1 = vpop.f32.mrb[181].mxu1 }
 0x835   :  { %v5727_v36 = vadd.f32 %v20061_v33, %v5726_v1  ;;  %v16638_v56 = vpop.f32.mrb[182].mxu1 }
 0x836   :  { %v5738_v19 = vadd.f32 %v16638_v56, %v20061_v33  ;;  %v5729_v42 = vpop.f32.mrb[183].mxu1  ;;  %v5843_v11 = vmul.f32 0.01, %v5735_v14  ;;  %vm5827_vm15 = vcmp.gt.f32.partialorder %v5735_v14, 0.0 }
 0x837   :  { %v5841_v38 = vmul.f32 0.01, %v5727_v36  ;;  %v5730_v52 = vadd.f32 %v20061_v33, %v5729_v42  ;;  %vm5825_vm13 = vcmp.gt.f32.partialorder %v5727_v36, 0.0 }
 0x838   :  { %vm5828_vm14 = vcmp.gt.f32.partialorder %v5738_v19, 0.0  ;;  %v5844_v26 = vmul.f32 0.01, %v5738_v19  ;;  %v20091_v48 = vsel %vm5827_vm15, %v5735_v14, %v5843_v11 }
 0x839   :  { %vm5826_vm1 = vcmp.gt.f32.partialorder %v5730_v52, 0.0  ;;  %v5842_v55 = vmul.f32 0.01, %v5730_v52  ;;  %v20087_v6 = vsel %vm5825_vm13, %v5727_v36, %v5841_v38  ;;  %23214 = vst [vmem:[#allocation42_spill] sm:$0xff] %v20091_v48 }
 0x83a   :  { %v20085_v4 = vsel %vm5828_vm14, %v5738_v19, %v5844_v26  ;;  %23212 = vst [vmem:[#allocation36_spill] sm:$0xff] %v20087_v6 }
 0x83b   :  { %23211 = vst [vmem:[#allocation35_spill] sm:$0xff] %v20085_v4  ;;  %v20089_v23 = vsel %vm5826_vm1, %v5730_v52, %v5842_v55  ;;  %v5888_v32 = vpack.c.bf16 %v20085_v4, %v20091_v48 }
 0x83c   :  { %23213 = vst [vmem:[#allocation41_spill] sm:$0xff] %v20089_v23  ;;  %v5887_v5 = vpack.c.bf16 %v20089_v23, %v20087_v6 }
 0x83e   :  { %16671 = vmatprep.mubr.msk.bf16.mxu0 %vm1437_vm3, %v5887_v5 }
 0x83f   :  { %16672 = vmatmul.mubr.msk.bf16.gmra.mrb[212].mxu0 %vm1437_vm3, %v5888_v32 }
 0x868   :  { %v16641_v35 = vpop.f32.mrb[184].mxu1 }
 0x869   :  { %v5751_v39 = vadd.f32 %v16641_v35, %v20061_v33  ;;  %v5742_v31 = vpop.f32.mrb[185].mxu1 }
 0x86a   :  { %v5743_v8 = vadd.f32 %v20061_v33, %v5742_v31  ;;  %v16642_v45 = vpop.f32.mrb[186].mxu1 }
 0x86b   :  { %v5754_v62 = vadd.f32 %v16642_v45, %v20061_v33  ;;  %v5745_v13 = vpop.f32.mrb[187].mxu1  ;;  %v5847_v0 = vmul.f32 0.01, %v5751_v39  ;;  %vm5831_vm7 = vcmp.gt.f32.partialorder %v5751_v39, 0.0 }
 0x86c   :  { %v5845_v9 = vmul.f32 0.01, %v5743_v8  ;;  %v5746_v27 = vadd.f32 %v20061_v33, %v5745_v13  ;;  %vm5829_vm5 = vcmp.gt.f32.partialorder %v5743_v8, 0.0 }
 0x86d   :  { %vm5832_vm6 = vcmp.gt.f32.partialorder %v5754_v62, 0.0  ;;  %v5848_v41 = vmul.f32 0.01, %v5754_v62  ;;  %v20109_v28 = vsel %vm5831_vm7, %v5751_v39, %v5847_v0 }
 0x86e   :  { %vm5830_vm8 = vcmp.gt.f32.partialorder %v5746_v27, 0.0  ;;  %v5846_v54 = vmul.f32 0.01, %v5746_v27  ;;  %v20105_v29 = vsel %vm5829_vm5, %v5743_v8, %v5845_v9  ;;  %23218 = vst [vmem:[#allocation54_spill] sm:$0xff] %v20109_v28 }
 0x86f   :  { %v20103_v59 = vsel %vm5832_vm6, %v5754_v62, %v5848_v41  ;;  %23216 = vst [vmem:[#allocation40_spill] sm:$0xff] %v20105_v29 }
 0x870   :  { %23215 = vst [vmem:[#allocation39_spill] sm:$0xff] %v20103_v59  ;;  %v20107_v22 = vsel %vm5830_vm8, %v5746_v27, %v5846_v54  ;;  %v5890_v16 = vpack.c.bf16 %v20103_v59, %v20109_v28 }
 0x871   :  { %23217 = vst [vmem:[#allocation53_spill] sm:$0xff] %v20107_v22  ;;  %v5889_v44 = vpack.c.bf16 %v20107_v22, %v20105_v29 }
 0x873   :  { %16675 = vmatprep.mubr.msk.bf16.mxu0 %vm1437_vm3, %v5889_v44 }
 0x874   :  { %16676 = vmatmul.mubr.msk.bf16.gmra.mrb[216].mxu0 %vm1437_vm3, %v5890_v16 }
 0x893   :  { %v16645_v25 = vpop.f32.mrb[188].mxu1 }
 0x894   :  { %v5767_v15 = vadd.f32 %v16645_v25, %v20061_v33  ;;  %v5758_v17 = vpop.f32.mrb[189].mxu1 }
 0x895   :  { %v5759_v20 = vadd.f32 %v20061_v33, %v5758_v17  ;;  %v16646_v34 = vpop.f32.mrb[190].mxu1 }
 0x896   :  { %v5770_v40 = vadd.f32 %v16646_v34, %v20061_v33  ;;  %v5761_v47 = vpop.f32.mrb[191].mxu1  ;;  %v5851_v36 = vmul.f32 0.01, %v5767_v15  ;;  %vm5835_vm11 = vcmp.gt.f32.partialorder %v5767_v15, 0.0 }
 0x897   :  { %v5849_v14 = vmul.f32 0.01, %v5759_v20  ;;  %v5762_v1 = vadd.f32 %v20061_v33, %v5761_v47  ;;  %vm5833_vm9 = vcmp.gt.f32.partialorder %v5759_v20, 0.0 }
 0x898   :  { %vm5836_vm10 = vcmp.gt.f32.partialorder %v5770_v40, 0.0  ;;  %v5852_v56 = vmul.f32 0.01, %v5770_v40  ;;  %v20127_v11 = vsel %vm5835_vm11, %v5767_v15, %v5851_v36 }
 0x899   :  { %vm5834_vm12 = vcmp.gt.f32.partialorder %v5762_v1, 0.0  ;;  %v5850_v19 = vmul.f32 0.01, %v5762_v1  ;;  %v20123_v38 = vsel %vm5833_vm9, %v5759_v20, %v5849_v14  ;;  %23222 = vst [vmem:[#allocation58_spill] sm:$0xff] %v20127_v11 }
 0x89a   :  { %v20121_v42 = vsel %vm5836_vm10, %v5770_v40, %v5852_v56  ;;  %23220 = vst [vmem:[#allocation56_spill] sm:$0xff] %v20123_v38 }
 0x89b   :  { %23219 = vst [vmem:[#allocation55_spill] sm:$0xff] %v20121_v42  ;;  %v20125_v52 = vsel %vm5834_vm12, %v5762_v1, %v5850_v19  ;;  %v5892_v33 = vpack.c.bf16 %v20121_v42, %v20127_v11 }
 0x89c   :  { %23221 = vst [vmem:[#allocation57_spill] sm:$0xff] %v20125_v52  ;;  %v5891_v26 = vpack.c.bf16 %v20125_v52, %v20123_v38 }
 0x89e   :  { %16679 = vmatprep.mubr.msk.bf16.mxu0 %vm1437_vm3, %v5891_v26 }
 0x89f   :  { %16680 = vmatmul.mubr.msk.bf16.gmra.mrb[220].mxu0 %vm1437_vm3, %v5892_v33 }
 0x8a0   :  { %16733 = vmatprep.mubr.msk.bf16.mxu0 %vm18351_vm0, %v23163_v7 }
 0x8a8   :  { %v20137_v55 = vpop.f32.mrb[192].mxu0 }
 0x8a9   :  { %v5987_v5 = vpop.f32.mrb[193].mxu0 }
 0x8aa   :  { %v20139_v32 = vpop.f32.mrb[194].mxu0 }
 0x8ab   :  { %v20141_v35 = vpop.f32.mrb[195].mxu0 }
 0x8c8   :  { %v20143_v39 = vpop.f32.mrb[196].mxu0 }
 0x8c9   :  { %v20145_v31 = vpop.f32.mrb[197].mxu0 }
 0x8ca   :  { %v20147_v8 = vpop.f32.mrb[198].mxu0 }
 0x8cb   :  { %v20149_v45 = vpop.f32.mrb[199].mxu0 }
 0x8d8   :  { %v20151_v62 = vpop.f32.mrb[200].mxu0 }
 0x8d9   :  { %v20153_v13 = vpop.f32.mrb[201].mxu0 }
 0x8da   :  { %v20155_v9 = vpop.f32.mrb[202].mxu0 }
 0x8db   :  { %v20157_v27 = vpop.f32.mrb[203].mxu0 }
 0x8e8   :  { %v20159_v0 = vpop.f32.mrb[204].mxu0 }
 0x8e9   :  { %v20161_v41 = vpop.f32.mrb[205].mxu0 }
 0x8ea   :  { %v20163_v54 = vpop.f32.mrb[206].mxu0 }
 0x8eb   :  { %v20165_v44 = vpop.f32.mrb[207].mxu0 }
 0x8f8   :  { %v16669_v16 = vpop.f32.mrb[208].mxu0 }
 0x8f9   :  { %v6051_v25 = vpop.f32.mrb[209].mxu0  ;;  %v20173_v40 = vpack.c.bf16 %v16669_v16, %v16669_v16 }
 0x8fa   :  { %v20167_v15 = vpack.c.bf16 %v6051_v25, %v6051_v25  ;;  %v16670_v17 = vpop.f32.mrb[210].mxu0 }
 0x8fb   :  { %v6054_v20 = vpop.f32.mrb[211].mxu0  ;;  %v20177_v47 = vpack.c.bf16 %v16670_v17, %v16670_v17 }
 0x8fc   :  { %v20169_v34 = vpack.c.bf16 %v6054_v20, %v6054_v20  ;;  %6210 = vrot.lane.b32.xlu0 %v20167_v15, %s18352_s27 }
 0x8fe   :  { %6258 = vrot.lane.b32.xlu1 %v20169_v34, %s18352_s27 }
 0x900   :  { %6306 = vrot.lane.b32.xlu0 %v20173_v40, %s18352_s27 }
 0x902   :  { %6354 = vrot.lane.b32.xlu1 %v20177_v47, %s18352_s27 }
 0x912   :  { %v16673_v14 = vpop.f32.mrb[212].mxu0 }
 0x913   :  { %v6067_v1 = vpop.f32.mrb[213].mxu0  ;;  %v20189_v33 = vpack.c.bf16 %v16673_v14, %v16673_v14 }
 0x914   :  { %v20183_v36 = vpack.c.bf16 %v6067_v1, %v6067_v1  ;;  %v16674_v56 = vpop.f32.mrb[214].mxu0 }
 0x915   :  { %v6070_v19 = vpop.f32.mrb[215].mxu0  ;;  %v20193_v16 = vpack.c.bf16 %v16674_v56, %v16674_v56 }
 0x916   :  { %v20185_v26 = vpack.c.bf16 %v6070_v19, %v6070_v19  ;;  %6402 = vrot.lane.b32.xlu0 %v20183_v36, %s18352_s27 }
 0x918   :  { %6450 = vrot.lane.b32.xlu1 %v20185_v26, %s18352_s27 }
 0x91a   :  { %6498 = vrot.lane.b32.xlu0 %v20189_v33, %s18352_s27 }
 0x91c   :  { %6546 = vrot.lane.b32.xlu1 %v20193_v16, %s18352_s27 }
 0x947   :  { %v16677_v25 = vpop.f32.mrb[216].mxu0 }
 0x948   :  { %v6083_v17 = vpop.f32.mrb[217].mxu0  ;;  %v20205_v14 = vpack.c.bf16 %v16677_v25, %v16677_v25 }
 0x949   :  { %v20199_v20 = vpack.c.bf16 %v6083_v17, %v6083_v17  ;;  %v16678_v1 = vpop.f32.mrb[218].mxu0 }
 0x94a   :  { %v6086_v19 = vpop.f32.mrb[219].mxu0  ;;  %v20209_v56 = vpack.c.bf16 %v16678_v1, %v16678_v1  ;;  %v20219_v1 = vpack.c.bf16 %v5987_v5, %v5987_v5  ;;  %v20261_v5 = vpack.c.bf16 %v20139_v32, %v20139_v32 }
 0x94b   :  { %v20201_v52 = vpack.c.bf16 %v6086_v19, %v6086_v19  ;;  %6594 = vrot.lane.b32.xlu0 %v20199_v20, %s18352_s27 }
 0x94d   :  { %6642 = vrot.lane.b32.xlu1 %v20201_v52, %s18352_s27 }
 0x94f   :  { %6690 = vrot.lane.b32.xlu0 %v20205_v14, %s18352_s27 }
 0x951   :  { %6738 = vrot.lane.b32.xlu1 %v20209_v56, %s18352_s27 }
 0x96e   :  { %v6211_v17 = vpop.permute.xlu0 %6210 }
 0x96f   :  { %v6216_v19 = vsel %vm1437_vm3, %v6211_v17, 0 }
 0x970   :  { %16684 = vmatpush3.bf16.xpose.msra.mxu1 %v6216_v19  ;;  %v6259_v42 = vpop.permute.xlu1 %6258  ;;  %v20273_v19 = vpack.c.bf16 %v20149_v45, %v20149_v45  ;;  %v20291_v45 = vpack.c.bf16 %v20147_v8, %v20147_v8 }
 0x971   :  { %16689 = vmatprep.subr.bf16.mxu1 %v23163_v7  ;;  %v6264_v28 = vsel %vm1437_vm3, %v6259_v42, 0 }
 0x972   :  { %v16681_v38 = vpop.f32.mrb[220].mxu0  ;;  %v6307_v42 = vpop.permute.xlu0 %6306 }
 0x973   :  { %v6099_v25 = vpop.f32.mrb[221].mxu0  ;;  %v20228_v17 = vpack.c.bf16 %v16681_v38, %v16681_v38  ;;  %v6312_v38 = vsel %vm1437_vm3, %v6307_v42, 0  ;;  %v20303_v42 = vpack.c.bf16 %v20157_v27, %v20157_v27  ;;  %v20321_v27 = vpack.c.bf16 %v20155_v9, %v20155_v9 }
 0x974   :  { %v20217_v11 = vpack.c.bf16 %v6099_v25, %v6099_v25  ;;  %v16682_v22 = vpop.f32.mrb[222].mxu0 }
 0x975   :  { %v6102_v29 = vpop.f32.mrb[223].mxu0 }
 0x976   :  { %v20221_v59 = vpack.c.bf16 %v6102_v29, %v6102_v29  ;;  %6786 = vrot.lane.b32.xlu0 %v20217_v11, %s18352_s27  ;;  %v20235_v29 = vpack.c.bf16 %v16682_v22, %v16682_v22  ;;  %v20252_v22 = vpack.c.bf16 %v20137_v55, %v20137_v55  ;;  %v20267_v55 = vpack.c.bf16 %v20145_v31, %v20145_v31 }
 0x977   :  { %16686 = vmatmul.mubr.msk.bf16.vlgmr.msra.gmra.mrb[192].mxu1 %vm1437_vm3, %v20219_v1  ;;  %v20282_v31 = vpack.c.bf16 %v20143_v39, %v20143_v39  ;;  %v20297_v39 = vpack.c.bf16 %v20153_v13, %v20153_v13  ;;  %v20312_v13 = vpack.c.bf16 %v20151_v62, %v20151_v62  ;;  %v20327_v62 = vpack.c.bf16 %v20161_v41, %v20161_v41 }
 0x978   :  { %16690 = vmatpush3.bf16.xpose.msra.mxu1 %v6264_v28  ;;  %6834 = vrot.lane.b32.xlu1 %v20221_v59, %s18352_s27  ;;  %v20243_v28 = vpack.c.bf16 %v20141_v35, %v20141_v35  ;;  %v6355_v35 = vpop.permute.xlu1 %6354  ;;  %v20342_v41 = vpack.c.bf16 %v20159_v0, %v20159_v0 }
 0x979   :  { %16691 = vmatprep.mubr.msk.bf16.mxu1 %vm18351_vm0, %v23163_v7  ;;  %16695 = vmatprep.subr.bf16.mxu1 %v23163_v7  ;;  %v6360_v32 = vsel %vm1437_vm3, %v6355_v35, 0  ;;  %v20333_v35 = vpack.c.bf16 %v20165_v44, %v20165_v44  ;;  %v20351_v44 = vpack.c.bf16 %v20163_v54, %v20163_v54 }
 0x97a   :  { %6882 = vrot.lane.b32.xlu0 %v20228_v17, %s18352_s27  ;;  %23224 = vst [vmem:[#allocation60_spill] sm:$0xff] %v20342_v41 }
 0x97b   :  { %23223 = vst [vmem:[#allocation59_spill] sm:$0xff] %v20333_v35  ;;  %23225 = vst [vmem:[#allocation61_spill] sm:$0xff] %v20351_v44 }
 0x97c   :  { %6930 = vrot.lane.b32.xlu1 %v20235_v29, %s18352_s27 }
 0x97e   :  { %6978 = vrot.lane.b32.xlu0 %v20219_v1, %s18352_s27 }
 0x97f   :  { %16692 = vmatmul.mubr.msk.bf16.vlgmr.msra.gmra.mrb[196].mxu1 %vm1437_vm3, %v20243_v28 }
 0x980   :  { %16696 = vmatpush3.bf16.xpose.msra.mxu1 %v6312_v38  ;;  %7026 = vrot.lane.b32.xlu1 %v20243_v28, %s18352_s27 }
 0x981   :  { %16697 = vmatprep.mubr.msk.bf16.mxu1 %vm18351_vm0, %v23163_v7  ;;  %16701 = vmatprep.subr.bf16.mxu1 %v23163_v7 }
 0x982   :  { %7074 = vrot.lane.b32.xlu0 %v20252_v22, %s18352_s27 }
 0x984   :  { %7122 = vrot.lane.b32.xlu1 %v20261_v5, %s18352_s27 }
 0x986   :  { %7170 = vrot.lane.b32.xlu0 %v20267_v55, %s18352_s27 }
 0x987   :  { %16698 = vmatmul.mubr.msk.bf16.vlgmr.msra.gmra.mrb[200].mxu1 %vm1437_vm3, %v20252_v22 }
 0x988   :  { %16702 = vmatpush3.bf16.xpose.msra.mxu1 %v6360_v32  ;;  %7218 = vrot.lane.b32.xlu1 %v20273_v19, %s18352_s27  ;;  %v6403_v25 = vpop.permute.xlu0 %6402 }
 0x989   :  { %16703 = vmatprep.mubr.msk.bf16.mxu1 %vm18351_vm0, %v23163_v7  ;;  %16707 = vmatprep.subr.bf16.mxu1 %v23163_v7  ;;  %v6408_v8 = vsel %vm1437_vm3, %v6403_v25, 0 }
 0x98a   :  { %7266 = vrot.lane.b32.xlu0 %v20282_v31, %s18352_s27  ;;  %v6451_v38 = vpop.permute.xlu1 %6450 }
 0x98b   :  { %v6456_v9 = vsel %vm1437_vm3, %v6451_v38, 0 }
 0x98c   :  { %7314 = vrot.lane.b32.xlu1 %v20291_v45, %s18352_s27  ;;  %v6499_v32 = vpop.permute.xlu0 %6498 }
 0x98d   :  { %v6504_v0 = vsel %vm1437_vm3, %v6499_v32, 0 }
 0x98e   :  { %7362 = vrot.lane.b32.xlu0 %v20297_v39, %s18352_s27  ;;  %v6547_v54 = vpop.permute.xlu1 %6546 }
 0x98f   :  { %16704 = vmatmul.mubr.msk.bf16.vlgmr.msra.gmra.mrb[204].mxu1 %vm1437_vm3, %v20261_v5  ;;  %v6552_v25 = vsel %vm1437_vm3, %v6547_v54, 0 }
 0x990   :  { %16708 = vmatpush3.bf16.xpose.msra.mxu1 %v6408_v8  ;;  %7410 = vrot.lane.b32.xlu1 %v20303_v42, %s18352_s27 }
 0x991   :  { %16709 = vmatprep.mubr.msk.bf16.mxu1 %vm18351_vm0, %v23163_v7  ;;  %16713 = vmatprep.subr.bf16.mxu1 %v23163_v7 }
 0x992   :  { %7458 = vrot.lane.b32.xlu0 %v20312_v13, %s18352_s27 }
 0x994   :  { %7506 = vrot.lane.b32.xlu1 %v20321_v27, %s18352_s27 }
 0x996   :  { %7554 = vrot.lane.b32.xlu0 %v20327_v62, %s18352_s27 }
 0x997   :  { %16710 = vmatmul.mubr.msk.bf16.vlgmr.msra.gmra.mrb[208].mxu1 %vm1437_vm3, %v20267_v55 }
 0x998   :  { %16714 = vmatpush3.bf16.xpose.msra.mxu1 %v6456_v9  ;;  %7602 = vrot.lane.b32.xlu1 %v20333_v35, %s18352_s27 }
 0x999   :  { %16715 = vmatprep.mubr.msk.bf16.mxu1 %vm18351_vm0, %v23163_v7  ;;  %16719 = vmatprep.subr.bf16.mxu1 %v23163_v7 }
 0x99a   :  { %7650 = vrot.lane.b32.xlu0 %v20342_v41, %s18352_s27 }
 0x99c   :  { %7698 = vrot.lane.b32.xlu1 %v20351_v44, %s18352_s27 }
 0x99e   :  { %8178 = vrot.lane.b32.xlu0 %v20169_v34, %s18336_s25 }
 0x99f   :  { %16716 = vmatmul.mubr.msk.bf16.vlgmr.msra.gmra.mrb[212].mxu1 %vm1437_vm3, %v20273_v19 }
 0x9a0   :  { %16720 = vmatpush3.bf16.xpose.msra.mxu1 %v6504_v0  ;;  %8130 = vrot.lane.b32.xlu1 %v20167_v15, %s18336_s25 }
 0x9a1   :  { %16721 = vmatprep.mubr.msk.bf16.mxu1 %vm18351_vm0, %v23163_v7  ;;  %16725 = vmatprep.subr.bf16.mxu1 %v23163_v7 }
 0x9a2   :  { %8274 = vrot.lane.b32.xlu0 %v20177_v47, %s18336_s25 }
 0x9a4   :  { %8226 = vrot.lane.b32.xlu1 %v20173_v40, %s18336_s25 }
 0x9a6   :  { %8370 = vrot.lane.b32.xlu0 %v20185_v26, %s18336_s25 }
 0x9a7   :  { %16722 = vmatmul.mubr.msk.bf16.vlgmr.msra.gmra.mrb[216].mxu1 %vm1437_vm3, %v20282_v31 }
 0x9a8   :  { %16726 = vmatpush3.bf16.xpose.msra.mxu1 %v6552_v25  ;;  %8322 = vrot.lane.b32.xlu1 %v20183_v36, %s18336_s25 }
 0x9a9   :  { %16727 = vmatprep.mubr.msk.bf16.mxu1 %vm18351_vm0, %v23163_v7  ;;  %16737 = vmatprep.subr.bf16.mxu1 %v23163_v7 }
 0x9aa   :  { %8466 = vrot.lane.b32.xlu0 %v20193_v16, %s18336_s25 }
 0x9ac   :  { %8418 = vrot.lane.b32.xlu1 %v20189_v33, %s18336_s25 }
 0x9ae   :  { %8562 = vrot.lane.b32.xlu0 %v20201_v52, %s18336_s25 }
 0x9af   :  { %16728 = vmatmul.mubr.msk.bf16.vlgmr.msra.gmra.mrb[220].mxu1 %vm1437_vm3, %v20291_v45 }
 0x9b0   :  { %8514 = vrot.lane.b32.xlu1 %v20199_v20, %s18336_s25  ;;  %16739 = vmatprep.mubr.msk.bf16.mxu1 %vm18351_vm0, %v23163_v7 }
 0x9b2   :  { %8658 = vrot.lane.b32.xlu0 %v20209_v56, %s18336_s25 }
 0x9b4   :  { %8610 = vrot.lane.b32.xlu1 %v20205_v14, %s18336_s25 }
 0x9b6   :  { %8898 = vrot.lane.b32.xlu0 %v20219_v1, %s18336_s25 }
 0x9b8   :  { %8706 = vrot.lane.b32.xlu1 %v20217_v11, %s18336_s25 }
 0x9ba   :  { %8994 = vrot.lane.b32.xlu0 %v20252_v22, %s18336_s25 }
 0x9bc   :  { %8802 = vrot.lane.b32.xlu1 %v20228_v17, %s18336_s25 }
 0x9bd   :  { %v6595_v8 = vpop.permute.xlu0 %6594 }
 0x9be   :  { %v6600_v38 = vsel %vm1437_vm3, %v6595_v8, 0  ;;  %9090 = vrot.lane.b32.xlu0 %v20267_v55, %s18336_s25 }
 0x9bf   :  { %16732 = vmatpush3.bf16.xpose.msra.mxu0 %v6600_v38  ;;  %v6643_v9 = vpop.permute.xlu1 %6642 }
 0x9c0   :  { %v6648_v32 = vsel %vm1437_vm3, %v6643_v9, 0  ;;  %8850 = vrot.lane.b32.xlu1 %v20235_v29, %s18336_s25  ;;  %16743 = vmatprep.subr.bf16.mxu0 %v23163_v7 }
 0x9c1   :  { %16738 = vmatpush3.bf16.xpose.msra.mxu1 %v6648_v32  ;;  %v6691_v1 = vpop.permute.xlu0 %6690 }
 0x9c2   :  { %8754 = vrot.lane.b32.xlu0 %v20221_v59, %s18336_s25  ;;  %16749 = vmatprep.subr.bf16.mxu1 %v23163_v7  ;;  %v6696_v55 = vsel %vm1437_vm3, %v6691_v1, 0 }
 0x9c3   :  { %v6739_v22 = vpop.permute.xlu1 %6738 }
 0x9c4   :  { %8946 = vrot.lane.b32.xlu1 %v20243_v28, %s18336_s25  ;;  %v6744_v0 = vsel %vm1437_vm3, %v6739_v22, 0 }
 0x9c6   :  { %16734 = vmatmul.mubr.msk.bf16.vlgmr.msra.gmra.mrb[224].mxu0 %vm1437_vm3, %v20297_v39 }
 0x9c7   :  { %16744 = vmatpush3.bf16.xpose.msra.mxu0 %v6696_v55  ;;  %16745 = vmatprep.mubr.msk.bf16.mxu0 %vm18351_vm0, %v23163_v7 }
 0x9c8   :  { %16740 = vmatmul.mubr.msk.bf16.vlgmr.msra.gmra.mrb[224].mxu1 %vm1437_vm3, %v20303_v42  ;;  %9042 = vrot.lane.b32.xlu1 %v20261_v5, %s18336_s25 }
 0x9c9   :  { %16750 = vmatpush3.bf16.xpose.msra.mxu1 %v6744_v0  ;;  %16751 = vmatprep.mubr.msk.bf16.mxu1 %vm18351_vm0, %v23163_v7 }
 0x9ca   :  { %16755 = vmatprep.subr.bf16.mxu0 %v23163_v7  ;;  %16761 = vmatprep.subr.bf16.mxu1 %v23163_v7 }
 0x9cc   :  { %9138 = vrot.lane.b32.xlu1 %v20273_v19, %s18336_s25 }
 0x9ce   :  { %16746 = vmatmul.mubr.msk.bf16.vlgmr.msra.gmra.mrb[228].mxu0 %vm1437_vm3, %v20312_v13 }
 0x9cf   :  { %16757 = vmatprep.mubr.msk.bf16.mxu0 %vm18351_vm0, %v23163_v7 }
 0x9d0   :  { %16752 = vmatmul.mubr.msk.bf16.vlgmr.msra.gmra.mrb[228].mxu1 %vm1437_vm3, %v20321_v27 }
 0x9d1   :  { %16763 = vmatprep.mubr.msk.bf16.mxu1 %vm18351_vm0, %v23163_v7 }
 0x9e8   :  { %v6787_v28 = vpop.permute.xlu0 %6786 }
 0x9e9   :  { %v6792_v5 = vsel %vm1437_vm3, %v6787_v28, 0 }
 0x9ea   :  { %16756 = vmatpush3.bf16.xpose.msra.mxu0 %v6792_v5  ;;  %v6835_v54 = vpop.permute.xlu1 %6834 }
 0x9eb   :  { %v6840_v25 = vsel %vm1437_vm3, %v6835_v54, 0  ;;  %16767 = vmatprep.subr.bf16.mxu0 %v23163_v7 }
 0x9ec   :  { %16762 = vmatpush3.bf16.xpose.msra.mxu1 %v6840_v25  ;;  %v6883_v19 = vpop.permute.xlu0 %6882 }
 0x9ed   :  { %16773 = vmatprep.subr.bf16.mxu1 %v23163_v7  ;;  %v6888_v38 = vsel %vm1437_vm3, %v6883_v19, 0 }
 0x9ee   :  { %v6931_v8 = vpop.permute.xlu1 %6930 }
 0x9ef   :  { %v6936_v9 = vsel %vm1437_vm3, %v6931_v8, 0 }
 0x9f0   :  { %v6979_v32 = vpop.permute.xlu0 %6978 }
 0x9f1   :  { %16758 = vmatmul.mubr.msk.bf16.vlgmr.msra.gmra.mrb[232].mxu0 %vm1437_vm3, %v20327_v62  ;;  %v6984_v22 = vsel %vm1437_vm3, %v6979_v32, 0 }
 0x9f2   :  { %16768 = vmatpush3.bf16.xpose.msra.mxu0 %v6888_v38  ;;  %16769 = vmatprep.mubr.msk.bf16.mxu0 %vm18351_vm0, %v23163_v7  ;;  %v7027_v1 = vpop.permute.xlu1 %7026 }
 0x9f3   :  { %16764 = vmatmul.mubr.msk.bf16.vlgmr.msra.gmra.mrb[232].mxu1 %vm1437_vm3, %v20333_v35  ;;  %16779 = vmatprep.subr.bf16.mxu0 %v23163_v7  ;;  %v7032_v55 = vsel %vm1437_vm3, %v7027_v1, 0 }
 0x9f4   :  { %16774 = vmatpush3.bf16.xpose.msra.mxu1 %v6936_v9  ;;  %16775 = vmatprep.mubr.msk.bf16.mxu1 %vm18351_vm0, %v23163_v7  ;;  %v7075_v0 = vpop.permute.xlu0 %7074 }
 0x9f5   :  { %16785 = vmatprep.subr.bf16.mxu1 %v23163_v7  ;;  %v7080_v5 = vsel %vm1437_vm3, %v7075_v0, 0 }
 0x9f6   :  { %v7123_v28 = vpop.permute.xlu1 %7122 }
 0x9f7   :  { %v7128_v54 = vsel %vm1437_vm3, %v7123_v28, 0 }
 0x9f8   :  { %v7171_v25 = vpop.permute.xlu0 %7170 }
 0x9f9   :  { %16770 = vmatmul.mubr.msk.bf16.vlgmr.msra.gmra.mrb[236].mxu0 %vm1437_vm3, %v20342_v41 }
 0x9fa   :  { %16780 = vmatpush3.bf16.xpose.msra.mxu0 %v6984_v22  ;;  %16781 = vmatprep.mubr.msk.bf16.mxu0 %vm18351_vm0, %v23163_v7  ;;  %v7219_v19 = vpop.permute.xlu1 %7218 }
 0x9fb   :  { %16776 = vmatmul.mubr.msk.bf16.vlgmr.msra.gmra.mrb[236].mxu1 %vm1437_vm3, %v20351_v44  ;;  %16791 = vmatprep.subr.bf16.mxu0 %v23163_v7 }
 0x9fc   :  { %16786 = vmatpush3.bf16.xpose.msra.mxu1 %v7032_v55  ;;  %16787 = vmatprep.mubr.msk.bf16.mxu1 %vm18351_vm0, %v23163_v7  ;;  %v7267_v8 = vpop.permute.xlu0 %7266 }
 0x9fd   :  { %16797 = vmatprep.subr.bf16.mxu1 %v23163_v7 }
 0x9fe   :  { %v7315_v38 = vpop.permute.xlu1 %7314 }
 0xa00   :  { %v7363_v9 = vpop.permute.xlu0 %7362 }
 0xa01   :  { %16782 = vmatmul.mubr.msk.bf16.vlgmr.msra.gmra.mrb[240].mxu0 %vm1437_vm3, %v20167_v15  ;;  %v7176_v15 = vsel %vm1437_vm3, %v7171_v25, 0 }
 0xa02   :  { %16792 = vmatpush3.bf16.xpose.msra.mxu0 %v7080_v5  ;;  %16793 = vmatprep.mubr.msk.bf16.mxu0 %vm18351_vm0, %v23163_v7  ;;  %v7411_v32 = vpop.permute.xlu1 %7410 }
 0xa03   :  { %16788 = vmatmul.mubr.msk.bf16.vlgmr.msra.gmra.mrb[240].mxu1 %vm1437_vm3, %v20169_v34  ;;  %16803 = vmatprep.subr.bf16.mxu0 %v23163_v7  ;;  %v7224_v34 = vsel %vm1437_vm3, %v7219_v19, 0 }
 0xa04   :  { %16798 = vmatpush3.bf16.xpose.msra.mxu1 %v7128_v54  ;;  %16799 = vmatprep.mubr.msk.bf16.mxu1 %vm18351_vm0, %v23163_v7  ;;  %v7459_v1 = vpop.permute.xlu0 %7458 }
 0xa05   :  { %16809 = vmatprep.subr.bf16.mxu1 %v23163_v7 }
 0xa06   :  { %v7507_v22 = vpop.permute.xlu1 %7506 }
 0xa08   :  { %v7555_v55 = vpop.permute.xlu0 %7554 }
 0xa09   :  { %16794 = vmatmul.mubr.msk.bf16.vlgmr.msra.gmra.mrb[244].mxu0 %vm1437_vm3, %v20173_v40  ;;  %v7272_v40 = vsel %vm1437_vm3, %v7267_v8, 0 }
 0xa0a   :  { %16804 = vmatpush3.bf16.xpose.msra.mxu0 %v7176_v15  ;;  %16805 = vmatprep.mubr.msk.bf16.mxu0 %vm18351_vm0, %v23163_v7  ;;  %v7603_v0 = vpop.permute.xlu1 %7602 }
 0xa0b   :  { %16800 = vmatmul.mubr.msk.bf16.vlgmr.msra.gmra.mrb[244].mxu1 %vm1437_vm3, %v20177_v47  ;;  %16815 = vmatprep.subr.bf16.mxu0 %v23163_v7  ;;  %v7320_v47 = vsel %vm1437_vm3, %v7315_v38, 0 }
 0xa0c   :  { %16810 = vmatpush3.bf16.xpose.msra.mxu1 %v7224_v34  ;;  %16811 = vmatprep.mubr.msk.bf16.mxu1 %vm18351_vm0, %v23163_v7  ;;  %v7651_v28 = vpop.permute.xlu0 %7650 }
 0xa0d   :  { %16821 = vmatprep.subr.bf16.mxu1 %v23163_v7 }
 0xa0e   :  { %v7699_v5 = vpop.permute.xlu1 %7698 }
 0xa10   :  { %v8179_v25 = vpop.permute.xlu0 %8178 }
 0xa11   :  { %16806 = vmatmul.mubr.msk.bf16.vlgmr.msra.gmra.mrb[248].mxu0 %vm1437_vm3, %v20183_v36  ;;  %v7368_v36 = vsel %vm1437_vm3, %v7363_v9, 0 }
 0xa12   :  { %16816 = vmatpush3.bf16.xpose.msra.mxu0 %v7272_v40  ;;  %16817 = vmatprep.mubr.msk.bf16.mxu0 %vm18351_vm0, %v23163_v7  ;;  %v8131_v54 = vpop.permute.xlu1 %8130 }
 0xa13   :  { %16812 = vmatmul.mubr.msk.bf16.vlgmr.msra.gmra.mrb[248].mxu1 %vm1437_vm3, %v20185_v26  ;;  %16827 = vmatprep.subr.bf16.mxu0 %v23163_v7  ;;  %v7416_v26 = vsel %vm1437_vm3, %v7411_v32, 0 }
 0xa14   :  { %16822 = vmatpush3.bf16.xpose.msra.mxu1 %v7320_v47  ;;  %16823 = vmatprep.mubr.msk.bf16.mxu1 %vm18351_vm0, %v23163_v7 }
 0xa15   :  { %16833 = vmatprep.subr.bf16.mxu1 %v23163_v7 }
 0xa19   :  { %16818 = vmatmul.mubr.msk.bf16.vlgmr.msra.gmra.mrb[252].mxu0 %vm1437_vm3, %v20189_v33  ;;  %v7464_v33 = vsel %vm1437_vm3, %v7459_v1, 0 }
 0xa1a   :  { %16828 = vmatpush3.bf16.xpose.msra.mxu0 %v7368_v36  ;;  %16829 = vmatprep.mubr.msk.bf16.mxu0 %vm18351_vm0, %v23163_v7 }
 0xa1b   :  { %16824 = vmatmul.mubr.msk.bf16.vlgmr.msra.gmra.mrb[252].mxu1 %vm1437_vm3, %v20193_v16  ;;  %16839 = vmatprep.subr.bf16.mxu0 %v23163_v7  ;;  %v7512_v16 = vsel %vm1437_vm3, %v7507_v22, 0 }
 0xa1c   :  { %16834 = vmatpush3.bf16.xpose.msra.mxu1 %v7416_v26  ;;  %16835 = vmatprep.mubr.msk.bf16.mxu1 %vm18351_vm0, %v23163_v7 }
 0xa1d   :  { %16845 = vmatprep.subr.bf16.mxu1 %v23163_v7 }
 0xa21   :  { %16830 = vmatmul.mubr.msk.bf16.vlgmr.msra.gmra.mrb[0].mxu0 %vm1437_vm3, %v20199_v20  ;;  %v7560_v20 = vsel %vm1437_vm3, %v7555_v55, 0 }
 0xa22   :  { %16840 = vmatpush3.bf16.xpose.msra.mxu0 %v7464_v33  ;;  %16841 = vmatprep.mubr.msk.bf16.mxu0 %vm18351_vm0, %v23163_v7 }
 0xa23   :  { %16836 = vmatmul.mubr.msk.bf16.vlgmr.msra.gmra.mrb[0].mxu1 %vm1437_vm3, %v20201_v52  ;;  %16851 = vmatprep.subr.bf16.mxu0 %v23163_v7  ;;  %v7608_v52 = vsel %vm1437_vm3, %v7603_v0, 0 }
 0xa24   :  { %16846 = vmatpush3.bf16.xpose.msra.mxu1 %v7512_v16  ;;  %16847 = vmatprep.mubr.msk.bf16.mxu1 %vm18351_vm0, %v23163_v7 }
 0xa25   :  { %16857 = vmatprep.subr.bf16.mxu1 %v23163_v7 }
 0xa29   :  { %16842 = vmatmul.mubr.msk.bf16.vlgmr.msra.gmra.mrb[4].mxu0 %vm1437_vm3, %v20205_v14  ;;  %v7656_v14 = vsel %vm1437_vm3, %v7651_v28, 0 }
 0xa2a   :  { %16852 = vmatpush3.bf16.xpose.msra.mxu0 %v7560_v20  ;;  %16853 = vmatprep.mubr.msk.bf16.mxu0 %vm18351_vm0, %v23163_v7 }
 0xa2b   :  { %16848 = vmatmul.mubr.msk.bf16.vlgmr.msra.gmra.mrb[4].mxu1 %vm1437_vm3, %v20209_v56  ;;  %16863 = vmatprep.subr.bf16.mxu0 %v23163_v7  ;;  %v7704_v56 = vsel %vm1437_vm3, %v7699_v5, 0 }
 0xa2c   :  { %16858 = vmatpush3.bf16.xpose.msra.mxu1 %v7608_v52  ;;  %16859 = vmatprep.mubr.msk.bf16.mxu1 %vm18351_vm0, %v23163_v7 }
 0xa2d   :  { %16869 = vmatprep.subr.bf16.mxu1 %v23163_v7 }
 0xa31   :  { %16854 = vmatmul.mubr.msk.bf16.vlgmr.msra.gmra.mrb[8].mxu0 %vm1437_vm3, %v20217_v11  ;;  %v8136_v11 = vsel %vm3668_vm4, %v8131_v54, 0 }
 0xa32   :  { %16864 = vmatpush3.bf16.xpose.msra.mxu0 %v7656_v14  ;;  %16865 = vmatprep.mubr.msk.bf16.mxu0 %vm18351_vm0, %v23163_v7 }
 0xa33   :  { %16860 = vmatmul.mubr.msk.bf16.vlgmr.msra.gmra.mrb[8].mxu1 %vm1437_vm3, %v20221_v59  ;;  %16875 = vmatprep.subr.bf16.mxu0 %v23163_v7  ;;  %v8184_v59 = vsel %vm3668_vm4, %v8179_v25, 0 }
 0xa34   :  { %16870 = vmatpush3.bf16.xpose.msra.mxu1 %v7704_v56  ;;  %16871 = vmatprep.mubr.msk.bf16.mxu1 %vm18351_vm0, %v23163_v7 }
 0xa35   :  { %16881 = vmatprep.subr.bf16.mxu1 %v23163_v7 }
 0xa39   :  { %16866 = vmatmul.mubr.msk.bf16.vlgmr.msra.gmra.mrb[12].mxu0 %vm1437_vm3, %v20228_v17 }
 0xa3a   :  { %16876 = vmatpush3.bf16.msra.mxu0 %v8136_v11  ;;  %16877 = vmatprep.mubr.msk.bf16.mxu0 %vm18351_vm0, %v23163_v7 }
 0xa3b   :  { %16872 = vmatmul.mubr.msk.bf16.vlgmr.msra.gmra.mrb[12].mxu1 %vm1437_vm3, %v20235_v29  ;;  %16887 = vmatprep.subr.bf16.mxu0 %v23163_v7 }
 0xa3c   :  { %16882 = vmatpush3.bf16.msra.mxu1 %v8184_v59  ;;  %16883 = vmatprep.mubr.msk.bf16.mxu1 %vm18351_vm0, %v23163_v7 }
 0xa3d   :  { %16893 = vmatprep.subr.bf16.mxu1 %v23163_v7 }
 0xa4a   :  { %v20565_v19 = vpop.f32.mrb[192].mxu1 }
 0xa4b   :  { %v16687_v17 = vpop.f32.mrb[193].mxu1  ;;  %v7746_v15 = vsel %vm245_vm2, %v20565_v19, -inf }
 0xa4c   :  { %v6255_v34 = vpop.f32.mrb[194].mxu1  ;;  %7747 = vmax.xlane.f32.xlu0 %v7746_v15 }
 0xa4d   :  { %v16688_v8 = vpop.f32.mrb[195].mxu1 }
 0xa52   :  { %v20569_v38 = vpop.f32.mrb[196].mxu1 }
 0xa53   :  { %v16693_v29 = vpop.f32.mrb[197].mxu1  ;;  %v7749_v40 = vsel %vm245_vm2, %v20569_v38, -inf }
 0xa54   :  { %v6303_v47 = vpop.f32.mrb[198].mxu1  ;;  %7750 = vmax.xlane.f32.xlu1 %v7749_v40 }
 0xa55   :  { %v16694_v9 = vpop.f32.mrb[199].mxu1 }
 0xa5a   :  { %v20573_v32 = vpop.f32.mrb[200].mxu1 }
 0xa5b   :  { %v16699_v36 = vpop.f32.mrb[201].mxu1  ;;  %v7752_v26 = vsel %vm245_vm2, %v20573_v32, -inf }
 0xa5c   :  { %v6351_v1 = vpop.f32.mrb[202].mxu1  ;;  %7753 = vmax.xlane.f32.xlu0 %v7752_v26 }
 0xa5d   :  { %v16700_v22 = vpop.f32.mrb[203].mxu1 }
 0xa62   :  { %v20577_v33 = vpop.f32.mrb[204].mxu1 }
 0xa63   :  { %v16705_v16 = vpop.f32.mrb[205].mxu1  ;;  %v7755_v55 = vsel %vm245_vm2, %v20577_v33, -inf }
 0xa64   :  { %v6399_v0 = vpop.f32.mrb[206].mxu1  ;;  %7756 = vmax.xlane.f32.xlu0 %v7755_v55 }
 0xa65   :  { %v16706_v20 = vpop.f32.mrb[207].mxu1  ;;  %9234 = vrot.lane.b32.xlu1 %v20291_v45, %s18336_s25 }
 0xa69   :  { %9282 = vrot.lane.b32.xlu1 %v20297_v39, %s18336_s25 }
 0xa6a   :  { %v20585_v52 = vpop.f32.mrb[208].mxu1 }
 0xa6b   :  { %v16711_v28 = vpop.f32.mrb[209].mxu1  ;;  %v7758_v40 = vsel %vm245_vm2, %v20585_v52, -inf }
 0xa6c   :  { %v6447_v5 = vpop.f32.mrb[210].mxu1 }
 0xa6d   :  { %v16712_v14 = vpop.f32.mrb[211].mxu1 }
 0xa72   :  { %v20587_v56 = vpop.f32.mrb[212].mxu1 }
 0xa73   :  { %v16717_v54 = vpop.f32.mrb[213].mxu1  ;;  %v7761_v47 = vsel %vm245_vm2, %v20587_v56, -inf }
 0xa74   :  { %v6495_v25 = vpop.f32.mrb[214].mxu1 }
 0xa75   :  { %v16718_v11 = vpop.f32.mrb[215].mxu1 }
 0xa7a   :  { %v20589_v59 = vpop.f32.mrb[216].mxu1  ;;  %9186 = vrot.lane.b32.xlu0 %v20282_v31, %s18336_s25 }
 0xa7b   :  { %v16723_v17 = vpop.f32.mrb[217].mxu1 }
 0xa7c   :  { %v6543_v45 = vpop.f32.mrb[218].mxu1 }
 0xa7d   :  { %v16724_v15 = vpop.f32.mrb[219].mxu1 }
 0xa82   :  { %v20593_v34 = vpop.f32.mrb[220].mxu1 }
 0xa83   :  { %v16729_v39 = vpop.f32.mrb[221].mxu1  ;;  %v7767_v55 = vsel %vm245_vm2, %v20593_v34, -inf }
 0xa84   :  { %v6591_v8 = vpop.f32.mrb[222].mxu1 }
 0xa85   :  { %v16730_v29 = vpop.f32.mrb[223].mxu1 }
 0xa86   :  { %v7764_v29 = vsel %vm245_vm2, %v20589_v59, -inf }
 0xa8d   :  { %7759 = vmax.xlane.f32.xlu1 %v7758_v40  ;;  %v20619_v40 = vpop.permute.xlu1 %8226 }
 0xa99   :  { %v20599_v9 = vpop.f32.mrb[224].mxu0  ;;  %7762 = vmax.xlane.f32.xlu0 %v7761_v47  ;;  %v20621_v47 = vpop.permute.xlu1 %8322 }
 0xa9a   :  { %v16735_v36 = vpop.f32.mrb[225].mxu0  ;;  %v7770_v31 = vsel %vm245_vm2, %v20599_v9, -inf }
 0xa9b   :  { %v6639_v26 = vpop.f32.mrb[226].mxu0  ;;  %v20603_v1 = vpop.f32.mrb[224].mxu1  ;;  %7771 = vmax.xlane.f32.xlu1 %v7770_v31 }
 0xa9c   :  { %v16736_v22 = vpop.f32.mrb[227].mxu0  ;;  %v16741_v16 = vpop.f32.mrb[225].mxu1  ;;  %v7773_v28 = vsel %vm245_vm2, %v20603_v1, -inf }
 0xa9d   :  { %v6687_v0 = vpop.f32.mrb[226].mxu1  ;;  %7768 = vmax.xlane.f32.xlu0 %v7767_v55  ;;  %v20623_v36 = vpop.permute.xlu0 %8274 }
 0xa9e   :  { %v16742_v20 = vpop.f32.mrb[227].mxu1  ;;  %v20625_v31 = vpop.permute.xlu1 %8418 }
 0xaa1   :  { %v20609_v5 = vpop.f32.mrb[228].mxu0  ;;  %7774 = vmax.xlane.f32.xlu0 %v7773_v28  ;;  %v20627_v26 = vpop.permute.xlu0 %8370 }
 0xaa2   :  { %v16747_v14 = vpop.f32.mrb[229].mxu0  ;;  %v7776_v54 = vsel %vm245_vm2, %v20609_v5, -inf  ;;  %v20629_v22 = vpop.permute.xlu1 %8514 }
 0xaa3   :  { %v6735_v25 = vpop.f32.mrb[230].mxu0  ;;  %v20613_v11 = vpop.f32.mrb[228].mxu1  ;;  %7777 = vmax.xlane.f32.xlu1 %v7776_v54 }
 0xaa4   :  { %v16748_v17 = vpop.f32.mrb[231].mxu0  ;;  %v16753_v45 = vpop.f32.mrb[229].mxu1  ;;  %v7779_v15 = vsel %vm245_vm2, %v20613_v11, -inf }
 0xaa5   :  { %v6783_v39 = vpop.f32.mrb[230].mxu1  ;;  %7780 = vmax.xlane.f32.xlu0 %v7779_v15  ;;  %v20631_v16 = vpop.permute.xlu0 %8466 }
 0xaa6   :  { %v16754_v8 = vpop.f32.mrb[231].mxu1  ;;  %v20635_v0 = vpop.permute.xlu1 %8610 }
 0xaa7   :  { %7765 = vmax.xlane.f32.xlu1 %v7764_v29 }
 0xaa9   :  { %v20643_v8 = vpop.permute.xlu0 %8562 }
 0xaad   :  { %v20655_v4 = vpop.permute.xlu0 %8658 }
 0xab1   :  { %v20667_v61 = vpop.permute.xlu0 %8898 }
 0xab2   :  { %23226 = vst [vmem:[#allocation62_spill] sm:$0xff] %v20667_v61 }
 0xab5   :  { %v20679_v49 = vpop.permute.xlu0 %8994 }
 0xab6   :  { %23227 = vst [vmem:[#allocation63_spill] sm:$0xff] %v20679_v49 }
 0xab9   :  { %v20691_v50 = vpop.permute.xlu0 %9090 }
 0xaba   :  { %23229 = vst [vmem:[#allocation65_spill] sm:$0xff] %v20691_v50 }
 0xac4   :  { %v20633_v55 = vpop.f32.mrb[232].mxu0 }
 0xac5   :  { %v16759_v20 = vpop.f32.mrb[233].mxu0  ;;  %v7782_v28 = vsel %vm245_vm2, %v20633_v55, -inf }
 0xac6   :  { %v6831_v14 = vpop.f32.mrb[234].mxu0  ;;  %7783 = vmax.xlane.f32.xlu1 %v7782_v28  ;;  %v20639_v54 = vpop.f32.mrb[232].mxu1 }
 0xac7   :  { %v16760_v25 = vpop.f32.mrb[235].mxu0  ;;  %v16765_v17 = vpop.f32.mrb[233].mxu1  ;;  %v7785_v45 = vsel %vm245_vm2, %v20639_v54, -inf }
 0xac8   :  { %7786 = vmax.xlane.f32.xlu0 %v7785_v45  ;;  %v6879_v15 = vpop.f32.mrb[234].mxu1  ;;  %v20647_v20 = vpop.permute.xlu1 %8706 }
 0xac9   :  { %v16766_v39 = vpop.f32.mrb[235].mxu1 }
 0xacc   :  { %v20645_v29 = vpop.f32.mrb[236].mxu0 }
 0xacd   :  { %v16771_v23 = vpop.f32.mrb[237].mxu0  ;;  %v7788_v28 = vsel %vm245_vm2, %v20645_v29, -inf }
 0xace   :  { %v6927_v14 = vpop.f32.mrb[238].mxu0  ;;  %7789 = vmax.xlane.f32.xlu1 %v7788_v28  ;;  %v20651_v25 = vpop.f32.mrb[236].mxu1 }
 0xacf   :  { %v16772_v17 = vpop.f32.mrb[239].mxu0  ;;  %v16777_v6 = vpop.f32.mrb[237].mxu1  ;;  %v7791_v45 = vsel %vm245_vm2, %v20651_v25, -inf }
 0xad0   :  { %7792 = vmax.xlane.f32.xlu0 %v7791_v45  ;;  %v6975_v15 = vpop.f32.mrb[238].mxu1  ;;  %v20659_v23 = vpop.permute.xlu1 %8802 }
 0xad1   :  { %v16778_v39 = vpop.f32.mrb[239].mxu1 }
 0xad4   :  { %v20657_v48 = vpop.f32.mrb[240].mxu0 }
 0xad5   :  { %v16783_v53 = vpop.f32.mrb[241].mxu0  ;;  %v7794_v28 = vsel %vm245_vm2, %v20657_v48, -inf }
 0xad6   :  { %v7023_v14 = vpop.f32.mrb[242].mxu0  ;;  %7795 = vmax.xlane.f32.xlu1 %v7794_v28  ;;  %v20663_v17 = vpop.f32.mrb[240].mxu1 }
 0xad7   :  { %v16784_v6 = vpop.f32.mrb[243].mxu0  ;;  %v16789_v21 = vpop.f32.mrb[241].mxu1  ;;  %v7797_v45 = vsel %vm245_vm2, %v20663_v17, -inf }
 0xad8   :  { %7798 = vmax.xlane.f32.xlu0 %v7797_v45  ;;  %v7071_v15 = vpop.f32.mrb[242].mxu1  ;;  %v20671_v53 = vpop.permute.xlu1 %8850 }
 0xad9   :  { %v16790_v39 = vpop.f32.mrb[243].mxu1 }
 0xadc   :  { %v20669_v37 = vpop.f32.mrb[244].mxu0 }
 0xadd   :  { %v16795_v10 = vpop.f32.mrb[245].mxu0  ;;  %v7800_v28 = vsel %vm245_vm2, %v20669_v37, -inf }
 0xade   :  { %v7119_v14 = vpop.f32.mrb[246].mxu0  ;;  %7801 = vmax.xlane.f32.xlu1 %v7800_v28  ;;  %v20675_v6 = vpop.f32.mrb[244].mxu1 }
 0xadf   :  { %v16796_v21 = vpop.f32.mrb[247].mxu0  ;;  %v16801_v2 = vpop.f32.mrb[245].mxu1  ;;  %v7803_v45 = vsel %vm245_vm2, %v20675_v6, -inf }
 0xae0   :  { %7804 = vmax.xlane.f32.xlu0 %v7803_v45  ;;  %v7167_v15 = vpop.f32.mrb[246].mxu1  ;;  %v20683_v10 = vpop.permute.xlu1 %8946 }
 0xae1   :  { %v16802_v39 = vpop.f32.mrb[247].mxu1  ;;  %23228 = vst [vmem:[#allocation64_spill] sm:$0xff] %v20683_v10 }
 0xae4   :  { %v20681_v30 = vpop.f32.mrb[248].mxu0 }
 0xae5   :  { %v16807_v18 = vpop.f32.mrb[249].mxu0  ;;  %v7806_v28 = vsel %vm245_vm2, %v20681_v30, -inf }
 0xae6   :  { %v7215_v14 = vpop.f32.mrb[250].mxu0  ;;  %7807 = vmax.xlane.f32.xlu1 %v7806_v28  ;;  %v20687_v21 = vpop.f32.mrb[248].mxu1 }
 0xae7   :  { %v16808_v2 = vpop.f32.mrb[251].mxu0  ;;  %v16813_v46 = vpop.f32.mrb[249].mxu1  ;;  %v7809_v45 = vsel %vm245_vm2, %v20687_v21, -inf }
 0xae8   :  { %7810 = vmax.xlane.f32.xlu0 %v7809_v45  ;;  %v7263_v15 = vpop.f32.mrb[250].mxu1  ;;  %v20695_v18 = vpop.permute.xlu1 %9042 }
 0xae9   :  { %v16814_v39 = vpop.f32.mrb[251].mxu1  ;;  %23230 = vst [vmem:[#allocation66_spill] sm:$0xff] %v20695_v18 }
 0xaea   :  { %v20703_v39 = vpop.permute.xlu0 %8754 }
 0xaec   :  { %v20693_v57 = vpop.f32.mrb[252].mxu0  ;;  %v20705_v12 = vpop.permute.xlu1 %9138 }
 0xaed   :  { %v16819_v63 = vpop.f32.mrb[253].mxu0  ;;  %v7812_v28 = vsel %vm245_vm2, %v20693_v57, -inf  ;;  %23231 = vst [vmem:[#allocation67_spill] sm:$0xff] %v20705_v12 }
 0xaee   :  { %v7311_v14 = vpop.f32.mrb[254].mxu0  ;;  %7813 = vmax.xlane.f32.xlu1 %v7812_v28  ;;  %v20699_v2 = vpop.f32.mrb[252].mxu1 }
 0xaef   :  { %v16820_v46 = vpop.f32.mrb[255].mxu0  ;;  %v16825_v24 = vpop.f32.mrb[253].mxu1  ;;  %v7815_v45 = vsel %vm245_vm2, %v20699_v2, -inf }
 0xaf0   :  { %7816 = vmax.xlane.f32.xlu0 %v7815_v45  ;;  %v7359_v15 = vpop.f32.mrb[254].mxu1  ;;  %v7748_v43 = vpop.xlane.xlu0 %7747 }
 0xaf1   :  { %v16826_v51 = vpop.f32.mrb[255].mxu1  ;;  %v7751_v12 = vpop.xlane.xlu1 %7750  ;;  %v7842_v18 = vsub.f32 %v20565_v19, %v7748_v43 }
 0xaf3   :  { %v7874_v50 = vmul.f32 1.442695, %v7842_v18 }
 0xaf4   :  { %v20707_v63 = vpop.f32.mrb[0].mxu0  ;;  %v7754_v15 = vpop.xlane.xlu0 %7753 }
 0xaf5   :  { %v16831_v60 = vpop.f32.mrb[1].mxu0  ;;  %v7818_v28 = vsel %vm245_vm2, %v20707_v63, -inf  ;;  %v7844_v43 = vsub.f32 %v20573_v32, %v7754_v15  ;;  %17809 = vpow2.f32 %v7874_v50 }
 0xaf6   :  { %v7407_v14 = vpop.f32.mrb[2].mxu0  ;;  %7819 = vmax.xlane.f32.xlu1 %v7818_v28  ;;  %v20711_v24 = vpop.f32.mrb[0].mxu1 }
 0xaf7   :  { %v16832_v46 = vpop.f32.mrb[3].mxu0  ;;  %v16837_v58 = vpop.f32.mrb[1].mxu1  ;;  %v7821_v45 = vsel %vm245_vm2, %v20711_v24, -inf  ;;  %v7843_v14 = vsub.f32 %v20569_v38, %v7751_v12  ;;  %v7878_v12 = vmul.f32 1.442695, %v7844_v43 }
 0xaf8   :  { %7822 = vmax.xlane.f32.xlu0 %v7821_v45  ;;  %v7455_v51 = vpop.f32.mrb[2].mxu1  ;;  %v7757_v10 = vpop.xlane.xlu0 %7756 }
 0xaf9   :  { %v16838_v3 = vpop.f32.mrb[3].mxu1  ;;  %v7876_v49 = vmul.f32 1.442695, %v7843_v14  ;;  %v7845_v61 = vsub.f32 %v20577_v33, %v7757_v10 }
 0xafb   :  { %17811 = vpow2.f32 %v7876_v49 }
 0xafc   :  { %v20716_v60 = vpop.f32.mrb[4].mxu0  ;;  %17813 = vpow2.f32 %v7878_v12 }
 0xafd   :  { %v16843_v41 = vpop.f32.mrb[5].mxu0  ;;  %v7824_v28 = vsel %vm245_vm2, %v20716_v60, -inf }
 0xafe   :  { %v7503_v58 = vpop.f32.mrb[6].mxu0  ;;  %7825 = vmax.xlane.f32.xlu1 %v7824_v28  ;;  %v20721_v46 = vpop.f32.mrb[4].mxu1 }
 0xaff   :  { %v16844_v45 = vpop.f32.mrb[7].mxu0  ;;  %v16849_v51 = vpop.f32.mrb[5].mxu1  ;;  %v7827_v3 = vsel %vm245_vm2, %v20721_v46, -inf }
 0xb00   :  { %7828 = vmax.xlane.f32.xlu0 %v7827_v3  ;;  %v7551_v19 = vpop.f32.mrb[6].mxu1  ;;  %v7880_v45 = vmul.f32 1.442695, %v7845_v61  ;;  %v20739_v61 = vpop.eup %17809 }
 0xb01   :  { %v16850_v41 = vpop.f32.mrb[7].mxu1 }
 0xb02   :  { %17815 = vpow2.f32 %v7880_v45  ;;  %v20747_v45 = vpop.permute.xlu1 %9234 }
 0xb03   :  { %23232 = vst [vmem:[#allocation68_spill] sm:$0xff] %v20747_v45 }
 0xb04   :  { %v20727_v38 = vpop.f32.mrb[8].mxu0 }
 0xb05   :  { %v16855_v28 = vpop.f32.mrb[9].mxu0  ;;  %v7830_v58 = vsel %vm245_vm2, %v20727_v38, -inf }
 0xb06   :  { %v7599_v51 = vpop.f32.mrb[10].mxu0  ;;  %7831 = vmax.xlane.f32.xlu1 %v7830_v58  ;;  %v20731_v18 = vpop.f32.mrb[8].mxu1 }
 0xb07   :  { %v16856_v32 = vpop.f32.mrb[11].mxu0  ;;  %v16861_v15 = vpop.f32.mrb[9].mxu1  ;;  %v7833_v14 = vsel %vm245_vm2, %v20731_v18, -inf }
 0xb08   :  { %7834 = vmax.xlane.f32.xlu0 %v7833_v14  ;;  %v7647_v50 = vpop.f32.mrb[10].mxu1  ;;  %v20745_v58 = vpop.eup %17811  ;;  %v7938_v15 = vsel %vm245_vm2, %v20739_v61, 0.0 }
 0xb09   :  { %v16862_v33 = vpop.f32.mrb[11].mxu1  ;;  %v20751_v14 = vpop.eup %17813  ;;  %v7941_v50 = vsel %vm245_vm2, %v20745_v58, 0.0 }
 0xb0c   :  { %v20735_v10 = vpop.f32.mrb[12].mxu0  ;;  %v20755_v33 = vpop.eup %17815 }
 0xb0d   :  { %v16867_v3 = vpop.f32.mrb[13].mxu0  ;;  %v7836_v49 = vsel %vm245_vm2, %v20735_v10, -inf }
 0xb0e   :  { %v7695_v43 = vpop.f32.mrb[14].mxu0  ;;  %7837 = vmax.xlane.f32.xlu1 %v7836_v49  ;;  %v20741_v19 = vpop.f32.mrb[12].mxu1  ;;  %v7944_v3 = vsel %vm245_vm2, %v20751_v14, 0.0 }
 0xb0f   :  { %v16868_v41 = vpop.f32.mrb[15].mxu0  ;;  %v16873_v28 = vpop.f32.mrb[13].mxu1  ;;  %v7839_v12 = vsel %vm245_vm2, %v20741_v19, -inf  ;;  %v7947_v43 = vsel %vm245_vm2, %v20755_v33, 0.0 }
 0xb10   :  { %7840 = vmax.xlane.f32.xlu0 %v7839_v12  ;;  %v7743_v51 = vpop.f32.mrb[14].mxu1  ;;  %v20759_v49 = vpop.permute.xlu1 %9282 }
 0xb11   :  { %v16874_v32 = vpop.f32.mrb[15].mxu1  ;;  %23233 = vst [vmem:[#allocation69_spill] sm:$0xff] %v20759_v49  ;;  %v20764_v51 = vpop.permute.xlu0 %9186 }
 0xb12   :  { %7939 = vadd.xlane.f32.xlu1 %v7938_v15  ;;  %23234 = vst [vmem:[#allocation70_spill] sm:$0xff] %v20764_v51 }
 0xb14   :  { %7942 = vadd.xlane.f32.xlu0 %v7941_v50 }
 0xb16   :  { %7945 = vadd.xlane.f32.xlu1 %v7944_v3 }
 0xb18   :  { %7948 = vadd.xlane.f32.xlu0 %v7947_v43 }
 0xb1a   :  { %v7760_v41 = vpop.xlane.xlu1 %7759 }
 0xb1b   :  { %v7846_v28 = vsub.f32 %v20585_v52, %v7760_v41 }
 0xb1d   :  { %v7882_v12 = vmul.f32 1.442695, %v7846_v28 }
 0xb1f   :  { %17817 = vpow2.f32 %v7882_v12 }
 0xb26   :  { %v7763_v32 = vpop.xlane.xlu0 %7762 }
 0xb27   :  { %v7847_v15 = vsub.f32 %v20587_v56, %v7763_v32 }
 0xb28   :  { %v7772_v50 = vpop.xlane.xlu1 %7771 }
 0xb29   :  { %v20767_v45 = vpop.eup %17817  ;;  %v7884_v44 = vmul.f32 1.442695, %v7847_v15  ;;  %v7850_v3 = vsub.f32 %v20599_v9, %v7772_v50 }
 0xb2a   :  { %v7769_v49 = vpop.xlane.xlu0 %7768  ;;  %v7950_v43 = vsel %vm245_vm2, %v20767_v45, 0.0 }
 0xb2b   :  { %17819 = vpow2.f32 %v7884_v44  ;;  %v7890_v35 = vmul.f32 1.442695, %v7850_v3  ;;  %v7849_v52 = vsub.f32 %v20593_v34, %v7769_v49  ;;  %7951 = vadd.xlane.f32.xlu1 %v7950_v43 }
 0xb2d   :  { %17821 = vpow2.f32 %v7890_v35  ;;  %v7888_v41 = vmul.f32 1.442695, %v7849_v52 }
 0xb2e   :  { %v7775_v28 = vpop.xlane.xlu0 %7774 }
 0xb2f   :  { %17823 = vpow2.f32 %v7888_v41  ;;  %v7851_v56 = vsub.f32 %v20603_v1, %v7775_v28 }
 0xb30   :  { %v7778_v12 = vpop.xlane.xlu1 %7777 }
 0xb31   :  { %v7892_v32 = vmul.f32 1.442695, %v7851_v56  ;;  %v7852_v15 = vsub.f32 %v20609_v5, %v7778_v12 }
 0xb32   :  { %v7781_v9 = vpop.xlane.xlu0 %7780 }
 0xb33   :  { %17825 = vpow2.f32 %v7892_v32  ;;  %v7894_v50 = vmul.f32 1.442695, %v7852_v15  ;;  %v7853_v51 = vsub.f32 %v20613_v11, %v7781_v9 }
 0xb34   :  { %v7766_v44 = vpop.xlane.xlu1 %7765 }
 0xb35   :  { %v20776_v3 = vpop.eup %17819  ;;  %17827 = vpow2.f32 %v7894_v50  ;;  %v7896_v34 = vmul.f32 1.442695, %v7853_v51  ;;  %v7848_v35 = vsub.f32 %v20589_v59, %v7766_v44 }
 0xb36   :  { %v7953_v49 = vsel %vm245_vm2, %v20776_v3, 0.0 }
 0xb37   :  { %v20781_v1 = vpop.eup %17821  ;;  %17829 = vpow2.f32 %v7896_v34  ;;  %v7886_v43 = vmul.f32 1.442695, %v7848_v35  ;;  %7954 = vadd.xlane.f32.xlu0 %v7953_v49 }
 0xb38   :  { %v7962_v5 = vsel %vm245_vm2, %v20781_v1, 0.0 }
 0xb39   :  { %v20785_v52 = vpop.eup %17823  ;;  %17831 = vpow2.f32 %v7886_v43  ;;  %7963 = vadd.xlane.f32.xlu1 %v7962_v5 }
 0xb3a   :  { %v7959_v11 = vsel %vm245_vm2, %v20785_v52, 0.0 }
 0xb3b   :  { %7960 = vadd.xlane.f32.xlu0 %v7959_v11 }
 0xb3d   :  { %v20789_v59 = vpop.eup %17825 }
 0xb3e   :  { %v7965_v51 = vsel %vm245_vm2, %v20789_v59, 0.0 }
 0xb3f   :  { %v20793_v41 = vpop.eup %17827  ;;  %7966 = vadd.xlane.f32.xlu0 %v7965_v51 }
 0xb40   :  { %v7968_v28 = vsel %vm245_vm2, %v20793_v41, 0.0 }
 0xb41   :  { %v20797_v56 = vpop.eup %17829  ;;  %7969 = vadd.xlane.f32.xlu1 %v7968_v28 }
 0xb42   :  { %v7971_v12 = vsel %vm245_vm2, %v20797_v56, 0.0 }
 0xb43   :  { %v20801_v32 = vpop.eup %17831  ;;  %7972 = vadd.xlane.f32.xlu0 %v7971_v12 }
 0xb44   :  { %v7956_v15 = vsel %vm245_vm2, %v20801_v32, 0.0 }
 0xb45   :  { %7957 = vadd.xlane.f32.xlu1 %v7956_v15 }
 0xb53   :  { %v7784_v9 = vpop.xlane.xlu1 %7783 }
 0xb54   :  { %v7854_v50 = vsub.f32 %v20633_v55, %v7784_v9 }
 0xb55   :  { %v7787_v44 = vpop.xlane.xlu0 %7786 }
 0xb56   :  { %v7898_v34 = vmul.f32 1.442695, %v7854_v50  ;;  %v7855_v35 = vsub.f32 %v20639_v54, %v7787_v44 }
 0xb58   :  { %17833 = vpow2.f32 %v7898_v34  ;;  %v7900_v49 = vmul.f32 1.442695, %v7855_v35 }
 0xb5a   :  { %17835 = vpow2.f32 %v7900_v49 }
 0xb5b   :  { %v7790_v43 = vpop.xlane.xlu1 %7789 }
 0xb5c   :  { %v7856_v5 = vsub.f32 %v20645_v29, %v7790_v43 }
 0xb5d   :  { %v7793_v49 = vpop.xlane.xlu0 %7792 }
 0xb5e   :  { %v7902_v11 = vmul.f32 1.442695, %v7856_v5  ;;  %v7857_v43 = vsub.f32 %v20651_v25, %v7793_v49 }
 0xb60   :  { %17837 = vpow2.f32 %v7902_v11 }
 0xb62   :  { %v20808_v51 = vpop.eup %17833 }
 0xb63   :  { %v7796_v28 = vpop.xlane.xlu1 %7795  ;;  %v7974_v12 = vsel %vm245_vm2, %v20808_v51, 0.0 }
 0xb64   :  { %v20812_v15 = vpop.eup %17835  ;;  %v7858_v55 = vsub.f32 %v20657_v48, %v7796_v28  ;;  %7975 = vadd.xlane.f32.xlu1 %v7974_v12  ;;  %v7904_v12 = vmul.f32 1.442695, %v7857_v43 }
 0xb65   :  { %v7977_v54 = vsel %vm245_vm2, %v20812_v15, 0.0 }
 0xb66   :  { %v7906_v9 = vmul.f32 1.442695, %v7858_v55  ;;  %7978 = vadd.xlane.f32.xlu0 %v7977_v54  ;;  %v7799_v54 = vpop.xlane.xlu0 %7798 }
 0xb68   :  { %17839 = vpow2.f32 %v7906_v9  ;;  %v7859_v9 = vsub.f32 %v20663_v17, %v7799_v54 }
 0xb6a   :  { %v20817_v29 = vpop.eup %17837 }
 0xb6b   :  { %v7802_v50 = vpop.xlane.xlu1 %7801  ;;  %v7980_v44 = vsel %vm245_vm2, %v20817_v29, 0.0 }
 0xb6c   :  { %v7860_v34 = vsub.f32 %v20669_v37, %v7802_v50  ;;  %7981 = vadd.xlane.f32.xlu1 %v7980_v44 }
 0xb6e   :  { %v7910_v35 = vmul.f32 1.442695, %v7860_v34  ;;  %v7908_v34 = vmul.f32 1.442695, %v7859_v9 }
 0xb70   :  { %17841 = vpow2.f32 %v7910_v35 }
 0xb72   :  { %v20822_v48 = vpop.eup %17839 }
 0xb73   :  { %v7808_v5 = vpop.xlane.xlu1 %7807  ;;  %v7986_v11 = vsel %vm245_vm2, %v20822_v48, 0.0 }
 0xb74   :  { %v7862_v28 = vsub.f32 %v20681_v30, %v7808_v5  ;;  %7987 = vadd.xlane.f32.xlu1 %v7986_v11  ;;  %v7805_v30 = vpop.xlane.xlu0 %7804 }
 0xb75   :  { %v7861_v43 = vsub.f32 %v20675_v6, %v7805_v30 }
 0xb76   :  { %v7914_v55 = vmul.f32 1.442695, %v7862_v28 }
 0xb78   :  { %17843 = vpow2.f32 %v7914_v55  ;;  %v7811_v54 = vpop.xlane.xlu0 %7810 }
 0xb79   :  { %17845 = vpow2.f32 %v7904_v12 }
 0xb7a   :  { %v20828_v37 = vpop.eup %17841 }
 0xb7b   :  { %v7814_v50 = vpop.xlane.xlu1 %7813  ;;  %v7992_v25 = vsel %vm245_vm2, %v20828_v37, 0.0 }
 0xb7c   :  { %v7864_v44 = vsub.f32 %v20693_v57, %v7814_v50  ;;  %7993 = vadd.xlane.f32.xlu1 %v7992_v25  ;;  %v7912_v57 = vmul.f32 1.442695, %v7861_v43 }
 0xb7d   :  { %v7817_v25 = vpop.xlane.xlu0 %7816 }
 0xb7e   :  { %v7918_v35 = vmul.f32 1.442695, %v7864_v44 }
 0xb80   :  { %17847 = vpow2.f32 %v7918_v35 }
 0xb81   :  { %17849 = vpow2.f32 %v7908_v34 }
 0xb82   :  { %v20834_v49 = vpop.eup %17843 }
 0xb83   :  { %v7820_v5 = vpop.xlane.xlu1 %7819  ;;  %v7998_v17 = vsel %vm245_vm2, %v20834_v49, 0.0  ;;  %v20839_v11 = vpop.eup %17845 }
 0xb84   :  { %23235 = vst [vmem:[#allocation71_spill] sm:$0xff] %v20839_v11  ;;  %v7866_v28 = vsub.f32 %v20707_v63, %v7820_v5  ;;  %7999 = vadd.xlane.f32.xlu0 %v7998_v17  ;;  %v7983_v55 = vsel %vm245_vm2, %v20839_v11, 0.0 }
 0xb85   :  { %v7823_v44 = vpop.xlane.xlu0 %7822 }
 0xb86   :  { %v7922_v12 = vmul.f32 1.442695, %v7866_v28 }
 0xb88   :  { %17851 = vpow2.f32 %v7922_v12  ;;  %7984 = vadd.xlane.f32.xlu0 %v7983_v55 }
 0xb89   :  { %17853 = vpow2.f32 %v7912_v57  ;;  %v7863_v57 = vsub.f32 %v20687_v21, %v7811_v54  ;;  %v7867_v21 = vsub.f32 %v20711_v24, %v7823_v44  ;;  %v8232_v24 = vsel %vm3668_vm4, %v20619_v40, 0 }
 0xb8a   :  { %v20844_v9 = vpop.eup %17847 }
 0xb8b   :  { %23236 = vst [vmem:[#allocation72_spill] sm:$0xff] %v20844_v9  ;;  %v8004_v6 = vsel %vm245_vm2, %v20844_v9, 0.0  ;;  %v20848_v50 = vpop.eup %17849  ;;  %v20856_v35 = vpop.xlane.xlu1 %7825 }
 0xb8c   :  { %23237 = vst [vmem:[#allocation73_spill] sm:$0xff] %v20848_v50  ;;  %8005 = vadd.xlane.f32.xlu0 %v8004_v6  ;;  %v7989_v63 = vsel %vm245_vm2, %v20848_v50, 0.0  ;;  %v7916_v6 = vmul.f32 1.442695, %v7863_v57  ;;  %v7924_v57 = vmul.f32 1.442695, %v7867_v21 }
 0xb8d   :  { %9378 = vrot.lane.b32.xlu1 %v20312_v13, %s18336_s25  ;;  %v20862_v5 = vpop.xlane.xlu0 %7828 }
 0xb90   :  { %7990 = vadd.xlane.f32.xlu0 %v7989_v63  ;;  %v7865_v63 = vsub.f32 %v20699_v2, %v7817_v25 }
 0xb92   :  { %v20854_v34 = vpop.eup %17851  ;;  %v7920_v50 = vmul.f32 1.442695, %v7865_v63  ;;  %v8328_v63 = vsel %vm3668_vm4, %v20621_v47, 0 }
 0xb93   :  { %23238 = vst [vmem:[#allocation74_spill] sm:$0xff] %v20854_v34  ;;  %v8010_v30 = vsel %vm245_vm2, %v20854_v34, 0.0  ;;  %v20860_v43 = vpop.eup %17853  ;;  %v20864_v17 = vpop.xlane.xlu1 %7831 }
 0xb94   :  { %23239 = vst [vmem:[#allocation75_spill] sm:$0xff] %v20860_v43  ;;  %8011 = vadd.xlane.f32.xlu0 %v8010_v30  ;;  %v7995_v13 = vsel %vm245_vm2, %v20860_v43, 0.0 }
 0xb95   :  { %v20868_v28 = vpop.xlane.xlu0 %7834 }
 0xb98   :  { %7996 = vadd.xlane.f32.xlu0 %v7995_v13 }
 0xb9b   :  { %v7838_v12 = vpop.xlane.xlu1 %7837 }
 0xb9c   :  { %v7872_v9 = vsub.f32 %v20735_v10, %v7838_v12  ;;  %v7868_v12 = vsub.f32 %v20716_v60, %v20856_v35  ;;  %v7870_v60 = vsub.f32 %v20727_v38, %v20864_v17  ;;  %v8424_v17 = vsel %vm3668_vm4, %v20625_v31, 0 }
 0xb9d   :  { %v20871_v55 = vpop.xlane.xlu0 %7840 }
 0xb9e   :  { %v7934_v54 = vmul.f32 1.442695, %v7872_v9  ;;  %v7926_v47 = vmul.f32 1.442695, %v7868_v12 }
 0xb9f   :  { %v7940_v34 = vpop.xlane.xlu1 %7939 }
 0xba0   :  { %17855 = vrcp.f32 %v7940_v34 }
 0xba1   :  { %v7943_v30 = vpop.xlane.xlu0 %7942  ;;  %17857 = vpow2.f32 %v7916_v6 }
 0xba2   :  { %17859 = vrcp.f32 %v7943_v30 }
 0xba3   :  { %v7946_v43 = vpop.xlane.xlu1 %7945 }
 0xba4   :  { %17861 = vrcp.f32 %v7946_v43 }
 0xba5   :  { %v7949_v13 = vpop.xlane.xlu0 %7948  ;;  %17863 = vpow2.f32 %v7920_v50 }
 0xba6   :  { %17865 = vrcp.f32 %v7949_v13 }
 0xba7   :  { %17867 = vpow2.f32 %v7934_v54  ;;  %v8376_v54 = vsel %vm3668_vm4, %v20627_v26, 0  ;;  %v7930_v26 = vmul.f32 1.442695, %v7870_v60 }
 0xba8   :  { %17869 = vpow2.f32 %v7924_v57 }
 0xbaa   :  { %v17856_v11 = vpop.eup %17855 }
 0xbab   :  { %v20876_v2 = vpop.eup %17857  ;;  %v8066_v25 = vmul.f32 %v17856_v11, %v20739_v61 }
 0xbac   :  { %v17860_v34 = vpop.eup %17859  ;;  %v8001_v61 = vsel %vm245_vm2, %v20876_v2, 0.0 }
 0xbad   :  { %v8098_v6 = vpack.c.bf16 %v8066_v25, %v8066_v25  ;;  %v8067_v10 = vmul.f32 %v17860_v34, %v20745_v58  ;;  %v8280_v58 = vsel %vm3668_vm4, %v20623_v36, 0 }
 0xbae   :  { %9330 = vrot.lane.b32.xlu0 %v20303_v42, %s18336_s25  ;;  %v17862_v43 = vpop.eup %17861 }
 0xbaf   :  { %v20882_v50 = vpop.eup %17863  ;;  %v8099_v9 = vpack.c.bf16 %v8067_v10, %v8067_v10  ;;  %16878 = vmatmul.mubr.msk.bf16.vlgmr.msra.gmra.mrb[16].mxu0 %vm245_vm2, %v8098_v6  ;;  %v8068_v42 = vmul.f32 %v17862_v43, %v20751_v14 }
 0xbb0   :  { %v17866_v11 = vpop.eup %17865  ;;  %16888 = vmatpush3.bf16.msra.mxu0 %v8232_v24  ;;  %16889 = vmatprep.mubr.msk.bf16.mxu0 %vm18351_vm0, %v23163_v7  ;;  %v8007_v44 = vsel %vm245_vm2, %v20882_v50, 0.0 }
 0xbb1   :  { %8002 = vadd.xlane.f32.xlu1 %v8001_v61  ;;  %16884 = vmatmul.mubr.msk.bf16.vlgmr.msra.gmra.mrb[16].mxu1 %vm245_vm2, %v8099_v9  ;;  %v8069_v40 = vmul.f32 %v17866_v11, %v20755_v33  ;;  %v20902_v36 = vpop.eup %17867  ;;  %v8100_v14 = vpack.c.bf16 %v8068_v42, %v8068_v42 }
 0xbb2   :  { %16894 = vmatpush3.bf16.msra.mxu1 %v8280_v58  ;;  %16899 = vmatprep.subr.bf16.mxu0 %v23163_v7  ;;  %v8028_v13 = vsel %vm245_vm2, %v20902_v36, 0.0  ;;  %v20911_v21 = vpop.eup %17869 }
 0xbb3   :  { %16895 = vmatprep.mubr.msk.bf16.mxu1 %vm18351_vm0, %v23163_v7  ;;  %16905 = vmatprep.subr.bf16.mxu1 %v23163_v7  ;;  %v8101_v30 = vpack.c.bf16 %v8069_v40, %v8069_v40  ;;  %v8013_v35 = vsel %vm245_vm2, %v20911_v21, 0.0 }
 0xbb5   :  { %8008 = vadd.xlane.f32.xlu1 %v8007_v44 }
 0xbb7   :  { %16890 = vmatmul.mubr.msk.bf16.vlgmr.msra.gmra.mrb[20].mxu0 %vm245_vm2, %v8100_v14  ;;  %v8472_v14 = vsel %vm3668_vm4, %v20631_v16, 0  ;;  %v7869_v16 = vsub.f32 %v20721_v46, %v20862_v5  ;;  %v8520_v46 = vsel %vm3668_vm4, %v20629_v22, 0 }
 0xbb8   :  { %v7952_v33 = vpop.xlane.xlu1 %7951  ;;  %16900 = vmatpush3.bf16.msra.mxu0 %v8328_v63  ;;  %16901 = vmatprep.mubr.msk.bf16.mxu0 %vm18351_vm0, %v23163_v7 }
 0xbb9   :  { %17871 = vrcp.f32 %v7952_v33  ;;  %8029 = vadd.xlane.f32.xlu1 %v8028_v13  ;;  %16896 = vmatmul.mubr.msk.bf16.vlgmr.msra.gmra.mrb[20].mxu1 %vm245_vm2, %v8101_v30  ;;  %v8568_v30 = vsel %vm3668_vm4, %v20643_v8, 0 }
 0xbba   :  { %16906 = vmatpush3.bf16.msra.mxu1 %v8376_v54  ;;  %16911 = vmatprep.subr.bf16.mxu0 %v23163_v7  ;;  %17873 = vpow2.f32 %v7926_v47  ;;  %v7928_v54 = vmul.f32 1.442695, %v7869_v16  ;;  %v23243_v16 = vld [vmem:[#allocation63_spill] sm:$0xff] }
 0xbbb   :  { %16907 = vmatprep.mubr.msk.bf16.mxu1 %vm18351_vm0, %v23163_v7  ;;  %16917 = vmatprep.subr.bf16.mxu1 %v23163_v7  ;;  %17875 = vpow2.f32 %v7930_v26 }
 0xbbd   :  { %8014 = vadd.xlane.f32.xlu1 %v8013_v35 }
 0xbc3   :  { %v17872_v57 = vpop.eup %17871 }
 0xbc4   :  { %v8070_v25 = vmul.f32 %v17872_v57, %v20767_v45  ;;  %v7955_v34 = vpop.xlane.xlu0 %7954  ;;  %v20930_v10 = vpop.eup %17873 }
 0xbc5   :  { %17877 = vrcp.f32 %v7955_v34  ;;  %v8016_v45 = vsel %vm245_vm2, %v20930_v10, 0.0  ;;  %v20937_v24 = vpop.eup %17875 }
 0xbc6   :  { %v8102_v38 = vpack.c.bf16 %v8070_v25, %v8070_v25  ;;  %v7964_v43 = vpop.xlane.xlu1 %7963  ;;  %v8022_v58 = vsel %vm245_vm2, %v20937_v24, 0.0 }
 0xbc8   :  { %v7961_v6 = vpop.xlane.xlu0 %7960  ;;  %16902 = vmatmul.mubr.msk.bf16.vlgmr.msra.gmra.mrb[24].mxu0 %vm245_vm2, %v8102_v38 }
 0xbc9   :  { %17879 = vrcp.f32 %v7961_v6  ;;  %16912 = vmatpush3.bf16.msra.mxu0 %v8424_v17  ;;  %16913 = vmatprep.mubr.msk.bf16.mxu0 %vm18351_vm0, %v23163_v7 }
 0xbca   :  { %16923 = vmatprep.subr.bf16.mxu0 %v23163_v7 }
 0xbcc   :  { %v7967_v31 = vpop.xlane.xlu0 %7966 }
 0xbcd   :  { %8017 = vadd.xlane.f32.xlu0 %v8016_v45  ;;  %17881 = vrcp.f32 %v7967_v31 }
 0xbce   :  { %v7970_v9 = vpop.xlane.xlu1 %7969  ;;  %9426 = vrot.lane.b32.xlu1 %v20321_v27, %s18336_s25 }
 0xbcf   :  { %v17878_v61 = vpop.eup %17877 }
 0xbd0   :  { %v8071_v11 = vmul.f32 %v17878_v61, %v20776_v3  ;;  %v7973_v3 = vpop.xlane.xlu0 %7972  ;;  %v8808_v61 = vsel %vm3668_vm4, %v20659_v23, 0 }
 0xbd1   :  { %8023 = vadd.xlane.f32.xlu0 %v8022_v58 }
 0xbd2   :  { %v8103_v42 = vpack.c.bf16 %v8071_v11, %v8071_v11  ;;  %v7958_v40 = vpop.xlane.xlu1 %7957 }
 0xbd3   :  { %v17880_v44 = vpop.eup %17879  ;;  %17883 = vrcp.f32 %v7958_v40 }
 0xbd4   :  { %16908 = vmatmul.mubr.msk.bf16.vlgmr.msra.gmra.mrb[24].mxu1 %vm245_vm2, %v8103_v42  ;;  %v8073_v27 = vmul.f32 %v17880_v44, %v20785_v52  ;;  %17885 = vrcp.f32 %v7964_v43  ;;  %v23241_v44 = vld [vmem:[#allocation61_spill] sm:$0xff] }
 0xbd5   :  { %16918 = vmatpush3.bf16.msra.mxu1 %v8472_v14  ;;  %16919 = vmatprep.mubr.msk.bf16.mxu1 %vm18351_vm0, %v23163_v7  ;;  %17887 = vrcp.f32 %v7973_v3  ;;  %v23242_v14 = vld [vmem:[#allocation62_spill] sm:$0xff] }
 0xbd6   :  { %16929 = vmatprep.subr.bf16.mxu1 %v23163_v7  ;;  %v8105_v12 = vpack.c.bf16 %v8073_v27, %v8073_v27  ;;  %17889 = vrcp.f32 %v7970_v9  ;;  %v8904_v27 = vsel %vm3668_vm4, %v23242_v14, 0  ;;  %v23255_v14 = vld [vmem:[#allocation67_spill] sm:$0xff] }
 0xbd7   :  { %v17882_v63 = vpop.eup %17881  ;;  %17891 = vpow2.f32 %v7928_v54 }
 0xbd8   :  { %v8075_v52 = vmul.f32 %v17882_v63, %v20789_v59  ;;  %v8664_v59 = vsel %vm3668_vm4, %v20655_v4, 0 }
 0xbda   :  { %v8107_v5 = vpack.c.bf16 %v8075_v52, %v8075_v52 }
 0xbdc   :  { %16920 = vmatmul.mubr.msk.bf16.vlgmr.msra.gmra.mrb[28].mxu1 %vm245_vm2, %v8105_v12 }
 0xbdd   :  { %v17884_v33 = vpop.eup %17883  ;;  %16930 = vmatpush3.bf16.msra.mxu1 %v8568_v30  ;;  %16931 = vmatprep.mubr.msk.bf16.mxu1 %vm18351_vm0, %v23163_v7 }
 0xbde   :  { %v8072_v13 = vmul.f32 %v17884_v33, %v20801_v32  ;;  %16941 = vmatprep.subr.bf16.mxu1 %v23163_v7  ;;  %v17886_v8 = vpop.eup %17885  ;;  %v9000_v33 = vsel %vm3668_vm4, %v23243_v16, 0 }
 0xbdf   :  { %v17888_v60 = vpop.eup %17887  ;;  %v8074_v32 = vmul.f32 %v17886_v8, %v20781_v1  ;;  %v8616_v1 = vsel %vm3668_vm4, %v20635_v0, 0  ;;  %v7871_v0 = vsub.f32 %v20731_v18, %v20868_v28  ;;  %v7873_v18 = vsub.f32 %v20741_v19, %v20871_v55  ;;  %v23244_v8 = vld [vmem:[#allocation65_spill] sm:$0xff] }
 0xbe0   :  { %v8104_v47 = vpack.c.bf16 %v8072_v13, %v8072_v13  ;;  %v8077_v22 = vmul.f32 %v17888_v60, %v20797_v56  ;;  %v17890_v4 = vpop.eup %17889  ;;  %v8760_v56 = vsel %vm3668_vm4, %v20703_v39, 0 }
 0xbe1   :  { %v8106_v35 = vpack.c.bf16 %v8074_v32, %v8074_v32  ;;  %v8076_v57 = vmul.f32 %v17890_v4, %v20793_v41  ;;  %v8712_v41 = vsel %vm3668_vm4, %v20647_v20, 0  ;;  %v7932_v17 = vmul.f32 1.442695, %v7871_v0  ;;  %v23246_v4 = vld [vmem:[#allocation70_spill] sm:$0xff] }
 0xbe2   :  { %16914 = vmatmul.mubr.msk.bf16.vlgmr.msra.gmra.mrb[28].mxu0 %vm245_vm2, %v8104_v47  ;;  %v8109_v26 = vpack.c.bf16 %v8077_v22, %v8077_v22  ;;  %v7936_v28 = vmul.f32 1.442695, %v7873_v18 }
 0xbe3   :  { %16924 = vmatpush3.bf16.msra.mxu0 %v8520_v46  ;;  %16925 = vmatprep.mubr.msk.bf16.mxu0 %vm18351_vm0, %v23163_v7  ;;  %v8108_v25 = vpack.c.bf16 %v8076_v57, %v8076_v57  ;;  %v9096_v46 = vsel %vm3668_vm4, %v23244_v8, 0 }
 0xbe4   :  { %16932 = vmatmul.mubr.msk.bf16.vlgmr.msra.gmra.mrb[32].mxu1 %vm245_vm2, %v8107_v5  ;;  %16935 = vmatprep.subr.bf16.mxu0 %v23163_v7 }
 0xbe5   :  { %16942 = vmatpush3.bf16.msra.mxu1 %v8664_v59  ;;  %16943 = vmatprep.mubr.msk.bf16.mxu1 %vm18351_vm0, %v23163_v7 }
 0xbe6   :  { %16953 = vmatprep.subr.bf16.mxu1 %v23163_v7 }
 0xbe7   :  { %9474 = vrot.lane.b32.xlu0 %v20327_v62, %s18336_s25  ;;  %v20989_v62 = vpop.eup %17891 }
 0xbe8   :  { %v8019_v39 = vsel %vm245_vm2, %v20989_v62, 0.0 }
 0xbea   :  { %16926 = vmatmul.mubr.msk.bf16.vlgmr.msra.gmra.mrb[32].mxu0 %vm245_vm2, %v8106_v35  ;;  %v23245_v35 = vld [vmem:[#allocation60_spill] sm:$0xff] }
 0xbeb   :  { %16936 = vmatpush3.bf16.msra.mxu0 %v8616_v1  ;;  %16937 = vmatprep.mubr.msk.bf16.mxu0 %vm18351_vm0, %v23163_v7  ;;  %v9192_v1 = vsel %vm3668_vm4, %v23246_v4, 0 }
 0xbec   :  { %16944 = vmatmul.mubr.msk.bf16.vlgmr.msra.gmra.mrb[36].mxu1 %vm245_vm2, %v8109_v26  ;;  %16947 = vmatprep.subr.bf16.mxu0 %v23163_v7  ;;  %v23247_v26 = vld [vmem:[#allocation71_spill] sm:$0xff] }
 0xbed   :  { %16954 = vmatpush3.bf16.msra.mxu1 %v8760_v56  ;;  %16955 = vmatprep.mubr.msk.bf16.mxu1 %vm18351_vm0, %v23163_v7 }
 0xbee   :  { %16965 = vmatprep.subr.bf16.mxu1 %v23163_v7 }
 0xbf1   :  { %v7976_v34 = vpop.xlane.xlu1 %7975 }
 0xbf2   :  { %16938 = vmatmul.mubr.msk.bf16.vlgmr.msra.gmra.mrb[36].mxu0 %vm245_vm2, %v8108_v25  ;;  %17893 = vrcp.f32 %v7976_v34  ;;  %8020 = vadd.xlane.f32.xlu1 %v8019_v39  ;;  %v23248_v25 = vld [vmem:[#allocation64_spill] sm:$0xff] }
 0xbf3   :  { %16948 = vmatpush3.bf16.msra.mxu0 %v8712_v41  ;;  %v7979_v38 = vpop.xlane.xlu0 %7978  ;;  %16949 = vmatprep.mubr.msk.bf16.mxu0 %vm18351_vm0, %v23163_v7  ;;  %v8952_v34 = vsel %vm3668_vm4, %v23248_v25, 0  ;;  %v23249_v39 = vld [vmem:[#allocation72_spill] sm:$0xff] }
 0xbf4   :  { %17895 = vrcp.f32 %v7979_v38  ;;  %16959 = vmatprep.subr.bf16.mxu0 %v23163_v7 }
 0xbf5   :  { %17897 = vpow2.f32 %v7932_v17 }
 0xbf9   :  { %v7982_v6 = vpop.xlane.xlu1 %7981 }
 0xbfa   :  { %17899 = vrcp.f32 %v7982_v6 }
 0xbfb   :  { %17901 = vpow2.f32 %v7936_v28  ;;  %v23250_v28 = vld [vmem:[#allocation69_spill] sm:$0xff] }
 0xbfc   :  { %v17894_v20 = vpop.eup %17893  ;;  %v9288_v6 = vsel %vm3668_vm4, %v23250_v28, 0 }
 0xbfd   :  { %v8078_v43 = vmul.f32 %v17894_v20, %v20808_v51  ;;  %v8856_v51 = vsel %vm3668_vm4, %v20671_v53, 0  ;;  %v23251_v20 = vld [vmem:[#allocation73_spill] sm:$0xff] }
 0xbfe   :  { %v17896_v45 = vpop.eup %17895 }
 0xbff   :  { %v8110_v31 = vpack.c.bf16 %v8078_v43, %v8078_v43  ;;  %v8079_v9 = vmul.f32 %v17896_v45, %v20812_v15  ;;  %v21009_v55 = vpop.eup %17897  ;;  %v23240_v15 = vld [vmem:[#allocation59_spill] sm:$0xff] }
 0xc00   :  { %v8025_v42 = vsel %vm245_vm2, %v21009_v55, 0.0 }
 0xc01   :  { %v8111_v11 = vpack.c.bf16 %v8079_v9, %v8079_v9  ;;  %16950 = vmatmul.mubr.msk.bf16.vlgmr.msra.gmra.mrb[40].mxu0 %vm245_vm2, %v8110_v31  ;;  %v7988_v19 = vpop.xlane.xlu1 %7987  ;;  %v23252_v9 = vld [vmem:[#allocation66_spill] sm:$0xff] }
 0xc02   :  { %16960 = vmatpush3.bf16.msra.mxu0 %v8808_v61  ;;  %17903 = vrcp.f32 %v7988_v19  ;;  %16961 = vmatprep.mubr.msk.bf16.mxu0 %vm18351_vm0, %v23163_v7  ;;  %v9048_v61 = vsel %vm3668_vm4, %v23252_v9, 0 }
 0xc03   :  { %16956 = vmatmul.mubr.msk.bf16.vlgmr.msra.gmra.mrb[40].mxu1 %vm245_vm2, %v8111_v11  ;;  %9522 = vrot.lane.b32.xlu1 %v23240_v15, %s18336_s25  ;;  %v23253_v11 = vld [vmem:[#allocation74_spill] sm:$0xff] }
 0xc04   :  { %v17900_v23 = vpop.eup %17899  ;;  %16966 = vmatpush3.bf16.msra.mxu1 %v8856_v51  ;;  %16971 = vmatprep.subr.bf16.mxu0 %v23163_v7 }
 0xc05   :  { %v8080_v58 = vmul.f32 %v17900_v23, %v20817_v29  ;;  %16967 = vmatprep.mubr.msk.bf16.mxu1 %vm18351_vm0, %v23163_v7  ;;  %16977 = vmatprep.subr.bf16.mxu1 %v23163_v7  ;;  %v21025_v53 = vpop.eup %17901 }
 0xc06   :  { %8026 = vadd.xlane.f32.xlu0 %v8025_v42  ;;  %v8031_v3 = vsel %vm245_vm2, %v21025_v53, 0.0  ;;  %v23254_v42 = vld [vmem:[#allocation75_spill] sm:$0xff] }
 0xc07   :  { %v8112_v40 = vpack.c.bf16 %v8080_v58, %v8080_v58  ;;  %9618 = vrot.lane.b32.xlu1 %v23241_v44, %s18336_s25 }
 0xc09   :  { %16962 = vmatmul.mubr.msk.bf16.vlgmr.msra.gmra.mrb[44].mxu0 %vm245_vm2, %v8112_v40  ;;  %v7994_v29 = vpop.xlane.xlu1 %7993 }
 0xc0a   :  { %16972 = vmatpush3.bf16.msra.mxu0 %v8904_v27  ;;  %17905 = vrcp.f32 %v7994_v29  ;;  %8032 = vadd.xlane.f32.xlu0 %v8031_v3  ;;  %v9144_v27 = vsel %vm3668_vm4, %v23255_v14, 0 }
 0xc0b   :  { %16973 = vmatprep.mubr.msk.bf16.mxu0 %vm18351_vm0, %v23163_v7  ;;  %16983 = vmatprep.subr.bf16.mxu0 %v23163_v7 }
 0xc0c   :  { %v17904_v12 = vpop.eup %17903 }
 0xc0d   :  { %v8082_v63 = vmul.f32 %v17904_v12, %v20822_v48  ;;  %v9379_v51 = vpop.permute.xlu1 %9378 }
 0xc0e   :  { %v9384_v58 = vsel %vm3668_vm4, %v9379_v51, 0 }
 0xc0f   :  { %v8114_v30 = vpack.c.bf16 %v8082_v63, %v8082_v63 }
 0xc11   :  { %v8000_v52 = vpop.xlane.xlu0 %7999  ;;  %16974 = vmatmul.mubr.msk.bf16.vlgmr.msra.gmra.mrb[48].mxu0 %vm245_vm2, %v8114_v30 }
 0xc12   :  { %17907 = vrcp.f32 %v8000_v52  ;;  %16984 = vmatpush3.bf16.msra.mxu0 %v9000_v33  ;;  %16985 = vmatprep.mubr.msk.bf16.mxu0 %vm18351_vm0, %v23163_v7 }
 0xc13   :  { %16995 = vmatprep.subr.bf16.mxu0 %v23163_v7 }
 0xc14   :  { %v17906_v13 = vpop.eup %17905 }
 0xc15   :  { %v8084_v54 = vmul.f32 %v17906_v13, %v20828_v37  ;;  %v7985_v47 = vpop.xlane.xlu0 %7984  ;;  %v23256_v13 = vld [vmem:[#allocation68_spill] sm:$0xff] }
 0xc16   :  { %17909 = vrcp.f32 %v7985_v47 }
 0xc17   :  { %v8116_v48 = vpack.c.bf16 %v8084_v54, %v8084_v54  ;;  %v9240_v54 = vsel %vm3668_vm4, %v23256_v13, 0 }
 0xc19   :  { %v8006_v5 = vpop.xlane.xlu0 %8005  ;;  %16986 = vmatmul.mubr.msk.bf16.vlgmr.msra.gmra.mrb[52].mxu0 %vm245_vm2, %v8116_v48 }
 0xc1a   :  { %17911 = vrcp.f32 %v8006_v5  ;;  %16996 = vmatpush3.bf16.msra.mxu0 %v9096_v46  ;;  %16997 = vmatprep.mubr.msk.bf16.mxu0 %vm18351_vm0, %v23163_v7 }
 0xc1b   :  { %17007 = vmatprep.subr.bf16.mxu0 %v23163_v7 }
 0xc1c   :  { %v17908_v60 = vpop.eup %17907 }
 0xc1d   :  { %v8086_v59 = vmul.f32 %v17908_v60, %v20834_v49  ;;  %v7991_v37 = vpop.xlane.xlu0 %7990 }
 0xc1e   :  { %17913 = vrcp.f32 %v7991_v37 }
 0xc1f   :  { %v8118_v32 = vpack.c.bf16 %v8086_v59, %v8086_v59 }
 0xc20   :  { %v17910_v22 = vpop.eup %17909  ;;  %9570 = vrot.lane.b32.xlu0 %v23245_v35, %s18336_s25 }
 0xc21   :  { %v8081_v56 = vmul.f32 %v17910_v22, %v23247_v26  ;;  %v8012_v57 = vpop.xlane.xlu0 %8011  ;;  %16998 = vmatmul.mubr.msk.bf16.vlgmr.msra.gmra.mrb[56].mxu0 %vm245_vm2, %v8118_v32 }
 0xc22   :  { %17915 = vrcp.f32 %v8012_v57  ;;  %17008 = vmatpush3.bf16.msra.mxu0 %v9192_v1  ;;  %17009 = vmatprep.mubr.msk.bf16.mxu0 %vm18351_vm0, %v23163_v7 }
 0xc23   :  { %v8113_v49 = vpack.c.bf16 %v8081_v56, %v8081_v56  ;;  %17019 = vmatprep.subr.bf16.mxu0 %v23163_v7 }
 0xc24   :  { %v17912_v0 = vpop.eup %17911 }
 0xc25   :  { %v8088_v41 = vmul.f32 %v17912_v0, %v23249_v39  ;;  %16968 = vmatmul.mubr.msk.bf16.vlgmr.msra.gmra.mrb[44].mxu1 %vm245_vm2, %v8113_v49  ;;  %v7997_v38 = vpop.xlane.xlu0 %7996 }
 0xc26   :  { %16978 = vmatpush3.bf16.msra.mxu1 %v8952_v34  ;;  %17917 = vrcp.f32 %v7997_v38  ;;  %16979 = vmatprep.mubr.msk.bf16.mxu1 %vm18351_vm0, %v23163_v7 }
 0xc27   :  { %v8120_v17 = vpack.c.bf16 %v8088_v41, %v8088_v41  ;;  %16989 = vmatprep.subr.bf16.mxu1 %v23163_v7 }
 0xc28   :  { %v17914_v18 = vpop.eup %17913 }
 0xc29   :  { %v8083_v43 = vmul.f32 %v17914_v18, %v23251_v20  ;;  %17010 = vmatmul.mubr.msk.bf16.vlgmr.msra.gmra.mrb[60].mxu0 %vm245_vm2, %v8120_v17  ;;  %v9331_v48 = vpop.permute.xlu0 %9330 }
 0xc2a   :  { %17020 = vmatpush3.bf16.msra.mxu0 %v9288_v6  ;;  %17021 = vmatprep.mubr.msk.bf16.mxu0 %vm18351_vm0, %v23163_v7  ;;  %v9336_v46 = vsel %vm3668_vm4, %v9331_v48, 0 }
 0xc2b   :  { %v8115_v45 = vpack.c.bf16 %v8083_v43, %v8083_v43  ;;  %17031 = vmatprep.subr.bf16.mxu0 %v23163_v7 }
 0xc2c   :  { %v17916_v31 = vpop.eup %17915 }
 0xc2d   :  { %v8090_v19 = vmul.f32 %v17916_v31, %v23253_v11  ;;  %16980 = vmatmul.mubr.msk.bf16.vlgmr.msra.gmra.mrb[48].mxu1 %vm245_vm2, %v8115_v45 }
 0xc2e   :  { %16990 = vmatpush3.bf16.msra.mxu1 %v9048_v61  ;;  %16991 = vmatprep.mubr.msk.bf16.mxu1 %vm18351_vm0, %v23163_v7 }
 0xc2f   :  { %v8122_v15 = vpack.c.bf16 %v8090_v19, %v8090_v19  ;;  %17001 = vmatprep.subr.bf16.mxu1 %v23163_v7 }
 0xc30   :  { %v17918_v23 = vpop.eup %17917 }
 0xc31   :  { %v8085_v40 = vmul.f32 %v17918_v23, %v23254_v42  ;;  %17022 = vmatmul.mubr.msk.bf16.vlgmr.msra.gmra.mrb[64].mxu0 %vm245_vm2, %v8122_v15 }
 0xc32   :  { %17032 = vmatpush3.bf16.msra.mxu0 %v9384_v58  ;;  %17033 = vmatprep.mubr.msk.bf16.mxu0 %vm18351_vm0, %v23163_v7 }
 0xc33   :  { %v8117_v44 = vpack.c.bf16 %v8085_v40, %v8085_v40  ;;  %17043 = vmatprep.subr.bf16.mxu0 %v23163_v7 }
 0xc35   :  { %16992 = vmatmul.mubr.msk.bf16.vlgmr.msra.gmra.mrb[52].mxu1 %vm245_vm2, %v8117_v44  ;;  %v17667_v44 = vld [vmem:[#allocation14] sm:$0xff]  }
 0xc36   :  { %17002 = vmatpush3.bf16.msra.mxu1 %v9144_v27  ;;  %17003 = vmatprep.mubr.msk.bf16.mxu1 %vm18351_vm0, %v23163_v7 }
 0xc37   :  { %17013 = vmatprep.subr.bf16.mxu1 %v23163_v7 }
 0xc3e   :  { %v8003_v29 = vpop.xlane.xlu1 %8002 }
 0xc3f   :  { %17919 = vrcp.f32 %v8003_v29 }
 0xc42   :  { %v8009_v3 = vpop.xlane.xlu1 %8008 }
 0xc43   :  { %17921 = vrcp.f32 %v8009_v3 }
 0xc46   :  { %v8030_v12 = vpop.xlane.xlu1 %8029 }
 0xc49   :  { %v17920_v63 = vpop.eup %17919 }
 0xc4a   :  { %v8087_v30 = vmul.f32 %v17920_v63, %v20876_v2  ;;  %v8015_v16 = vpop.xlane.xlu1 %8014 }
 0xc4b   :  { %17923 = vrcp.f32 %v8015_v16 }
 0xc4c   :  { %v8119_v33 = vpack.c.bf16 %v8087_v30, %v8087_v30 }
 0xc4d   :  { %v17922_v52 = vpop.eup %17921 }
 0xc4e   :  { %17004 = vmatmul.mubr.msk.bf16.vlgmr.msra.gmra.mrb[56].mxu1 %vm245_vm2, %v8119_v33  ;;  %v8089_v47 = vmul.f32 %v17922_v52, %v20882_v50  ;;  %v9427_v59 = vpop.permute.xlu1 %9426  ;;  %v17668_v33 = vld [vmem:[#allocation14 + $0x8] sm:$0xff]  }
 0xc4f   :  { %17014 = vmatpush3.bf16.msra.mxu1 %v9240_v54  ;;  %17015 = vmatprep.mubr.msk.bf16.mxu1 %vm18351_vm0, %v23163_v7  ;;  %v9432_v37 = vsel %vm3668_vm4, %v9427_v59, 0 }
 0xc50   :  { %17025 = vmatprep.subr.bf16.mxu1 %v23163_v7  ;;  %v8121_v8 = vpack.c.bf16 %v8089_v47, %v8089_v47 }
 0xc55   :  { %v17924_v2 = vpop.eup %17923 }
 0xc56   :  { %17016 = vmatmul.mubr.msk.bf16.vlgmr.msra.gmra.mrb[60].mxu1 %vm245_vm2, %v8121_v8  ;;  %v8091_v5 = vmul.f32 %v17924_v2, %v20911_v21 }
 0xc57   :  { %17026 = vmatpush3.bf16.msra.mxu1 %v9336_v46  ;;  %17027 = vmatprep.mubr.msk.bf16.mxu1 %vm18351_vm0, %v23163_v7 }
 0xc58   :  { %17037 = vmatprep.subr.bf16.mxu1 %v23163_v7  ;;  %v8123_v50 = vpack.c.bf16 %v8091_v5, %v8091_v5 }
 0xc5a   :  { %v8018_v60 = vpop.xlane.xlu0 %8017 }
 0xc5b   :  { %17925 = vrcp.f32 %v8018_v60 }
 0xc5e   :  { %v8024_v32 = vpop.xlane.xlu0 %8023  ;;  %17028 = vmatmul.mubr.msk.bf16.vlgmr.msra.gmra.mrb[64].mxu1 %vm245_vm2, %v8123_v50 }
 0xc5f   :  { %17927 = vrcp.f32 %v8024_v32  ;;  %17038 = vmatpush3.bf16.msra.mxu1 %v9432_v37  ;;  %17039 = vmatprep.mubr.msk.bf16.mxu1 %vm18351_vm0, %v23163_v7 }
 0xc60   :  { %17049 = vmatprep.subr.bf16.mxu1 %v23163_v7 }
 0xc62   :  { %v9475_v35 = vpop.permute.xlu0 %9474 }
 0xc63   :  { %v9480_v26 = vsel %vm3668_vm4, %v9475_v35, 0 }
 0xc65   :  { %v17926_v22 = vpop.eup %17925 }
 0xc66   :  { %v8092_v21 = vmul.f32 %v17926_v22, %v20930_v10 }
 0xc68   :  { %v8124_v4 = vpack.c.bf16 %v8092_v21, %v8092_v21 }
 0xc69   :  { %v17928_v1 = vpop.eup %17927 }
 0xc6a   :  { %17034 = vmatmul.mubr.msk.bf16.vlgmr.msra.gmra.mrb[68].mxu0 %vm245_vm2, %v8124_v4  ;;  %v8094_v56 = vmul.f32 %v17928_v1, %v20937_v24 }
 0xc6b   :  { %17044 = vmatpush3.bf16.msra.mxu0 %v9480_v26  ;;  %17045 = vmatprep.mubr.msk.bf16.mxu0 %vm18351_vm0, %v23163_v7 }
 0xc6c   :  { %17055 = vmatprep.subr.bf16.mxu0 %v23163_v7  ;;  %v8126_v57 = vpack.c.bf16 %v8094_v56, %v8094_v56 }
 0xc72   :  { %17046 = vmatmul.mubr.msk.bf16.vlgmr.msra.gmra.mrb[72].mxu0 %vm245_vm2, %v8126_v57 }
 0xc73   :  { %17057 = vmatprep.mubr.msk.bf16.mxu0 %vm18351_vm0, %v23163_v7 }
 0xc7f   :  { %v8021_v10 = vpop.xlane.xlu1 %8020 }
 0xc80   :  { %17929 = vrcp.f32 %v8021_v10 }
 0xc81   :  { %17931 = vrcp.f32 %v8030_v12 }
 0xc82   :  { %v8172_v49 = vpop.f32.mrb[16].mxu0 }
 0xc83   :  { %v16879_v0 = vpop.f32.mrb[17].mxu0  ;;  %v9523_v20 = vpop.permute.xlu1 %9522 }
 0xc84   :  { %v8175_v25 = vpop.f32.mrb[18].mxu0  ;;  %v8220_v34 = vpop.f32.mrb[16].mxu1  ;;  %v9528_v51 = vsel %vm3668_vm4, %v9523_v20, 0 }
 0xc85   :  { %v9666_v39 = vpack.c.bf16 %v8220_v34, %v8172_v49  ;;  %v16880_v41 = vpop.f32.mrb[19].mxu0  ;;  %v16885_v38 = vpop.f32.mrb[17].mxu1 }
 0xc86   :  { %v8223_v17 = vpop.f32.mrb[18].mxu1 }
 0xc87   :  { %v16886_v18 = vpop.f32.mrb[19].mxu1  ;;  %v9619_v13 = vpop.permute.xlu1 %9618 }
 0xc88   :  { %v9624_v47 = vsel %vm3668_vm4, %v9619_v13, 0 }
 0xc8a   :  { %v17930_v24 = vpop.eup %17929  ;;  %v8268_v6 = vpop.f32.mrb[20].mxu0 }
 0xc8b   :  { %v8093_v28 = vmul.f32 %v17930_v24, %v20989_v62  ;;  %v16891_v43 = vpop.f32.mrb[21].mxu0  ;;  %v17932_v58 = vpop.eup %17931 }
 0xc8c   :  { %v8271_v31 = vpop.f32.mrb[22].mxu0  ;;  %v8316_v9 = vpop.f32.mrb[20].mxu1  ;;  %v8096_v40 = vmul.f32 %v17932_v58, %v20902_v36 }
 0xc8d   :  { %v8125_v45 = vpack.c.bf16 %v8093_v28, %v8093_v28  ;;  %v9667_v61 = vpack.c.bf16 %v8316_v9, %v8268_v6  ;;  %v16892_v11 = vpop.f32.mrb[23].mxu0  ;;  %v16897_v19 = vpop.f32.mrb[21].mxu1 }
 0xc8e   :  { %v8319_v15 = vpop.f32.mrb[22].mxu1  ;;  %v8128_v30 = vpack.c.bf16 %v8096_v40, %v8096_v40 }
 0xc8f   :  { %17040 = vmatmul.mubr.msk.bf16.vlgmr.msra.gmra.mrb[68].mxu1 %vm245_vm2, %v8125_v45  ;;  %v16898_v23 = vpop.f32.mrb[23].mxu1 }
 0xc90   :  { %17050 = vmatpush3.bf16.msra.mxu1 %v9528_v51  ;;  %17051 = vmatprep.mubr.msk.bf16.mxu1 %vm18351_vm0, %v23163_v7 }
 0xc91   :  { %17061 = vmatprep.subr.bf16.mxu1 %v23163_v7 }
 0xc93   :  { %v8027_v62 = vpop.xlane.xlu0 %8026 }
 0xc94   :  { %17933 = vrcp.f32 %v8027_v62 }
 0xc97   :  { %v8033_v42 = vpop.xlane.xlu0 %8032 }
 0xc98   :  { %17935 = vrcp.f32 %v8033_v42 }
 0xc9b   :  { %v9571_v14 = vpop.permute.xlu0 %9570  ;;  %v8364_v27 = vpop.f32.mrb[24].mxu0 }
 0xc9c   :  { %v9576_v29 = vsel %vm3668_vm4, %v9571_v14, 0  ;;  %v16903_v3 = vpop.f32.mrb[25].mxu0 }
 0xc9d   :  { %v8367_v12 = vpop.f32.mrb[26].mxu0  ;;  %17056 = vmatpush3.bf16.msra.mxu0 %v9576_v29 }
 0xc9e   :  { %v17934_v63 = vpop.eup %17933  ;;  %v16904_v16 = vpop.f32.mrb[27].mxu0  ;;  %17067 = vmatprep.subr.bf16.mxu0 %v17667_v44 }
 0xc9f   :  { %v8095_v52 = vmul.f32 %v17934_v63, %v21009_v55 }
 0xca0   :  { %17058 = vmatmul.mubr.msk.bf16.vlgmr.msra.gmra.mrb[76].mxu0 %vm245_vm2, %v8128_v30 }
 0xca1   :  { %v8127_v54 = vpack.c.bf16 %v8095_v52, %v8095_v52  ;;  %17068 = vmatpush3.bf16.msra.mxu0 %v17667_v44  ;;  %17071 = vmatprep.mubr.msk.bf16.mxu0 %vm1437_vm3, %v9666_v39 }
 0xca2   :  { %v17936_v36 = vpop.eup %17935  ;;  %17069 = vmatprep.subr.bf16.mxu0 %v17668_v33 }
 0xca3   :  { %17052 = vmatmul.mubr.msk.bf16.vlgmr.msra.gmra.mrb[72].mxu1 %vm245_vm2, %v8127_v54  ;;  %v8097_v48 = vmul.f32 %v17936_v36, %v21025_v53 }
 0xca4   :  { %17062 = vmatpush3.bf16.msra.mxu1 %v9624_v47  ;;  %17063 = vmatprep.mubr.msk.bf16.mxu1 %vm18351_vm0, %v23163_v7 }
 0xca5   :  { %17070 = vmatpush3.bf16.msra.mxu0 %v17668_v33  ;;  %v8129_v46 = vpack.c.bf16 %v8097_v48, %v8097_v48 }
 0xca7   :  { %v8412_v55 = vpop.f32.mrb[24].mxu1 }
 0xca8   :  { %v9668_v8 = vpack.c.bf16 %v8412_v55, %v8364_v27  ;;  %v16909_v2 = vpop.f32.mrb[25].mxu1  ;;  %17072 = vmatmul.mubr.msk.bf16.vlgmr.msra.gmra.mrb[80].mxu0 %vm1437_vm3, %v9667_v61 }
 0xca9   :  { %v8415_v5 = vpop.f32.mrb[26].mxu1 }
 0xcaa   :  { %v16910_v60 = vpop.f32.mrb[27].mxu1  ;;  %17075 = vmatprep.mubr.msk.bf16.mxu0 %vm1437_vm3, %v9668_v8  ;;  %v17669_v8 = vld [vmem:[#allocation15] sm:$0xff]  }
 0xcab   :  { %17064 = vmatmul.mubr.msk.bf16.vlgmr.msra.gmra.mrb[76].mxu1 %vm245_vm2, %v8129_v46  ;;  %17103 = vmatprep.subr.bf16.mxu1 %v17669_v8 }
 0xcac   :  { %17104 = vmatpush3.bf16.msra.mxu1 %v17669_v8 }
 0xcaf   :  { %v8508_v59 = vpop.f32.mrb[28].mxu1 }
 0xcb0   :  { %v16921_v50 = vpop.f32.mrb[29].mxu1 }
 0xcb1   :  { %v8511_v37 = vpop.f32.mrb[30].mxu1 }
 0xcb2   :  { %v16922_v32 = vpop.f32.mrb[31].mxu1 }
 0xcb5   :  { %v8460_v22 = vpop.f32.mrb[28].mxu0 }
 0xcb6   :  { %v9669_v21 = vpack.c.bf16 %v8508_v59, %v8460_v22  ;;  %v16915_v53 = vpop.f32.mrb[29].mxu0  ;;  %v17670_v59 = vld [vmem:[#allocation15 + $0x8] sm:$0xff]  }
 0xcb7   :  { %v8463_v35 = vpop.f32.mrb[30].mxu0  ;;  %v8604_v4 = vpop.f32.mrb[32].mxu1  ;;  %17105 = vmatprep.subr.bf16.mxu1 %v17670_v59 }
 0xcb8   :  { %v16916_v1 = vpop.f32.mrb[31].mxu0  ;;  %17076 = vmatmul.mubr.msk.bf16.gmra.mrb[84].mxu0 %vm1437_vm3, %v9669_v21  ;;  %v16933_v26 = vpop.f32.mrb[33].mxu1  ;;  %17106 = vmatpush3.bf16.msra.mxu1 %v17670_v59 }
 0xcb9   :  { %v8607_v56 = vpop.f32.mrb[34].mxu1 }
 0xcba   :  { %v16934_v57 = vpop.f32.mrb[35].mxu1 }
 0xcbd   :  { %v8556_v10 = vpop.f32.mrb[32].mxu0 }
 0xcbe   :  { %v9670_v49 = vpack.c.bf16 %v8604_v4, %v8556_v10  ;;  %v16927_v0 = vpop.f32.mrb[33].mxu0 }
 0xcbf   :  { %v8559_v25 = vpop.f32.mrb[34].mxu0  ;;  %v8700_v34 = vpop.f32.mrb[36].mxu1 }
 0xcc0   :  { %v16928_v39 = vpop.f32.mrb[35].mxu0  ;;  %17079 = vmatprep.mubr.msk.bf16.mxu0 %vm1437_vm3, %v9670_v49  ;;  %v16945_v41 = vpop.f32.mrb[37].mxu1 }
 0xcc1   :  { %v8703_v38 = vpop.f32.mrb[38].mxu1 }
 0xcc2   :  { %v16946_v17 = vpop.f32.mrb[39].mxu1 }
 0xcc5   :  { %v8652_v18 = vpop.f32.mrb[36].mxu0 }
 0xcc6   :  { %v9671_v24 = vpack.c.bf16 %v8700_v34, %v8652_v18  ;;  %v16939_v28 = vpop.f32.mrb[37].mxu0 }
 0xcc7   :  { %v8655_v6 = vpop.f32.mrb[38].mxu0 }
 0xcc8   :  { %v16940_v20 = vpop.f32.mrb[39].mxu0  ;;  %17080 = vmatmul.mubr.msk.bf16.gmra.mrb[88].mxu0 %vm1437_vm3, %v9671_v24 }
 0xcd4   :  { %v8748_v43 = vpop.f32.mrb[40].mxu0 }
 0xcd5   :  { %v16951_v45 = vpop.f32.mrb[41].mxu0 }
 0xcd6   :  { %v8751_v31 = vpop.f32.mrb[42].mxu0  ;;  %v8796_v9 = vpop.f32.mrb[40].mxu1 }
 0xcd7   :  { %v9672_v61 = vpack.c.bf16 %v8796_v9, %v8748_v43  ;;  %v16952_v11 = vpop.f32.mrb[43].mxu0  ;;  %v16957_v19 = vpop.f32.mrb[41].mxu1 }
 0xcd8   :  { %v8799_v51 = vpop.f32.mrb[42].mxu1 }
 0xcd9   :  { %v16958_v15 = vpop.f32.mrb[43].mxu1  ;;  %17083 = vmatprep.mubr.msk.bf16.mxu0 %vm1437_vm3, %v9672_v61 }
 0xcdc   :  { %v8844_v23 = vpop.f32.mrb[44].mxu0 }
 0xcdd   :  { %v16963_v62 = vpop.f32.mrb[45].mxu0 }
 0xcde   :  { %v8847_v58 = vpop.f32.mrb[46].mxu0  ;;  %v17671_v62 = vld [vmem:[#allocation17] sm:$0xff]  }
 0xcdf   :  { %v16964_v42 = vpop.f32.mrb[47].mxu0  ;;  %17123 = vmatprep.subr.bf16.mxu1 %v17671_v62 }
 0xce4   :  { %v8940_v40 = vpop.f32.mrb[48].mxu0 }
 0xce5   :  { %v16975_v44 = vpop.f32.mrb[49].mxu0 }
 0xce6   :  { %v8943_v14 = vpop.f32.mrb[50].mxu0 }
 0xce7   :  { %v16976_v27 = vpop.f32.mrb[51].mxu0 }
 0xcec   :  { %v9036_v29 = vpop.f32.mrb[52].mxu0 }
 0xced   :  { %v16987_v3 = vpop.f32.mrb[53].mxu0 }
 0xcee   :  { %v9039_v12 = vpop.f32.mrb[54].mxu0 }
 0xcef   :  { %v16988_v63 = vpop.f32.mrb[55].mxu0 }
 0xcf4   :  { %v9132_v30 = vpop.f32.mrb[56].mxu0 }
 0xcf5   :  { %v16999_v16 = vpop.f32.mrb[57].mxu0 }
 0xcf6   :  { %v9135_v33 = vpop.f32.mrb[58].mxu0 }
 0xcf7   :  { %v17000_v52 = vpop.f32.mrb[59].mxu0 }
 0xcf8   :  { %v8892_v13 = vpop.f32.mrb[44].mxu1 }
 0xcf9   :  { %v9673_v54 = vpack.c.bf16 %v8892_v13, %v8844_v23  ;;  %v16969_v36 = vpop.f32.mrb[45].mxu1 }
 0xcfa   :  { %v8895_v47 = vpop.f32.mrb[46].mxu1 }
 0xcfb   :  { %v16970_v48 = vpop.f32.mrb[47].mxu1  ;;  %17084 = vmatmul.mubr.msk.bf16.gmra.mrb[92].mxu0 %vm1437_vm3, %v9673_v54  ;;  %v23257_v47 = vld [vmem:[#allocation47_spill] sm:$0xff] }
 0xcfc   :  { %v9228_v55 = vpop.f32.mrb[60].mxu0 }
 0xcfd   :  { %v17011_v2 = vpop.f32.mrb[61].mxu0 }
 0xcfe   :  { %v9231_v46 = vpop.f32.mrb[62].mxu0 }
 0xcff   :  { %v17012_v5 = vpop.f32.mrb[63].mxu0 }
 0xd00   :  { %v8988_v60 = vpop.f32.mrb[48].mxu1  ;;  %v23259_v5 = vld [vmem:[#allocation50_spill] sm:$0xff] }
 0xd01   :  { %v9674_v50 = vpack.c.bf16 %v8988_v60, %v8940_v40  ;;  %v16981_v37 = vpop.f32.mrb[49].mxu1 }
 0xd02   :  { %v8991_v32 = vpop.f32.mrb[50].mxu1 }
 0xd03   :  { %v16982_v22 = vpop.f32.mrb[51].mxu1  ;;  %17087 = vmatprep.mubr.msk.bf16.mxu0 %vm1437_vm3, %v9674_v50  ;;  %v23260_v50 = vld [vmem:[#allocation44_spill] sm:$0xff] }
 0xd04   :  { %v9324_v21 = vpop.f32.mrb[64].mxu0 }
 0xd05   :  { %v17023_v53 = vpop.f32.mrb[65].mxu0 }
 0xd06   :  { %v9327_v35 = vpop.f32.mrb[66].mxu0 }
 0xd07   :  { %v17024_v4 = vpop.f32.mrb[67].mxu0 }
 0xd08   :  { %v9084_v1 = vpop.f32.mrb[52].mxu1  ;;  %v17672_v4 = vld [vmem:[#allocation17 + $0x8] sm:$0xff]  }
 0xd09   :  { %v9675_v26 = vpack.c.bf16 %v9084_v1, %v9036_v29  ;;  %v16993_v56 = vpop.f32.mrb[53].mxu1 }
 0xd0a   :  { %v9087_v57 = vpop.f32.mrb[54].mxu1 }
 0xd0b   :  { %v16994_v10 = vpop.f32.mrb[55].mxu1  ;;  %17088 = vmatmul.mubr.msk.bf16.gmra.mrb[96].mxu0 %vm1437_vm3, %v9675_v26  ;;  %v23261_v57 = vld [vmem:[#allocation51_spill] sm:$0xff] }
 0xd21   :  { %v9180_v49 = vpop.f32.mrb[56].mxu1 }
 0xd22   :  { %v9676_v0 = vpack.c.bf16 %v9180_v49, %v9132_v30  ;;  %v17005_v25 = vpop.f32.mrb[57].mxu1  ;;  %v23262_v49 = vld [vmem:[#allocation49_spill] sm:$0xff] }
 0xd23   :  { %v9183_v34 = vpop.f32.mrb[58].mxu1 }
 0xd24   :  { %v17006_v39 = vpop.f32.mrb[59].mxu1  ;;  %17091 = vmatprep.mubr.msk.bf16.mxu0 %vm1437_vm3, %v9676_v0  ;;  %v23263_v34 = vld [vmem:[#allocation43_spill] sm:$0xff] }
 0xd29   :  { %v9276_v41 = vpop.f32.mrb[60].mxu1 }
 0xd2a   :  { %v9677_v38 = vpack.c.bf16 %v9276_v41, %v9228_v55  ;;  %v17017_v17 = vpop.f32.mrb[61].mxu1  ;;  %v23258_v55 = vld [vmem:[#allocation45_spill] sm:$0xff]  ;;  %v23264_v41 = vld [vmem:[#allocation46_spill] sm:$0xff] }
 0xd2b   :  { %v9279_v18 = vpop.f32.mrb[62].mxu1 }
 0xd2c   :  { %v17018_v24 = vpop.f32.mrb[63].mxu1  ;;  %17092 = vmatmul.mubr.msk.bf16.gmra.mrb[100].mxu0 %vm1437_vm3, %v9677_v38 }
 0xd31   :  { %v9372_v28 = vpop.f32.mrb[64].mxu1 }
 0xd32   :  { %v9678_v6 = vpack.c.bf16 %v9372_v28, %v9324_v21  ;;  %v17029_v20 = vpop.f32.mrb[65].mxu1 }
 0xd33   :  { %v9375_v43 = vpop.f32.mrb[66].mxu1  ;;  %v23265_v20 = vld [vmem:[#allocation30_spill] sm:$0xff] }
 0xd34   :  { %v17030_v45 = vpop.f32.mrb[67].mxu1  ;;  %17095 = vmatprep.mubr.msk.bf16.mxu0 %vm1437_vm3, %v9678_v6 }
 0xd35   :  { %v23266_v45 = vld [vmem:[#allocation48_spill] sm:$0xff] }
 0xd3d   :  { %v9420_v31 = vpop.f32.mrb[68].mxu0 }
 0xd3e   :  { %v17035_v9 = vpop.f32.mrb[69].mxu0 }
 0xd3f   :  { %v9423_v61 = vpop.f32.mrb[70].mxu0 }
 0xd40   :  { %v17036_v11 = vpop.f32.mrb[71].mxu0  ;;  %v23267_v61 = vld [vmem:[#allocation52_spill] sm:$0xff] }
 0xd45   :  { %v9516_v19 = vpop.f32.mrb[72].mxu0 }
 0xd46   :  { %v17047_v51 = vpop.f32.mrb[73].mxu0 }
 0xd47   :  { %v9519_v15 = vpop.f32.mrb[74].mxu0 }
 0xd48   :  { %v17048_v23 = vpop.f32.mrb[75].mxu0 }
 0xd62   :  { %v9468_v58 = vpop.f32.mrb[68].mxu1 }
 0xd63   :  { %v9679_v42 = vpack.c.bf16 %v9468_v58, %v9420_v31  ;;  %v17041_v40 = vpop.f32.mrb[69].mxu1 }
 0xd64   :  { %v9471_v44 = vpop.f32.mrb[70].mxu1  ;;  %v23269_v40 = vld [vmem:[#allocation34_spill] sm:$0xff] }
 0xd65   :  { %v17042_v14 = vpop.f32.mrb[71].mxu1  ;;  %17096 = vmatmul.mubr.msk.bf16.gmra.mrb[104].mxu0 %vm1437_vm3, %v9679_v42 }
 0xd66   :  { %v23270_v14 = vld [vmem:[#allocation27_spill] sm:$0xff] }
 0xd73   :  { %v9612_v27 = vpop.f32.mrb[76].mxu0 }
 0xd74   :  { %v17059_v29 = vpop.f32.mrb[77].mxu0 }
 0xd75   :  { %v9615_v3 = vpop.f32.mrb[78].mxu0 }
 0xd76   :  { %v9564_v12 = vpop.f32.mrb[72].mxu1  ;;  %v17060_v63 = vpop.f32.mrb[79].mxu0  ;;  %v23271_v3 = vld [vmem:[#allocation28_spill] sm:$0xff] }
 0xd77   :  { %v9680_v30 = vpack.c.bf16 %v9564_v12, %v9516_v19  ;;  %v17053_v16 = vpop.f32.mrb[73].mxu1  ;;  %v23268_v19 = vld [vmem:[#allocation29_spill] sm:$0xff] }
 0xd78   :  { %v9567_v33 = vpop.f32.mrb[74].mxu1  ;;  %v23272_v63 = vld [vmem:[#allocation33_spill] sm:$0xff] }
 0xd79   :  { %v17054_v52 = vpop.f32.mrb[75].mxu1  ;;  %17099 = vmatprep.mubr.msk.bf16.mxu0 %vm1437_vm3, %v9680_v30 }
 0xd7a   :  { %v17673_v52 = vld [vmem:[#allocation18] sm:$0xff]  }
 0xd7b   :  { %v17073_v13 = vpop.f32.mrb[80].mxu0  ;;  %17143 = vmatprep.subr.bf16.mxu0 %v17673_v52 }
 0xd7c   :  { %v9776_v54 = vpop.f32.mrb[81].mxu0  ;;  %v9905_v48 = vadd.f32 %v17073_v13, %v23257_v47  ;;  %17144 = vmatpush3.bf16.msra.mxu0 %v17673_v52 }
 0xd7d   :  { %v17074_v36 = vpop.f32.mrb[82].mxu0  ;;  %v9903_v60 = vadd.f32 %v9776_v54, %v23259_v5  ;;  %v23275_v5 = vld [vmem:[#allocation32_spill] sm:$0xff] }
 0xd7e   :  { %v9906_v8 = vadd.f32 %v17074_v36, %v23258_v55  ;;  %v9660_v2 = vpop.f32.mrb[76].mxu1  ;;  %v9779_v46 = vpop.f32.mrb[83].mxu0  ;;  %v17674_v36 = vld [vmem:[#allocation18 + $0x8] sm:$0xff]  }
 0xd7f   :  { %v9681_v59 = vpack.c.bf16 %v9660_v2, %v9612_v27  ;;  %v9904_v37 = vadd.f32 %v9779_v46, %v23260_v50  ;;  %v17065_v32 = vpop.f32.mrb[77].mxu1  ;;  %17145 = vmatprep.subr.bf16.mxu0 %v17674_v36 }
 0xd80   :  { %v9946_v22 = vpack.c.bf16 %v9906_v8, %v9905_v48  ;;  %v9663_v21 = vpop.f32.mrb[78].mxu1  ;;  %v23273_v48 = vld [vmem:[#allocation38_spill] sm:$0xff]  ;;  %v23274_v8 = vld [vmem:[#allocation31_spill] sm:$0xff]  ;;  %17146 = vmatpush3.bf16.msra.mxu0 %v17674_v36 }
 0xd81   :  { %v9945_v53 = vpack.c.bf16 %v9904_v37, %v9903_v60  ;;  %v17066_v35 = vpop.f32.mrb[79].mxu1  ;;  %17100 = vmatmul.mubr.msk.bf16.gmra.mrb[108].mxu0 %vm1437_vm3, %v9681_v59  ;;  %v23276_v59 = vld [vmem:[#allocation37_spill] sm:$0xff]  ;;  %17227 = vmatprep.subr.bf16.mxu0 %v23163_v7 }
 0xd82   :  { %v23277_v35 = vld [vmem:[#allocation42_spill] sm:$0xff] }
 0xd83   :  { %17107 = vmatprep.mubr.msk.bf16.mxu1 %vm1437_vm3, %v9945_v53 }
 0xd84   :  { %17108 = vmatmul.mubr.msk.bf16.vlgmr.msra.gmra.mrb[80].mxu1 %vm1437_vm3, %v9946_v22 }
 0xd85   :  { %17124 = vmatpush3.bf16.msra.mxu1 %v17671_v62 }
 0xd86   :  { %17125 = vmatprep.subr.bf16.mxu1 %v17672_v4 }
 0xd89   :  { %17126 = vmatpush3.bf16.msra.mxu1 %v17672_v4 }
 0xd8a   :  { %17179 = vmatprep.subr.bf16.mxu1 %v23163_v7 }
 0xd8b   :  { %v17077_v1 = vpop.f32.mrb[84].mxu0 }
 0xd8c   :  { %v9792_v26 = vpop.f32.mrb[85].mxu0  ;;  %v9909_v10 = vadd.f32 %v17077_v1, %v23261_v57  ;;  %v23278_v1 = vld [vmem:[#allocation35_spill] sm:$0xff]  ;;  %v23279_v57 = vld [vmem:[#allocation36_spill] sm:$0xff] }
 0xd8d   :  { %v17078_v56 = vpop.f32.mrb[86].mxu0  ;;  %v9907_v39 = vadd.f32 %v9792_v26, %v23263_v34 }
 0xd8e   :  { %v9910_v0 = vadd.f32 %v17078_v56, %v23262_v49  ;;  %v9795_v25 = vpop.f32.mrb[87].mxu0  ;;  %v23280_v49 = vld [vmem:[#allocation41_spill] sm:$0xff] }
 0xd8f   :  { %v9908_v38 = vadd.f32 %v9795_v25, %v23264_v41 }
 0xd90   :  { %v9948_v17 = vpack.c.bf16 %v9910_v0, %v9909_v10 }
 0xd91   :  { %v9947_v18 = vpack.c.bf16 %v9908_v38, %v9907_v39 }
 0xd93   :  { %17111 = vmatprep.mubr.msk.bf16.mxu1 %vm1437_vm3, %v9947_v18 }
 0xd94   :  { %17112 = vmatmul.mubr.msk.bf16.gmra.mrb[84].mxu1 %vm1437_vm3, %v9948_v17  ;;  %v23281_v17 = vld [vmem:[#allocation54_spill] sm:$0xff] }
 0xd9b   :  { %v17081_v24 = vpop.f32.mrb[88].mxu0 }
 0xd9c   :  { %v9808_v28 = vpop.f32.mrb[89].mxu0  ;;  %v9913_v43 = vadd.f32 %v17081_v24, %v23265_v20  ;;  %v23282_v24 = vld [vmem:[#allocation39_spill] sm:$0xff]  ;;  %v23283_v20 = vld [vmem:[#allocation40_spill] sm:$0xff] }
 0xd9d   :  { %v17082_v6 = vpop.f32.mrb[90].mxu0  ;;  %v9911_v11 = vadd.f32 %v9808_v28, %v23267_v61 }
 0xd9e   :  { %v9914_v31 = vadd.f32 %v17082_v6, %v23266_v45  ;;  %v9811_v9 = vpop.f32.mrb[91].mxu0  ;;  %v23284_v45 = vld [vmem:[#allocation53_spill] sm:$0xff] }
 0xd9f   :  { %v9912_v51 = vadd.f32 %v9811_v9, %v23268_v19 }
 0xda0   :  { %v9950_v15 = vpack.c.bf16 %v9914_v31, %v9913_v43 }
 0xda1   :  { %v9949_v23 = vpack.c.bf16 %v9912_v51, %v9911_v11  ;;  %v21202_v51 = vld [vmem:[%s23008_s12] ss:$0 sm:$0xff] }
 0xda3   :  { %17115 = vmatprep.mubr.msk.bf16.mxu1 %vm1437_vm3, %v9949_v23  ;;  %v23285_v23 = vld [vmem:[#allocation58_spill] sm:$0xff] }
 0xda4   :  { %17116 = vmatmul.mubr.msk.bf16.gmra.mrb[88].mxu1 %vm1437_vm3, %v9950_v15 }
 0xdce   :  { %v17085_v62 = vpop.f32.mrb[92].mxu0 }
 0xdcf   :  { %v9824_v58 = vpop.f32.mrb[93].mxu0  ;;  %v9917_v44 = vadd.f32 %v17085_v62, %v23269_v40 }
 0xdd0   :  { %v17086_v42 = vpop.f32.mrb[94].mxu0  ;;  %v9915_v12 = vadd.f32 %v9824_v58, %v23271_v3  ;;  %v23286_v58 = vld [vmem:[#allocation55_spill] sm:$0xff] }
 0xdd1   :  { %v9918_v27 = vadd.f32 %v17086_v42, %v23270_v14  ;;  %v9827_v29 = vpop.f32.mrb[95].mxu0  ;;  %v23287_v14 = vld [vmem:[#allocation56_spill] sm:$0xff] }
 0xdd2   :  { %v9916_v30 = vadd.f32 %v9827_v29, %v23272_v63  ;;  %v23288_v29 = vld [vmem:[#allocation57_spill] sm:$0xff] }
 0xdd3   :  { %v9952_v16 = vpack.c.bf16 %v9918_v27, %v9917_v44 }
 0xdd4   :  { %v9951_v33 = vpack.c.bf16 %v9916_v30, %v9915_v12 }
 0xdd6   :  { %17119 = vmatprep.mubr.msk.bf16.mxu1 %vm1437_vm3, %v9951_v33 }
 0xdd7   :  { %17120 = vmatmul.mubr.msk.bf16.gmra.mrb[92].mxu1 %vm1437_vm3, %v9952_v16 }
 0xdde   :  { %v17089_v13 = vpop.f32.mrb[96].mxu0 }
 0xddf   :  { %v9840_v54 = vpop.f32.mrb[97].mxu0  ;;  %v9921_v55 = vadd.f32 %v17089_v13, %v23273_v48 }
 0xde0   :  { %v17090_v47 = vpop.f32.mrb[98].mxu0  ;;  %v9919_v60 = vadd.f32 %v9840_v54, %v23275_v5 }
 0xde1   :  { %v9922_v2 = vadd.f32 %v17090_v47, %v23274_v8  ;;  %v9843_v46 = vpop.f32.mrb[99].mxu0 }
 0xde2   :  { %v9920_v50 = vadd.f32 %v9843_v46, %v23276_v59 }
 0xde3   :  { %v9954_v37 = vpack.c.bf16 %v9922_v2, %v9921_v55 }
 0xde4   :  { %v9953_v32 = vpack.c.bf16 %v9920_v50, %v9919_v60 }
 0xde6   :  { %17127 = vmatprep.mubr.msk.bf16.mxu1 %vm1437_vm3, %v9953_v32 }
 0xde7   :  { %17128 = vmatmul.mubr.msk.bf16.vlgmr.msra.gmra.mrb[96].mxu1 %vm1437_vm3, %v9954_v37 }
 0xdff   :  { %v17093_v22 = vpop.f32.mrb[100].mxu0 }
 0xe00   :  { %v9856_v21 = vpop.f32.mrb[101].mxu0  ;;  %v9925_v4 = vadd.f32 %v17093_v22, %v23277_v35 }
 0xe01   :  { %v17094_v53 = vpop.f32.mrb[102].mxu0  ;;  %v9923_v10 = vadd.f32 %v9856_v21, %v23279_v57 }
 0xe02   :  { %v9926_v26 = vadd.f32 %v17094_v53, %v23278_v1  ;;  %v9859_v56 = vpop.f32.mrb[103].mxu0 }
 0xe03   :  { %v9924_v0 = vadd.f32 %v9859_v56, %v23280_v49 }
 0xe04   :  { %v9956_v25 = vpack.c.bf16 %v9926_v26, %v9925_v4 }
 0xe05   :  { %v9955_v34 = vpack.c.bf16 %v9924_v0, %v9923_v10 }
 0xe07   :  { %17131 = vmatprep.mubr.msk.bf16.mxu1 %vm1437_vm3, %v9955_v34 }
 0xe08   :  { %17132 = vmatmul.mubr.msk.bf16.gmra.mrb[100].mxu1 %vm1437_vm3, %v9956_v25 }
 0xe38   :  { %v17097_v39 = vpop.f32.mrb[104].mxu0 }
 0xe39   :  { %v9872_v41 = vpop.f32.mrb[105].mxu0  ;;  %v9929_v18 = vadd.f32 %v17097_v39, %v23281_v17 }
 0xe3a   :  { %v17098_v38 = vpop.f32.mrb[106].mxu0  ;;  %v9927_v43 = vadd.f32 %v9872_v41, %v23283_v20 }
 0xe3b   :  { %v9930_v28 = vadd.f32 %v17098_v38, %v23282_v24  ;;  %v9875_v6 = vpop.f32.mrb[107].mxu0 }
 0xe3c   :  { %v9928_v31 = vadd.f32 %v9875_v6, %v23284_v45 }
 0xe3d   :  { %v9958_v9 = vpack.c.bf16 %v9930_v28, %v9929_v18 }
 0xe3e   :  { %v9957_v61 = vpack.c.bf16 %v9928_v31, %v9927_v43 }
 0xe40   :  { %17135 = vmatprep.mubr.msk.bf16.mxu1 %vm1437_vm3, %v9957_v61 }
 0xe41   :  { %17136 = vmatmul.mubr.msk.bf16.gmra.mrb[104].mxu1 %vm1437_vm3, %v9958_v9 }
 0xe54   :  { %v17101_v11 = vpop.f32.mrb[108].mxu0 }
 0xe55   :  { %v9888_v19 = vpop.f32.mrb[109].mxu0  ;;  %v9933_v62 = vadd.f32 %v17101_v11, %v23285_v23 }
 0xe56   :  { %v17102_v15 = vpop.f32.mrb[110].mxu0  ;;  %v9931_v27 = vadd.f32 %v9888_v19, %v23287_v14 }
 0xe57   :  { %v9934_v42 = vadd.f32 %v17102_v15, %v23286_v58  ;;  %v9891_v40 = vpop.f32.mrb[111].mxu0  ;;  %v17109_v44 = vpop.f32.mrb[80].mxu1 }
 0xe58   :  { %v9932_v3 = vadd.f32 %v9891_v40, %v23288_v29  ;;  %v10046_v12 = vadd.f32 %v17109_v44, %v21202_v51  ;;  %v10037_v63 = vpop.f32.mrb[81].mxu1 }
 0xe59   :  { %v9960_v30 = vpack.c.bf16 %v9934_v42, %v9933_v62  ;;  %v10038_v16 = vadd.f32 %v21202_v51, %v10037_v63  ;;  %v17110_v33 = vpop.f32.mrb[82].mxu1 }
 0xe5a   :  { %v9959_v52 = vpack.c.bf16 %v9932_v3, %v9931_v27  ;;  %v10049_v13 = vadd.f32 %v17110_v33, %v21202_v51  ;;  %v10040_v54 = vpop.f32.mrb[83].mxu1  ;;  %v10257_v48 = vmul.f32 0.01, %v10046_v12  ;;  %vm10241_vm15 = vcmp.gt.f32.partialorder %v10046_v12, 0.0 }
 0xe5b   :  { %v10255_v36 = vmul.f32 0.01, %v10038_v16  ;;  %v10041_v47 = vadd.f32 %v21202_v51, %v10040_v54  ;;  %vm10239_vm13 = vcmp.gt.f32.partialorder %v10038_v16, 0.0 }
 0xe5c   :  { %vm10242_vm14 = vcmp.gt.f32.partialorder %v10049_v13, 0.0  ;;  %v10258_v55 = vmul.f32 0.01, %v10049_v13  ;;  %17139 = vmatprep.mubr.msk.bf16.mxu1 %vm1437_vm3, %v9959_v52  ;;  %v21222_v60 = vsel %vm10241_vm15, %v10046_v12, %v10257_v48  ;;  %v21287_v48 = vld [vmem:[%s23010_s14] ss:$0 sm:$0xff] }
 0xe5d   :  { %vm10240_vm1 = vcmp.gt.f32.partialorder %v10041_v47, 0.0  ;;  %v10256_v8 = vmul.f32 0.01, %v10041_v47  ;;  %17140 = vmatmul.mubr.msk.bf16.gmra.mrb[108].mxu1 %vm1437_vm3, %v9960_v30  ;;  %v21218_v46 = vsel %vm10239_vm13, %v10038_v16, %v10255_v36  ;;  %23292 = vst [vmem:[#allocation63_spill] sm:$0xff] %v21222_v60 }
 0xe5e   :  { %v21214_v2 = vsel %vm10242_vm14, %v10049_v13, %v10258_v55  ;;  %17181 = vmatprep.mubr.msk.bf16.mxu1 %vm18351_vm0, %v23163_v7  ;;  %23290 = vst [vmem:[#allocation61_spill] sm:$0xff] %v21218_v46 }
 0xe5f   :  { %23289 = vst [vmem:[#allocation59_spill] sm:$0xff] %v21214_v2  ;;  %v21220_v5 = vsel %vm10240_vm1, %v10041_v47, %v10256_v8  ;;  %v10344_v50 = vpack.c.bf16 %v21214_v2, %v21222_v60 }
 0xe60   :  { %23291 = vst [vmem:[#allocation62_spill] sm:$0xff] %v21220_v5  ;;  %v10343_v59 = vpack.c.bf16 %v21220_v5, %v21218_v46 }
 0xe62   :  { %17147 = vmatprep.mubr.msk.bf16.mxu0 %vm1437_vm3, %v10343_v59 }
 0xe63   :  { %17148 = vmatmul.mubr.msk.bf16.vlgmr.msra.gmra.mrb[112].mxu0 %vm1437_vm3, %v10344_v50 }
 0xe67   :  { %v17113_v37 = vpop.f32.mrb[84].mxu1 }
 0xe68   :  { %v10062_v32 = vadd.f32 %v17113_v37, %v21202_v51  ;;  %v10053_v22 = vpop.f32.mrb[85].mxu1 }
 0xe69   :  { %v10054_v21 = vadd.f32 %v21202_v51, %v10053_v22  ;;  %v17114_v53 = vpop.f32.mrb[86].mxu1 }
 0xe6a   :  { %v10065_v35 = vadd.f32 %v17114_v53, %v21202_v51  ;;  %v10056_v4 = vpop.f32.mrb[87].mxu1  ;;  %v10261_v56 = vmul.f32 0.01, %v10062_v32  ;;  %vm10245_vm7 = vcmp.gt.f32.partialorder %v10062_v32, 0.0 }
 0xe6b   :  { %v10259_v1 = vmul.f32 0.01, %v10054_v21  ;;  %v10057_v26 = vadd.f32 %v21202_v51, %v10056_v4  ;;  %vm10243_vm5 = vcmp.gt.f32.partialorder %v10054_v21, 0.0 }
 0xe6c   :  { %vm10246_vm6 = vcmp.gt.f32.partialorder %v10065_v35, 0.0  ;;  %v10262_v57 = vmul.f32 0.01, %v10065_v35  ;;  %v21240_v34 = vsel %vm10245_vm7, %v10062_v32, %v10261_v56 }
 0xe6d   :  { %vm10244_vm8 = vcmp.gt.f32.partialorder %v10057_v26, 0.0  ;;  %v10260_v10 = vmul.f32 0.01, %v10057_v26  ;;  %v21236_v0 = vsel %vm10243_vm5, %v10054_v21, %v10259_v1  ;;  %23296 = vst [vmem:[#allocation71_spill] sm:$0xff] %v21240_v34 }
 0xe6e   :  { %v21234_v49 = vsel %vm10246_vm6, %v10065_v35, %v10262_v57  ;;  %23294 = vst [vmem:[#allocation60_spill] sm:$0xff] %v21236_v0 }
 0xe6f   :  { %23293 = vst [vmem:[#allocation65_spill] sm:$0xff] %v21234_v49  ;;  %v21238_v25 = vsel %vm10244_vm8, %v10057_v26, %v10260_v10  ;;  %v10346_v41 = vpack.c.bf16 %v21234_v49, %v21240_v34 }
 0xe70   :  { %23295 = vst [vmem:[#allocation70_spill] sm:$0xff] %v21238_v25  ;;  %v10345_v39 = vpack.c.bf16 %v21238_v25, %v21236_v0 }
 0xe72   :  { %17151 = vmatprep.mubr.msk.bf16.mxu0 %vm1437_vm3, %v10345_v39 }
 0xe73   :  { %17152 = vmatmul.mubr.msk.bf16.gmra.mrb[116].mxu0 %vm1437_vm3, %v10346_v41 }
 0xe77   :  { %v17117_v38 = vpop.f32.mrb[88].mxu1 }
 0xe78   :  { %v10078_v17 = vadd.f32 %v17117_v38, %v21202_v51  ;;  %v10069_v18 = vpop.f32.mrb[89].mxu1 }
 0xe79   :  { %v10070_v24 = vadd.f32 %v21202_v51, %v10069_v18  ;;  %v17118_v28 = vpop.f32.mrb[90].mxu1 }
 0xe7a   :  { %v10081_v6 = vadd.f32 %v17118_v28, %v21202_v51  ;;  %v10072_v20 = vpop.f32.mrb[91].mxu1  ;;  %v10265_v31 = vmul.f32 0.01, %v10078_v17  ;;  %vm10249_vm11 = vcmp.gt.f32.partialorder %v10078_v17, 0.0 }
 0xe7b   :  { %v10263_v43 = vmul.f32 0.01, %v10070_v24  ;;  %v10073_v45 = vadd.f32 %v21202_v51, %v10072_v20  ;;  %vm10247_vm9 = vcmp.gt.f32.partialorder %v10070_v24, 0.0 }
 0xe7c   :  { %vm10250_vm10 = vcmp.gt.f32.partialorder %v10081_v6, 0.0  ;;  %v10266_v9 = vmul.f32 0.01, %v10081_v6  ;;  %v21258_v23 = vsel %vm10249_vm11, %v10078_v17, %v10265_v31 }
 0xe7d   :  { %vm10248_vm12 = vcmp.gt.f32.partialorder %v10073_v45, 0.0  ;;  %v10264_v61 = vmul.f32 0.01, %v10073_v45  ;;  %v21254_v19 = vsel %vm10247_vm9, %v10070_v24, %v10263_v43  ;;  %23300 = vst [vmem:[#allocation73_spill] sm:$0xff] %v21258_v23 }
 0xe7e   :  { %v21252_v11 = vsel %vm10250_vm10, %v10081_v6, %v10266_v9  ;;  %23298 = vst [vmem:[#allocation72_spill] sm:$0xff] %v21254_v19 }
 0xe7f   :  { %23297 = vst [vmem:[#allocation64_spill] sm:$0xff] %v21252_v11  ;;  %v21256_v15 = vsel %vm10248_vm12, %v10073_v45, %v10264_v61  ;;  %v10348_v58 = vpack.c.bf16 %v21252_v11, %v21258_v23 }
 0xe80   :  { %23299 = vst [vmem:[#allocation69_spill] sm:$0xff] %v21256_v15  ;;  %v10347_v62 = vpack.c.bf16 %v21256_v15, %v21254_v19 }
 0xe82   :  { %17155 = vmatprep.mubr.msk.bf16.mxu0 %vm1437_vm3, %v10347_v62 }
 0xe83   :  { %17156 = vmatmul.mubr.msk.bf16.gmra.mrb[120].mxu0 %vm1437_vm3, %v10348_v58 }
 0xeaa   :  { %v17121_v42 = vpop.f32.mrb[92].mxu1 }
 0xeab   :  { %v10094_v40 = vadd.f32 %v17121_v42, %v21202_v51  ;;  %v10085_v44 = vpop.f32.mrb[93].mxu1 }
 0xeac   :  { %v10086_v14 = vadd.f32 %v21202_v51, %v10085_v44  ;;  %v17122_v27 = vpop.f32.mrb[94].mxu1 }
 0xead   :  { %v10097_v29 = vadd.f32 %v17122_v27, %v21202_v51  ;;  %v10088_v3 = vpop.f32.mrb[95].mxu1  ;;  %v10269_v30 = vmul.f32 0.01, %v10094_v40  ;;  %vm10253_vm15 = vcmp.gt.f32.partialorder %v10094_v40, 0.0 }
 0xeae   :  { %v10267_v12 = vmul.f32 0.01, %v10086_v14  ;;  %v10089_v63 = vadd.f32 %v21202_v51, %v10088_v3  ;;  %vm10251_vm13 = vcmp.gt.f32.partialorder %v10086_v14, 0.0 }
 0xeaf   :  { %vm10254_vm14 = vcmp.gt.f32.partialorder %v10097_v29, 0.0  ;;  %v10270_v16 = vmul.f32 0.01, %v10097_v29  ;;  %v21276_v36 = vsel %vm10253_vm15, %v10094_v40, %v10269_v30 }
 0xeb0   :  { %vm10252_vm1 = vcmp.gt.f32.partialorder %v10089_v63, 0.0  ;;  %v10268_v33 = vmul.f32 0.01, %v10089_v63  ;;  %v21272_v13 = vsel %vm10251_vm13, %v10086_v14, %v10267_v12  ;;  %23304 = vst [vmem:[#allocation67_spill] sm:$0xff] %v21276_v36 }
 0xeb1   :  { %v21270_v52 = vsel %vm10254_vm14, %v10097_v29, %v10270_v16  ;;  %23302 = vst [vmem:[#allocation74_spill] sm:$0xff] %v21272_v13 }
 0xeb2   :  { %23301 = vst [vmem:[#allocation66_spill] sm:$0xff] %v21270_v52  ;;  %v21274_v54 = vsel %vm10252_vm1, %v10089_v63, %v10268_v33  ;;  %v10350_v51 = vpack.c.bf16 %v21270_v52, %v21276_v36 }
 0xeb3   :  { %23303 = vst [vmem:[#allocation75_spill] sm:$0xff] %v21274_v54  ;;  %v10349_v47 = vpack.c.bf16 %v21274_v54, %v21272_v13 }
 0xeb5   :  { %17159 = vmatprep.mubr.msk.bf16.mxu0 %vm1437_vm3, %v10349_v47 }
 0xeb6   :  { %17160 = vmatmul.mubr.msk.bf16.gmra.mrb[124].mxu0 %vm1437_vm3, %v10350_v51 }
 0xeba   :  { %v17129_v55 = vpop.f32.mrb[96].mxu1 }
 0xebb   :  { %v10185_v8 = vadd.f32 %v17129_v55, %v21287_v48  ;;  %v10176_v59 = vpop.f32.mrb[97].mxu1 }
 0xebc   :  { %v10177_v50 = vadd.f32 %v21287_v48, %v10176_v59  ;;  %v17130_v37 = vpop.f32.mrb[98].mxu1 }
 0xebd   :  { %v10188_v32 = vadd.f32 %v17130_v37, %v21287_v48  ;;  %v10179_v22 = vpop.f32.mrb[99].mxu1  ;;  %v10305_v35 = vmul.f32 0.01, %v10185_v8  ;;  %vm10289_vm7 = vcmp.gt.f32.partialorder %v10185_v8, 0.0 }
 0xebe   :  { %v10303_v21 = vmul.f32 0.01, %v10177_v50  ;;  %v10180_v53 = vadd.f32 %v21287_v48, %v10179_v22  ;;  %vm10287_vm5 = vcmp.gt.f32.partialorder %v10177_v50, 0.0 }
 0xebf   :  { %vm10290_vm6 = vcmp.gt.f32.partialorder %v10188_v32, 0.0  ;;  %v10306_v4 = vmul.f32 0.01, %v10188_v32  ;;  %v21299_v10 = vsel %vm10289_vm7, %v10185_v8, %v10305_v35 }
 0xec0   :  { %vm10288_vm8 = vcmp.gt.f32.partialorder %v10180_v53, 0.0  ;;  %v10304_v1 = vmul.f32 0.01, %v10180_v53  ;;  %v21295_v56 = vsel %vm10287_vm5, %v10177_v50, %v10303_v21  ;;  %23308 = vst [vmem:[#allocation50_spill] sm:$0xff] %v21299_v10 }
 0xec1   :  { %v21293_v26 = vsel %vm10290_vm6, %v10188_v32, %v10306_v4  ;;  %23306 = vst [vmem:[#allocation47_spill] sm:$0xff] %v21295_v56 }
 0xec2   :  { %23305 = vst [vmem:[#allocation68_spill] sm:$0xff] %v21293_v26  ;;  %v21297_v57 = vsel %vm10288_vm8, %v10180_v53, %v10304_v1  ;;  %v10352_v41 = vpack.c.bf16 %v21293_v26, %v21299_v10 }
 0xec3   :  { %23307 = vst [vmem:[#allocation45_spill] sm:$0xff] %v21297_v57  ;;  %v10351_v39 = vpack.c.bf16 %v21297_v57, %v21295_v56 }
 0xec5   :  { %17163 = vmatprep.mubr.msk.bf16.mxu0 %vm1437_vm3, %v10351_v39 }
 0xec6   :  { %17164 = vmatmul.mubr.msk.bf16.gmra.mrb[128].mxu0 %vm1437_vm3, %v10352_v41 }
 0xedb   :  { %v17133_v38 = vpop.f32.mrb[100].mxu1 }
 0xedc   :  { %v10201_v17 = vadd.f32 %v17133_v38, %v21287_v48  ;;  %v10192_v18 = vpop.f32.mrb[101].mxu1 }
 0xedd   :  { %v10193_v24 = vadd.f32 %v21287_v48, %v10192_v18  ;;  %v17134_v28 = vpop.f32.mrb[102].mxu1 }
 0xede   :  { %v10204_v6 = vadd.f32 %v17134_v28, %v21287_v48  ;;  %v10195_v20 = vpop.f32.mrb[103].mxu1  ;;  %v10309_v31 = vmul.f32 0.01, %v10201_v17  ;;  %vm10293_vm11 = vcmp.gt.f32.partialorder %v10201_v17, 0.0 }
 0xedf   :  { %v10307_v43 = vmul.f32 0.01, %v10193_v24  ;;  %v10196_v45 = vadd.f32 %v21287_v48, %v10195_v20  ;;  %vm10291_vm9 = vcmp.gt.f32.partialorder %v10193_v24, 0.0 }
 0xee0   :  { %vm10294_vm10 = vcmp.gt.f32.partialorder %v10204_v6, 0.0  ;;  %v10310_v9 = vmul.f32 0.01, %v10204_v6  ;;  %v21317_v40 = vsel %vm10293_vm11, %v10201_v17, %v10309_v31 }
 0xee1   :  { %vm10292_vm12 = vcmp.gt.f32.partialorder %v10196_v45, 0.0  ;;  %v10308_v61 = vmul.f32 0.01, %v10196_v45  ;;  %v21313_v58 = vsel %vm10291_vm9, %v10193_v24, %v10307_v43  ;;  %23312 = vst [vmem:[#allocation43_spill] sm:$0xff] %v21317_v40 }
 0xee2   :  { %v21311_v62 = vsel %vm10294_vm10, %v10204_v6, %v10310_v9  ;;  %23310 = vst [vmem:[#allocation51_spill] sm:$0xff] %v21313_v58 }
 0xee3   :  { %23309 = vst [vmem:[#allocation44_spill] sm:$0xff] %v21311_v62  ;;  %v21315_v42 = vsel %vm10292_vm12, %v10196_v45, %v10308_v61  ;;  %v10354_v14 = vpack.c.bf16 %v21311_v62, %v21317_v40 }
 0xee4   :  { %23311 = vst [vmem:[#allocation49_spill] sm:$0xff] %v21315_v42  ;;  %v10353_v44 = vpack.c.bf16 %v21315_v42, %v21313_v58 }
 0xee6   :  { %17167 = vmatprep.mubr.msk.bf16.mxu0 %vm1437_vm3, %v10353_v44 }
 0xee7   :  { %17168 = vmatmul.mubr.msk.bf16.gmra.mrb[132].mxu0 %vm1437_vm3, %v10354_v14 }
 0xf14   :  { %v17137_v27 = vpop.f32.mrb[104].mxu1 }
 0xf15   :  { %v10217_v29 = vadd.f32 %v17137_v27, %v21287_v48  ;;  %v10208_v3 = vpop.f32.mrb[105].mxu1 }
 0xf16   :  { %v10209_v12 = vadd.f32 %v21287_v48, %v10208_v3  ;;  %v17138_v63 = vpop.f32.mrb[106].mxu1 }
 0xf17   :  { %v10220_v30 = vadd.f32 %v17138_v63, %v21287_v48  ;;  %v10211_v16 = vpop.f32.mrb[107].mxu1  ;;  %v10313_v51 = vmul.f32 0.01, %v10217_v29  ;;  %vm10297_vm15 = vcmp.gt.f32.partialorder %v10217_v29, 0.0 }
 0xf18   :  { %v10311_v33 = vmul.f32 0.01, %v10209_v12  ;;  %v10212_v47 = vadd.f32 %v21287_v48, %v10211_v16  ;;  %vm10295_vm13 = vcmp.gt.f32.partialorder %v10209_v12, 0.0 }
 0xf19   :  { %vm10298_vm14 = vcmp.gt.f32.partialorder %v10220_v30, 0.0  ;;  %v10314_v55 = vmul.f32 0.01, %v10220_v30  ;;  %v21335_v32 = vsel %vm10297_vm15, %v10217_v29, %v10313_v51 }
 0xf1a   :  { %vm10296_vm1 = vcmp.gt.f32.partialorder %v10212_v47, 0.0  ;;  %v10312_v8 = vmul.f32 0.01, %v10212_v47  ;;  %v21331_v50 = vsel %vm10295_vm13, %v10209_v12, %v10311_v33  ;;  %23316 = vst [vmem:[#allocation52_spill] sm:$0xff] %v21335_v32 }
 0xf1b   :  { %v21329_v59 = vsel %vm10298_vm14, %v10220_v30, %v10314_v55  ;;  %23314 = vst [vmem:[#allocation30_spill] sm:$0xff] %v21331_v50 }
 0xf1c   :  { %23313 = vst [vmem:[#allocation46_spill] sm:$0xff] %v21329_v59  ;;  %v21333_v37 = vsel %vm10296_vm1, %v10212_v47, %v10312_v8  ;;  %v10356_v21 = vpack.c.bf16 %v21329_v59, %v21335_v32 }
 0xf1d   :  { %23315 = vst [vmem:[#allocation48_spill] sm:$0xff] %v21333_v37  ;;  %v10355_v22 = vpack.c.bf16 %v21333_v37, %v21331_v50 }
 0xf1f   :  { %17171 = vmatprep.mubr.msk.bf16.mxu0 %vm1437_vm3, %v10355_v22 }
 0xf20   :  { %17172 = vmatmul.mubr.msk.bf16.gmra.mrb[136].mxu0 %vm1437_vm3, %v10356_v21 }
 0xf30   :  { %v17141_v53 = vpop.f32.mrb[108].mxu1 }
 0xf31   :  { %v10233_v35 = vadd.f32 %v17141_v53, %v21287_v48  ;;  %v10224_v4 = vpop.f32.mrb[109].mxu1 }
 0xf32   :  { %v10225_v1 = vadd.f32 %v21287_v48, %v10224_v4  ;;  %v17142_v39 = vpop.f32.mrb[110].mxu1 }
 0xf33   :  { %v10236_v41 = vadd.f32 %v17142_v39, %v21287_v48  ;;  %v10227_v38 = vpop.f32.mrb[111].mxu1  ;;  %v10317_v24 = vmul.f32 0.01, %v10233_v35  ;;  %vm10301_vm7 = vcmp.gt.f32.partialorder %v10233_v35, 0.0 }
 0xf34   :  { %v10315_v17 = vmul.f32 0.01, %v10225_v1  ;;  %v10228_v18 = vadd.f32 %v21287_v48, %v10227_v38  ;;  %vm10299_vm5 = vcmp.gt.f32.partialorder %v10225_v1, 0.0 }
 0xf35   :  { %vm10302_vm6 = vcmp.gt.f32.partialorder %v10236_v41, 0.0  ;;  %v10318_v28 = vmul.f32 0.01, %v10236_v41  ;;  %v21359_v48 = vsel %vm10301_vm7, %v10233_v35, %v10317_v24 }
 0xf36   :  { %vm10300_vm8 = vcmp.gt.f32.partialorder %v10228_v18, 0.0  ;;  %v10316_v6 = vmul.f32 0.01, %v10228_v18  ;;  %v21347_v20 = vpop.f32.mrb[112].mxu0  ;;  %v21353_v31 = vsel %vm10299_vm5, %v10225_v1, %v10315_v17  ;;  %23320 = vst [vmem:[#allocation28_spill] sm:$0xff] %v21359_v48 }
 0xf37   :  { %v21349_v43 = vsel %vm10302_vm6, %v10236_v41, %v10318_v28  ;;  %v21351_v45 = vpop.f32.mrb[113].mxu0  ;;  %23318 = vst [vmem:[#allocation34_spill] sm:$0xff] %v21353_v31 }
 0xf38   :  { %23317 = vst [vmem:[#allocation29_spill] sm:$0xff] %v21349_v43  ;;  %v21355_v9 = vsel %vm10300_vm8, %v10228_v18, %v10316_v6  ;;  %v21357_v61 = vpop.f32.mrb[114].mxu0  ;;  %v10358_v27 = vpack.c.bf16 %v21349_v43, %v21359_v48 }
 0xf39   :  { %23319 = vst [vmem:[#allocation27_spill] sm:$0xff] %v21355_v9  ;;  %v10357_v44 = vpack.c.bf16 %v21355_v9, %v21353_v31  ;;  %v21363_v14 = vpop.f32.mrb[115].mxu0 }
 0xf3b   :  { %17175 = vmatprep.mubr.msk.bf16.mxu0 %vm1437_vm3, %v10357_v44 }
 0xf3c   :  { %17176 = vmatmul.mubr.msk.bf16.gmra.mrb[140].mxu0 %vm1437_vm3, %v10358_v27 }
 0xf3d   :  { %17229 = vmatprep.mubr.msk.bf16.mxu0 %vm18351_vm0, %v23163_v7 }
 0xf46   :  { %v21371_v29 = vpop.f32.mrb[116].mxu0 }
 0xf47   :  { %v21373_v3 = vpop.f32.mrb[117].mxu0 }
 0xf48   :  { %v21375_v12 = vpop.f32.mrb[118].mxu0 }
 0xf49   :  { %v21377_v63 = vpop.f32.mrb[119].mxu0 }
 0xf56   :  { %v21379_v30 = vpop.f32.mrb[120].mxu0 }
 0xf57   :  { %v21381_v16 = vpop.f32.mrb[121].mxu0 }
 0xf58   :  { %v21383_v33 = vpop.f32.mrb[122].mxu0 }
 0xf59   :  { %v21385_v47 = vpop.f32.mrb[123].mxu0 }
 0xf89   :  { %v21387_v51 = vpop.f32.mrb[124].mxu0 }
 0xf8a   :  { %v21389_v55 = vpop.f32.mrb[125].mxu0 }
 0xf8b   :  { %v21391_v8 = vpop.f32.mrb[126].mxu0 }
 0xf8c   :  { %v21393_v22 = vpop.f32.mrb[127].mxu0 }
 0xf99   :  { %v17165_v21 = vpop.f32.mrb[128].mxu0 }
 0xf9a   :  { %v10517_v53 = vpop.f32.mrb[129].mxu0  ;;  %v21401_v41 = vpack.c.bf16 %v17165_v21, %v17165_v21 }
 0xf9b   :  { %v21395_v35 = vpack.c.bf16 %v10517_v53, %v10517_v53  ;;  %v17166_v4 = vpop.f32.mrb[130].mxu0 }
 0xf9c   :  { %v10520_v1 = vpop.f32.mrb[131].mxu0  ;;  %v21405_v38 = vpack.c.bf16 %v17166_v4, %v17166_v4 }
 0xf9d   :  { %v21397_v39 = vpack.c.bf16 %v10520_v1, %v10520_v1  ;;  %10676 = vrot.lane.b32.xlu0 %v21395_v35, %s18352_s27 }
 0xf9f   :  { %10724 = vrot.lane.b32.xlu1 %v21397_v39, %s18352_s27 }
 0xfa1   :  { %10772 = vrot.lane.b32.xlu0 %v21401_v41, %s18352_s27 }
 0xfa3   :  { %10820 = vrot.lane.b32.xlu1 %v21405_v38, %s18352_s27 }
 0xfba   :  { %v17169_v17 = vpop.f32.mrb[132].mxu0 }
 0xfbb   :  { %v10533_v18 = vpop.f32.mrb[133].mxu0  ;;  %v21417_v27 = vpack.c.bf16 %v17169_v17, %v17169_v17 }
 0xfbc   :  { %v21411_v24 = vpack.c.bf16 %v10533_v18, %v10533_v18  ;;  %v17170_v28 = vpop.f32.mrb[134].mxu0 }
 0xfbd   :  { %v10536_v6 = vpop.f32.mrb[135].mxu0  ;;  %v21421_v21 = vpack.c.bf16 %v17170_v28, %v17170_v28 }
 0xfbe   :  { %v21413_v44 = vpack.c.bf16 %v10536_v6, %v10536_v6  ;;  %10868 = vrot.lane.b32.xlu0 %v21411_v24, %s18352_s27 }
 0xfc0   :  { %10916 = vrot.lane.b32.xlu1 %v21413_v44, %s18352_s27 }
 0xfc2   :  { %10964 = vrot.lane.b32.xlu0 %v21417_v27, %s18352_s27 }
 0xfc4   :  { %11012 = vrot.lane.b32.xlu1 %v21421_v21, %s18352_s27 }
 0xff3   :  { %v17173_v53 = vpop.f32.mrb[136].mxu0 }
 0xff4   :  { %v10549_v4 = vpop.f32.mrb[137].mxu0  ;;  %v21433_v17 = vpack.c.bf16 %v17173_v53, %v17173_v53 }
 0xff5   :  { %v21427_v1 = vpack.c.bf16 %v10549_v4, %v10549_v4  ;;  %v17174_v18 = vpop.f32.mrb[138].mxu0 }
 0xff6   :  { %v10552_v6 = vpop.f32.mrb[139].mxu0  ;;  %v21437_v28 = vpack.c.bf16 %v17174_v18, %v17174_v18 }
 0xff7   :  { %v21429_v9 = vpack.c.bf16 %v10552_v6, %v10552_v6  ;;  %11060 = vrot.lane.b32.xlu0 %v21427_v1, %s18352_s27 }
 0xff9   :  { %11108 = vrot.lane.b32.xlu1 %v21429_v9, %s18352_s27 }
 0xffb   :  { %11156 = vrot.lane.b32.xlu0 %v21433_v17, %s18352_s27 }
 0xffd   :  { %11204 = vrot.lane.b32.xlu1 %v21437_v28, %s18352_s27 }
0x100f   :  { %v10677_v4 = vpop.permute.xlu0 %10676  ;;  %v17177_v31 = vpop.f32.mrb[140].mxu0 }
0x1010   :  { %v10682_v6 = vsel %vm1437_vm3, %v10677_v4, 0  ;;  %v10565_v43 = vpop.f32.mrb[141].mxu0  ;;  %v21451_v50 = vpack.c.bf16 %v17177_v31, %v17177_v31 }
0x1011   :  { %v21444_v48 = vpack.c.bf16 %v10565_v43, %v10565_v43  ;;  %17180 = vmatpush3.bf16.xpose.msra.mxu1 %v10682_v6  ;;  %v17178_v53 = vpop.f32.mrb[142].mxu0  ;;  %v10725_v59 = vpop.permute.xlu1 %10724  ;;  %v21457_v43 = vpack.c.bf16 %v21351_v45, %v21351_v45  ;;  %v21473_v45 = vpack.c.bf16 %v21363_v14, %v21363_v14  ;;  %v21485_v6 = vpack.c.bf16 %v21357_v61, %v21357_v61 }
0x1012   :  { %v10568_v37 = vpop.f32.mrb[143].mxu0  ;;  %17185 = vmatprep.subr.bf16.mxu1 %v23163_v7  ;;  %v21459_v4 = vpack.c.bf16 %v17178_v53, %v17178_v53  ;;  %v21503_v61 = vpack.c.bf16 %v21377_v63, %v21377_v63 }
0x1013   :  { %v21447_v18 = vpack.c.bf16 %v10568_v37, %v10568_v37  ;;  %11252 = vrot.lane.b32.xlu0 %v21444_v48, %s18352_s27  ;;  %v10730_v37 = vsel %vm1437_vm3, %v10725_v59, 0  ;;  %v21479_v59 = vpack.c.bf16 %v21347_v20, %v21347_v20  ;;  %v10773_v31 = vpop.permute.xlu0 %10772  ;;  %v21494_v20 = vpack.c.bf16 %v21373_v3, %v21373_v3 }
0x1014   :  { %v10778_v14 = vsel %vm1437_vm3, %v10773_v31, 0  ;;  %v21509_v3 = vpack.c.bf16 %v21371_v29, %v21371_v29  ;;  %v21524_v29 = vpack.c.bf16 %v21381_v16, %v21381_v16  ;;  %v21539_v16 = vpack.c.bf16 %v21379_v30, %v21379_v30 }
0x1015   :  { %11300 = vrot.lane.b32.xlu1 %v21447_v18, %s18352_s27  ;;  %v10821_v53 = vpop.permute.xlu1 %10820  ;;  %v21545_v31 = vpack.c.bf16 %v21383_v33, %v21383_v33  ;;  %v21562_v33 = vpack.c.bf16 %v21393_v22, %v21393_v22 }
0x1016   :  { %v10826_v63 = vsel %vm1437_vm3, %v10821_v53, 0 }
0x1017   :  { %11348 = vrot.lane.b32.xlu0 %v21451_v50, %s18352_s27 }
0x1018   :  { %17182 = vmatmul.mubr.msk.bf16.vlgmr.msra.gmra.mrb[112].mxu1 %vm1437_vm3, %v21457_v43 }
0x1019   :  { %17186 = vmatpush3.bf16.xpose.msra.mxu1 %v10730_v37  ;;  %11396 = vrot.lane.b32.xlu1 %v21459_v4, %s18352_s27  ;;  %v21515_v37 = vpack.c.bf16 %v21375_v12, %v21375_v12  ;;  %v21533_v12 = vpack.c.bf16 %v21385_v47, %v21385_v47 }
0x101a   :  { %17187 = vmatprep.mubr.msk.bf16.mxu1 %vm18351_vm0, %v23163_v7  ;;  %17191 = vmatprep.subr.bf16.mxu1 %v23163_v7 }
0x101b   :  { %11444 = vrot.lane.b32.xlu0 %v21457_v43, %s18352_s27 }
0x101d   :  { %11492 = vrot.lane.b32.xlu1 %v21473_v45, %s18352_s27 }
0x101f   :  { %11540 = vrot.lane.b32.xlu0 %v21479_v59, %s18352_s27 }
0x1020   :  { %17188 = vmatmul.mubr.msk.bf16.vlgmr.msra.gmra.mrb[116].mxu1 %vm1437_vm3, %v21473_v45 }
0x1021   :  { %17192 = vmatpush3.bf16.xpose.msra.mxu1 %v10778_v14  ;;  %11588 = vrot.lane.b32.xlu1 %v21485_v6, %s18352_s27  ;;  %v21553_v14 = vpack.c.bf16 %v21389_v55, %v21389_v55  ;;  %v21569_v55 = vpack.c.bf16 %v21387_v51, %v21387_v51 }
0x1022   :  { %17193 = vmatprep.mubr.msk.bf16.mxu1 %vm18351_vm0, %v23163_v7  ;;  %17197 = vmatprep.subr.bf16.mxu1 %v23163_v7 }
0x1023   :  { %11636 = vrot.lane.b32.xlu0 %v21494_v20, %s18352_s27 }
0x1025   :  { %11684 = vrot.lane.b32.xlu1 %v21503_v61, %s18352_s27 }
0x1027   :  { %11732 = vrot.lane.b32.xlu0 %v21509_v3, %s18352_s27 }
0x1028   :  { %17194 = vmatmul.mubr.msk.bf16.vlgmr.msra.gmra.mrb[120].mxu1 %vm1437_vm3, %v21479_v59 }
0x1029   :  { %17198 = vmatpush3.bf16.xpose.msra.mxu1 %v10826_v63  ;;  %11780 = vrot.lane.b32.xlu1 %v21515_v37, %s18352_s27  ;;  %v21575_v63 = vpack.c.bf16 %v21391_v8, %v21391_v8 }
0x102a   :  { %17199 = vmatprep.mubr.msk.bf16.mxu1 %vm18351_vm0, %v23163_v7  ;;  %17203 = vmatprep.subr.bf16.mxu1 %v23163_v7 }
0x102b   :  { %11828 = vrot.lane.b32.xlu0 %v21524_v29, %s18352_s27 }
0x102d   :  { %11876 = vrot.lane.b32.xlu1 %v21533_v12, %s18352_s27 }
0x102f   :  { %11924 = vrot.lane.b32.xlu0 %v21539_v16, %s18352_s27 }
0x1030   :  { %17200 = vmatmul.mubr.msk.bf16.vlgmr.msra.gmra.mrb[124].mxu1 %vm1437_vm3, %v21485_v6  ;;  %v10869_v47 = vpop.permute.xlu0 %10868 }
0x1031   :  { %v10874_v30 = vsel %vm1437_vm3, %v10869_v47, 0  ;;  %11972 = vrot.lane.b32.xlu1 %v21545_v31, %s18352_s27  ;;  %17205 = vmatprep.mubr.msk.bf16.mxu1 %vm18351_vm0, %v23163_v7 }
0x1032   :  { %17204 = vmatpush3.bf16.xpose.msra.mxu1 %v10874_v30  ;;  %v10917_v53 = vpop.permute.xlu1 %10916 }
0x1033   :  { %12020 = vrot.lane.b32.xlu0 %v21553_v14, %s18352_s27  ;;  %17209 = vmatprep.subr.bf16.mxu1 %v23163_v7  ;;  %v10922_v22 = vsel %vm1437_vm3, %v10917_v53, 0 }
0x1034   :  { %v10965_v51 = vpop.permute.xlu0 %10964 }
0x1035   :  { %12068 = vrot.lane.b32.xlu1 %v21562_v33, %s18352_s27  ;;  %v10970_v8 = vsel %vm1437_vm3, %v10965_v51, 0 }
0x1036   :  { %v11013_v47 = vpop.permute.xlu1 %11012 }
0x1037   :  { %12116 = vrot.lane.b32.xlu0 %v21569_v55, %s18352_s27  ;;  %v11018_v30 = vsel %vm1437_vm3, %v11013_v47, 0 }
0x1039   :  { %17206 = vmatmul.mubr.msk.bf16.vlgmr.msra.gmra.mrb[128].mxu1 %vm1437_vm3, %v21494_v20  ;;  %12164 = vrot.lane.b32.xlu1 %v21575_v63, %s18352_s27 }
0x103a   :  { %17210 = vmatpush3.bf16.xpose.msra.mxu1 %v10922_v22  ;;  %17211 = vmatprep.mubr.msk.bf16.mxu1 %vm18351_vm0, %v23163_v7 }
0x103b   :  { %12644 = vrot.lane.b32.xlu0 %v21397_v39, %s18336_s25  ;;  %17215 = vmatprep.subr.bf16.mxu1 %v23163_v7 }
0x103d   :  { %12596 = vrot.lane.b32.xlu1 %v21395_v35, %s18336_s25 }
0x103f   :  { %12740 = vrot.lane.b32.xlu0 %v21405_v38, %s18336_s25 }
0x1041   :  { %17212 = vmatmul.mubr.msk.bf16.vlgmr.msra.gmra.mrb[132].mxu1 %vm1437_vm3, %v21503_v61  ;;  %12692 = vrot.lane.b32.xlu1 %v21401_v41, %s18336_s25 }
0x1042   :  { %17216 = vmatpush3.bf16.xpose.msra.mxu1 %v10970_v8  ;;  %17217 = vmatprep.mubr.msk.bf16.mxu1 %vm18351_vm0, %v23163_v7 }
0x1043   :  { %12836 = vrot.lane.b32.xlu0 %v21413_v44, %s18336_s25  ;;  %17221 = vmatprep.subr.bf16.mxu1 %v23163_v7 }
0x1045   :  { %12788 = vrot.lane.b32.xlu1 %v21411_v24, %s18336_s25 }
0x1047   :  { %12932 = vrot.lane.b32.xlu0 %v21421_v21, %s18336_s25 }
0x1049   :  { %17218 = vmatmul.mubr.msk.bf16.vlgmr.msra.gmra.mrb[136].mxu1 %vm1437_vm3, %v21509_v3  ;;  %12884 = vrot.lane.b32.xlu1 %v21417_v27, %s18336_s25 }
0x104a   :  { %17222 = vmatpush3.bf16.xpose.msra.mxu1 %v11018_v30  ;;  %17223 = vmatprep.mubr.msk.bf16.mxu1 %vm18351_vm0, %v23163_v7 }
0x104b   :  { %13028 = vrot.lane.b32.xlu0 %v21429_v9, %s18336_s25  ;;  %17233 = vmatprep.subr.bf16.mxu1 %v23163_v7 }
0x104d   :  { %12980 = vrot.lane.b32.xlu1 %v21427_v1, %s18336_s25 }
0x104f   :  { %13124 = vrot.lane.b32.xlu0 %v21437_v28, %s18336_s25 }
0x1051   :  { %17224 = vmatmul.mubr.msk.bf16.vlgmr.msra.gmra.mrb[140].mxu1 %vm1437_vm3, %v21515_v37  ;;  %13076 = vrot.lane.b32.xlu1 %v21433_v17, %s18336_s25 }
0x1052   :  { %17235 = vmatprep.mubr.msk.bf16.mxu1 %vm18351_vm0, %v23163_v7 }
0x1053   :  { %13316 = vrot.lane.b32.xlu0 %v21459_v4, %s18336_s25 }
0x1055   :  { %13172 = vrot.lane.b32.xlu1 %v21444_v48, %s18336_s25 }
0x1057   :  { %13412 = vrot.lane.b32.xlu0 %v21473_v45, %s18336_s25 }
0x1059   :  { %13268 = vrot.lane.b32.xlu1 %v21451_v50, %s18336_s25 }
0x105b   :  { %13508 = vrot.lane.b32.xlu0 %v21485_v6, %s18336_s25 }
0x105d   :  { %13364 = vrot.lane.b32.xlu1 %v21457_v43, %s18336_s25 }
0x105f   :  { %13604 = vrot.lane.b32.xlu0 %v21503_v61, %s18336_s25 }
0x1061   :  { %13460 = vrot.lane.b32.xlu1 %v21479_v59, %s18336_s25 }
0x1063   :  { %13700 = vrot.lane.b32.xlu0 %v21515_v37, %s18336_s25 }
0x1065   :  { %13556 = vrot.lane.b32.xlu1 %v21494_v20, %s18336_s25 }
0x1067   :  { %13220 = vrot.lane.b32.xlu0 %v21447_v18, %s18336_s25 }
0x1069   :  { %v11061_v45 = vpop.permute.xlu0 %11060  ;;  %13652 = vrot.lane.b32.xlu1 %v21509_v3, %s18336_s25 }
0x106a   :  { %v11066_v43 = vsel %vm1437_vm3, %v11061_v45, 0 }
0x106b   :  { %17228 = vmatpush3.bf16.xpose.msra.mxu0 %v11066_v43  ;;  %v11109_v6 = vpop.permute.xlu1 %11108 }
0x106c   :  { %v11114_v61 = vsel %vm1437_vm3, %v11109_v6, 0  ;;  %17239 = vmatprep.subr.bf16.mxu0 %v23163_v7 }
0x106d   :  { %17234 = vmatpush3.bf16.xpose.msra.mxu1 %v11114_v61  ;;  %13748 = vrot.lane.b32.xlu1 %v21524_v29, %s18336_s25  ;;  %v11157_v59 = vpop.permute.xlu0 %11156 }
0x106e   :  { %17245 = vmatprep.subr.bf16.mxu1 %v23163_v7  ;;  %v11162_v37 = vsel %vm1437_vm3, %v11157_v59, 0 }
0x106f   :  { %v11205_v20 = vpop.permute.xlu1 %11204 }
0x1070   :  { %v11210_v3 = vsel %vm1437_vm3, %v11205_v20, 0 }
0x1072   :  { %17230 = vmatmul.mubr.msk.bf16.vlgmr.msra.gmra.mrb[144].mxu0 %vm1437_vm3, %v21524_v29 }
0x1073   :  { %17240 = vmatpush3.bf16.xpose.msra.mxu0 %v11162_v37  ;;  %17241 = vmatprep.mubr.msk.bf16.mxu0 %vm18351_vm0, %v23163_v7 }
0x1074   :  { %17236 = vmatmul.mubr.msk.bf16.vlgmr.msra.gmra.mrb[144].mxu1 %vm1437_vm3, %v21533_v12  ;;  %17251 = vmatprep.subr.bf16.mxu0 %v23163_v7 }
0x1075   :  { %17246 = vmatpush3.bf16.xpose.msra.mxu1 %v11210_v3  ;;  %17247 = vmatprep.mubr.msk.bf16.mxu1 %vm18351_vm0, %v23163_v7 }
0x1076   :  { %17257 = vmatprep.subr.bf16.mxu1 %v23163_v7 }
0x107a   :  { %17242 = vmatmul.mubr.msk.bf16.vlgmr.msra.gmra.mrb[148].mxu0 %vm1437_vm3, %v21539_v16 }
0x107b   :  { %17253 = vmatprep.mubr.msk.bf16.mxu0 %vm18351_vm0, %v23163_v7 }
0x107c   :  { %17248 = vmatmul.mubr.msk.bf16.vlgmr.msra.gmra.mrb[148].mxu1 %vm1437_vm3, %v21545_v31 }
0x107d   :  { %17259 = vmatprep.mubr.msk.bf16.mxu1 %vm18351_vm0, %v23163_v7 }
0x1085   :  { %v11253_v29 = vpop.permute.xlu0 %11252 }
0x1086   :  { %v11258_v53 = vsel %vm1437_vm3, %v11253_v29, 0 }
0x1087   :  { %17252 = vmatpush3.bf16.xpose.msra.mxu0 %v11258_v53  ;;  %v11301_v22 = vpop.permute.xlu1 %11300 }
0x1088   :  { %v11306_v51 = vsel %vm1437_vm3, %v11301_v22, 0  ;;  %17263 = vmatprep.subr.bf16.mxu0 %v23163_v7 }
0x1089   :  { %17258 = vmatpush3.bf16.xpose.msra.mxu1 %v11306_v51  ;;  %v11349_v8 = vpop.permute.xlu0 %11348 }
0x108a   :  { %17269 = vmatprep.subr.bf16.mxu1 %v23163_v7  ;;  %v11354_v30 = vsel %vm1437_vm3, %v11349_v8, 0 }
0x108b   :  { %v11397_v47 = vpop.permute.xlu1 %11396 }
0x108c   :  { %v11402_v45 = vsel %vm1437_vm3, %v11397_v47, 0 }
0x108d   :  { %v11445_v43 = vpop.permute.xlu0 %11444 }
0x108e   :  { %17254 = vmatmul.mubr.msk.bf16.vlgmr.msra.gmra.mrb[152].mxu0 %vm1437_vm3, %v21553_v14  ;;  %v11450_v61 = vsel %vm1437_vm3, %v11445_v43, 0 }
0x108f   :  { %17264 = vmatpush3.bf16.xpose.msra.mxu0 %v11354_v30  ;;  %17265 = vmatprep.mubr.msk.bf16.mxu0 %vm18351_vm0, %v23163_v7  ;;  %v11493_v6 = vpop.permute.xlu1 %11492 }
0x1090   :  { %17260 = vmatmul.mubr.msk.bf16.vlgmr.msra.gmra.mrb[152].mxu1 %vm1437_vm3, %v21562_v33  ;;  %17275 = vmatprep.subr.bf16.mxu0 %v23163_v7  ;;  %v11498_v59 = vsel %vm1437_vm3, %v11493_v6, 0 }
0x1091   :  { %17270 = vmatpush3.bf16.xpose.msra.mxu1 %v11402_v45  ;;  %17271 = vmatprep.mubr.msk.bf16.mxu1 %vm18351_vm0, %v23163_v7  ;;  %v11541_v20 = vpop.permute.xlu0 %11540 }
0x1092   :  { %17281 = vmatprep.subr.bf16.mxu1 %v23163_v7  ;;  %v11546_v3 = vsel %vm1437_vm3, %v11541_v20, 0 }
0x1093   :  { %v11589_v37 = vpop.permute.xlu1 %11588 }
0x1094   :  { %v11594_v29 = vsel %vm1437_vm3, %v11589_v37, 0 }
0x1095   :  { %v11637_v53 = vpop.permute.xlu0 %11636 }
0x1096   :  { %17266 = vmatmul.mubr.msk.bf16.vlgmr.msra.gmra.mrb[156].mxu0 %vm1437_vm3, %v21569_v55 }
0x1097   :  { %17276 = vmatpush3.bf16.xpose.msra.mxu0 %v11450_v61  ;;  %17277 = vmatprep.mubr.msk.bf16.mxu0 %vm18351_vm0, %v23163_v7  ;;  %v11685_v22 = vpop.permute.xlu1 %11684 }
0x1098   :  { %17272 = vmatmul.mubr.msk.bf16.vlgmr.msra.gmra.mrb[156].mxu1 %vm1437_vm3, %v21575_v63  ;;  %17287 = vmatprep.subr.bf16.mxu0 %v23163_v7 }
0x1099   :  { %17282 = vmatpush3.bf16.xpose.msra.mxu1 %v11498_v59  ;;  %17283 = vmatprep.mubr.msk.bf16.mxu1 %vm18351_vm0, %v23163_v7  ;;  %v11733_v51 = vpop.permute.xlu0 %11732 }
0x109a   :  { %17293 = vmatprep.subr.bf16.mxu1 %v23163_v7 }
0x109b   :  { %v11781_v8 = vpop.permute.xlu1 %11780 }
0x109d   :  { %v11829_v47 = vpop.permute.xlu0 %11828 }
0x109e   :  { %17278 = vmatmul.mubr.msk.bf16.vlgmr.msra.gmra.mrb[160].mxu0 %vm1437_vm3, %v21395_v35  ;;  %v11642_v35 = vsel %vm1437_vm3, %v11637_v53, 0 }
0x109f   :  { %17288 = vmatpush3.bf16.xpose.msra.mxu0 %v11546_v3  ;;  %17289 = vmatprep.mubr.msk.bf16.mxu0 %vm18351_vm0, %v23163_v7  ;;  %v11877_v30 = vpop.permute.xlu1 %11876 }
0x10a0   :  { %17284 = vmatmul.mubr.msk.bf16.vlgmr.msra.gmra.mrb[160].mxu1 %vm1437_vm3, %v21397_v39  ;;  %17299 = vmatprep.subr.bf16.mxu0 %v23163_v7  ;;  %v11690_v39 = vsel %vm1437_vm3, %v11685_v22, 0 }
0x10a1   :  { %17294 = vmatpush3.bf16.xpose.msra.mxu1 %v11594_v29  ;;  %17295 = vmatprep.mubr.msk.bf16.mxu1 %vm18351_vm0, %v23163_v7  ;;  %v11925_v45 = vpop.permute.xlu0 %11924 }
0x10a2   :  { %17305 = vmatprep.subr.bf16.mxu1 %v23163_v7 }
0x10a3   :  { %v11973_v43 = vpop.permute.xlu1 %11972 }
0x10a5   :  { %v12021_v6 = vpop.permute.xlu0 %12020 }
0x10a6   :  { %17290 = vmatmul.mubr.msk.bf16.vlgmr.msra.gmra.mrb[164].mxu0 %vm1437_vm3, %v21401_v41  ;;  %v11738_v41 = vsel %vm1437_vm3, %v11733_v51, 0 }
0x10a7   :  { %17300 = vmatpush3.bf16.xpose.msra.mxu0 %v11642_v35  ;;  %17301 = vmatprep.mubr.msk.bf16.mxu0 %vm18351_vm0, %v23163_v7  ;;  %v12069_v61 = vpop.permute.xlu1 %12068 }
0x10a8   :  { %17296 = vmatmul.mubr.msk.bf16.vlgmr.msra.gmra.mrb[164].mxu1 %vm1437_vm3, %v21405_v38  ;;  %17311 = vmatprep.subr.bf16.mxu0 %v23163_v7  ;;  %v11786_v38 = vsel %vm1437_vm3, %v11781_v8, 0 }
0x10a9   :  { %17306 = vmatpush3.bf16.xpose.msra.mxu1 %v11690_v39  ;;  %17307 = vmatprep.mubr.msk.bf16.mxu1 %vm18351_vm0, %v23163_v7  ;;  %v12117_v59 = vpop.permute.xlu0 %12116 }
0x10aa   :  { %17317 = vmatprep.subr.bf16.mxu1 %v23163_v7 }
0x10ab   :  { %v12165_v20 = vpop.permute.xlu1 %12164 }
0x10ad   :  { %v12645_v3 = vpop.permute.xlu0 %12644 }
0x10ae   :  { %17302 = vmatmul.mubr.msk.bf16.vlgmr.msra.gmra.mrb[168].mxu0 %vm1437_vm3, %v21411_v24  ;;  %v11834_v24 = vsel %vm1437_vm3, %v11829_v47, 0 }
0x10af   :  { %17312 = vmatpush3.bf16.xpose.msra.mxu0 %v11738_v41  ;;  %17313 = vmatprep.mubr.msk.bf16.mxu0 %vm18351_vm0, %v23163_v7  ;;  %v12597_v37 = vpop.permute.xlu1 %12596 }
0x10b0   :  { %17308 = vmatmul.mubr.msk.bf16.vlgmr.msra.gmra.mrb[168].mxu1 %vm1437_vm3, %v21413_v44  ;;  %17323 = vmatprep.subr.bf16.mxu0 %v23163_v7  ;;  %v11882_v44 = vsel %vm1437_vm3, %v11877_v30, 0 }
0x10b1   :  { %17318 = vmatpush3.bf16.xpose.msra.mxu1 %v11786_v38  ;;  %17319 = vmatprep.mubr.msk.bf16.mxu1 %vm18351_vm0, %v23163_v7 }
0x10b2   :  { %17329 = vmatprep.subr.bf16.mxu1 %v23163_v7 }
0x10b6   :  { %17314 = vmatmul.mubr.msk.bf16.vlgmr.msra.gmra.mrb[172].mxu0 %vm1437_vm3, %v21417_v27  ;;  %v11930_v27 = vsel %vm1437_vm3, %v11925_v45, 0 }
0x10b7   :  { %17324 = vmatpush3.bf16.xpose.msra.mxu0 %v11834_v24  ;;  %17325 = vmatprep.mubr.msk.bf16.mxu0 %vm18351_vm0, %v23163_v7 }
0x10b8   :  { %17320 = vmatmul.mubr.msk.bf16.vlgmr.msra.gmra.mrb[172].mxu1 %vm1437_vm3, %v21421_v21  ;;  %17335 = vmatprep.subr.bf16.mxu0 %v23163_v7  ;;  %v11978_v21 = vsel %vm1437_vm3, %v11973_v43, 0 }
0x10b9   :  { %17330 = vmatpush3.bf16.xpose.msra.mxu1 %v11882_v44  ;;  %17331 = vmatprep.mubr.msk.bf16.mxu1 %vm18351_vm0, %v23163_v7 }
0x10ba   :  { %17341 = vmatprep.subr.bf16.mxu1 %v23163_v7 }
0x10be   :  { %17326 = vmatmul.mubr.msk.bf16.vlgmr.msra.gmra.mrb[176].mxu0 %vm1437_vm3, %v21427_v1  ;;  %v12026_v1 = vsel %vm1437_vm3, %v12021_v6, 0 }
0x10bf   :  { %17336 = vmatpush3.bf16.xpose.msra.mxu0 %v11930_v27  ;;  %17337 = vmatprep.mubr.msk.bf16.mxu0 %vm18351_vm0, %v23163_v7 }
0x10c0   :  { %17332 = vmatmul.mubr.msk.bf16.vlgmr.msra.gmra.mrb[176].mxu1 %vm1437_vm3, %v21429_v9  ;;  %17347 = vmatprep.subr.bf16.mxu0 %v23163_v7  ;;  %v12074_v9 = vsel %vm1437_vm3, %v12069_v61, 0 }
0x10c1   :  { %17342 = vmatpush3.bf16.xpose.msra.mxu1 %v11978_v21  ;;  %17343 = vmatprep.mubr.msk.bf16.mxu1 %vm18351_vm0, %v23163_v7 }
0x10c2   :  { %17353 = vmatprep.subr.bf16.mxu1 %v23163_v7 }
0x10c6   :  { %17338 = vmatmul.mubr.msk.bf16.vlgmr.msra.gmra.mrb[180].mxu0 %vm1437_vm3, %v21433_v17  ;;  %v12122_v17 = vsel %vm1437_vm3, %v12117_v59, 0 }
0x10c7   :  { %17348 = vmatpush3.bf16.xpose.msra.mxu0 %v12026_v1  ;;  %17349 = vmatprep.mubr.msk.bf16.mxu0 %vm18351_vm0, %v23163_v7 }
0x10c8   :  { %17344 = vmatmul.mubr.msk.bf16.vlgmr.msra.gmra.mrb[180].mxu1 %vm1437_vm3, %v21437_v28  ;;  %17359 = vmatprep.subr.bf16.mxu0 %v23163_v7  ;;  %v12170_v28 = vsel %vm1437_vm3, %v12165_v20, 0 }
0x10c9   :  { %17354 = vmatpush3.bf16.xpose.msra.mxu1 %v12074_v9  ;;  %17355 = vmatprep.mubr.msk.bf16.mxu1 %vm18351_vm0, %v23163_v7 }
0x10ca   :  { %17365 = vmatprep.subr.bf16.mxu1 %v23163_v7 }
0x10ce   :  { %17350 = vmatmul.mubr.msk.bf16.vlgmr.msra.gmra.mrb[184].mxu0 %vm1437_vm3, %v21444_v48  ;;  %v12602_v48 = vsel %vm3668_vm4, %v12597_v37, 0 }
0x10cf   :  { %17360 = vmatpush3.bf16.xpose.msra.mxu0 %v12122_v17  ;;  %17361 = vmatprep.mubr.msk.bf16.mxu0 %vm18351_vm0, %v23163_v7 }
0x10d0   :  { %17356 = vmatmul.mubr.msk.bf16.vlgmr.msra.gmra.mrb[184].mxu1 %vm1437_vm3, %v21447_v18  ;;  %17371 = vmatprep.subr.bf16.mxu0 %v23163_v7  ;;  %v12650_v18 = vsel %vm3668_vm4, %v12645_v3, 0 }
0x10d1   :  { %17366 = vmatpush3.bf16.xpose.msra.mxu1 %v12170_v28  ;;  %17367 = vmatprep.mubr.msk.bf16.mxu1 %vm18351_vm0, %v23163_v7 }
0x10d2   :  { %17377 = vmatprep.subr.bf16.mxu1 %v23163_v7 }
0x10d6   :  { %17362 = vmatmul.mubr.msk.bf16.vlgmr.msra.gmra.mrb[188].mxu0 %vm1437_vm3, %v21451_v50 }
0x10d7   :  { %17372 = vmatpush3.bf16.msra.mxu0 %v12602_v48  ;;  %17373 = vmatprep.mubr.msk.bf16.mxu0 %vm18351_vm0, %v23163_v7 }
0x10d8   :  { %17368 = vmatmul.mubr.msk.bf16.vlgmr.msra.gmra.mrb[188].mxu1 %vm1437_vm3, %v21459_v4  ;;  %17383 = vmatprep.subr.bf16.mxu0 %v23163_v7 }
0x10d9   :  { %17378 = vmatpush3.bf16.msra.mxu1 %v12650_v18  ;;  %17379 = vmatprep.mubr.msk.bf16.mxu1 %vm18351_vm0, %v23163_v7 }
0x10da   :  { %17389 = vmatprep.subr.bf16.mxu1 %v23163_v7 }
0x10eb   :  { %v21801_v29 = vpop.f32.mrb[112].mxu1 }
0x10ec   :  { %v17183_v50 = vpop.f32.mrb[113].mxu1  ;;  %v12212_v53 = vsel %vm245_vm2, %v21801_v29, -inf }
0x10ed   :  { %v10721_v22 = vpop.f32.mrb[114].mxu1  ;;  %12213 = vmax.xlane.f32.xlu0 %v12212_v53 }
0x10ee   :  { %v17184_v35 = vpop.f32.mrb[115].mxu1 }
0x10f3   :  { %v21805_v39 = vpop.f32.mrb[116].mxu1 }
0x10f4   :  { %v17189_v4 = vpop.f32.mrb[117].mxu1  ;;  %v12215_v51 = vsel %vm245_vm2, %v21805_v39, -inf }
0x10f5   :  { %v10769_v8 = vpop.f32.mrb[118].mxu1  ;;  %12216 = vmax.xlane.f32.xlu1 %v12215_v51 }
0x10f6   :  { %v17190_v41 = vpop.f32.mrb[119].mxu1 }
0x10fb   :  { %v21809_v38 = vpop.f32.mrb[120].mxu1 }
0x10fc   :  { %v17195_v47 = vpop.f32.mrb[121].mxu1  ;;  %v12218_v30 = vsel %vm245_vm2, %v21809_v38, -inf }
0x10fd   :  { %v10817_v24 = vpop.f32.mrb[122].mxu1  ;;  %12219 = vmax.xlane.f32.xlu0 %v12218_v30  ;;  %v21831_v47 = vpop.permute.xlu1 %12692 }
0x10fe   :  { %v17196_v44 = vpop.f32.mrb[123].mxu1  ;;  %v21833_v30 = vpop.permute.xlu0 %12740 }
0x1101   :  { %v21837_v44 = vpop.permute.xlu1 %12788 }
0x1103   :  { %v21813_v45 = vpop.f32.mrb[124].mxu1 }
0x1104   :  { %v17201_v43 = vpop.f32.mrb[125].mxu1  ;;  %v12221_v27 = vsel %vm245_vm2, %v21813_v45, -inf }
0x1105   :  { %v10865_v21 = vpop.f32.mrb[126].mxu1  ;;  %12222 = vmax.xlane.f32.xlu0 %v12221_v27 }
0x1106   :  { %v17202_v6 = vpop.f32.mrb[127].mxu1 }
0x110c   :  { %v21817_v61 = vpop.f32.mrb[128].mxu1 }
0x110d   :  { %v17207_v1 = vpop.f32.mrb[129].mxu1  ;;  %v12224_v9 = vsel %vm245_vm2, %v21817_v61, -inf }
0x110e   :  { %v10913_v59 = vpop.f32.mrb[130].mxu1  ;;  %12225 = vmax.xlane.f32.xlu1 %v12224_v9 }
0x110f   :  { %v17208_v20 = vpop.f32.mrb[131].mxu1 }
0x1114   :  { %v21821_v17 = vpop.f32.mrb[132].mxu1 }
0x1115   :  { %v17213_v28 = vpop.f32.mrb[133].mxu1  ;;  %v12227_v37 = vsel %vm245_vm2, %v21821_v17, -inf }
0x1116   :  { %v10961_v3 = vpop.f32.mrb[134].mxu1  ;;  %12228 = vmax.xlane.f32.xlu0 %v12227_v37  ;;  %v21845_v37 = vpop.permute.xlu0 %12836 }
0x1117   :  { %v17214_v48 = vpop.f32.mrb[135].mxu1 }
0x1118   :  { %v21849_v48 = vpop.permute.xlu1 %12884 }
0x111c   :  { %v21825_v18 = vpop.f32.mrb[136].mxu1 }
0x111d   :  { %v17219_v50 = vpop.f32.mrb[137].mxu1 }
0x111e   :  { %v11009_v53 = vpop.f32.mrb[138].mxu1 }
0x111f   :  { %v17220_v22 = vpop.f32.mrb[139].mxu1 }
0x1124   :  { %v21827_v35 = vpop.f32.mrb[140].mxu1 }
0x1125   :  { %v17225_v4 = vpop.f32.mrb[141].mxu1  ;;  %v12233_v51 = vsel %vm245_vm2, %v21827_v35, -inf }
0x1126   :  { %v11057_v8 = vpop.f32.mrb[142].mxu1  ;;  %12234 = vmax.xlane.f32.xlu0 %v12233_v51 }
0x1127   :  { %v17226_v41 = vpop.f32.mrb[143].mxu1 }
0x1145   :  { %v21835_v24 = vpop.f32.mrb[144].mxu0 }
0x1146   :  { %v17231_v43 = vpop.f32.mrb[145].mxu0  ;;  %v12236_v27 = vsel %vm245_vm2, %v21835_v24, -inf }
0x1147   :  { %v11105_v21 = vpop.f32.mrb[146].mxu0  ;;  %v21841_v6 = vpop.f32.mrb[144].mxu1  ;;  %12237 = vmax.xlane.f32.xlu1 %v12236_v27 }
0x1148   :  { %v17232_v1 = vpop.f32.mrb[147].mxu0  ;;  %v17237_v9 = vpop.f32.mrb[145].mxu1  ;;  %v12239_v59 = vsel %vm245_vm2, %v21841_v6, -inf  ;;  %v12230_v21 = vsel %vm245_vm2, %v21825_v18, -inf }
0x1149   :  { %v11153_v20 = vpop.f32.mrb[146].mxu1  ;;  %12240 = vmax.xlane.f32.xlu0 %v12239_v59  ;;  %v21859_v1 = vpop.permute.xlu0 %12932 }
0x114a   :  { %v17238_v28 = vpop.f32.mrb[147].mxu1  ;;  %v21861_v9 = vpop.permute.xlu1 %12980 }
0x114d   :  { %v21847_v3 = vpop.f32.mrb[148].mxu0  ;;  %v21863_v59 = vpop.permute.xlu0 %13028 }
0x114e   :  { %v17243_v50 = vpop.f32.mrb[149].mxu0  ;;  %v12242_v53 = vsel %vm245_vm2, %v21847_v3, -inf  ;;  %v21865_v20 = vpop.permute.xlu1 %13076 }
0x114f   :  { %v11201_v22 = vpop.f32.mrb[150].mxu0  ;;  %v21853_v4 = vpop.f32.mrb[148].mxu1  ;;  %12243 = vmax.xlane.f32.xlu1 %v12242_v53 }
0x1150   :  { %v17244_v51 = vpop.f32.mrb[151].mxu0  ;;  %v17249_v8 = vpop.f32.mrb[149].mxu1  ;;  %v12245_v41 = vsel %vm245_vm2, %v21853_v4, -inf }
0x1151   :  { %v11249_v43 = vpop.f32.mrb[150].mxu1  ;;  %12246 = vmax.xlane.f32.xlu0 %v12245_v41  ;;  %v21867_v28 = vpop.permute.xlu0 %13124 }
0x1152   :  { %v17250_v27 = vpop.f32.mrb[151].mxu1  ;;  %v21871_v53 = vpop.permute.xlu1 %13172 }
0x1153   :  { %12231 = vmax.xlane.f32.xlu1 %v12230_v21  ;;  %23321 = vst [vmem:[#allocation33_spill] sm:$0xff] %v21871_v53 }
0x1155   :  { %v21879_v58 = vpop.permute.xlu0 %13316 }
0x1156   :  { %23322 = vst [vmem:[#allocation38_spill] sm:$0xff] %v21879_v58 }
0x1159   :  { %v21891_v56 = vpop.permute.xlu0 %13412 }
0x115a   :  { %23324 = vst [vmem:[#allocation32_spill] sm:$0xff] %v21891_v56 }
0x115d   :  { %v21903_v13 = vpop.permute.xlu0 %13508 }
0x115e   :  { %23326 = vst [vmem:[#allocation42_spill] sm:$0xff] %v21903_v13 }
0x1161   :  { %v21869_v50 = vpop.f32.mrb[152].mxu0  ;;  %v21915_v19 = vpop.permute.xlu0 %13604 }
0x1162   :  { %v17255_v22 = vpop.f32.mrb[153].mxu0  ;;  %v12248_v51 = vsel %vm245_vm2, %v21869_v50, -inf  ;;  %23328 = vst [vmem:[#allocation36_spill] sm:$0xff] %v21915_v19 }
0x1163   :  { %v11297_v8 = vpop.f32.mrb[154].mxu0  ;;  %12249 = vmax.xlane.f32.xlu1 %v12248_v51  ;;  %v21875_v41 = vpop.f32.mrb[152].mxu1 }
0x1164   :  { %v17256_v43 = vpop.f32.mrb[155].mxu0  ;;  %v17261_v27 = vpop.f32.mrb[153].mxu1  ;;  %v12251_v21 = vsel %vm245_vm2, %v21875_v41, -inf }
0x1165   :  { %12252 = vmax.xlane.f32.xlu0 %v12251_v21  ;;  %v11345_v32 = vpop.f32.mrb[154].mxu1  ;;  %v21883_v22 = vpop.permute.xlu1 %13268 }
0x1166   :  { %v17262_v42 = vpop.f32.mrb[155].mxu1  ;;  %23323 = vst [vmem:[#allocation31_spill] sm:$0xff] %v21883_v22  ;;  %v21927_v0 = vpop.permute.xlu0 %13700 }
0x1167   :  { %23330 = vst [vmem:[#allocation54_spill] sm:$0xff] %v21927_v0 }
0x1169   :  { %v21881_v62 = vpop.f32.mrb[156].mxu0 }
0x116a   :  { %v17267_v40 = vpop.f32.mrb[157].mxu0  ;;  %v12254_v51 = vsel %vm245_vm2, %v21881_v62, -inf }
0x116b   :  { %v11393_v8 = vpop.f32.mrb[158].mxu0  ;;  %12255 = vmax.xlane.f32.xlu1 %v12254_v51  ;;  %v21887_v43 = vpop.f32.mrb[156].mxu1 }
0x116c   :  { %v17268_v27 = vpop.f32.mrb[159].mxu0  ;;  %v17273_v57 = vpop.f32.mrb[157].mxu1  ;;  %v12257_v32 = vsel %vm245_vm2, %v21887_v43, -inf }
0x116d   :  { %12258 = vmax.xlane.f32.xlu0 %v12257_v32  ;;  %v11441_v42 = vpop.f32.mrb[158].mxu1  ;;  %v21895_v40 = vpop.permute.xlu1 %13364 }
0x116e   :  { %v17274_v21 = vpop.f32.mrb[159].mxu1  ;;  %23325 = vst [vmem:[#allocation37_spill] sm:$0xff] %v21895_v40 }
0x1171   :  { %v21893_v26 = vpop.f32.mrb[160].mxu0 }
0x1172   :  { %v17279_v10 = vpop.f32.mrb[161].mxu0  ;;  %v12260_v51 = vsel %vm245_vm2, %v21893_v26, -inf }
0x1173   :  { %v11489_v8 = vpop.f32.mrb[162].mxu0  ;;  %12261 = vmax.xlane.f32.xlu1 %v12260_v51  ;;  %v21899_v27 = vpop.f32.mrb[160].mxu1 }
0x1174   :  { %v17280_v57 = vpop.f32.mrb[163].mxu0  ;;  %v17285_v54 = vpop.f32.mrb[161].mxu1  ;;  %v12263_v32 = vsel %vm245_vm2, %v21899_v27, -inf }
0x1175   :  { %12264 = vmax.xlane.f32.xlu0 %v12263_v32  ;;  %v11537_v42 = vpop.f32.mrb[162].mxu1  ;;  %v21907_v10 = vpop.permute.xlu1 %13460 }
0x1176   :  { %v17286_v21 = vpop.f32.mrb[163].mxu1  ;;  %23327 = vst [vmem:[#allocation35_spill] sm:$0xff] %v21907_v10 }
0x1179   :  { %v21905_v52 = vpop.f32.mrb[164].mxu0 }
0x117a   :  { %v17291_v36 = vpop.f32.mrb[165].mxu0  ;;  %v12266_v51 = vsel %vm245_vm2, %v21905_v52, -inf }
0x117b   :  { %v11585_v8 = vpop.f32.mrb[166].mxu0  ;;  %12267 = vmax.xlane.f32.xlu1 %v12266_v51  ;;  %v21911_v57 = vpop.f32.mrb[164].mxu1 }
0x117c   :  { %v17292_v54 = vpop.f32.mrb[167].mxu0  ;;  %v17297_v15 = vpop.f32.mrb[165].mxu1  ;;  %v12269_v32 = vsel %vm245_vm2, %v21911_v57, -inf }
0x117d   :  { %12270 = vmax.xlane.f32.xlu0 %v12269_v32  ;;  %v11633_v42 = vpop.f32.mrb[166].mxu1  ;;  %v21919_v36 = vpop.permute.xlu1 %13556 }
0x117e   :  { %v17298_v21 = vpop.f32.mrb[167].mxu1  ;;  %23329 = vst [vmem:[#allocation41_spill] sm:$0xff] %v21919_v36 }
0x1181   :  { %v21917_v11 = vpop.f32.mrb[168].mxu0 }
0x1182   :  { %v17303_v23 = vpop.f32.mrb[169].mxu0  ;;  %v12272_v51 = vsel %vm245_vm2, %v21917_v11, -inf }
0x1183   :  { %v11681_v8 = vpop.f32.mrb[170].mxu0  ;;  %12273 = vmax.xlane.f32.xlu1 %v12272_v51  ;;  %v21923_v54 = vpop.f32.mrb[168].mxu1 }
0x1184   :  { %v17304_v15 = vpop.f32.mrb[171].mxu0  ;;  %v17309_v25 = vpop.f32.mrb[169].mxu1  ;;  %v12275_v32 = vsel %vm245_vm2, %v21923_v54, -inf }
0x1185   :  { %12276 = vmax.xlane.f32.xlu0 %v12275_v32  ;;  %v11729_v42 = vpop.f32.mrb[170].mxu1  ;;  %v21931_v23 = vpop.permute.xlu1 %13652 }
0x1186   :  { %v17310_v21 = vpop.f32.mrb[171].mxu1  ;;  %23331 = vst [vmem:[#allocation39_spill] sm:$0xff] %v21931_v23 }
0x1187   :  { %v21939_v21 = vpop.permute.xlu0 %13220 }
0x1189   :  { %v21929_v49 = vpop.f32.mrb[172].mxu0  ;;  %v21941_v2 = vpop.permute.xlu1 %13748 }
0x118a   :  { %v17315_v34 = vpop.f32.mrb[173].mxu0  ;;  %v12278_v51 = vsel %vm245_vm2, %v21929_v49, -inf  ;;  %23332 = vst [vmem:[#allocation40_spill] sm:$0xff] %v21941_v2 }
0x118b   :  { %v11777_v8 = vpop.f32.mrb[174].mxu0  ;;  %12279 = vmax.xlane.f32.xlu1 %v12278_v51  ;;  %v21935_v15 = vpop.f32.mrb[172].mxu1 }
0x118c   :  { %v17316_v25 = vpop.f32.mrb[175].mxu0  ;;  %v17321_v5 = vpop.f32.mrb[173].mxu1  ;;  %v12281_v32 = vsel %vm245_vm2, %v21935_v15, -inf }
0x118d   :  { %12282 = vmax.xlane.f32.xlu0 %v12281_v32  ;;  %v11825_v42 = vpop.f32.mrb[174].mxu1  ;;  %v12214_v60 = vpop.xlane.xlu0 %12213 }
0x118e   :  { %v17322_v46 = vpop.f32.mrb[175].mxu1  ;;  %v12217_v2 = vpop.xlane.xlu1 %12216  ;;  %v12308_v19 = vsub.f32 %v21801_v29, %v12214_v60 }
0x1191   :  { %v21943_v34 = vpop.f32.mrb[176].mxu0  ;;  %v12220_v36 = vpop.xlane.xlu0 %12219 }
0x1192   :  { %v17327_v23 = vpop.f32.mrb[177].mxu0  ;;  %v12284_v51 = vsel %vm245_vm2, %v21943_v34, -inf  ;;  %v12310_v60 = vsub.f32 %v21809_v38, %v12220_v36 }
0x1193   :  { %v11873_v8 = vpop.f32.mrb[178].mxu0  ;;  %12285 = vmax.xlane.f32.xlu1 %v12284_v51  ;;  %v21947_v5 = vpop.f32.mrb[176].mxu1 }
0x1194   :  { %v17328_v25 = vpop.f32.mrb[179].mxu0  ;;  %v17333_v0 = vpop.f32.mrb[177].mxu1  ;;  %v12287_v32 = vsel %vm245_vm2, %v21947_v5, -inf  ;;  %v12309_v8 = vsub.f32 %v21805_v39, %v12217_v2  ;;  %v12344_v2 = vmul.f32 1.442695, %v12310_v60 }
0x1195   :  { %12288 = vmax.xlane.f32.xlu0 %v12287_v32  ;;  %v11921_v46 = vpop.f32.mrb[178].mxu1  ;;  %v12223_v13 = vpop.xlane.xlu0 %12222 }
0x1196   :  { %v17334_v42 = vpop.f32.mrb[179].mxu1  ;;  %v12342_v40 = vmul.f32 1.442695, %v12309_v8  ;;  %v12311_v56 = vsub.f32 %v21813_v45, %v12223_v13 }
0x1197   :  { %v12340_v42 = vmul.f32 1.442695, %v12308_v19 }
0x1199   :  { %v21952_v23 = vpop.f32.mrb[180].mxu0  ;;  %17937 = vpow2.f32 %v12340_v42 }
0x119a   :  { %v17339_v10 = vpop.f32.mrb[181].mxu0  ;;  %v12290_v51 = vsel %vm245_vm2, %v21952_v23, -inf  ;;  %17939 = vpow2.f32 %v12342_v40 }
0x119b   :  { %v11969_v25 = vpop.f32.mrb[182].mxu0  ;;  %12291 = vmax.xlane.f32.xlu1 %v12290_v51  ;;  %v21957_v0 = vpop.f32.mrb[180].mxu1  ;;  %17941 = vpow2.f32 %v12344_v2 }
0x119c   :  { %v17340_v32 = vpop.f32.mrb[183].mxu0  ;;  %v12293_v46 = vsel %vm245_vm2, %v21957_v0, -inf  ;;  %v17345_v29 = vpop.f32.mrb[181].mxu1 }
0x119d   :  { %12294 = vmax.xlane.f32.xlu0 %v12293_v46  ;;  %v12017_v10 = vpop.f32.mrb[182].mxu1  ;;  %v12346_v32 = vmul.f32 1.442695, %v12311_v56 }
0x119e   :  { %v17346_v22 = vpop.f32.mrb[183].mxu1 }
0x119f   :  { %17943 = vpow2.f32 %v12346_v32 }
0x11a1   :  { %v21963_v39 = vpop.f32.mrb[184].mxu0 }
0x11a2   :  { %v17351_v51 = vpop.f32.mrb[185].mxu0  ;;  %v12296_v25 = vsel %vm245_vm2, %v21963_v39, -inf }
0x11a3   :  { %v12065_v19 = vpop.f32.mrb[186].mxu0  ;;  %12297 = vmax.xlane.f32.xlu1 %v12296_v25  ;;  %v21967_v38 = vpop.f32.mrb[184].mxu1 }
0x11a4   :  { %v17352_v36 = vpop.f32.mrb[187].mxu0  ;;  %v17357_v8 = vpop.f32.mrb[185].mxu1  ;;  %v12299_v13 = vsel %vm245_vm2, %v21967_v38, -inf }
0x11a5   :  { %12300 = vmax.xlane.f32.xlu0 %v12299_v13  ;;  %v12113_v45 = vpop.f32.mrb[186].mxu1  ;;  %v21975_v40 = vpop.eup %17937 }
0x11a6   :  { %v17358_v22 = vpop.f32.mrb[187].mxu1  ;;  %v21981_v25 = vpop.eup %17939  ;;  %v12404_v36 = vsel %vm245_vm2, %v21975_v40, 0.0 }
0x11a7   :  { %v21985_v8 = vpop.eup %17941  ;;  %v12407_v13 = vsel %vm245_vm2, %v21981_v25, 0.0 }
0x11a8   :  { %v12410_v22 = vsel %vm245_vm2, %v21985_v8, 0.0 }
0x11a9   :  { %v21971_v46 = vpop.f32.mrb[188].mxu0  ;;  %v21989_v45 = vpop.eup %17943 }
0x11aa   :  { %v17363_v42 = vpop.f32.mrb[189].mxu0  ;;  %v12302_v56 = vsel %vm245_vm2, %v21971_v46, -inf }
0x11ab   :  { %v12161_v60 = vpop.f32.mrb[190].mxu0  ;;  %12303 = vmax.xlane.f32.xlu1 %v12302_v56  ;;  %v21977_v29 = vpop.f32.mrb[188].mxu1  ;;  %v12413_v42 = vsel %vm245_vm2, %v21989_v45, 0.0 }
0x11ac   :  { %v17364_v10 = vpop.f32.mrb[191].mxu0  ;;  %v17369_v2 = vpop.f32.mrb[189].mxu1  ;;  %v12305_v51 = vsel %vm245_vm2, %v21977_v29, -inf }
0x11ad   :  { %12306 = vmax.xlane.f32.xlu0 %v12305_v51  ;;  %v12209_v32 = vpop.f32.mrb[190].mxu1  ;;  %v12226_v56 = vpop.xlane.xlu1 %12225 }
0x11ae   :  { %v17370_v19 = vpop.f32.mrb[191].mxu1  ;;  %v12229_v60 = vpop.xlane.xlu0 %12228  ;;  %v12312_v10 = vsub.f32 %v21817_v61, %v12226_v56 }
0x11af   :  { %12405 = vadd.xlane.f32.xlu1 %v12404_v36  ;;  %v12313_v2 = vsub.f32 %v21821_v17, %v12229_v60 }
0x11b0   :  { %v12348_v19 = vmul.f32 1.442695, %v12312_v10 }
0x11b1   :  { %12408 = vadd.xlane.f32.xlu0 %v12407_v13  ;;  %v12350_v13 = vmul.f32 1.442695, %v12313_v2 }
0x11b2   :  { %17945 = vpow2.f32 %v12348_v19 }
0x11b3   :  { %12411 = vadd.xlane.f32.xlu1 %v12410_v22  ;;  %v12235_v32 = vpop.xlane.xlu0 %12234  ;;  %17947 = vpow2.f32 %v12350_v13 }
0x11b4   :  { %v12315_v22 = vsub.f32 %v21827_v35, %v12235_v32 }
0x11b5   :  { %12414 = vadd.xlane.f32.xlu0 %v12413_v42 }
0x11b6   :  { %v12354_v58 = vmul.f32 1.442695, %v12315_v22 }
0x11c4   :  { %13844 = vrot.lane.b32.xlu1 %v21539_v16, %s18336_s25 }
0x11cb   :  { %13796 = vrot.lane.b32.xlu0 %v21533_v12, %s18336_s25 }
0x11d4   :  { %v12238_v51 = vpop.xlane.xlu1 %12237 }
0x11d5   :  { %v12316_v36 = vsub.f32 %v21835_v24, %v12238_v51  ;;  %v22007_v51 = vpop.eup %17945 }
0x11d6   :  { %v12241_v42 = vpop.xlane.xlu0 %12240 }
0x11d7   :  { %v12356_v16 = vmul.f32 1.442695, %v12316_v36  ;;  %v12317_v12 = vsub.f32 %v21841_v6, %v12241_v42  ;;  %v22009_v6 = vpop.eup %17947 }
0x11d9   :  { %17949 = vpow2.f32 %v12356_v16  ;;  %v12358_v60 = vmul.f32 1.442695, %v12317_v12 }
0x11da   :  { %17951 = vpow2.f32 %v12354_v58  ;;  %v12419_v58 = vsel %vm245_vm2, %v22009_v6, 0.0 }
0x11dc   :  { %v12244_v53 = vpop.xlane.xlu1 %12243 }
0x11dd   :  { %v12318_v61 = vsub.f32 %v21847_v3, %v12244_v53  ;;  %v12416_v3 = vsel %vm245_vm2, %v22007_v51, 0.0 }
0x11de   :  { %v12247_v17 = vpop.xlane.xlu0 %12246 }
0x11df   :  { %v12360_v56 = vmul.f32 1.442695, %v12318_v61  ;;  %v12319_v24 = vsub.f32 %v21853_v4, %v12247_v17 }
0x11e0   :  { %v12232_v10 = vpop.xlane.xlu1 %12231 }
0x11e1   :  { %v12314_v35 = vsub.f32 %v21825_v18, %v12232_v10  ;;  %17953 = vpow2.f32 %v12360_v56  ;;  %v12362_v32 = vmul.f32 1.442695, %v12319_v24 }
0x11e2   :  { %17955 = vpow2.f32 %v12358_v60 }
0x11e3   :  { %v12352_v2 = vmul.f32 1.442695, %v12314_v35  ;;  %v22013_v53 = vpop.eup %17949 }
0x11e4   :  { %v22017_v18 = vpop.eup %17951  ;;  %v12428_v4 = vsel %vm245_vm2, %v22013_v53, 0.0 }
0x11e5   :  { %17957 = vpow2.f32 %v12352_v2  ;;  %v12425_v36 = vsel %vm245_vm2, %v22017_v18, 0.0 }
0x11e6   :  { %17959 = vpow2.f32 %v12362_v32 }
0x11e8   :  { %12417 = vadd.xlane.f32.xlu1 %v12416_v3 }
0x11ea   :  { %12420 = vadd.xlane.f32.xlu0 %v12419_v58 }
0x11eb   :  { %v22021_v19 = vpop.eup %17953 }
0x11ec   :  { %12429 = vadd.xlane.f32.xlu1 %v12428_v4  ;;  %v22025_v13 = vpop.eup %17955  ;;  %v12434_v22 = vsel %vm245_vm2, %v22021_v19, 0.0 }
0x11ed   :  { %v12431_v61 = vsel %vm245_vm2, %v22025_v13, 0.0 }
0x11ee   :  { %12426 = vadd.xlane.f32.xlu0 %v12425_v36 }
0x11ef   :  { %v22029_v42 = vpop.eup %17957 }
0x11f0   :  { %12435 = vadd.xlane.f32.xlu1 %v12434_v22  ;;  %v12250_v16 = vpop.xlane.xlu1 %12249  ;;  %v22034_v17 = vpop.eup %17959  ;;  %v12422_v10 = vsel %vm245_vm2, %v22029_v42, 0.0 }
0x11f1   :  { %v12320_v12 = vsub.f32 %v21869_v50, %v12250_v16  ;;  %v12437_v2 = vsel %vm245_vm2, %v22034_v17, 0.0 }
0x11f2   :  { %v12253_v56 = vpop.xlane.xlu0 %12252  ;;  %12432 = vadd.xlane.f32.xlu0 %v12431_v61 }
0x11f3   :  { %v12364_v60 = vmul.f32 1.442695, %v12320_v12  ;;  %v12321_v24 = vsub.f32 %v21875_v41, %v12253_v56 }
0x11f4   :  { %12423 = vadd.xlane.f32.xlu1 %v12422_v10 }
0x11f5   :  { %17961 = vpow2.f32 %v12364_v60  ;;  %v12366_v35 = vmul.f32 1.442695, %v12321_v24 }
0x11f6   :  { %12438 = vadd.xlane.f32.xlu0 %v12437_v2 }
0x11f7   :  { %17963 = vpow2.f32 %v12366_v35 }
0x11f8   :  { %v12256_v50 = vpop.xlane.xlu1 %12255 }
0x11f9   :  { %v12322_v32 = vsub.f32 %v21881_v62, %v12256_v50 }
0x11fa   :  { %v12259_v3 = vpop.xlane.xlu0 %12258 }
0x11fb   :  { %v12368_v58 = vmul.f32 1.442695, %v12322_v32  ;;  %v12323_v4 = vsub.f32 %v21887_v43, %v12259_v3 }
0x11fd   :  { %17965 = vpow2.f32 %v12368_v58  ;;  %v12370_v41 = vmul.f32 1.442695, %v12323_v4 }
0x11ff   :  { %v22043_v36 = vpop.eup %17961  ;;  %17967 = vpow2.f32 %v12370_v41 }
0x1200   :  { %v12262_v22 = vpop.xlane.xlu1 %12261  ;;  %v12440_v16 = vsel %vm245_vm2, %v22043_v36, 0.0 }
0x1201   :  { %v22047_v12 = vpop.eup %17963  ;;  %v12324_v61 = vsub.f32 %v21893_v26, %v12262_v22  ;;  %12441 = vadd.xlane.f32.xlu1 %v12440_v16 }
0x1202   :  { %v12265_v56 = vpop.xlane.xlu0 %12264  ;;  %v12443_v62 = vsel %vm245_vm2, %v22047_v12, 0.0 }
0x1203   :  { %v12372_v60 = vmul.f32 1.442695, %v12324_v61  ;;  %v12325_v43 = vsub.f32 %v21899_v27, %v12265_v56  ;;  %12444 = vadd.xlane.f32.xlu0 %v12443_v62 }
0x1205   :  { %17969 = vpow2.f32 %v12372_v60  ;;  %v12374_v24 = vmul.f32 1.442695, %v12325_v43 }
0x1207   :  { %v22053_v10 = vpop.eup %17965  ;;  %17971 = vpow2.f32 %v12374_v24 }
0x1208   :  { %v12268_v35 = vpop.xlane.xlu1 %12267  ;;  %v12446_v2 = vsel %vm245_vm2, %v22053_v10, 0.0 }
0x1209   :  { %v22057_v50 = vpop.eup %17967  ;;  %v12326_v26 = vsub.f32 %v21905_v52, %v12268_v35  ;;  %12447 = vadd.xlane.f32.xlu1 %v12446_v2 }
0x120a   :  { %v12271_v32 = vpop.xlane.xlu0 %12270  ;;  %v12449_v3 = vsel %vm245_vm2, %v22057_v50, 0.0 }
0x120b   :  { %v12376_v27 = vmul.f32 1.442695, %v12326_v26  ;;  %v12327_v58 = vsub.f32 %v21911_v57, %v12271_v32  ;;  %12450 = vadd.xlane.f32.xlu0 %v12449_v3 }
0x120d   :  { %17973 = vpow2.f32 %v12376_v27  ;;  %v12378_v4 = vmul.f32 1.442695, %v12327_v58 }
0x120f   :  { %v22063_v41 = vpop.eup %17969  ;;  %17975 = vpow2.f32 %v12378_v4 }
0x1210   :  { %v12274_v22 = vpop.xlane.xlu1 %12273  ;;  %v12452_v16 = vsel %vm245_vm2, %v22063_v41, 0.0 }
0x1211   :  { %v22067_v61 = vpop.eup %17971  ;;  %v12328_v52 = vsub.f32 %v21917_v11, %v12274_v22  ;;  %12453 = vadd.xlane.f32.xlu1 %v12452_v16 }
0x1212   :  { %v12277_v56 = vpop.xlane.xlu0 %12276  ;;  %v12455_v62 = vsel %vm245_vm2, %v22067_v61, 0.0 }
0x1213   :  { %v12380_v57 = vmul.f32 1.442695, %v12328_v52  ;;  %v12329_v60 = vsub.f32 %v21923_v54, %v12277_v56  ;;  %12456 = vadd.xlane.f32.xlu0 %v12455_v62 }
0x1215   :  { %17977 = vpow2.f32 %v12380_v57  ;;  %v12382_v43 = vmul.f32 1.442695, %v12329_v60 }
0x1217   :  { %v22073_v24 = vpop.eup %17973  ;;  %17979 = vpow2.f32 %v12382_v43 }
0x1218   :  { %v12458_v35 = vsel %vm245_vm2, %v22073_v24, 0.0 }
0x1219   :  { %v22077_v2 = vpop.eup %17975  ;;  %12459 = vadd.xlane.f32.xlu1 %v12458_v35 }
0x121a   :  { %v12283_v11 = vpop.xlane.xlu0 %12282  ;;  %v12461_v26 = vsel %vm245_vm2, %v22077_v2, 0.0 }
0x121b   :  { %v12331_v32 = vsub.f32 %v21935_v15, %v12283_v11  ;;  %12462 = vadd.xlane.f32.xlu0 %v12461_v26  ;;  %v12280_v15 = vpop.xlane.xlu1 %12279 }
0x121d   :  { %v12386_v54 = vmul.f32 1.442695, %v12331_v32 }
0x121f   :  { %v22082_v3 = vpop.eup %17977  ;;  %17981 = vpow2.f32 %v12386_v54 }
0x1220   :  { %23333 = vst [vmem:[#allocation53_spill] sm:$0xff] %v22082_v3  ;;  %v12464_v27 = vsel %vm245_vm2, %v22082_v3, 0.0  ;;  %v12286_v43 = vpop.xlane.xlu1 %12285 }
0x1221   :  { %v22086_v58 = vpop.eup %17979  ;;  %12465 = vadd.xlane.f32.xlu1 %v12464_v27 }
0x1222   :  { %v12289_v4 = vpop.xlane.xlu0 %12288  ;;  %v12467_v22 = vsel %vm245_vm2, %v22086_v58, 0.0 }
0x1223   :  { %v12333_v16 = vsub.f32 %v21947_v5, %v12289_v4  ;;  %12468 = vadd.xlane.f32.xlu0 %v12467_v22 }
0x1225   :  { %v12390_v52 = vmul.f32 1.442695, %v12333_v16 }
0x1227   :  { %17983 = vpow2.f32 %v12390_v52 }
0x1228   :  { %v12292_v11 = vpop.xlane.xlu1 %12291 }
0x1229   :  { %v22091_v56 = vpop.eup %17981 }
0x122a   :  { %23334 = vst [vmem:[#allocation58_spill] sm:$0xff] %v22091_v56  ;;  %v12295_v62 = vpop.xlane.xlu0 %12294  ;;  %v12473_v57 = vsel %vm245_vm2, %v22091_v56, 0.0  ;;  %v12334_v56 = vsub.f32 %v21952_v23, %v12292_v11  ;;  %v12746_v23 = vsel %vm3668_vm4, %v21833_v30, 0 }
0x122b   :  { %v12335_v60 = vsub.f32 %v21957_v0, %v12295_v62  ;;  %12474 = vadd.xlane.f32.xlu0 %v12473_v57 }
0x122d   :  { %v12394_v35 = vmul.f32 1.442695, %v12335_v60 }
0x122f   :  { %17985 = vpow2.f32 %v12394_v35  ;;  %v12332_v35 = vsub.f32 %v21943_v34, %v12286_v43  ;;  %v12698_v34 = vsel %vm3668_vm4, %v21831_v47, 0 }
0x1230   :  { %v12298_v32 = vpop.xlane.xlu1 %12297 }
0x1231   :  { %v22096_v26 = vpop.eup %17983 }
0x1232   :  { %23335 = vst [vmem:[#allocation55_spill] sm:$0xff] %v22096_v26  ;;  %13892 = vrot.lane.b32.xlu1 %v21545_v31, %s18336_s25  ;;  %v12479_v5 = vsel %vm245_vm2, %v22096_v26, 0.0  ;;  %v22102_v54 = vpop.xlane.xlu0 %12300  ;;  %v12330_v31 = vsub.f32 %v21929_v49, %v12280_v15  ;;  %v12388_v26 = vmul.f32 1.442695, %v12332_v35  ;;  %v12392_v15 = vmul.f32 1.442695, %v12334_v56 }
0x1233   :  { %12480 = vadd.xlane.f32.xlu0 %v12479_v5  ;;  %v12794_v56 = vsel %vm3668_vm4, %v21837_v44, 0 }
0x1234   :  { %v12384_v60 = vmul.f32 1.442695, %v12330_v31 }
0x1238   :  { %v12304_v27 = vpop.xlane.xlu1 %12303 }
0x1239   :  { %v22104_v4 = vpop.eup %17985  ;;  %v12338_v47 = vsub.f32 %v21971_v46, %v12304_v27 }
0x123a   :  { %23336 = vst [vmem:[#allocation56_spill] sm:$0xff] %v22104_v4  ;;  %v22106_v0 = vpop.xlane.xlu0 %12306  ;;  %v12485_v22 = vsel %vm245_vm2, %v22104_v4, 0.0 }
0x123b   :  { %12486 = vadd.xlane.f32.xlu0 %v12485_v22 }
0x123c   :  { %v12406_v16 = vpop.xlane.xlu1 %12405 }
0x123d   :  { %17987 = vrcp.f32 %v12406_v16 }
0x123e   :  { %v12409_v52 = vpop.xlane.xlu0 %12408 }
0x123f   :  { %17989 = vrcp.f32 %v12409_v52  ;;  %v12336_v52 = vsub.f32 %v21963_v39, %v12298_v32 }
0x1240   :  { %v12412_v62 = vpop.xlane.xlu1 %12411 }
0x1241   :  { %17991 = vrcp.f32 %v12412_v62  ;;  %v12396_v39 = vmul.f32 1.442695, %v12336_v52  ;;  %v12339_v62 = vsub.f32 %v21977_v29, %v22106_v0 }
0x1242   :  { %v12415_v57 = vpop.xlane.xlu0 %12414 }
0x1243   :  { %17993 = vrcp.f32 %v12415_v57  ;;  %v12402_v35 = vmul.f32 1.442695, %v12339_v62 }
0x1244   :  { %17995 = vpow2.f32 %v12384_v60  ;;  %v22175_v0 = vpop.permute.xlu1 %13844 }
0x1245   :  { %17997 = vpow2.f32 %v12388_v26 }
0x1246   :  { %17999 = vpow2.f32 %v12392_v15 }
0x1247   :  { %v17988_v5 = vpop.eup %17987  ;;  %18001 = vpow2.f32 %v12396_v39 }
0x1248   :  { %v12532_v22 = vmul.f32 %v17988_v5, %v21975_v40 }
0x1249   :  { %v17990_v4 = vpop.eup %17989 }
0x124a   :  { %v12564_v16 = vpack.c.bf16 %v12532_v22, %v12532_v22  ;;  %v12533_v3 = vmul.f32 %v17990_v4, %v21981_v25  ;;  %v22177_v22 = vpop.permute.xlu0 %13796 }
0x124b   :  { %v17992_v49 = vpop.eup %17991 }
0x124c   :  { %v12565_v43 = vpack.c.bf16 %v12533_v3, %v12533_v3  ;;  %17374 = vmatmul.mubr.msk.bf16.vlgmr.msra.gmra.mrb[192].mxu0 %vm245_vm2, %v12564_v16  ;;  %v12534_v40 = vmul.f32 %v17992_v49, %v21985_v8  ;;  %v12400_v3 = vmul.f32 1.442695, %v12338_v47 }
0x124d   :  { %v17994_v31 = vpop.eup %17993  ;;  %17384 = vmatpush3.bf16.msra.mxu0 %v12698_v34  ;;  %17385 = vmatprep.mubr.msk.bf16.mxu0 %vm18351_vm0, %v23163_v7 }
0x124e   :  { %17380 = vmatmul.mubr.msk.bf16.vlgmr.msra.gmra.mrb[192].mxu1 %vm245_vm2, %v12565_v43  ;;  %17395 = vmatprep.subr.bf16.mxu0 %v23163_v7  ;;  %v12535_v25 = vmul.f32 %v17994_v31, %v21989_v45  ;;  %v22133_v30 = vpop.eup %17995  ;;  %v12566_v8 = vpack.c.bf16 %v12534_v40, %v12534_v40  ;;  %18003 = vpow2.f32 %v12400_v3 }
0x124f   :  { %17390 = vmatpush3.bf16.msra.mxu1 %v12746_v23  ;;  %17391 = vmatprep.mubr.msk.bf16.mxu1 %vm18351_vm0, %v23163_v7  ;;  %v12470_v11 = vsel %vm245_vm2, %v22133_v30, 0.0  ;;  %v22140_v45 = vpop.eup %17997 }
0x1250   :  { %17401 = vmatprep.subr.bf16.mxu1 %v23163_v7  ;;  %v12567_v46 = vpack.c.bf16 %v12535_v25, %v12535_v25  ;;  %v12476_v44 = vsel %vm245_vm2, %v22140_v45, 0.0  ;;  %v22153_v26 = vpop.eup %17999 }
0x1251   :  { %13940 = vrot.lane.b32.xlu0 %v21553_v14, %s18336_s25  ;;  %v12842_v14 = vsel %vm3668_vm4, %v21845_v37, 0  ;;  %v12337_v37 = vsub.f32 %v21967_v38, %v22102_v54  ;;  %v12482_v32 = vsel %vm245_vm2, %v22153_v26, 0.0  ;;  %v22159_v27 = vpop.eup %18001 }
0x1252   :  { %v12488_v57 = vsel %vm245_vm2, %v22159_v27, 0.0 }
0x1253   :  { %v12398_v4 = vmul.f32 1.442695, %v12337_v37 }
0x1254   :  { %17386 = vmatmul.mubr.msk.bf16.vlgmr.msra.gmra.mrb[196].mxu0 %vm245_vm2, %v12566_v8 }
0x1255   :  { %17396 = vmatpush3.bf16.msra.mxu0 %v12794_v56  ;;  %17397 = vmatprep.mubr.msk.bf16.mxu0 %vm18351_vm0, %v23163_v7  ;;  %18005 = vpow2.f32 %v12398_v4 }
0x1256   :  { %12471 = vadd.xlane.f32.xlu1 %v12470_v11  ;;  %17392 = vmatmul.mubr.msk.bf16.vlgmr.msra.gmra.mrb[196].mxu1 %vm245_vm2, %v12567_v46  ;;  %18007 = vpow2.f32 %v12402_v35 }
0x1257   :  { %17402 = vmatpush3.bf16.msra.mxu1 %v12842_v14  ;;  %17407 = vmatprep.subr.bf16.mxu0 %v23163_v7  ;;  %v13034_v14 = vsel %vm3668_vm4, %v21863_v59, 0 }
0x1258   :  { %17403 = vmatprep.mubr.msk.bf16.mxu1 %vm18351_vm0, %v23163_v7  ;;  %17413 = vmatprep.subr.bf16.mxu1 %v23163_v7  ;;  %v22165_v60 = vpop.eup %18003 }
0x1259   :  { %v12494_v38 = vsel %vm245_vm2, %v22165_v60, 0.0 }
0x125a   :  { %12477 = vadd.xlane.f32.xlu1 %v12476_v44 }
0x125e   :  { %12483 = vadd.xlane.f32.xlu1 %v12482_v32 }
0x125f   :  { %v22169_v54 = vpop.eup %18005 }
0x1260   :  { %v12491_v5 = vsel %vm245_vm2, %v22169_v54, 0.0  ;;  %v22173_v29 = vpop.eup %18007 }
0x1261   :  { %v12497_v16 = vsel %vm245_vm2, %v22173_v29, 0.0 }
0x1262   :  { %12489 = vadd.xlane.f32.xlu1 %v12488_v57 }
0x1266   :  { %12495 = vadd.xlane.f32.xlu1 %v12494_v38 }
0x1270   :  { %12492 = vadd.xlane.f32.xlu0 %v12491_v5 }
0x1274   :  { %12498 = vadd.xlane.f32.xlu0 %v12497_v16 }
0x1275   :  { %v12418_v49 = vpop.xlane.xlu1 %12417 }
0x1276   :  { %18009 = vrcp.f32 %v12418_v49 }
0x1277   :  { %v12421_v15 = vpop.xlane.xlu0 %12420  ;;  %13988 = vrot.lane.b32.xlu1 %v21562_v33, %s18336_s25  ;;  %v12890_v33 = vsel %vm3668_vm4, %v21849_v48, 0 }
0x1278   :  { %18011 = vrcp.f32 %v12421_v15 }
0x1279   :  { %v12430_v52 = vpop.xlane.xlu1 %12429 }
0x127b   :  { %v12427_v34 = vpop.xlane.xlu0 %12426  ;;  %14084 = vrot.lane.b32.xlu1 %v21575_v63, %s18336_s25 }
0x127c   :  { %18013 = vrcp.f32 %v12427_v34 }
0x127d   :  { %v12436_v43 = vpop.xlane.xlu1 %12435 }
0x127f   :  { %v12433_v40 = vpop.xlane.xlu0 %12432 }
0x1280   :  { %v18010_v31 = vpop.eup %18009 }
0x1281   :  { %v12536_v23 = vmul.f32 %v18010_v31, %v22007_v51  ;;  %v12424_v39 = vpop.xlane.xlu1 %12423  ;;  %v12938_v51 = vsel %vm3668_vm4, %v21859_v1, 0 }
0x1282   :  { %v18012_v47 = vpop.eup %18011  ;;  %18015 = vrcp.f32 %v12424_v39  ;;  %v23338_v39 = vld [vmem:[#allocation38_spill] sm:$0xff] }
0x1283   :  { %v12568_v25 = vpack.c.bf16 %v12536_v23, %v12536_v23  ;;  %v12537_v8 = vmul.f32 %v18012_v47, %v22009_v6  ;;  %18017 = vrcp.f32 %v12433_v40  ;;  %v12439_v6 = vpop.xlane.xlu0 %12438 }
0x1284   :  { %18019 = vrcp.f32 %v12430_v52  ;;  %v23337_v52 = vld [vmem:[#allocation33_spill] sm:$0xff] }
0x1285   :  { %v12569_v3 = vpack.c.bf16 %v12537_v8, %v12537_v8  ;;  %17398 = vmatmul.mubr.msk.bf16.vlgmr.msra.gmra.mrb[200].mxu0 %vm245_vm2, %v12568_v25  ;;  %18021 = vrcp.f32 %v12439_v6  ;;  %v23339_v8 = vld [vmem:[#allocation31_spill] sm:$0xff] }
0x1286   :  { %v18014_v63 = vpop.eup %18013  ;;  %17408 = vmatpush3.bf16.msra.mxu0 %v12890_v33  ;;  %17409 = vmatprep.mubr.msk.bf16.mxu0 %vm18351_vm0, %v23163_v7  ;;  %18023 = vrcp.f32 %v12436_v43 }
0x1287   :  { %17404 = vmatmul.mubr.msk.bf16.vlgmr.msra.gmra.mrb[200].mxu1 %vm245_vm2, %v12569_v3  ;;  %17419 = vmatprep.subr.bf16.mxu0 %v23163_v7  ;;  %v12539_v48 = vmul.f32 %v18014_v63, %v22017_v18 }
0x1288   :  { %17414 = vmatpush3.bf16.msra.mxu1 %v12938_v51  ;;  %17415 = vmatprep.mubr.msk.bf16.mxu1 %vm18351_vm0, %v23163_v7 }
0x1289   :  { %17425 = vmatprep.subr.bf16.mxu1 %v23163_v7  ;;  %v12571_v46 = vpack.c.bf16 %v12539_v48, %v12539_v48 }
0x128a   :  { %14036 = vrot.lane.b32.xlu0 %v21569_v55, %s18336_s25  ;;  %v12986_v55 = vsel %vm3668_vm4, %v21861_v9, 0  ;;  %v13130_v9 = vsel %vm3668_vm4, %v21867_v28, 0 }
0x128c   :  { %v18016_v56 = vpop.eup %18015 }
0x128d   :  { %v12538_v1 = vmul.f32 %v18016_v56, %v22029_v42  ;;  %v18018_v11 = vpop.eup %18017  ;;  %v23340_v56 = vld [vmem:[#allocation32_spill] sm:$0xff] }
0x128e   :  { %v18020_v18 = vpop.eup %18019  ;;  %v12541_v37 = vmul.f32 %v18018_v11, %v22025_v13  ;;  %v12442_v42 = vpop.xlane.xlu1 %12441  ;;  %v23341_v11 = vld [vmem:[#allocation37_spill] sm:$0xff] }
0x128f   :  { %v12570_v44 = vpack.c.bf16 %v12538_v1, %v12538_v1  ;;  %17416 = vmatmul.mubr.msk.bf16.vlgmr.msra.gmra.mrb[204].mxu1 %vm245_vm2, %v12571_v46  ;;  %v12540_v59 = vmul.f32 %v18020_v18, %v22013_v53  ;;  %v18022_v62 = vpop.eup %18021  ;;  %v13082_v53 = vsel %vm3668_vm4, %v21865_v20, 0  ;;  %v13226_v20 = vsel %vm3668_vm4, %v21939_v21, 0 }
0x1290   :  { %17426 = vmatpush3.bf16.msra.mxu1 %v13034_v14  ;;  %17427 = vmatprep.mubr.msk.bf16.mxu1 %vm18351_vm0, %v23163_v7  ;;  %v12445_v32 = vpop.xlane.xlu0 %12444  ;;  %v12573_v4 = vpack.c.bf16 %v12541_v37, %v12541_v37  ;;  %v18024_v57 = vpop.eup %18023  ;;  %v12543_v35 = vmul.f32 %v18022_v62, %v22034_v17  ;;  %v23343_v62 = vld [vmem:[#allocation35_spill] sm:$0xff] }
0x1291   :  { %17410 = vmatmul.mubr.msk.bf16.vlgmr.msra.gmra.mrb[204].mxu0 %vm245_vm2, %v12570_v44  ;;  %17437 = vmatprep.subr.bf16.mxu1 %v23163_v7  ;;  %18025 = vrcp.f32 %v12445_v32  ;;  %v12572_v13 = vpack.c.bf16 %v12540_v59, %v12540_v59  ;;  %v12542_v28 = vmul.f32 %v18024_v57, %v22021_v19  ;;  %v13178_v19 = vsel %vm3668_vm4, %v23337_v52, 0  ;;  %v23342_v59 = vld [vmem:[#allocation42_spill] sm:$0xff] }
0x1292   :  { %17420 = vmatpush3.bf16.msra.mxu0 %v12986_v55  ;;  %17421 = vmatprep.mubr.msk.bf16.mxu0 %vm18351_vm0, %v23163_v7  ;;  %18027 = vrcp.f32 %v12442_v42  ;;  %v12575_v16 = vpack.c.bf16 %v12543_v35, %v12543_v35 }
0x1293   :  { %17431 = vmatprep.subr.bf16.mxu0 %v23163_v7  ;;  %v12574_v17 = vpack.c.bf16 %v12542_v28, %v12542_v28 }
0x1296   :  { %v12448_v5 = vpop.xlane.xlu1 %12447 }
0x1297   :  { %17428 = vmatmul.mubr.msk.bf16.vlgmr.msra.gmra.mrb[208].mxu1 %vm245_vm2, %v12573_v4 }
0x1298   :  { %17438 = vmatpush3.bf16.msra.mxu1 %v13130_v9  ;;  %17439 = vmatprep.mubr.msk.bf16.mxu1 %vm18351_vm0, %v23163_v7  ;;  %v12451_v38 = vpop.xlane.xlu0 %12450 }
0x1299   :  { %17422 = vmatmul.mubr.msk.bf16.vlgmr.msra.gmra.mrb[208].mxu0 %vm245_vm2, %v12572_v13  ;;  %17449 = vmatprep.subr.bf16.mxu1 %v23163_v7  ;;  %18029 = vrcp.f32 %v12451_v38  ;;  %v23344_v38 = vld [vmem:[#allocation36_spill] sm:$0xff] }
0x129a   :  { %17432 = vmatpush3.bf16.msra.mxu0 %v13082_v53  ;;  %17433 = vmatprep.mubr.msk.bf16.mxu0 %vm18351_vm0, %v23163_v7  ;;  %18031 = vrcp.f32 %v12448_v5  ;;  %v13610_v28 = vsel %vm3668_vm4, %v23344_v38, 0 }
0x129b   :  { %17443 = vmatprep.subr.bf16.mxu0 %v23163_v7  ;;  %v18026_v49 = vpop.eup %18025 }
0x129c   :  { %v18028_v15 = vpop.eup %18027  ;;  %v12545_v34 = vmul.f32 %v18026_v49, %v22047_v12  ;;  %v13322_v12 = vsel %vm3668_vm4, %v23338_v39, 0 }
0x129d   :  { %v12544_v21 = vmul.f32 %v18028_v15, %v22043_v36  ;;  %v13274_v36 = vsel %vm3668_vm4, %v23339_v8, 0  ;;  %v23350_v8 = vld [vmem:[#allocation55_spill] sm:$0xff] }
0x129e   :  { %v12454_v31 = vpop.xlane.xlu1 %12453  ;;  %v12577_v23 = vpack.c.bf16 %v12545_v34, %v12545_v34  ;;  %v23347_v34 = vld [vmem:[#allocation54_spill] sm:$0xff] }
0x129f   :  { %17440 = vmatmul.mubr.msk.bf16.vlgmr.msra.gmra.mrb[212].mxu1 %vm245_vm2, %v12575_v16  ;;  %v12576_v47 = vpack.c.bf16 %v12544_v21, %v12544_v21  ;;  %v23345_v16 = vld [vmem:[#allocation41_spill] sm:$0xff]  ;;  %v23348_v21 = vld [vmem:[#allocation39_spill] sm:$0xff] }
0x12a0   :  { %17450 = vmatpush3.bf16.msra.mxu1 %v13226_v20  ;;  %17451 = vmatprep.mubr.msk.bf16.mxu1 %vm18351_vm0, %v23163_v7  ;;  %v12457_v43 = vpop.xlane.xlu0 %12456  ;;  %v13562_v49 = vsel %vm3668_vm4, %v23345_v16, 0 }
0x12a1   :  { %17434 = vmatmul.mubr.msk.bf16.vlgmr.msra.gmra.mrb[212].mxu0 %vm245_vm2, %v12574_v17  ;;  %17461 = vmatprep.subr.bf16.mxu1 %v23163_v7  ;;  %18033 = vrcp.f32 %v12457_v43  ;;  %v23346_v17 = vld [vmem:[#allocation53_spill] sm:$0xff]  ;;  %v13706_v43 = vsel %vm3668_vm4, %v23347_v34, 0 }
0x12a2   :  { %17444 = vmatpush3.bf16.msra.mxu0 %v13178_v19  ;;  %17445 = vmatprep.mubr.msk.bf16.mxu0 %vm18351_vm0, %v23163_v7  ;;  %18035 = vrcp.f32 %v12454_v31  ;;  %v13658_v31 = vsel %vm3668_vm4, %v23348_v21, 0 }
0x12a3   :  { %17455 = vmatprep.subr.bf16.mxu0 %v23163_v7  ;;  %v18030_v40 = vpop.eup %18029 }
0x12a4   :  { %v18032_v25 = vpop.eup %18031  ;;  %v12547_v33 = vmul.f32 %v18030_v40, %v22057_v50  ;;  %v13418_v50 = vsel %vm3668_vm4, %v23340_v56, 0 }
0x12a5   :  { %v12546_v63 = vmul.f32 %v18032_v25, %v22053_v10  ;;  %v13370_v10 = vsel %vm3668_vm4, %v23341_v11, 0  ;;  %v13802_v25 = vsel %vm3668_vm4, %v22177_v22, 0  ;;  %v23351_v22 = vld [vmem:[#allocation56_spill] sm:$0xff] }
0x12a6   :  { %v12460_v51 = vpop.xlane.xlu1 %12459  ;;  %v12579_v48 = vpack.c.bf16 %v12547_v33, %v12547_v33 }
0x12a7   :  { %17452 = vmatmul.mubr.msk.bf16.vlgmr.msra.gmra.mrb[216].mxu1 %vm245_vm2, %v12577_v23  ;;  %v12578_v46 = vpack.c.bf16 %v12546_v63, %v12546_v63  ;;  %v23349_v23 = vld [vmem:[#allocation58_spill] sm:$0xff] }
0x12a8   :  { %17462 = vmatpush3.bf16.msra.mxu1 %v13322_v12  ;;  %17463 = vmatprep.mubr.msk.bf16.mxu1 %vm18351_vm0, %v23163_v7  ;;  %v12463_v3 = vpop.xlane.xlu0 %12462 }
0x12a9   :  { %17446 = vmatmul.mubr.msk.bf16.vlgmr.msra.gmra.mrb[216].mxu0 %vm245_vm2, %v12576_v47  ;;  %17473 = vmatprep.subr.bf16.mxu1 %v23163_v7  ;;  %18037 = vrcp.f32 %v12463_v3 }
0x12aa   :  { %17456 = vmatpush3.bf16.msra.mxu0 %v13274_v36  ;;  %17457 = vmatprep.mubr.msk.bf16.mxu0 %vm18351_vm0, %v23163_v7  ;;  %18039 = vrcp.f32 %v12460_v51 }
0x12ab   :  { %17467 = vmatprep.subr.bf16.mxu0 %v23163_v7  ;;  %v18034_v6 = vpop.eup %18033 }
0x12ac   :  { %v18036_v1 = vpop.eup %18035  ;;  %v12549_v14 = vmul.f32 %v18034_v6, %v22067_v61  ;;  %v13514_v61 = vsel %vm3668_vm4, %v23342_v59, 0 }
0x12ad   :  { %v12548_v18 = vmul.f32 %v18036_v1, %v22063_v41  ;;  %v13466_v41 = vsel %vm3668_vm4, %v23343_v62, 0  ;;  %v13850_v62 = vsel %vm3668_vm4, %v22175_v0, 0 }
0x12ae   :  { %v12466_v55 = vpop.xlane.xlu1 %12465  ;;  %v12581_v37 = vpack.c.bf16 %v12549_v14, %v12549_v14 }
0x12af   :  { %17464 = vmatmul.mubr.msk.bf16.vlgmr.msra.gmra.mrb[220].mxu1 %vm245_vm2, %v12579_v48  ;;  %v12580_v42 = vpack.c.bf16 %v12548_v18, %v12548_v18  ;;  %v23352_v18 = vld [vmem:[#allocation40_spill] sm:$0xff] }
0x12b0   :  { %17474 = vmatpush3.bf16.msra.mxu1 %v13418_v50  ;;  %17475 = vmatprep.mubr.msk.bf16.mxu1 %vm18351_vm0, %v23163_v7  ;;  %v12469_v44 = vpop.xlane.xlu0 %12468 }
0x12b1   :  { %17458 = vmatmul.mubr.msk.bf16.vlgmr.msra.gmra.mrb[220].mxu0 %vm245_vm2, %v12578_v46  ;;  %17485 = vmatprep.subr.bf16.mxu1 %v23163_v7  ;;  %18041 = vrcp.f32 %v12469_v44 }
0x12b2   :  { %17468 = vmatpush3.bf16.msra.mxu0 %v13370_v10  ;;  %17469 = vmatprep.mubr.msk.bf16.mxu0 %vm18351_vm0, %v23163_v7  ;;  %18043 = vrcp.f32 %v12466_v55  ;;  %v13893_v33 = vpop.permute.xlu1 %13892  ;;  %v13754_v55 = vsel %vm3668_vm4, %v23352_v18, 0 }
0x12b3   :  { %17479 = vmatprep.subr.bf16.mxu0 %v23163_v7  ;;  %v18038_v32 = vpop.eup %18037  ;;  %v13898_v51 = vsel %vm3668_vm4, %v13893_v33, 0 }
0x12b4   :  { %v18040_v4 = vpop.eup %18039  ;;  %v12551_v9 = vmul.f32 %v18038_v32, %v22077_v2 }
0x12b5   :  { %v12550_v57 = vmul.f32 %v18040_v4, %v22073_v24 }
0x12b6   :  { %v12583_v53 = vpack.c.bf16 %v12551_v9, %v12551_v9 }
0x12b7   :  { %17476 = vmatmul.mubr.msk.bf16.vlgmr.msra.gmra.mrb[224].mxu1 %vm245_vm2, %v12581_v37  ;;  %v12582_v2 = vpack.c.bf16 %v12550_v57, %v12550_v57 }
0x12b8   :  { %17486 = vmatpush3.bf16.msra.mxu1 %v13514_v61  ;;  %17487 = vmatprep.mubr.msk.bf16.mxu1 %vm18351_vm0, %v23163_v7  ;;  %v12475_v13 = vpop.xlane.xlu0 %12474 }
0x12b9   :  { %17470 = vmatmul.mubr.msk.bf16.vlgmr.msra.gmra.mrb[224].mxu0 %vm245_vm2, %v12580_v42  ;;  %17497 = vmatprep.subr.bf16.mxu1 %v23163_v7  ;;  %18045 = vrcp.f32 %v12475_v13 }
0x12ba   :  { %17480 = vmatpush3.bf16.msra.mxu0 %v13466_v41  ;;  %17481 = vmatprep.mubr.msk.bf16.mxu0 %vm18351_vm0, %v23163_v7 }
0x12bb   :  { %17491 = vmatprep.subr.bf16.mxu0 %v23163_v7  ;;  %v18042_v35 = vpop.eup %18041 }
0x12bc   :  { %v18044_v5 = vpop.eup %18043  ;;  %v12553_v24 = vmul.f32 %v18042_v35, %v22086_v58 }
0x12bd   :  { %v12552_v15 = vmul.f32 %v18044_v5, %v23346_v17 }
0x12be   :  { %v12585_v52 = vpack.c.bf16 %v12553_v24, %v12553_v24 }
0x12bf   :  { %17488 = vmatmul.mubr.msk.bf16.vlgmr.msra.gmra.mrb[228].mxu1 %vm245_vm2, %v12583_v53  ;;  %v12584_v58 = vpack.c.bf16 %v12552_v15, %v12552_v15 }
0x12c0   :  { %17498 = vmatpush3.bf16.msra.mxu1 %v13610_v28  ;;  %17499 = vmatprep.mubr.msk.bf16.mxu1 %vm18351_vm0, %v23163_v7  ;;  %v12481_v20 = vpop.xlane.xlu0 %12480 }
0x12c1   :  { %17482 = vmatmul.mubr.msk.bf16.vlgmr.msra.gmra.mrb[228].mxu0 %vm245_vm2, %v12582_v2  ;;  %17509 = vmatprep.subr.bf16.mxu1 %v23163_v7  ;;  %18047 = vrcp.f32 %v12481_v20  ;;  %v17675_v2 = vld [vmem:[#allocation20] sm:$0xff]  }
0x12c2   :  { %17492 = vmatpush3.bf16.msra.mxu0 %v13562_v49  ;;  %17493 = vmatprep.mubr.msk.bf16.mxu0 %vm18351_vm0, %v23163_v7 }
0x12c3   :  { %17503 = vmatprep.subr.bf16.mxu0 %v23163_v7  ;;  %v18046_v19 = vpop.eup %18045 }
0x12c4   :  { %v12555_v40 = vmul.f32 %v18046_v19, %v23349_v23 }
0x12c6   :  { %v12587_v12 = vpack.c.bf16 %v12555_v40, %v12555_v40 }
0x12c7   :  { %17500 = vmatmul.mubr.msk.bf16.vlgmr.msra.gmra.mrb[232].mxu1 %vm245_vm2, %v12585_v52  ;;  %v17676_v52 = vld [vmem:[#allocation20 + $0x8] sm:$0xff]  }
0x12c8   :  { %17510 = vmatpush3.bf16.msra.mxu1 %v13706_v43  ;;  %17511 = vmatprep.mubr.msk.bf16.mxu1 %vm18351_vm0, %v23163_v7  ;;  %v12487_v39 = vpop.xlane.xlu0 %12486 }
0x12c9   :  { %17494 = vmatmul.mubr.msk.bf16.vlgmr.msra.gmra.mrb[232].mxu0 %vm245_vm2, %v12584_v58  ;;  %17521 = vmatprep.subr.bf16.mxu1 %v23163_v7  ;;  %18049 = vrcp.f32 %v12487_v39 }
0x12ca   :  { %17504 = vmatpush3.bf16.msra.mxu0 %v13658_v31  ;;  %17505 = vmatprep.mubr.msk.bf16.mxu0 %vm18351_vm0, %v23163_v7 }
0x12cb   :  { %17515 = vmatprep.subr.bf16.mxu0 %v23163_v7  ;;  %v18048_v47 = vpop.eup %18047 }
0x12cc   :  { %v12557_v36 = vmul.f32 %v18048_v47, %v23350_v8  ;;  %v13941_v61 = vpop.permute.xlu0 %13940 }
0x12cd   :  { %v13946_v53 = vsel %vm3668_vm4, %v13941_v61, 0 }
0x12ce   :  { %v12589_v3 = vpack.c.bf16 %v12557_v36, %v12557_v36 }
0x12cf   :  { %17512 = vmatmul.mubr.msk.bf16.vlgmr.msra.gmra.mrb[236].mxu1 %vm245_vm2, %v12587_v12 }
0x12d0   :  { %17522 = vmatpush3.bf16.msra.mxu1 %v13802_v25  ;;  %17523 = vmatprep.mubr.msk.bf16.mxu1 %vm18351_vm0, %v23163_v7 }
0x12d1   :  { %17533 = vmatprep.subr.bf16.mxu1 %v23163_v7 }
0x12d3   :  { %v18050_v63 = vpop.eup %18049 }
0x12d4   :  { %v12559_v48 = vmul.f32 %v18050_v63, %v23351_v22 }
0x12d6   :  { %v12591_v6 = vpack.c.bf16 %v12559_v48, %v12559_v48 }
0x12d7   :  { %17524 = vmatmul.mubr.msk.bf16.vlgmr.msra.gmra.mrb[240].mxu1 %vm245_vm2, %v12589_v3 }
0x12d8   :  { %17534 = vmatpush3.bf16.msra.mxu1 %v13898_v51  ;;  %17535 = vmatprep.mubr.msk.bf16.mxu1 %vm18351_vm0, %v23163_v7 }
0x12d9   :  { %17545 = vmatprep.subr.bf16.mxu1 %v23163_v7 }
0x12df   :  { %17536 = vmatmul.mubr.msk.bf16.vlgmr.msra.gmra.mrb[244].mxu1 %vm245_vm2, %v12591_v6 }
0x12e0   :  { %17547 = vmatprep.mubr.msk.bf16.mxu1 %vm18351_vm0, %v23163_v7 }
0x12e3   :  { %v12472_v56 = vpop.xlane.xlu1 %12471 }
0x12e4   :  { %18051 = vrcp.f32 %v12472_v56 }
0x12e7   :  { %v12478_v50 = vpop.xlane.xlu1 %12477 }
0x12e8   :  { %18053 = vrcp.f32 %v12478_v50 }
0x12eb   :  { %v12484_v46 = vpop.xlane.xlu1 %12483 }
0x12ec   :  { %18055 = vrcp.f32 %v12484_v46 }
0x12ee   :  { %v18052_v1 = vpop.eup %18051 }
0x12ef   :  { %v12554_v11 = vmul.f32 %v18052_v1, %v22133_v30  ;;  %v12490_v10 = vpop.xlane.xlu1 %12489 }
0x12f0   :  { %18057 = vrcp.f32 %v12490_v10 }
0x12f1   :  { %v12586_v14 = vpack.c.bf16 %v12554_v11, %v12554_v11 }
0x12f2   :  { %v18054_v44 = vpop.eup %18053 }
0x12f3   :  { %17506 = vmatmul.mubr.msk.bf16.vlgmr.msra.gmra.mrb[236].mxu0 %vm245_vm2, %v12586_v14  ;;  %v12496_v37 = vpop.xlane.xlu1 %12495  ;;  %v12556_v32 = vmul.f32 %v18054_v44, %v22140_v45 }
0x12f4   :  { %17516 = vmatpush3.bf16.msra.mxu0 %v13754_v55  ;;  %17517 = vmatprep.mubr.msk.bf16.mxu0 %vm18351_vm0, %v23163_v7 }
0x12f5   :  { %17527 = vmatprep.subr.bf16.mxu0 %v23163_v7  ;;  %v12588_v42 = vpack.c.bf16 %v12556_v32, %v12556_v32 }
0x12f6   :  { %v18056_v4 = vpop.eup %18055 }
0x12f7   :  { %v13989_v59 = vpop.permute.xlu1 %13988  ;;  %v12558_v45 = vmul.f32 %v18056_v4, %v22153_v26 }
0x12f8   :  { %v13994_v30 = vsel %vm3668_vm4, %v13989_v59, 0 }
0x12f9   :  { %17546 = vmatpush3.bf16.msra.mxu1 %v13994_v30  ;;  %v12590_v9 = vpack.c.bf16 %v12558_v45, %v12558_v45 }
0x12fa   :  { %17557 = vmatprep.subr.bf16.mxu1 %v23163_v7  ;;  %v18058_v57 = vpop.eup %18057 }
0x12fb   :  { %17518 = vmatmul.mubr.msk.bf16.vlgmr.msra.gmra.mrb[240].mxu0 %vm245_vm2, %v12588_v42  ;;  %v12560_v0 = vmul.f32 %v18058_v57, %v22159_v27  ;;  %v14085_v16 = vpop.permute.xlu1 %14084 }
0x12fc   :  { %17528 = vmatpush3.bf16.msra.mxu0 %v13850_v62  ;;  %17529 = vmatprep.mubr.msk.bf16.mxu0 %vm18351_vm0, %v23163_v7  ;;  %v14090_v17 = vsel %vm3668_vm4, %v14085_v16, 0 }
0x12fd   :  { %v12493_v41 = vpop.xlane.xlu0 %12492  ;;  %17539 = vmatprep.subr.bf16.mxu0 %v23163_v7  ;;  %v12592_v38 = vpack.c.bf16 %v12560_v0, %v12560_v0 }
0x12fe   :  { %18059 = vrcp.f32 %v12493_v41 }
0x12ff   :  { %18061 = vrcp.f32 %v12496_v37 }
0x1301   :  { %v12499_v13 = vpop.xlane.xlu0 %12498 }
0x1302   :  { %18063 = vrcp.f32 %v12499_v13 }
0x1303   :  { %17530 = vmatmul.mubr.msk.bf16.vlgmr.msra.gmra.mrb[244].mxu0 %vm245_vm2, %v12590_v9 }
0x1304   :  { %17540 = vmatpush3.bf16.msra.mxu0 %v13946_v53  ;;  %17541 = vmatprep.mubr.msk.bf16.mxu0 %vm18351_vm0, %v23163_v7 }
0x1305   :  { %17551 = vmatprep.subr.bf16.mxu0 %v23163_v7  ;;  %v14037_v35 = vpop.permute.xlu0 %14036 }
0x1306   :  { %v14042_v24 = vsel %vm3668_vm4, %v14037_v35, 0 }
0x1308   :  { %v18060_v26 = vpop.eup %18059 }
0x1309   :  { %v12561_v28 = vmul.f32 %v18060_v26, %v22169_v54  ;;  %v18062_v5 = vpop.eup %18061 }
0x130a   :  { %v12562_v27 = vmul.f32 %v18062_v5, %v22165_v60 }
0x130b   :  { %v12593_v49 = vpack.c.bf16 %v12561_v28, %v12561_v28  ;;  %17542 = vmatmul.mubr.msk.bf16.vlgmr.msra.gmra.mrb[248].mxu0 %vm245_vm2, %v12592_v38 }
0x130c   :  { %v18064_v20 = vpop.eup %18063  ;;  %17552 = vmatpush3.bf16.msra.mxu0 %v14042_v24  ;;  %17553 = vmatprep.mubr.msk.bf16.mxu0 %vm18351_vm0, %v23163_v7  ;;  %v12594_v15 = vpack.c.bf16 %v12562_v27, %v12562_v27 }
0x130d   :  { %17548 = vmatmul.mubr.msk.bf16.vlgmr.msra.gmra.mrb[248].mxu1 %vm245_vm2, %v12593_v49  ;;  %17563 = vmatprep.subr.bf16.mxu0 %v17675_v2  ;;  %v12563_v54 = vmul.f32 %v18064_v20, %v22173_v29 }
0x130e   :  { %17558 = vmatpush3.bf16.msra.mxu1 %v14090_v17  ;;  %17559 = vmatprep.mubr.msk.bf16.mxu1 %vm18351_vm0, %v23163_v7  ;;  %vm14737_vm0 = vcmask 97280  }
0x130f   :  { %v12595_v19 = vpack.c.bf16 %v12563_v54, %v12563_v54 }
0x1313   :  { %17554 = vmatmul.mubr.msk.bf16.vlgmr.msra.gmra.mrb[252].mxu0 %vm245_vm2, %v12594_v15 }
0x1314   :  { %17564 = vmatpush3.bf16.msra.mxu0 %v17675_v2 }
0x1315   :  { %17560 = vmatmul.mubr.msk.bf16.vlgmr.msra.gmra.mrb[252].mxu1 %vm245_vm2, %v12595_v19  ;;  %17565 = vmatprep.subr.bf16.mxu0 %v17676_v52  ;;  %v17677_v19 = vld [vmem:[%s23013_s17] sm:$0xff]  }
0x1316   :  { %17599 = vmatprep.subr.bf16.mxu1 %v17677_v19 }
0x1317   :  { %17600 = vmatpush3.bf16.msra.mxu1 %v17677_v19 }
0x1318   :  { %17566 = vmatpush3.bf16.msra.mxu0 %v17676_v52 }
0x131f   :  { %v12638_v60 = vpop.f32.mrb[192].mxu0 }
0x1320   :  { %v17375_v34 = vpop.f32.mrb[193].mxu0 }
0x1321   :  { %v12641_v43 = vpop.f32.mrb[194].mxu0  ;;  %v12686_v58 = vpop.f32.mrb[192].mxu1 }
0x1322   :  { %v14132_v21 = vpack.c.bf16 %v12686_v58, %v12638_v60  ;;  %v17376_v31 = vpop.f32.mrb[195].mxu0  ;;  %v17381_v23 = vpop.f32.mrb[193].mxu1 }
0x1323   :  { %v12689_v7 = vpop.f32.mrb[194].mxu1 }
0x1324   :  { %v17382_v40 = vpop.f32.mrb[195].mxu1  ;;  %17567 = vmatprep.mubr.msk.bf16.mxu0 %vm1437_vm3, %v14132_v21  ;;  %v17678_v21 = vld [vmem:[%s23013_s17 + $0x8] sm:$0xff]  }
0x1325   :  { %17601 = vmatprep.subr.bf16.mxu1 %v17678_v21 }
0x1326   :  { %17602 = vmatpush3.bf16.msra.mxu1 %v17678_v21 }
0x1327   :  { %v12734_v29 = vpop.f32.mrb[196].mxu0 }
0x1328   :  { %v17387_v39 = vpop.f32.mrb[197].mxu0 }
0x1329   :  { %v12737_v12 = vpop.f32.mrb[198].mxu0  ;;  %v12782_v47 = vpop.f32.mrb[196].mxu1 }
0x132a   :  { %v14133_v25 = vpack.c.bf16 %v12782_v47, %v12734_v29  ;;  %v17388_v8 = vpop.f32.mrb[199].mxu0  ;;  %v17393_v36 = vpop.f32.mrb[197].mxu1 }
0x132b   :  { %v12785_v33 = vpop.f32.mrb[198].mxu1 }
0x132c   :  { %v17394_v3 = vpop.f32.mrb[199].mxu1  ;;  %17568 = vmatmul.mubr.msk.bf16.vlgmr.msra.gmra.mrb[0].mxu0 %vm1437_vm3, %v14133_v25 }
0x1358   :  { %v12830_v63 = vpop.f32.mrb[200].mxu0 }
0x1359   :  { %v17399_v51 = vpop.f32.mrb[201].mxu0 }
0x135a   :  { %v12833_v22 = vpop.f32.mrb[202].mxu0  ;;  %v12878_v48 = vpop.f32.mrb[200].mxu1 }
0x135b   :  { %v14134_v6 = vpack.c.bf16 %v12878_v48, %v12830_v63  ;;  %v17400_v56 = vpop.f32.mrb[203].mxu0  ;;  %v17405_v50 = vpop.f32.mrb[201].mxu1 }
0x135c   :  { %v12881_v46 = vpop.f32.mrb[202].mxu1 }
0x135d   :  { %v17406_v1 = vpop.f32.mrb[203].mxu1  ;;  %17571 = vmatprep.mubr.msk.bf16.mxu0 %vm1437_vm3, %v14134_v6 }
0x1362   :  { %v12974_v11 = vpop.f32.mrb[204].mxu1 }
0x1363   :  { %v17417_v10 = vpop.f32.mrb[205].mxu1 }
0x1364   :  { %v12926_v14 = vpop.f32.mrb[204].mxu0  ;;  %v12977_v44 = vpop.f32.mrb[206].mxu1 }
0x1365   :  { %v14135_v18 = vpack.c.bf16 %v12974_v11, %v12926_v14  ;;  %v17411_v55 = vpop.f32.mrb[205].mxu0  ;;  %v17418_v37 = vpop.f32.mrb[207].mxu1 }
0x1366   :  { %v12929_v32 = vpop.f32.mrb[206].mxu0 }
0x1367   :  { %v17412_v59 = vpop.f32.mrb[207].mxu0  ;;  %17572 = vmatmul.mubr.msk.bf16.gmra.mrb[4].mxu0 %vm1437_vm3, %v14135_v18 }
0x136a   :  { %v13070_v30 = vpop.f32.mrb[208].mxu1 }
0x136b   :  { %v17429_v61 = vpop.f32.mrb[209].mxu1 }
0x136c   :  { %v13022_v42 = vpop.f32.mrb[208].mxu0  ;;  %v13073_v4 = vpop.f32.mrb[210].mxu1 }
0x136d   :  { %v14136_v62 = vpack.c.bf16 %v13070_v30, %v13022_v42  ;;  %v17423_v45 = vpop.f32.mrb[209].mxu0  ;;  %v17430_v41 = vpop.f32.mrb[211].mxu1 }
0x136e   :  { %v13025_v9 = vpop.f32.mrb[210].mxu0 }
0x136f   :  { %v17424_v13 = vpop.f32.mrb[211].mxu0  ;;  %17575 = vmatprep.mubr.msk.bf16.mxu0 %vm1437_vm3, %v14136_v62 }
0x1372   :  { %v13166_v57 = vpop.f32.mrb[212].mxu1 }
0x1373   :  { %v17441_v53 = vpop.f32.mrb[213].mxu1 }
0x1374   :  { %v13118_v0 = vpop.f32.mrb[212].mxu0  ;;  %v13169_v26 = vpop.f32.mrb[214].mxu1 }
0x1375   :  { %v14137_v35 = vpack.c.bf16 %v13166_v57, %v13118_v0  ;;  %v17435_v38 = vpop.f32.mrb[213].mxu0  ;;  %v17442_v28 = vpop.f32.mrb[215].mxu1 }
0x1376   :  { %v13121_v2 = vpop.f32.mrb[214].mxu0 }
0x1377   :  { %v17436_v5 = vpop.f32.mrb[215].mxu0  ;;  %17576 = vmatmul.mubr.msk.bf16.gmra.mrb[8].mxu0 %vm1437_vm3, %v14137_v35 }
0x137a   :  { %v13262_v16 = vpop.f32.mrb[216].mxu1 }
0x137b   :  { %v17453_v49 = vpop.f32.mrb[217].mxu1 }
0x137c   :  { %v13214_v24 = vpop.f32.mrb[216].mxu0  ;;  %v13265_v20 = vpop.f32.mrb[218].mxu1 }
0x137d   :  { %v14138_v27 = vpack.c.bf16 %v13262_v16, %v13214_v24  ;;  %v17447_v17 = vpop.f32.mrb[217].mxu0  ;;  %v17454_v54 = vpop.f32.mrb[219].mxu1 }
0x137e   :  { %v13217_v15 = vpop.f32.mrb[218].mxu0 }
0x137f   :  { %v17448_v52 = vpop.f32.mrb[219].mxu0  ;;  %17579 = vmatprep.mubr.msk.bf16.mxu0 %vm1437_vm3, %v14138_v27 }
0x1382   :  { %v13358_v60 = vpop.f32.mrb[220].mxu1 }
0x1383   :  { %v17465_v34 = vpop.f32.mrb[221].mxu1 }
0x1384   :  { %v13310_v43 = vpop.f32.mrb[220].mxu0  ;;  %v13361_v58 = vpop.f32.mrb[222].mxu1 }
0x1385   :  { %v14139_v31 = vpack.c.bf16 %v13358_v60, %v13310_v43  ;;  %v17459_v23 = vpop.f32.mrb[221].mxu0  ;;  %v17466_v7 = vpop.f32.mrb[223].mxu1 }
0x1386   :  { %v13313_v40 = vpop.f32.mrb[222].mxu0 }
0x1387   :  { %v17460_v29 = vpop.f32.mrb[223].mxu0  ;;  %17580 = vmatmul.mubr.msk.bf16.gmra.mrb[12].mxu0 %vm1437_vm3, %v14139_v31 }
0x138a   :  { %v13454_v39 = vpop.f32.mrb[224].mxu1 }
0x138b   :  { %v17477_v12 = vpop.f32.mrb[225].mxu1 }
0x138c   :  { %v13406_v47 = vpop.f32.mrb[224].mxu0  ;;  %v13457_v25 = vpop.f32.mrb[226].mxu1 }
0x138d   :  { %v14140_v8 = vpack.c.bf16 %v13454_v39, %v13406_v47  ;;  %v17471_v36 = vpop.f32.mrb[225].mxu0  ;;  %v17478_v33 = vpop.f32.mrb[227].mxu1 }
0x138e   :  { %v13409_v3 = vpop.f32.mrb[226].mxu0 }
0x138f   :  { %v17472_v63 = vpop.f32.mrb[227].mxu0  ;;  %17583 = vmatprep.mubr.msk.bf16.mxu0 %vm1437_vm3, %v14140_v8 }
0x1390   :  { %v17679_v63 = vld [vmem:[%s23015_s19] sm:$0xff]  }
0x1391   :  { %17619 = vmatprep.subr.bf16.mxu1 %v17679_v63 }
0x1392   :  { %v13550_v51 = vpop.f32.mrb[228].mxu1 }
0x1393   :  { %v17489_v22 = vpop.f32.mrb[229].mxu1 }
0x1394   :  { %v13502_v48 = vpop.f32.mrb[228].mxu0  ;;  %v13553_v6 = vpop.f32.mrb[230].mxu1 }
0x1395   :  { %v14141_v56 = vpack.c.bf16 %v13550_v51, %v13502_v48  ;;  %v17483_v50 = vpop.f32.mrb[229].mxu0  ;;  %v17490_v46 = vpop.f32.mrb[231].mxu1  ;;  %v23353_v6 = vld [vmem:[#allocation63_spill] sm:$0xff] }
0x1396   :  { %v13505_v1 = vpop.f32.mrb[230].mxu0  ;;  %v23354_v50 = vld [vmem:[#allocation59_spill] sm:$0xff] }
0x1397   :  { %v17484_v11 = vpop.f32.mrb[231].mxu0  ;;  %17584 = vmatmul.mubr.msk.bf16.gmra.mrb[16].mxu0 %vm1437_vm3, %v14141_v56 }
0x1398   :  { %v23355_v11 = vld [vmem:[#allocation61_spill] sm:$0xff] }
0x139a   :  { %v13646_v10 = vpop.f32.mrb[232].mxu1 }
0x139b   :  { %v17501_v14 = vpop.f32.mrb[233].mxu1 }
0x139c   :  { %v13598_v44 = vpop.f32.mrb[232].mxu0  ;;  %v13649_v18 = vpop.f32.mrb[234].mxu1  ;;  %v23356_v14 = vld [vmem:[#allocation62_spill] sm:$0xff] }
0x139d   :  { %v14142_v55 = vpack.c.bf16 %v13646_v10, %v13598_v44  ;;  %v17495_v37 = vpop.f32.mrb[233].mxu0  ;;  %v17502_v32 = vpop.f32.mrb[235].mxu1 }
0x139e   :  { %v13601_v59 = vpop.f32.mrb[234].mxu0  ;;  %v17680_v37 = vld [vmem:[%s23015_s19 + $0x8] sm:$0xff]  }
0x139f   :  { %v17496_v30 = vpop.f32.mrb[235].mxu0  ;;  %17587 = vmatprep.mubr.msk.bf16.mxu0 %vm1437_vm3, %v14142_v55 }
0x13a2   :  { %v13742_v61 = vpop.f32.mrb[236].mxu1 }
0x13a3   :  { %v17513_v42 = vpop.f32.mrb[237].mxu1 }
0x13a4   :  { %v13745_v4 = vpop.f32.mrb[238].mxu1 }
0x13a5   :  { %v17514_v62 = vpop.f32.mrb[239].mxu1  ;;  %v23358_v4 = vld [vmem:[#allocation65_spill] sm:$0xff] }
0x13aa   :  { %v13838_v45 = vpop.f32.mrb[240].mxu1 }
0x13ab   :  { %v17525_v41 = vpop.f32.mrb[241].mxu1 }
0x13ac   :  { %v13841_v9 = vpop.f32.mrb[242].mxu1  ;;  %v23359_v41 = vld [vmem:[#allocation60_spill] sm:$0xff] }
0x13ad   :  { %v17526_v13 = vpop.f32.mrb[243].mxu1 }
0x13ae   :  { %v23360_v13 = vld [vmem:[#allocation70_spill] sm:$0xff] }
0x13b2   :  { %v13934_v57 = vpop.f32.mrb[244].mxu1 }
0x13b3   :  { %v17537_v53 = vpop.f32.mrb[245].mxu1 }
0x13b4   :  { %v13937_v0 = vpop.f32.mrb[246].mxu1 }
0x13b5   :  { %v17538_v26 = vpop.f32.mrb[247].mxu1 }
0x13c6   :  { %v13694_v35 = vpop.f32.mrb[236].mxu0 }
0x13c7   :  { %v14143_v38 = vpack.c.bf16 %v13742_v61, %v13694_v35  ;;  %v17507_v28 = vpop.f32.mrb[237].mxu0  ;;  %v23357_v61 = vld [vmem:[#allocation71_spill] sm:$0xff] }
0x13c8   :  { %v13697_v2 = vpop.f32.mrb[238].mxu0  ;;  %v23361_v28 = vld [vmem:[#allocation73_spill] sm:$0xff] }
0x13c9   :  { %v17508_v5 = vpop.f32.mrb[239].mxu0  ;;  %17588 = vmatmul.mubr.msk.bf16.gmra.mrb[20].mxu0 %vm1437_vm3, %v14143_v38 }
0x13ca   :  { %v23362_v5 = vld [vmem:[#allocation64_spill] sm:$0xff] }
0x13ce   :  { %v13790_v16 = vpop.f32.mrb[240].mxu0 }
0x13cf   :  { %v14144_v49 = vpack.c.bf16 %v13838_v45, %v13790_v16  ;;  %v17519_v24 = vpop.f32.mrb[241].mxu0 }
0x13d0   :  { %v13793_v20 = vpop.f32.mrb[242].mxu0  ;;  %v23363_v24 = vld [vmem:[#allocation72_spill] sm:$0xff] }
0x13d1   :  { %v17520_v27 = vpop.f32.mrb[243].mxu0  ;;  %17591 = vmatprep.mubr.msk.bf16.mxu0 %vm1437_vm3, %v14144_v49 }
0x13d2   :  { %v23364_v27 = vld [vmem:[#allocation69_spill] sm:$0xff] }
0x13d6   :  { %v13886_v17 = vpop.f32.mrb[244].mxu0 }
0x13d7   :  { %v14145_v54 = vpack.c.bf16 %v13934_v57, %v13886_v17  ;;  %v17531_v15 = vpop.f32.mrb[245].mxu0 }
0x13d8   :  { %v13889_v52 = vpop.f32.mrb[246].mxu0 }
0x13d9   :  { %v17532_v19 = vpop.f32.mrb[247].mxu0  ;;  %17592 = vmatmul.mubr.msk.bf16.gmra.mrb[24].mxu0 %vm1437_vm3, %v14145_v54 }
0x13de   :  { %v13982_v60 = vpop.f32.mrb[248].mxu0 }
0x13df   :  { %v17543_v34 = vpop.f32.mrb[249].mxu0 }
0x13e0   :  { %v13985_v43 = vpop.f32.mrb[250].mxu0  ;;  %v14030_v58 = vpop.f32.mrb[248].mxu1  ;;  %v23365_v34 = vld [vmem:[#allocation67_spill] sm:$0xff] }
0x13e1   :  { %v14146_v21 = vpack.c.bf16 %v14030_v58, %v13982_v60  ;;  %v17544_v31 = vpop.f32.mrb[251].mxu0  ;;  %v17549_v23 = vpop.f32.mrb[249].mxu1  ;;  %v23366_v58 = vld [vmem:[#allocation66_spill] sm:$0xff] }
0x13e2   :  { %v14033_v7 = vpop.f32.mrb[250].mxu1  ;;  %v23367_v23 = vld [vmem:[#allocation74_spill] sm:$0xff] }
0x13e3   :  { %v17550_v40 = vpop.f32.mrb[251].mxu1  ;;  %17595 = vmatprep.mubr.msk.bf16.mxu0 %vm1437_vm3, %v14146_v21 }
0x13e4   :  { %v23368_v40 = vld [vmem:[#allocation75_spill] sm:$0xff] }
0x13e6   :  { %v14078_v29 = vpop.f32.mrb[252].mxu0 }
0x13e7   :  { %v17555_v39 = vpop.f32.mrb[253].mxu0 }
0x13e8   :  { %v14081_v12 = vpop.f32.mrb[254].mxu0  ;;  %v14126_v47 = vpop.f32.mrb[252].mxu1 }
0x13e9   :  { %v14147_v25 = vpack.c.bf16 %v14126_v47, %v14078_v29  ;;  %v17556_v8 = vpop.f32.mrb[255].mxu0  ;;  %v17561_v36 = vpop.f32.mrb[253].mxu1 }
0x13ea   :  { %v14129_v33 = vpop.f32.mrb[254].mxu1  ;;  %v23369_v36 = vld [vmem:[#allocation50_spill] sm:$0xff] }
0x13eb   :  { %v17562_v3 = vpop.f32.mrb[255].mxu1  ;;  %17596 = vmatmul.mubr.msk.bf16.gmra.mrb[28].mxu0 %vm1437_vm3, %v14147_v25 }
0x13ec   :  { %v23370_v3 = vld [vmem:[#allocation68_spill] sm:$0xff] }
0x13ff   :  { %v17569_v51 = vpop.f32.mrb[0].mxu0 }
0x1400   :  { %v14242_v22 = vpop.f32.mrb[1].mxu0  ;;  %v14371_v56 = vadd.f32 %v17569_v51, %v23353_v6  ;;  %v23372_v6 = vld [vmem:[#allocation45_spill] sm:$0xff] }
0x1401   :  { %v17570_v48 = vpop.f32.mrb[2].mxu0  ;;  %v14369_v10 = vadd.f32 %v14242_v22, %v23355_v11  ;;  %v23371_v22 = vld [vmem:[#allocation47_spill] sm:$0xff] }
0x1402   :  { %v14372_v46 = vadd.f32 %v17570_v48, %v23354_v50  ;;  %v14245_v1 = vpop.f32.mrb[3].mxu0 }
0x1403   :  { %v14370_v44 = vadd.f32 %v14245_v1, %v23356_v14  ;;  %v23373_v14 = vld [vmem:[#allocation43_spill] sm:$0xff] }
0x1404   :  { %v14412_v18 = vpack.c.bf16 %v14372_v46, %v14371_v56 }
0x1405   :  { %v14411_v55 = vpack.c.bf16 %v14370_v44, %v14369_v10 }
0x1407   :  { %17603 = vmatprep.mubr.msk.bf16.mxu1 %vm1437_vm3, %v14411_v55 }
0x1408   :  { %17604 = vmatmul.mubr.msk.bf16.vlgmr.msra.gmra.mrb[0].mxu1 %vm1437_vm3, %v14412_v18  ;;  %v23374_v18 = vld [vmem:[#allocation44_spill] sm:$0xff] }
0x1409   :  { %17620 = vmatpush3.bf16.msra.mxu1 %v17679_v63 }
0x140a   :  { %17621 = vmatprep.subr.bf16.mxu1 %v17680_v37 }
0x140d   :  { %17622 = vmatpush3.bf16.msra.mxu1 %v17680_v37 }
0x143a   :  { %v17573_v32 = vpop.f32.mrb[4].mxu0 }
0x143b   :  { %v14258_v59 = vpop.f32.mrb[5].mxu0  ;;  %v14375_v42 = vadd.f32 %v17573_v32, %v23357_v61  ;;  %v23375_v32 = vld [vmem:[#allocation51_spill] sm:$0xff] }
0x143c   :  { %v17574_v30 = vpop.f32.mrb[6].mxu0  ;;  %v14373_v9 = vadd.f32 %v14258_v59, %v23359_v41 }
0x143d   :  { %v14376_v62 = vadd.f32 %v17574_v30, %v23358_v4  ;;  %v14261_v45 = vpop.f32.mrb[7].mxu0  ;;  %v23376_v30 = vld [vmem:[#allocation49_spill] sm:$0xff] }
0x143e   :  { %v14374_v57 = vadd.f32 %v14261_v45, %v23360_v13 }
0x143f   :  { %v14414_v53 = vpack.c.bf16 %v14376_v62, %v14375_v42 }
0x1440   :  { %v14413_v0 = vpack.c.bf16 %v14374_v57, %v14373_v9  ;;  %v23377_v9 = vld [vmem:[#allocation52_spill] sm:$0xff]  ;;  %v23378_v57 = vld [vmem:[#allocation46_spill] sm:$0xff] }
0x1442   :  { %17607 = vmatprep.mubr.msk.bf16.mxu1 %vm1437_vm3, %v14413_v0 }
0x1443   :  { %17608 = vmatmul.mubr.msk.bf16.gmra.mrb[4].mxu1 %vm1437_vm3, %v14414_v53 }
0x144a   :  { %v17577_v26 = vpop.f32.mrb[8].mxu0 }
0x144b   :  { %v14274_v35 = vpop.f32.mrb[9].mxu0  ;;  %v14379_v2 = vadd.f32 %v17577_v26, %v23361_v28  ;;  %v23379_v26 = vld [vmem:[#allocation30_spill] sm:$0xff] }
0x144c   :  { %v17578_v38 = vpop.f32.mrb[10].mxu0  ;;  %v14377_v20 = vadd.f32 %v14274_v35, %v23363_v24 }
0x144d   :  { %v14380_v16 = vadd.f32 %v17578_v38, %v23362_v5  ;;  %v14277_v49 = vpop.f32.mrb[11].mxu0  ;;  %v23380_v38 = vld [vmem:[#allocation48_spill] sm:$0xff] }
0x144e   :  { %v14378_v17 = vadd.f32 %v14277_v49, %v23364_v27 }
0x144f   :  { %v14416_v54 = vpack.c.bf16 %v14380_v16, %v14379_v2 }
0x1450   :  { %v14415_v15 = vpack.c.bf16 %v14378_v17, %v14377_v20  ;;  %v23381_v20 = vld [vmem:[#allocation28_spill] sm:$0xff]  ;;  %v23382_v17 = vld [vmem:[#allocation29_spill] sm:$0xff] }
0x1452   :  { %17611 = vmatprep.mubr.msk.bf16.mxu1 %vm1437_vm3, %v14415_v15 }
0x1453   :  { %17612 = vmatmul.mubr.msk.bf16.gmra.mrb[8].mxu1 %vm1437_vm3, %v14416_v54 }
0x145a   :  { %v17581_v52 = vpop.f32.mrb[12].mxu0 }
0x145b   :  { %v14290_v19 = vpop.f32.mrb[13].mxu0  ;;  %v14383_v43 = vadd.f32 %v17581_v52, %v23365_v34  ;;  %v23383_v52 = vld [vmem:[#allocation34_spill] sm:$0xff] }
0x145c   :  { %v17582_v60 = vpop.f32.mrb[14].mxu0  ;;  %v14381_v7 = vadd.f32 %v14290_v19, %v23367_v23 }
0x145d   :  { %v14384_v21 = vadd.f32 %v17582_v60, %v23366_v58  ;;  %v14293_v31 = vpop.f32.mrb[15].mxu0  ;;  %v23384_v60 = vld [vmem:[#allocation27_spill] sm:$0xff] }
0x145e   :  { %v14382_v29 = vadd.f32 %v14293_v31, %v23368_v40 }
0x145f   :  { %v14418_v39 = vpack.c.bf16 %v14384_v21, %v14383_v43  ;;  %v22445_v21 = vld [vmem:[%s23014_s18] ss:$0 sm:$0xff] }
0x1460   :  { %v14417_v12 = vpack.c.bf16 %v14382_v29, %v14381_v7 }
0x1462   :  { %17615 = vmatprep.mubr.msk.bf16.mxu1 %vm1437_vm3, %v14417_v12 }
0x1463   :  { %17616 = vmatmul.mubr.msk.bf16.gmra.mrb[12].mxu1 %vm1437_vm3, %v14418_v39 }
0x146a   :  { %v17585_v47 = vpop.f32.mrb[16].mxu0 }
0x146b   :  { %v14306_v25 = vpop.f32.mrb[17].mxu0  ;;  %v14387_v33 = vadd.f32 %v17585_v47, %v23369_v36 }
0x146c   :  { %v17586_v8 = vpop.f32.mrb[18].mxu0  ;;  %v14385_v48 = vadd.f32 %v14306_v25, %v23371_v22 }
0x146d   :  { %v14388_v63 = vadd.f32 %v17586_v8, %v23370_v3  ;;  %v14309_v51 = vpop.f32.mrb[19].mxu0 }
0x146e   :  { %v14386_v56 = vadd.f32 %v14309_v51, %v23372_v6 }
0x146f   :  { %v14420_v50 = vpack.c.bf16 %v14388_v63, %v14387_v33 }
0x1470   :  { %v14419_v46 = vpack.c.bf16 %v14386_v56, %v14385_v48 }
0x1472   :  { %17623 = vmatprep.mubr.msk.bf16.mxu1 %vm1437_vm3, %v14419_v46 }
0x1473   :  { %17624 = vmatmul.mubr.msk.bf16.vlgmr.msra.gmra.mrb[16].mxu1 %vm1437_vm3, %v14420_v50 }
0x149c   :  { %v17589_v1 = vpop.f32.mrb[20].mxu0 }
0x149d   :  { %v14322_v11 = vpop.f32.mrb[21].mxu0  ;;  %v14391_v44 = vadd.f32 %v17589_v1, %v23373_v14 }
0x149e   :  { %v17590_v10 = vpop.f32.mrb[22].mxu0  ;;  %v14389_v59 = vadd.f32 %v14322_v11, %v23375_v32 }
0x149f   :  { %v14392_v55 = vadd.f32 %v17590_v10, %v23374_v18  ;;  %v14325_v37 = vpop.f32.mrb[23].mxu0 }
0x14a0   :  { %v14390_v61 = vadd.f32 %v14325_v37, %v23376_v30 }
0x14a1   :  { %v14422_v42 = vpack.c.bf16 %v14392_v55, %v14391_v44 }
0x14a2   :  { %v14421_v4 = vpack.c.bf16 %v14390_v61, %v14389_v59 }
0x14a4   :  { %17627 = vmatprep.mubr.msk.bf16.mxu1 %vm1437_vm3, %v14421_v4 }
0x14a5   :  { %17628 = vmatmul.mubr.msk.bf16.gmra.mrb[20].mxu1 %vm1437_vm3, %v14422_v42 }
0x14ac   :  { %v17593_v62 = vpop.f32.mrb[24].mxu0 }
0x14ad   :  { %v14338_v45 = vpop.f32.mrb[25].mxu0  ;;  %v14395_v13 = vadd.f32 %v17593_v62, %v23377_v9 }
0x14ae   :  { %v17594_v41 = vpop.f32.mrb[26].mxu0  ;;  %v14393_v35 = vadd.f32 %v14338_v45, %v23379_v26 }
0x14af   :  { %v14396_v53 = vadd.f32 %v17594_v41, %v23378_v57  ;;  %v14341_v0 = vpop.f32.mrb[27].mxu0 }
0x14b0   :  { %v14394_v28 = vadd.f32 %v14341_v0, %v23380_v38 }
0x14b1   :  { %v14424_v2 = vpack.c.bf16 %v14396_v53, %v14395_v13 }
0x14b2   :  { %v14423_v5 = vpack.c.bf16 %v14394_v28, %v14393_v35 }
0x14b4   :  { %17631 = vmatprep.mubr.msk.bf16.mxu1 %vm1437_vm3, %v14423_v5 }
0x14b5   :  { %17632 = vmatmul.mubr.msk.bf16.gmra.mrb[24].mxu1 %vm1437_vm3, %v14424_v2 }
0x14be   :  { %v17597_v16 = vpop.f32.mrb[28].mxu0 }
0x14bf   :  { %v14354_v49 = vpop.f32.mrb[29].mxu0  ;;  %v14399_v27 = vadd.f32 %v17597_v16, %v23381_v20 }
0x14c0   :  { %v17598_v24 = vpop.f32.mrb[30].mxu0  ;;  %v14397_v19 = vadd.f32 %v14354_v49, %v23383_v52 }
0x14c1   :  { %v14400_v54 = vadd.f32 %v17598_v24, %v23382_v17  ;;  %v14357_v15 = vpop.f32.mrb[31].mxu0 }
0x14c2   :  { %v14398_v34 = vadd.f32 %v14357_v15, %v23384_v60 }
0x14c3   :  { %v14426_v43 = vpack.c.bf16 %v14400_v54, %v14399_v27 }
0x14c4   :  { %v14425_v58 = vpack.c.bf16 %v14398_v34, %v14397_v19 }
0x14c6   :  { %17635 = vmatprep.mubr.msk.bf16.mxu1 %vm1437_vm3, %v14425_v58 }
0x14c7   :  { %17636 = vmatmul.mubr.msk.bf16.gmra.mrb[28].mxu1 %vm1437_vm3, %v14426_v43 }
0x14db   :  { %v17605_v31 = vpop.f32.mrb[0].mxu1 }
0x14dc   :  { %v14512_v23 = vadd.f32 %v17605_v31, %v22445_v21  ;;  %v14503_v7 = vpop.f32.mrb[1].mxu1  ;;  %v22722_v31 = vld [vmem:[%s23386_s29] ss:$0 sm:$0xff] }
0x14dd   :  { %v14504_v40 = vadd.f32 %v22445_v21, %v14503_v7  ;;  %v17606_v29 = vpop.f32.mrb[2].mxu1 }
0x14de   :  { %v14707_v39 = vmax.f32 %v14512_v23, 0.0  ;;  %v14515_v12 = vadd.f32 %v17606_v29, %v22445_v21  ;;  %v14506_v47 = vpop.f32.mrb[3].mxu1 }
0x14df   :  { %v14705_v25 = vmax.f32 %v14504_v40, 0.0  ;;  %v14507_v8 = vadd.f32 %v22445_v21, %v14506_v47 }
0x14e0   :  { %v14723_v36 = vmin.f32 %v14707_v39, 1.0  ;;  %v14708_v33 = vmax.f32 %v14515_v12, 0.0 }
0x14e1   :  { %v14721_v3 = vmin.f32 %v14705_v25, 1.0  ;;  %v14706_v63 = vmax.f32 %v14507_v8, 0.0 }
0x14e2   :  { %14746 = vst.msk [vmem:[%s23385_s9 + $0x40] sm:$0xff] %vm14737_vm0, %v14723_v36  ;;  %14747 = vst.msk [vmem:[%s23385_s9 + $0x48] sm:$0xff] %vm14737_vm0, %v14723_v36  ;;  %v14724_v51 = vmin.f32 %v14708_v33, 1.0 }
0x14e3   :  { %14748 = vst.msk [vmem:[%s23385_s9 + $0x50] sm:$0xff] %vm14737_vm0, %v14723_v36  ;;  %14749 = vst.msk [vmem:[%s23385_s9 + $0x58] sm:$0xff] %vm14737_vm0, %v14723_v36  ;;  %v14722_v22 = vmin.f32 %v14706_v63, 1.0 }
0x14e4   :  { %14738 = vst.msk [vmem:[%s23385_s9] sm:$0xff] %vm14737_vm0, %v14721_v3  ;;  %14739 = vst.msk [vmem:[%s23385_s9 + $0x8] sm:$0xff] %vm14737_vm0, %v14721_v3 }
0x14e5   :  { %14740 = vst.msk [vmem:[%s23385_s9 + $0x10] sm:$0xff] %vm14737_vm0, %v14721_v3  ;;  %14741 = vst.msk [vmem:[%s23385_s9 + $0x18] sm:$0xff] %vm14737_vm0, %v14721_v3 }
0x14e6   :  { %14750 = vst.msk [vmem:[%s23385_s9 + $0x60] sm:$0xff] %vm14737_vm0, %v14724_v51  ;;  %14751 = vst.msk [vmem:[%s23385_s9 + $0x68] sm:$0xff] %vm14737_vm0, %v14724_v51 }
0x14e7   :  { %14752 = vst.msk [vmem:[%s23385_s9 + $0x70] sm:$0xff] %vm14737_vm0, %v14724_v51  ;;  %14753 = vst.msk [vmem:[%s23385_s9 + $0x78] sm:$0xff] %vm14737_vm0, %v14724_v51 }
0x14e8   :  { %14742 = vst.msk [vmem:[%s23385_s9 + $0x20] sm:$0xff] %vm14737_vm0, %v14722_v22  ;;  %14743 = vst.msk [vmem:[%s23385_s9 + $0x28] sm:$0xff] %vm14737_vm0, %v14722_v22 }
0x14e9   :  { %14744 = vst.msk [vmem:[%s23385_s9 + $0x30] sm:$0xff] %vm14737_vm0, %v14722_v22  ;;  %14745 = vst.msk [vmem:[%s23385_s9 + $0x38] sm:$0xff] %vm14737_vm0, %v14722_v22 }
0x1516   :  { %v17609_v48 = vpop.f32.mrb[4].mxu1 }
0x1517   :  { %v14528_v6 = vadd.f32 %v17609_v48, %v22445_v21  ;;  %v14519_v56 = vpop.f32.mrb[5].mxu1 }
0x1518   :  { %v14520_v50 = vadd.f32 %v22445_v21, %v14519_v56  ;;  %v17610_v46 = vpop.f32.mrb[6].mxu1 }
0x1519   :  { %v14711_v1 = vmax.f32 %v14528_v6, 0.0  ;;  %v14531_v11 = vadd.f32 %v17610_v46, %v22445_v21  ;;  %v14522_v10 = vpop.f32.mrb[7].mxu1 }
0x151a   :  { %v14709_v14 = vmax.f32 %v14520_v50, 0.0  ;;  %v14523_v44 = vadd.f32 %v22445_v21, %v14522_v10 }
0x151b   :  { %v14727_v18 = vmin.f32 %v14711_v1, 1.0  ;;  %v14712_v55 = vmax.f32 %v14531_v11, 0.0 }
0x151c   :  { %v14725_v37 = vmin.f32 %v14709_v14, 1.0  ;;  %v14710_v32 = vmax.f32 %v14523_v44, 0.0 }
0x151d   :  { %14762 = vst.msk [vmem:[%s23385_s9 + $0xc0] sm:$0xff] %vm14737_vm0, %v14727_v18  ;;  %14763 = vst.msk [vmem:[%s23385_s9 + $0xc8] sm:$0xff] %vm14737_vm0, %v14727_v18  ;;  %v14728_v59 = vmin.f32 %v14712_v55, 1.0 }
0x151e   :  { %14764 = vst.msk [vmem:[%s23385_s9 + $0xd0] sm:$0xff] %vm14737_vm0, %v14727_v18  ;;  %14765 = vst.msk [vmem:[%s23385_s9 + $0xd8] sm:$0xff] %vm14737_vm0, %v14727_v18  ;;  %v14726_v30 = vmin.f32 %v14710_v32, 1.0 }
0x151f   :  { %14754 = vst.msk [vmem:[%s23385_s9 + $0x80] sm:$0xff] %vm14737_vm0, %v14725_v37  ;;  %14755 = vst.msk [vmem:[%s23385_s9 + $0x88] sm:$0xff] %vm14737_vm0, %v14725_v37 }
0x1520   :  { %14756 = vst.msk [vmem:[%s23385_s9 + $0x90] sm:$0xff] %vm14737_vm0, %v14725_v37  ;;  %14757 = vst.msk [vmem:[%s23385_s9 + $0x98] sm:$0xff] %vm14737_vm0, %v14725_v37 }
0x1521   :  { %14766 = vst.msk [vmem:[%s23385_s9 + $0xe0] sm:$0xff] %vm14737_vm0, %v14728_v59  ;;  %14767 = vst.msk [vmem:[%s23385_s9 + $0xe8] sm:$0xff] %vm14737_vm0, %v14728_v59 }
0x1522   :  { %14768 = vst.msk [vmem:[%s23385_s9 + $0xf0] sm:$0xff] %vm14737_vm0, %v14728_v59  ;;  %14769 = vst.msk [vmem:[%s23385_s9 + $0xf8] sm:$0xff] %vm14737_vm0, %v14728_v59 }
0x1523   :  { %14758 = vst.msk [vmem:[%s23385_s9 + $0xa0] sm:$0xff] %vm14737_vm0, %v14726_v30  ;;  %14759 = vst.msk [vmem:[%s23385_s9 + $0xa8] sm:$0xff] %vm14737_vm0, %v14726_v30 }
0x1524   :  { %14760 = vst.msk [vmem:[%s23385_s9 + $0xb0] sm:$0xff] %vm14737_vm0, %v14726_v30  ;;  %14761 = vst.msk [vmem:[%s23385_s9 + $0xb8] sm:$0xff] %vm14737_vm0, %v14726_v30 }
0x1526   :  { %v17613_v61 = vpop.f32.mrb[8].mxu1 }
0x1527   :  { %v14544_v42 = vadd.f32 %v17613_v61, %v22445_v21  ;;  %v14535_v4 = vpop.f32.mrb[9].mxu1 }
0x1528   :  { %v14536_v62 = vadd.f32 %v22445_v21, %v14535_v4  ;;  %v17614_v45 = vpop.f32.mrb[10].mxu1 }
0x1529   :  { %v14715_v41 = vmax.f32 %v14544_v42, 0.0  ;;  %v14547_v9 = vadd.f32 %v17614_v45, %v22445_v21  ;;  %v14538_v13 = vpop.f32.mrb[11].mxu1 }
0x152a   :  { %v14713_v57 = vmax.f32 %v14536_v62, 0.0  ;;  %v14539_v53 = vadd.f32 %v22445_v21, %v14538_v13 }
0x152b   :  { %v14731_v0 = vmin.f32 %v14715_v41, 1.0  ;;  %v14716_v26 = vmax.f32 %v14547_v9, 0.0 }
0x152c   :  { %v14729_v35 = vmin.f32 %v14713_v57, 1.0  ;;  %v14714_v38 = vmax.f32 %v14539_v53, 0.0 }
0x152d   :  { %14778 = vst.msk [vmem:[%s23385_s9 + $0x140] sm:$0xff] %vm14737_vm0, %v14731_v0  ;;  %14779 = vst.msk [vmem:[%s23385_s9 + $0x148] sm:$0xff] %vm14737_vm0, %v14731_v0  ;;  %v14732_v28 = vmin.f32 %v14716_v26, 1.0 }
0x152e   :  { %14780 = vst.msk [vmem:[%s23385_s9 + $0x150] sm:$0xff] %vm14737_vm0, %v14731_v0  ;;  %14781 = vst.msk [vmem:[%s23385_s9 + $0x158] sm:$0xff] %vm14737_vm0, %v14731_v0  ;;  %v14730_v2 = vmin.f32 %v14714_v38, 1.0 }
0x152f   :  { %14770 = vst.msk [vmem:[%s23385_s9 + $0x100] sm:$0xff] %vm14737_vm0, %v14729_v35  ;;  %14771 = vst.msk [vmem:[%s23385_s9 + $0x108] sm:$0xff] %vm14737_vm0, %v14729_v35 }
0x1530   :  { %14772 = vst.msk [vmem:[%s23385_s9 + $0x110] sm:$0xff] %vm14737_vm0, %v14729_v35  ;;  %14773 = vst.msk [vmem:[%s23385_s9 + $0x118] sm:$0xff] %vm14737_vm0, %v14729_v35 }
0x1531   :  { %14782 = vst.msk [vmem:[%s23385_s9 + $0x160] sm:$0xff] %vm14737_vm0, %v14732_v28  ;;  %14783 = vst.msk [vmem:[%s23385_s9 + $0x168] sm:$0xff] %vm14737_vm0, %v14732_v28 }
0x1532   :  { %14784 = vst.msk [vmem:[%s23385_s9 + $0x170] sm:$0xff] %vm14737_vm0, %v14732_v28  ;;  %14785 = vst.msk [vmem:[%s23385_s9 + $0x178] sm:$0xff] %vm14737_vm0, %v14732_v28 }
0x1533   :  { %14774 = vst.msk [vmem:[%s23385_s9 + $0x120] sm:$0xff] %vm14737_vm0, %v14730_v2  ;;  %14775 = vst.msk [vmem:[%s23385_s9 + $0x128] sm:$0xff] %vm14737_vm0, %v14730_v2 }
0x1534   :  { %14776 = vst.msk [vmem:[%s23385_s9 + $0x130] sm:$0xff] %vm14737_vm0, %v14730_v2  ;;  %14777 = vst.msk [vmem:[%s23385_s9 + $0x138] sm:$0xff] %vm14737_vm0, %v14730_v2 }
0x1536   :  { %v17617_v5 = vpop.f32.mrb[12].mxu1 }
0x1537   :  { %v14560_v16 = vadd.f32 %v17617_v5, %v22445_v21  ;;  %v14551_v49 = vpop.f32.mrb[13].mxu1 }
0x1538   :  { %v14552_v24 = vadd.f32 %v22445_v21, %v14551_v49  ;;  %v17618_v20 = vpop.f32.mrb[14].mxu1 }
0x1539   :  { %v14719_v27 = vmax.f32 %v14560_v16, 0.0  ;;  %v14563_v17 = vadd.f32 %v17618_v20, %v22445_v21  ;;  %v14554_v54 = vpop.f32.mrb[15].mxu1 }
0x153a   :  { %v14717_v15 = vmax.f32 %v14552_v24, 0.0  ;;  %v14555_v52 = vadd.f32 %v22445_v21, %v14554_v54 }
0x153b   :  { %v14735_v19 = vmin.f32 %v14719_v27, 1.0  ;;  %v14720_v60 = vmax.f32 %v14563_v17, 0.0 }
0x153c   :  { %v14733_v34 = vmin.f32 %v14717_v15, 1.0  ;;  %v14718_v43 = vmax.f32 %v14555_v52, 0.0 }
0x153d   :  { %14794 = vst.msk [vmem:[%s23385_s9 + $0x1c0] sm:$0xff] %vm14737_vm0, %v14735_v19  ;;  %14795 = vst.msk [vmem:[%s23385_s9 + $0x1c8] sm:$0xff] %vm14737_vm0, %v14735_v19  ;;  %v14736_v58 = vmin.f32 %v14720_v60, 1.0 }
0x153e   :  { %14796 = vst.msk [vmem:[%s23385_s9 + $0x1d0] sm:$0xff] %vm14737_vm0, %v14735_v19  ;;  %14797 = vst.msk [vmem:[%s23385_s9 + $0x1d8] sm:$0xff] %vm14737_vm0, %v14735_v19  ;;  %v14734_v21 = vmin.f32 %v14718_v43, 1.0 }
0x153f   :  { %14786 = vst.msk [vmem:[%s23385_s9 + $0x180] sm:$0xff] %vm14737_vm0, %v14733_v34  ;;  %14787 = vst.msk [vmem:[%s23385_s9 + $0x188] sm:$0xff] %vm14737_vm0, %v14733_v34 }
0x1540   :  { %14788 = vst.msk [vmem:[%s23385_s9 + $0x190] sm:$0xff] %vm14737_vm0, %v14733_v34  ;;  %14789 = vst.msk [vmem:[%s23385_s9 + $0x198] sm:$0xff] %vm14737_vm0, %v14733_v34 }
0x1541   :  { %14798 = vst.msk [vmem:[%s23385_s9 + $0x1e0] sm:$0xff] %vm14737_vm0, %v14736_v58  ;;  %14799 = vst.msk [vmem:[%s23385_s9 + $0x1e8] sm:$0xff] %vm14737_vm0, %v14736_v58 }
0x1542   :  { %14800 = vst.msk [vmem:[%s23385_s9 + $0x1f0] sm:$0xff] %vm14737_vm0, %v14736_v58  ;;  %14801 = vst.msk [vmem:[%s23385_s9 + $0x1f8] sm:$0xff] %vm14737_vm0, %v14736_v58 }
0x1543   :  { %14790 = vst.msk [vmem:[%s23385_s9 + $0x1a0] sm:$0xff] %vm14737_vm0, %v14734_v21  ;;  %14791 = vst.msk [vmem:[%s23385_s9 + $0x1a8] sm:$0xff] %vm14737_vm0, %v14734_v21 }
0x1544   :  { %14792 = vst.msk [vmem:[%s23385_s9 + $0x1b0] sm:$0xff] %vm14737_vm0, %v14734_v21  ;;  %14793 = vst.msk [vmem:[%s23385_s9 + $0x1b8] sm:$0xff] %vm14737_vm0, %v14734_v21 }
0x1546   :  { %v17625_v23 = vpop.f32.mrb[16].mxu1 }
0x1547   :  { %v14651_v7 = vadd.f32 %v17625_v23, %v22722_v31  ;;  %v14642_v40 = vpop.f32.mrb[17].mxu1 }
0x1548   :  { %v14643_v29 = vadd.f32 %v22722_v31, %v14642_v40  ;;  %v17626_v39 = vpop.f32.mrb[18].mxu1 }
0x1549   :  { %v14804_v12 = vmax.f32 %v14651_v7, 0.0  ;;  %v14654_v47 = vadd.f32 %v17626_v39, %v22722_v31  ;;  %v14645_v25 = vpop.f32.mrb[19].mxu1 }
0x154a   :  { %v14802_v8 = vmax.f32 %v14643_v29, 0.0  ;;  %v14646_v36 = vadd.f32 %v22722_v31, %v14645_v25 }
0x154b   :  { %v14820_v33 = vmin.f32 %v14804_v12, 1.0  ;;  %v14805_v3 = vmax.f32 %v14654_v47, 0.0 }
0x154c   :  { %v14818_v63 = vmin.f32 %v14802_v8, 1.0  ;;  %v14803_v51 = vmax.f32 %v14646_v36, 0.0 }
0x154d   :  { %14842 = vst.msk [vmem:[%s23387_s22 + $0x40] sm:$0xff] %vm14737_vm0, %v14820_v33  ;;  %14843 = vst.msk [vmem:[%s23387_s22 + $0x48] sm:$0xff] %vm14737_vm0, %v14820_v33  ;;  %v14821_v22 = vmin.f32 %v14805_v3, 1.0 }
0x154e   :  { %14844 = vst.msk [vmem:[%s23387_s22 + $0x50] sm:$0xff] %vm14737_vm0, %v14820_v33  ;;  %14845 = vst.msk [vmem:[%s23387_s22 + $0x58] sm:$0xff] %vm14737_vm0, %v14820_v33  ;;  %v14819_v48 = vmin.f32 %v14803_v51, 1.0 }
0x154f   :  { %14834 = vst.msk [vmem:[%s23387_s22] sm:$0xff] %vm14737_vm0, %v14818_v63  ;;  %14835 = vst.msk [vmem:[%s23387_s22 + $0x8] sm:$0xff] %vm14737_vm0, %v14818_v63 }
0x1550   :  { %14836 = vst.msk [vmem:[%s23387_s22 + $0x10] sm:$0xff] %vm14737_vm0, %v14818_v63  ;;  %14837 = vst.msk [vmem:[%s23387_s22 + $0x18] sm:$0xff] %vm14737_vm0, %v14818_v63 }
0x1551   :  { %14846 = vst.msk [vmem:[%s23387_s22 + $0x60] sm:$0xff] %vm14737_vm0, %v14821_v22  ;;  %14847 = vst.msk [vmem:[%s23387_s22 + $0x68] sm:$0xff] %vm14737_vm0, %v14821_v22 }
0x1552   :  { %14848 = vst.msk [vmem:[%s23387_s22 + $0x70] sm:$0xff] %vm14737_vm0, %v14821_v22  ;;  %14849 = vst.msk [vmem:[%s23387_s22 + $0x78] sm:$0xff] %vm14737_vm0, %v14821_v22 }
0x1553   :  { %14838 = vst.msk [vmem:[%s23387_s22 + $0x20] sm:$0xff] %vm14737_vm0, %v14819_v48  ;;  %14839 = vst.msk [vmem:[%s23387_s22 + $0x28] sm:$0xff] %vm14737_vm0, %v14819_v48 }
0x1554   :  { %14840 = vst.msk [vmem:[%s23387_s22 + $0x30] sm:$0xff] %vm14737_vm0, %v14819_v48  ;;  %14841 = vst.msk [vmem:[%s23387_s22 + $0x38] sm:$0xff] %vm14737_vm0, %v14819_v48 }
0x1578   :  { %v17629_v6 = vpop.f32.mrb[20].mxu1 }
0x1579   :  { %v14667_v56 = vadd.f32 %v17629_v6, %v22722_v31  ;;  %v14658_v50 = vpop.f32.mrb[21].mxu1 }
0x157a   :  { %v14659_v46 = vadd.f32 %v22722_v31, %v14658_v50  ;;  %v17630_v1 = vpop.f32.mrb[22].mxu1 }
0x157b   :  { %v14808_v11 = vmax.f32 %v14667_v56, 0.0  ;;  %v14670_v10 = vadd.f32 %v17630_v1, %v22722_v31  ;;  %v14661_v14 = vpop.f32.mrb[23].mxu1 }
0x157c   :  { %v14806_v44 = vmax.f32 %v14659_v46, 0.0  ;;  %v14662_v18 = vadd.f32 %v22722_v31, %v14661_v14 }
0x157d   :  { %v14824_v55 = vmin.f32 %v14808_v11, 1.0  ;;  %v14809_v37 = vmax.f32 %v14670_v10, 0.0 }
0x157e   :  { %v14822_v32 = vmin.f32 %v14806_v44, 1.0  ;;  %v14807_v59 = vmax.f32 %v14662_v18, 0.0 }
0x157f   :  { %14858 = vst.msk [vmem:[%s23387_s22 + $0xc0] sm:$0xff] %vm14737_vm0, %v14824_v55  ;;  %14859 = vst.msk [vmem:[%s23387_s22 + $0xc8] sm:$0xff] %vm14737_vm0, %v14824_v55  ;;  %v14825_v30 = vmin.f32 %v14809_v37, 1.0 }
0x1580   :  { %14860 = vst.msk [vmem:[%s23387_s22 + $0xd0] sm:$0xff] %vm14737_vm0, %v14824_v55  ;;  %14861 = vst.msk [vmem:[%s23387_s22 + $0xd8] sm:$0xff] %vm14737_vm0, %v14824_v55  ;;  %v14823_v61 = vmin.f32 %v14807_v59, 1.0 }
0x1581   :  { %14850 = vst.msk [vmem:[%s23387_s22 + $0x80] sm:$0xff] %vm14737_vm0, %v14822_v32  ;;  %14851 = vst.msk [vmem:[%s23387_s22 + $0x88] sm:$0xff] %vm14737_vm0, %v14822_v32 }
0x1582   :  { %14852 = vst.msk [vmem:[%s23387_s22 + $0x90] sm:$0xff] %vm14737_vm0, %v14822_v32  ;;  %14853 = vst.msk [vmem:[%s23387_s22 + $0x98] sm:$0xff] %vm14737_vm0, %v14822_v32 }
0x1583   :  { %14862 = vst.msk [vmem:[%s23387_s22 + $0xe0] sm:$0xff] %vm14737_vm0, %v14825_v30  ;;  %14863 = vst.msk [vmem:[%s23387_s22 + $0xe8] sm:$0xff] %vm14737_vm0, %v14825_v30 }
0x1584   :  { %14864 = vst.msk [vmem:[%s23387_s22 + $0xf0] sm:$0xff] %vm14737_vm0, %v14825_v30  ;;  %14865 = vst.msk [vmem:[%s23387_s22 + $0xf8] sm:$0xff] %vm14737_vm0, %v14825_v30 }
0x1585   :  { %14854 = vst.msk [vmem:[%s23387_s22 + $0xa0] sm:$0xff] %vm14737_vm0, %v14823_v61  ;;  %14855 = vst.msk [vmem:[%s23387_s22 + $0xa8] sm:$0xff] %vm14737_vm0, %v14823_v61 }
0x1586   :  { %14856 = vst.msk [vmem:[%s23387_s22 + $0xb0] sm:$0xff] %vm14737_vm0, %v14823_v61  ;;  %14857 = vst.msk [vmem:[%s23387_s22 + $0xb8] sm:$0xff] %vm14737_vm0, %v14823_v61 }
0x1588   :  { %v17633_v42 = vpop.f32.mrb[24].mxu1 }
0x1589   :  { %v14683_v4 = vadd.f32 %v17633_v42, %v22722_v31  ;;  %v14674_v62 = vpop.f32.mrb[25].mxu1 }
0x158a   :  { %v14675_v45 = vadd.f32 %v22722_v31, %v14674_v62  ;;  %v17634_v41 = vpop.f32.mrb[26].mxu1 }
0x158b   :  { %v14812_v9 = vmax.f32 %v14683_v4, 0.0  ;;  %v14686_v13 = vadd.f32 %v17634_v41, %v22722_v31  ;;  %v14677_v57 = vpop.f32.mrb[27].mxu1 }
0x158c   :  { %v14810_v53 = vmax.f32 %v14675_v45, 0.0  ;;  %v14678_v0 = vadd.f32 %v22722_v31, %v14677_v57 }
0x158d   :  { %v14828_v26 = vmin.f32 %v14812_v9, 1.0  ;;  %v14813_v35 = vmax.f32 %v14686_v13, 0.0 }
0x158e   :  { %v14826_v38 = vmin.f32 %v14810_v53, 1.0  ;;  %v14811_v28 = vmax.f32 %v14678_v0, 0.0 }
0x158f   :  { %14874 = vst.msk [vmem:[%s23387_s22 + $0x140] sm:$0xff] %vm14737_vm0, %v14828_v26  ;;  %14875 = vst.msk [vmem:[%s23387_s22 + $0x148] sm:$0xff] %vm14737_vm0, %v14828_v26  ;;  %v14829_v2 = vmin.f32 %v14813_v35, 1.0 }
0x1590   :  { %14876 = vst.msk [vmem:[%s23387_s22 + $0x150] sm:$0xff] %vm14737_vm0, %v14828_v26  ;;  %14877 = vst.msk [vmem:[%s23387_s22 + $0x158] sm:$0xff] %vm14737_vm0, %v14828_v26  ;;  %v14827_v5 = vmin.f32 %v14811_v28, 1.0 }
0x1591   :  { %14866 = vst.msk [vmem:[%s23387_s22 + $0x100] sm:$0xff] %vm14737_vm0, %v14826_v38  ;;  %14867 = vst.msk [vmem:[%s23387_s22 + $0x108] sm:$0xff] %vm14737_vm0, %v14826_v38 }
0x1592   :  { %14868 = vst.msk [vmem:[%s23387_s22 + $0x110] sm:$0xff] %vm14737_vm0, %v14826_v38  ;;  %14869 = vst.msk [vmem:[%s23387_s22 + $0x118] sm:$0xff] %vm14737_vm0, %v14826_v38 }
0x1593   :  { %14878 = vst.msk [vmem:[%s23387_s22 + $0x160] sm:$0xff] %vm14737_vm0, %v14829_v2  ;;  %14879 = vst.msk [vmem:[%s23387_s22 + $0x168] sm:$0xff] %vm14737_vm0, %v14829_v2 }
0x1594   :  { %14880 = vst.msk [vmem:[%s23387_s22 + $0x170] sm:$0xff] %vm14737_vm0, %v14829_v2  ;;  %14881 = vst.msk [vmem:[%s23387_s22 + $0x178] sm:$0xff] %vm14737_vm0, %v14829_v2 }
0x1595   :  { %14870 = vst.msk [vmem:[%s23387_s22 + $0x120] sm:$0xff] %vm14737_vm0, %v14827_v5  ;;  %14871 = vst.msk [vmem:[%s23387_s22 + $0x128] sm:$0xff] %vm14737_vm0, %v14827_v5 }
0x1596   :  { %14872 = vst.msk [vmem:[%s23387_s22 + $0x130] sm:$0xff] %vm14737_vm0, %v14827_v5  ;;  %14873 = vst.msk [vmem:[%s23387_s22 + $0x138] sm:$0xff] %vm14737_vm0, %v14827_v5 }
0x159a   :  { %v17637_v16 = vpop.f32.mrb[28].mxu1 }
0x159b   :  { %v14699_v49 = vadd.f32 %v17637_v16, %v22722_v31  ;;  %v14690_v24 = vpop.f32.mrb[29].mxu1 }
0x159c   :  { %v14691_v20 = vadd.f32 %v22722_v31, %v14690_v24  ;;  %v17638_v27 = vpop.f32.mrb[30].mxu1 }
0x159d   :  { %v14816_v17 = vmax.f32 %v14699_v49, 0.0  ;;  %v14702_v54 = vadd.f32 %v17638_v27, %v22722_v31  ;;  %v14693_v15 = vpop.f32.mrb[31].mxu1 }
0x159e   :  { %v14814_v52 = vmax.f32 %v14691_v20, 0.0  ;;  %v14694_v19 = vadd.f32 %v22722_v31, %v14693_v15 }
0x159f   :  { %v14832_v60 = vmin.f32 %v14816_v17, 1.0  ;;  %v14817_v34 = vmax.f32 %v14702_v54, 0.0 }
0x15a0   :  { %v14830_v43 = vmin.f32 %v14814_v52, 1.0  ;;  %v14815_v58 = vmax.f32 %v14694_v19, 0.0 }
0x15a1   :  { %14890 = vst.msk [vmem:[%s23387_s22 + $0x1c0] sm:$0xff] %vm14737_vm0, %v14832_v60  ;;  %14891 = vst.msk [vmem:[%s23387_s22 + $0x1c8] sm:$0xff] %vm14737_vm0, %v14832_v60  ;;  %v14833_v21 = vmin.f32 %v14817_v34, 1.0 }
0x15a2   :  { %14892 = vst.msk [vmem:[%s23387_s22 + $0x1d0] sm:$0xff] %vm14737_vm0, %v14832_v60  ;;  %14893 = vst.msk [vmem:[%s23387_s22 + $0x1d8] sm:$0xff] %vm14737_vm0, %v14832_v60  ;;  %v14831_v31 = vmin.f32 %v14815_v58, 1.0 }
0x15a3   :  { %14882 = vst.msk [vmem:[%s23387_s22 + $0x180] sm:$0xff] %vm14737_vm0, %v14830_v43  ;;  %14883 = vst.msk [vmem:[%s23387_s22 + $0x188] sm:$0xff] %vm14737_vm0, %v14830_v43 }
0x15a4   :  { %14884 = vst.msk [vmem:[%s23387_s22 + $0x190] sm:$0xff] %vm14737_vm0, %v14830_v43  ;;  %14885 = vst.msk [vmem:[%s23387_s22 + $0x198] sm:$0xff] %vm14737_vm0, %v14830_v43 }
0x15a5   :  { %14894 = vst.msk [vmem:[%s23387_s22 + $0x1e0] sm:$0xff] %vm14737_vm0, %v14833_v21  ;;  %14895 = vst.msk [vmem:[%s23387_s22 + $0x1e8] sm:$0xff] %vm14737_vm0, %v14833_v21 }
0x15a6   :  { %14896 = vst.msk [vmem:[%s23387_s22 + $0x1f0] sm:$0xff] %vm14737_vm0, %v14833_v21  ;;  %14897 = vst.msk [vmem:[%s23387_s22 + $0x1f8] sm:$0xff] %vm14737_vm0, %v14833_v21 }
0x15a7   :  { %14886 = vst.msk [vmem:[%s23387_s22 + $0x1a0] sm:$0xff] %vm14737_vm0, %v14831_v31  ;;  %14887 = vst.msk [vmem:[%s23387_s22 + $0x1a8] sm:$0xff] %vm14737_vm0, %v14831_v31 }
0x15a8   :  { %14888 = vst.msk [vmem:[%s23387_s22 + $0x1b0] sm:$0xff] %vm14737_vm0, %v14831_v31  ;;  %14889 = vst.msk [vmem:[%s23387_s22 + $0x1b8] sm:$0xff] %vm14737_vm0, %v14831_v31 }
0x15a9   :  { %14906 = vsyncpa [#allocation5], 1 }
0x15aa   :  { %14907 = vsyncpa [#allocation7], 1 }
0x15ab   :  { %14908 = vsyncpa [#allocation10], 1 }
0x15ac   :  { %14909 = vsyncpa [#allocation13], 1 }
0x15ad   :  { %14910 = vsyncpa [#allocation16], 1 }
0x15ae   :  { %14911 = vsyncpa [#allocation19], 1 }

</bundles_post_ra>
